<compile_context>
chip_gen: v5e
topology: v5e:2x2
jax: 0.10.0
libtpu: 0.0.40
codegen_flags: <defaults>
</compile_context>

<pallas_src>
import functools

import jax
import jax.numpy as jnp
from jax import lax
from jax.experimental import pallas as pl
from jax.experimental.pallas import tpu as pltpu

B = 2            # batch
H = 2            # EEG electrodes (PyTorch H axis)
T = 750          # time samples (forced by Linear in_features = 32 * 23 = 736)
K1 = 51          # conv1 temporal kernel (pad 25 -> "same")
K3 = 15          # conv3 temporal kernel (pad 7  -> "same")
K3H = 7          # conv3 half-kernel (halo width)
P1_W = 187       # width after AvgPool2d((1,4)):  floor(750/4)
P2_W = 23        # width after AvgPool2d((1,8)):  floor(187/8)
CONV_N = 768     # lane-aligned conv1/conv2 output width (750 -> 6*128)
XPAD_W = 896     # lane-aligned padded input width (>= CONV_N + K1 - 1 = 818)
EPS = 1e-5
ACTIVATION = 0   # 0 = ELU, 1 = ReLU, else LeakyReLU(0.01) -- mirrors the module


def _make_act(activation):
    if activation == 0:
        return lambda v: jnp.where(v > 0, v, jnp.exp(jnp.minimum(v, 0.0)) - 1.0)
    elif activation == 1:
        return lambda v: jnp.maximum(v, 0.0)
    return lambda v: jnp.where(v > 0, v, 0.01 * v)


def _eegnet_kernel(activation,
                   x_ref, wf_ref, w3f_ref, pc_ref, wle_ref, bl_ref,
                   out_ref,
                   pat1_ref, pm1_ref, pad3_ref, pat3_ref):
    act = _make_act(activation)

    # ---- in-kernel im2col for the fused conv1(1x51) + conv2(2x1) ----
    # pat1[k, t]      = xpad[electrode 0, t + k]
    # pat1[51+k, t]   = xpad[electrode 1, t + k]
    for k in range(K1):
        pat1_ref[k:k + 1, :] = x_ref[0, 0:1, k:k + CONV_N]
        pat1_ref[K1 + k:K1 + k + 1, :] = x_ref[0, 1:2, k:k + CONV_N]

    # conv1 + conv2 + BN1 + BN2 fused into one (32,102)@(102,768) MXU matmul,
    # then the activation (all BN scales/biases folded host-side).
    z = jnp.dot(wf_ref[...], pat1_ref[...],
                preferred_element_type=jnp.float32)              # (32, 768)
    z = act(z + pc_ref[:, 0:1])

    # AvgPool2d((1,4)): selection matmul with an iota-generated 0.25 matrix.
    # Rows >= 748 are all-zero, so the lane-padding tail of z is ignored and
    # the pool remainder (cols 748,749) is dropped, matching PyTorch.
    for blk in range(CONV_N // 128):
        u = lax.broadcasted_iota(jnp.int32, (128, P1_W), 0) + blk * 128
        v = lax.broadcasted_iota(jnp.int32, (128, P1_W), 1)
        pm1_ref[blk * 128:(blk + 1) * 128, :] = jnp.where(
            (u >> 2) == v, 0.25, 0.0).astype(jnp.float32)
    p1 = jnp.dot(z, pm1_ref[...], preferred_element_type=jnp.float32)  # (32,187)
    # TODO(synk): Dropout(p=0.25) -- eval-mode identity (no RNG masking).

    # conv3 (1x15, "same"): write p1 into the padded scratch (only the two
    # 7-column halos are zeroed), build a (480, 187) im2col, one K=480 matmul
    # (BN3 scale already folded into w3f).
    pad3_ref[:, 0:K3H] = jnp.zeros((32, K3H), jnp.float32)
    pad3_ref[:, K3H + P1_W:K3H + P1_W + K3H] = jnp.zeros((32, K3H), jnp.float32)
    pad3_ref[:, K3H:K3H + P1_W] = p1
    for k in range(K3):
        pat3_ref[k * 32:(k + 1) * 32, :] = pad3_ref[:, k:k + P1_W]
    a3 = jnp.dot(w3f_ref[...], pat3_ref[...],
                 preferred_element_type=jnp.float32)             # (32, 187)
    a3 = act(a3 + pc_ref[:, 1:2])
    # TODO(synk): Dropout(p=0.25) -- eval-mode identity (no RNG masking).

    # AvgPool2d((1,8)) + Linear(736->2) fused: wle carries the 1/8 factor
    # expanded over the pooling window (pool2 remainder cols 184..186 dropped).
    contrib = a3[None, :, :P2_W * 8] * wle_ref[...]              # (2, 32, 184)
    logits = jnp.sum(jnp.sum(contrib, axis=2), axis=1)           # (2,)
    out_ref[...] = (logits + bl_ref[0]).reshape(1, 1, 2)


def eegnet_forward(x, params, activation=ACTIVATION):
    (w1, g1, be1, m1, v1,
     w2, g2, be2, m2, v2,
     w3, g3, be3, m3, v3,
     wl, bl) = params
    b = x.shape[0]

    def fold(g, be, m, v):           # eval-mode BatchNorm folded to scale/bias
        s = g / jnp.sqrt(v + EPS)
        return s, be - m * s

    s1, c1 = fold(g1, be1, m1, v1)
    s2, c2 = fold(g2, be2, m2, v2)
    s3, c3 = fold(g3, be3, m3, v3)

    # ---- host-side parameter folding (tiny; no activation-sized HBM temps) ----
    # padded input: 25 zeros left ("same" conv1), zero-fill to 896 lanes.
    xpad = jnp.pad(x[:, 0], ((0, 0), (0, 0), (25, XPAD_W - T - 25)))      # (B,2,896)

    # conv1 (x) conv2 (x) BN1 (x) BN2 -> one (32, 102) weight + (32,) bias.
    # groups=16 depthwise expansion: output channel oc uses conv1 channel oc//2.
    w1e = jnp.repeat(w1.reshape(16, K1), 2, axis=0)                       # (32, 51)
    s1e = jnp.repeat(s1, 2)
    c1e = jnp.repeat(c1, 2)
    w2h0 = w2[:, 0, 0, 0]                                                 # (32,)
    w2h1 = w2[:, 0, 1, 0]
    a0 = (s2 * w2h0 * s1e)[:, None]
    a1 = (s2 * w2h1 * s1e)[:, None]
    bvec = s2 * (w2h0 + w2h1) * c1e + c2                                  # (32,)
    wfused = jnp.concatenate([a0 * w1e, a1 * w1e], axis=1)                # (32, 102)

    # conv3 weight with BN3 scale folded; column index = k*32 + c.
    w3km = jnp.transpose(w3[:, :, 0, :], (0, 2, 1))                       # (o, k, c)
    w3f = (s3[:, None, None] * w3km).reshape(32, K3 * 32)                 # (32, 480)

    # per-channel vectors packed into one block: [:,0]=fused conv bias, [:,1]=BN3 bias
    perch = jnp.stack([bvec, c3], axis=1)                                 # (32, 2)

    # AvgPool2d((1,8)) folded into the linear weight (PyTorch c*23+t flatten order).
    wle = jnp.repeat(wl.reshape(2, 32, P2_W), 8, axis=2) * 0.125          # (2,32,184)
    blin = bl.reshape(1, 2)

    const2 = lambda i: (0, 0)
    const3 = lambda i: (0, 0, 0)

    out = pl.pallas_call(
        functools.partial(_eegnet_kernel, activation),
        out_shape=jax.ShapeDtypeStruct((b, 1, 2), jnp.float32),
        grid=(b,),
        in_specs=[
            pl.BlockSpec((1, H, XPAD_W), lambda i: (i, 0, 0)),   # padded raw input
            pl.BlockSpec((32, 2 * K1), const2),                  # fused conv1/conv2 weight
            pl.BlockSpec((32, K3 * 32), const2),                 # fused conv3 weight
            pl.BlockSpec((32, 2), const2),                       # packed per-channel biases
            pl.BlockSpec((2, 32, P2_W * 8), const3),             # pool2-folded linear weight
            pl.BlockSpec((1, 2), const2),                        # linear bias
        ],
        out_specs=pl.BlockSpec((1, 1, 2), lambda i: (i, 0, 0)),
        scratch_shapes=[
            pltpu.VMEM((2 * K1, CONV_N), jnp.float32),           # conv1/conv2 im2col
            pltpu.VMEM((CONV_N, P1_W), jnp.float32),             # pool-by-4 selection matrix
            pltpu.VMEM((32, P1_W + K3 - 1), jnp.float32),        # zero-padded p1
            pltpu.VMEM((K3 * 32, P1_W), jnp.float32),            # conv3 im2col
        ],
        compiler_params=pltpu.CompilerParams(
            dimension_semantics=("parallel",)),
    )(xpad, wfused, w3f, perch, wle, blin)
    return out[:, 0, :]


def init_params(key):
    ks = jax.random.split(key, 17)
    w1 = 0.1 * jax.random.normal(ks[0], (16, 1, 1, K1), jnp.float32)
    g1 = 1.0 + 0.1 * jax.random.normal(ks[1], (16,), jnp.float32)
    be1 = 0.1 * jax.random.normal(ks[2], (16,), jnp.float32)
    m1 = 0.1 * jax.random.normal(ks[3], (16,), jnp.float32)
    v1 = 0.5 + jax.random.uniform(ks[4], (16,), jnp.float32)
    w2 = 0.2 * jax.random.normal(ks[5], (32, 1, 2, 1), jnp.float32)
    g2 = 1.0 + 0.1 * jax.random.normal(ks[6], (32,), jnp.float32)
    be2 = 0.1 * jax.random.normal(ks[7], (32,), jnp.float32)
    m2 = 0.1 * jax.random.normal(ks[8], (32,), jnp.float32)
    v2 = 0.5 + jax.random.uniform(ks[9], (32,), jnp.float32)
    w3 = 0.05 * jax.random.normal(ks[10], (32, 32, 1, K3), jnp.float32)
    g3 = 1.0 + 0.1 * jax.random.normal(ks[11], (32,), jnp.float32)
    be3 = 0.1 * jax.random.normal(ks[12], (32,), jnp.float32)
    m3 = 0.1 * jax.random.normal(ks[13], (32,), jnp.float32)
    v3 = 0.5 + jax.random.uniform(ks[14], (32,), jnp.float32)
    wl = 0.05 * jax.random.normal(ks[15], (2, 736), jnp.float32)
    bl = 0.1 * jax.random.normal(ks[16], (2,), jnp.float32)
    return (w1, g1, be1, m1, v1, w2, g2, be2, m2, v2,
            w3, g3, be3, m3, v3, wl, bl)


def eegnet_reference(x, params, activation=ACTIVATION):
    """Pure-JAX reference (eval-mode BN, identity dropout) for validation."""
    (w1, g1, be1, m1, v1, w2, g2, be2, m2, v2,
     w3, g3, be3, m3, v3, wl, bl) = params
    act = _make_act(activation)
    dn = ('NCHW', 'OIHW', 'NCHW')

    def bn(t, g, be, m, v):
        s = (g / jnp.sqrt(v + EPS))[None, :, None, None]
        return (t - m[None, :, None, None]) * s + be[None, :, None, None]

    h = lax.conv_general_dilated(x, w1, (1, 1), [(0, 0), (25, 25)],
                                 dimension_numbers=dn)
    h = bn(h, g1, be1, m1, v1)
    h = lax.conv_general_dilated(h, w2, (1, 1), [(0, 0), (0, 0)],
                                 dimension_numbers=dn, feature_group_count=16)
    h = act(bn(h, g2, be2, m2, v2))
    h = h[:, :, :, :P1_W * 4].reshape(h.shape[0], 32, 1, P1_W, 4).mean(-1)
    h = lax.conv_general_dilated(h, w3, (1, 1), [(0, 0), (7, 7)],
                                 dimension_numbers=dn)
    h = act(bn(h, g3, be3, m3, v3))
    h = h[:, :, :, :P2_W * 8].reshape(h.shape[0], 32, 1, P2_W, 8).mean(-1)
    res = h.reshape(h.shape[0], 32 * P2_W)
    return res @ wl.T + bl[None, :]


if __name__ == "__main__":
    key = jax.random.PRNGKey(0)
    pkey, xkey = jax.random.split(key)
    params = init_params(pkey)
    x = jax.random.normal(xkey, (B, 1, H, T), jnp.float32)

    fwd = jax.jit(eegnet_forward)
    out = jax.block_until_ready(fwd(x, params))
    ref = jax.block_until_ready(eegnet_reference(x, params))

    assert out.shape == (B, 2), out.shape
    assert jnp.allclose(out, ref, atol=5e-2, rtol=5e-2), (out, ref)
    print("KERNEL_OK")
</pallas_src>

<mosaic_0001>
module attributes {stable_mosaic.version = 11 : i64} {
  func.func @_eegnet_kernel(%arg0: i32, %arg1: memref<1x2x896xf32, #tpu.memory_space<vmem>>, %arg2: memref<32x102xf32, #tpu.memory_space<vmem>>, %arg3: memref<32x480xf32, #tpu.memory_space<vmem>>, %arg4: memref<32x2xf32, #tpu.memory_space<vmem>>, %arg5: memref<2x32x184xf32, #tpu.memory_space<vmem>>, %arg6: memref<1x2xf32, #tpu.memory_space<vmem>>, %arg7: memref<1x1x2xf32, #tpu.memory_space<vmem>>, %arg8: memref<102x768xf32, #tpu.memory_space<vmem>>, %arg9: memref<768x187xf32, #tpu.memory_space<vmem>>, %arg10: memref<32x201xf32, #tpu.memory_space<vmem>>, %arg11: memref<480x187xf32, #tpu.memory_space<vmem>>) attributes {dimension_semantics = [#tpu.dimension_semantics<parallel>], iteration_bounds = array<i64: 2>, scalar_prefetch = 0 : i64, scratch_operands = 4 : i64, tpu.core_type = #tpu.core_type<tc>, window_params = [{transform_indices = @transform_0, window_bounds = array<i64: 1, 2, 896>}, {pipeline_mode = #tpu.pipeline_mode<synchronous>, transform_indices = @transform_1, window_bounds = array<i64: 32, 102>}, {pipeline_mode = #tpu.pipeline_mode<synchronous>, transform_indices = @transform_2, window_bounds = array<i64: 32, 480>}, {pipeline_mode = #tpu.pipeline_mode<synchronous>, transform_indices = @transform_3, window_bounds = array<i64: 32, 2>}, {pipeline_mode = #tpu.pipeline_mode<synchronous>, transform_indices = @transform_4, window_bounds = array<i64: 2, 32, 184>}, {pipeline_mode = #tpu.pipeline_mode<synchronous>, transform_indices = @transform_5, window_bounds = array<i64: 1, 2>}, {transform_indices = @transform_6, window_bounds = array<i64: 1, 1, 2>}]} {
    %c0 = arith.constant 0 : index
    %c0_0 = arith.constant 0 : index
    %c0_1 = arith.constant 0 : index
    %0 = vector.load %arg1[%c0, %c0_0, %c0_1] : memref<1x2x896xf32, #tpu.memory_space<vmem>>, vector<1x1x768xf32>
    %1 = vector.shape_cast %0 : vector<1x1x768xf32> to vector<1x768xf32>
    %c0_2 = arith.constant 0 : index
    %c0_3 = arith.constant 0 : index
    %2 = vector.load %arg8[%c0_2, %c0_3] : memref<102x768xf32, #tpu.memory_space<vmem>>, vector<1x768xf32>
    tpu.vector_store %arg8[%c0_2, %c0_3], %1 {strides = array<i32>} : memref<102x768xf32, #tpu.memory_space<vmem>>, vector<1x768xf32>,
    %c0_4 = arith.constant 0 : index
    %c1 = arith.constant 1 : index
    %c0_5 = arith.constant 0 : index
    %3 = vector.load %arg1[%c0_4, %c1, %c0_5] : memref<1x2x896xf32, #tpu.memory_space<vmem>>, vector<1x1x768xf32>
    %4 = vector.shape_cast %3 : vector<1x1x768xf32> to vector<1x768xf32>
    %c51 = arith.constant 51 : index
    %c0_6 = arith.constant 0 : index
    %5 = vector.load %arg8[%c51, %c0_6] : memref<102x768xf32, #tpu.memory_space<vmem>>, vector<1x768xf32>
    tpu.vector_store %arg8[%c51, %c0_6], %4 {strides = array<i32>} : memref<102x768xf32, #tpu.memory_space<vmem>>, vector<1x768xf32>,
    %c0_7 = arith.constant 0 : index
    %c0_8 = arith.constant 0 : index
    %c1_9 = arith.constant 1 : index
    %6 = vector.load %arg1[%c0_7, %c0_8, %c1_9] : memref<1x2x896xf32, #tpu.memory_space<vmem>>, vector<1x1x768xf32>
    %7 = vector.shape_cast %6 : vector<1x1x768xf32> to vector<1x768xf32>
    %c1_10 = arith.constant 1 : index
    %c0_11 = arith.constant 0 : index
    %8 = vector.load %arg8[%c1_10, %c0_11] : memref<102x768xf32, #tpu.memory_space<vmem>>, vector<1x768xf32>
    tpu.vector_store %arg8[%c1_10, %c0_11], %7 {strides = array<i32>} : memref<102x768xf32, #tpu.memory_space<vmem>>, vector<1x768xf32>,
    %c0_12 = arith.constant 0 : index
    %c1_13 = arith.constant 1 : index
    %c1_14 = arith.constant 1 : index
    %9 = vector.load %arg1[%c0_12, %c1_13, %c1_14] : memref<1x2x896xf32, #tpu.memory_space<vmem>>, vector<1x1x768xf32>
    %10 = vector.shape_cast %9 : vector<1x1x768xf32> to vector<1x768xf32>
    %c52 = arith.constant 52 : index
    %c0_15 = arith.constant 0 : index
    %11 = vector.load %arg8[%c52, %c0_15] : memref<102x768xf32, #tpu.memory_space<vmem>>, vector<1x768xf32>
    tpu.vector_store %arg8[%c52, %c0_15], %10 {strides = array<i32>} : memref<102x768xf32, #tpu.memory_space<vmem>>, vector<1x768xf32>,
    %c0_16 = arith.constant 0 : index
    %c0_17 = arith.constant 0 : index
    %c2 = arith.constant 2 : index
    %12 = vector.load %arg1[%c0_16, %c0_17, %c2] : memref<1x2x896xf32, #tpu.memory_space<vmem>>, vector<1x1x768xf32>
    %13 = vector.shape_cast %12 : vector<1x1x768xf32> to vector<1x768xf32>
    %c2_18 = arith.constant 2 : index
    %c0_19 = arith.constant 0 : index
    %14 = vector.load %arg8[%c2_18, %c0_19] : memref<102x768xf32, #tpu.memory_space<vmem>>, vector<1x768xf32>
    tpu.vector_store %arg8[%c2_18, %c0_19], %13 {strides = array<i32>} : memref<102x768xf32, #tpu.memory_space<vmem>>, vector<1x768xf32>,
    %c0_20 = arith.constant 0 : index
    %c1_21 = arith.constant 1 : index
    %c2_22 = arith.constant 2 : index
    %15 = vector.load %arg1[%c0_20, %c1_21, %c2_22] : memref<1x2x896xf32, #tpu.memory_space<vmem>>, vector<1x1x768xf32>
    %16 = vector.shape_cast %15 : vector<1x1x768xf32> to vector<1x768xf32>
    %c53 = arith.constant 53 : index
    %c0_23 = arith.constant 0 : index
    %17 = vector.load %arg8[%c53, %c0_23] : memref<102x768xf32, #tpu.memory_space<vmem>>, vector<1x768xf32>
    tpu.vector_store %arg8[%c53, %c0_23], %16 {strides = array<i32>} : memref<102x768xf32, #tpu.memory_space<vmem>>, vector<1x768xf32>,
    %c0_24 = arith.constant 0 : index
    %c0_25 = arith.constant 0 : index
    %c3 = arith.constant 3 : index
    %18 = vector.load %arg1[%c0_24, %c0_25, %c3] : memref<1x2x896xf32, #tpu.memory_space<vmem>>, vector<1x1x768xf32>
    %19 = vector.shape_cast %18 : vector<1x1x768xf32> to vector<1x768xf32>
    %c3_26 = arith.constant 3 : index
    %c0_27 = arith.constant 0 : index
    %20 = vector.load %arg8[%c3_26, %c0_27] : memref<102x768xf32, #tpu.memory_space<vmem>>, vector<1x768xf32>
    tpu.vector_store %arg8[%c3_26, %c0_27], %19 {strides = array<i32>} : memref<102x768xf32, #tpu.memory_space<vmem>>, vector<1x768xf32>,
    %c0_28 = arith.constant 0 : index
    %c1_29 = arith.constant 1 : index
    %c3_30 = arith.constant 3 : index
    %21 = vector.load %arg1[%c0_28, %c1_29, %c3_30] : memref<1x2x896xf32, #tpu.memory_space<vmem>>, vector<1x1x768xf32>
    %22 = vector.shape_cast %21 : vector<1x1x768xf32> to vector<1x768xf32>
    %c54 = arith.constant 54 : index
    %c0_31 = arith.constant 0 : index
    %23 = vector.load %arg8[%c54, %c0_31] : memref<102x768xf32, #tpu.memory_space<vmem>>, vector<1x768xf32>
    tpu.vector_store %arg8[%c54, %c0_31], %22 {strides = array<i32>} : memref<102x768xf32, #tpu.memory_space<vmem>>, vector<1x768xf32>,
    %c0_32 = arith.constant 0 : index
    %c0_33 = arith.constant 0 : index
    %c4 = arith.constant 4 : index
    %24 = vector.load %arg1[%c0_32, %c0_33, %c4] : memref<1x2x896xf32, #tpu.memory_space<vmem>>, vector<1x1x768xf32>
    %25 = vector.shape_cast %24 : vector<1x1x768xf32> to vector<1x768xf32>
    %c4_34 = arith.constant 4 : index
    %c0_35 = arith.constant 0 : index
    %26 = vector.load %arg8[%c4_34, %c0_35] : memref<102x768xf32, #tpu.memory_space<vmem>>, vector<1x768xf32>
    tpu.vector_store %arg8[%c4_34, %c0_35], %25 {strides = array<i32>} : memref<102x768xf32, #tpu.memory_space<vmem>>, vector<1x768xf32>,
    %c0_36 = arith.constant 0 : index
    %c1_37 = arith.constant 1 : index
    %c4_38 = arith.constant 4 : index
    %27 = vector.load %arg1[%c0_36, %c1_37, %c4_38] : memref<1x2x896xf32, #tpu.memory_space<vmem>>, vector<1x1x768xf32>
    %28 = vector.shape_cast %27 : vector<1x1x768xf32> to vector<1x768xf32>
    %c55 = arith.constant 55 : index
    %c0_39 = arith.constant 0 : index
    %29 = vector.load %arg8[%c55, %c0_39] : memref<102x768xf32, #tpu.memory_space<vmem>>, vector<1x768xf32>
    tpu.vector_store %arg8[%c55, %c0_39], %28 {strides = array<i32>} : memref<102x768xf32, #tpu.memory_space<vmem>>, vector<1x768xf32>,
    %c0_40 = arith.constant 0 : index
    %c0_41 = arith.constant 0 : index
    %c5 = arith.constant 5 : index
    %30 = vector.load %arg1[%c0_40, %c0_41, %c5] : memref<1x2x896xf32, #tpu.memory_space<vmem>>, vector<1x1x768xf32>
    %31 = vector.shape_cast %30 : vector<1x1x768xf32> to vector<1x768xf32>
    %c5_42 = arith.constant 5 : index
    %c0_43 = arith.constant 0 : index
    %32 = vector.load %arg8[%c5_42, %c0_43] : memref<102x768xf32, #tpu.memory_space<vmem>>, vector<1x768xf32>
    tpu.vector_store %arg8[%c5_42, %c0_43], %31 {strides = array<i32>} : memref<102x768xf32, #tpu.memory_space<vmem>>, vector<1x768xf32>,
    %c0_44 = arith.constant 0 : index
    %c1_45 = arith.constant 1 : index
    %c5_46 = arith.constant 5 : index
    %33 = vector.load %arg1[%c0_44, %c1_45, %c5_46] : memref<1x2x896xf32, #tpu.memory_space<vmem>>, vector<1x1x768xf32>
    %34 = vector.shape_cast %33 : vector<1x1x768xf32> to vector<1x768xf32>
    %c56 = arith.constant 56 : index
    %c0_47 = arith.constant 0 : index
    %35 = vector.load %arg8[%c56, %c0_47] : memref<102x768xf32, #tpu.memory_space<vmem>>, vector<1x768xf32>
    tpu.vector_store %arg8[%c56, %c0_47], %34 {strides = array<i32>} : memref<102x768xf32, #tpu.memory_space<vmem>>, vector<1x768xf32>,
    %c0_48 = arith.constant 0 : index
    %c0_49 = arith.constant 0 : index
    %c6 = arith.constant 6 : index
    %36 = vector.load %arg1[%c0_48, %c0_49, %c6] : memref<1x2x896xf32, #tpu.memory_space<vmem>>, vector<1x1x768xf32>
    %37 = vector.shape_cast %36 : vector<1x1x768xf32> to vector<1x768xf32>
    %c6_50 = arith.constant 6 : index
    %c0_51 = arith.constant 0 : index
    %38 = vector.load %arg8[%c6_50, %c0_51] : memref<102x768xf32, #tpu.memory_space<vmem>>, vector<1x768xf32>
    tpu.vector_store %arg8[%c6_50, %c0_51], %37 {strides = array<i32>} : memref<102x768xf32, #tpu.memory_space<vmem>>, vector<1x768xf32>,
    %c0_52 = arith.constant 0 : index
    %c1_53 = arith.constant 1 : index
    %c6_54 = arith.constant 6 : index
    %39 = vector.load %arg1[%c0_52, %c1_53, %c6_54] : memref<1x2x896xf32, #tpu.memory_space<vmem>>, vector<1x1x768xf32>
    %40 = vector.shape_cast %39 : vector<1x1x768xf32> to vector<1x768xf32>
    %c57 = arith.constant 57 : index
    %c0_55 = arith.constant 0 : index
    %41 = vector.load %arg8[%c57, %c0_55] : memref<102x768xf32, #tpu.memory_space<vmem>>, vector<1x768xf32>
    tpu.vector_store %arg8[%c57, %c0_55], %40 {strides = array<i32>} : memref<102x768xf32, #tpu.memory_space<vmem>>, vector<1x768xf32>,
    %c0_56 = arith.constant 0 : index
    %c0_57 = arith.constant 0 : index
    %c7 = arith.constant 7 : index
    %42 = vector.load %arg1[%c0_56, %c0_57, %c7] : memref<1x2x896xf32, #tpu.memory_space<vmem>>, vector<1x1x768xf32>
    %43 = vector.shape_cast %42 : vector<1x1x768xf32> to vector<1x768xf32>
    %c7_58 = arith.constant 7 : index
    %c0_59 = arith.constant 0 : index
    %44 = vector.load %arg8[%c7_58, %c0_59] : memref<102x768xf32, #tpu.memory_space<vmem>>, vector<1x768xf32>
    tpu.vector_store %arg8[%c7_58, %c0_59], %43 {strides = array<i32>} : memref<102x768xf32, #tpu.memory_space<vmem>>, vector<1x768xf32>,
    %c0_60 = arith.constant 0 : index
    %c1_61 = arith.constant 1 : index
    %c7_62 = arith.constant 7 : index
    %45 = vector.load %arg1[%c0_60, %c1_61, %c7_62] : memref<1x2x896xf32, #tpu.memory_space<vmem>>, vector<1x1x768xf32>
    %46 = vector.shape_cast %45 : vector<1x1x768xf32> to vector<1x768xf32>
    %c58 = arith.constant 58 : index
    %c0_63 = arith.constant 0 : index
    %47 = vector.load %arg8[%c58, %c0_63] : memref<102x768xf32, #tpu.memory_space<vmem>>, vector<1x768xf32>
    tpu.vector_store %arg8[%c58, %c0_63], %46 {strides = array<i32>} : memref<102x768xf32, #tpu.memory_space<vmem>>, vector<1x768xf32>,
    %c0_64 = arith.constant 0 : index
    %c0_65 = arith.constant 0 : index
    %c8 = arith.constant 8 : index
    %48 = vector.load %arg1[%c0_64, %c0_65, %c8] : memref<1x2x896xf32, #tpu.memory_space<vmem>>, vector<1x1x768xf32>
    %49 = vector.shape_cast %48 : vector<1x1x768xf32> to vector<1x768xf32>
    %c8_66 = arith.constant 8 : index
    %c0_67 = arith.constant 0 : index
    %50 = vector.load %arg8[%c8_66, %c0_67] : memref<102x768xf32, #tpu.memory_space<vmem>>, vector<1x768xf32>
    tpu.vector_store %arg8[%c8_66, %c0_67], %49 {strides = array<i32>} : memref<102x768xf32, #tpu.memory_space<vmem>>, vector<1x768xf32>,
    %c0_68 = arith.constant 0 : index
    %c1_69 = arith.constant 1 : index
    %c8_70 = arith.constant 8 : index
    %51 = vector.load %arg1[%c0_68, %c1_69, %c8_70] : memref<1x2x896xf32, #tpu.memory_space<vmem>>, vector<1x1x768xf32>
    %52 = vector.shape_cast %51 : vector<1x1x768xf32> to vector<1x768xf32>
    %c59 = arith.constant 59 : index
    %c0_71 = arith.constant 0 : index
    %53 = vector.load %arg8[%c59, %c0_71] : memref<102x768xf32, #tpu.memory_space<vmem>>, vector<1x768xf32>
    tpu.vector_store %arg8[%c59, %c0_71], %52 {strides = array<i32>} : memref<102x768xf32, #tpu.memory_space<vmem>>, vector<1x768xf32>,
    %c0_72 = arith.constant 0 : index
    %c0_73 = arith.constant 0 : index
    %c9 = arith.constant 9 : index
    %54 = vector.load %arg1[%c0_72, %c0_73, %c9] : memref<1x2x896xf32, #tpu.memory_space<vmem>>, vector<1x1x768xf32>
    %55 = vector.shape_cast %54 : vector<1x1x768xf32> to vector<1x768xf32>
    %c9_74 = arith.constant 9 : index
    %c0_75 = arith.constant 0 : index
    %56 = vector.load %arg8[%c9_74, %c0_75] : memref<102x768xf32, #tpu.memory_space<vmem>>, vector<1x768xf32>
    tpu.vector_store %arg8[%c9_74, %c0_75], %55 {strides = array<i32>} : memref<102x768xf32, #tpu.memory_space<vmem>>, vector<1x768xf32>,
    %c0_76 = arith.constant 0 : index
    %c1_77 = arith.constant 1 : index
    %c9_78 = arith.constant 9 : index
    %57 = vector.load %arg1[%c0_76, %c1_77, %c9_78] : memref<1x2x896xf32, #tpu.memory_space<vmem>>, vector<1x1x768xf32>
    %58 = vector.shape_cast %57 : vector<1x1x768xf32> to vector<1x768xf32>
    %c60 = arith.constant 60 : index
    %c0_79 = arith.constant 0 : index
    %59 = vector.load %arg8[%c60, %c0_79] : memref<102x768xf32, #tpu.memory_space<vmem>>, vector<1x768xf32>
    tpu.vector_store %arg8[%c60, %c0_79], %58 {strides = array<i32>} : memref<102x768xf32, #tpu.memory_space<vmem>>, vector<1x768xf32>,
    %c0_80 = arith.constant 0 : index
    %c0_81 = arith.constant 0 : index
    %c10 = arith.constant 10 : index
    %60 = vector.load %arg1[%c0_80, %c0_81, %c10] : memref<1x2x896xf32, #tpu.memory_space<vmem>>, vector<1x1x768xf32>
    %61 = vector.shape_cast %60 : vector<1x1x768xf32> to vector<1x768xf32>
    %c10_82 = arith.constant 10 : index
    %c0_83 = arith.constant 0 : index
    %62 = vector.load %arg8[%c10_82, %c0_83] : memref<102x768xf32, #tpu.memory_space<vmem>>, vector<1x768xf32>
    tpu.vector_store %arg8[%c10_82, %c0_83], %61 {strides = array<i32>} : memref<102x768xf32, #tpu.memory_space<vmem>>, vector<1x768xf32>,
    %c0_84 = arith.constant 0 : index
    %c1_85 = arith.constant 1 : index
    %c10_86 = arith.constant 10 : index
    %63 = vector.load %arg1[%c0_84, %c1_85, %c10_86] : memref<1x2x896xf32, #tpu.memory_space<vmem>>, vector<1x1x768xf32>
    %64 = vector.shape_cast %63 : vector<1x1x768xf32> to vector<1x768xf32>
    %c61 = arith.constant 61 : index
    %c0_87 = arith.constant 0 : index
    %65 = vector.load %arg8[%c61, %c0_87] : memref<102x768xf32, #tpu.memory_space<vmem>>, vector<1x768xf32>
    tpu.vector_store %arg8[%c61, %c0_87], %64 {strides = array<i32>} : memref<102x768xf32, #tpu.memory_space<vmem>>, vector<1x768xf32>,
    %c0_88 = arith.constant 0 : index
    %c0_89 = arith.constant 0 : index
    %c11 = arith.constant 11 : index
    %66 = vector.load %arg1[%c0_88, %c0_89, %c11] : memref<1x2x896xf32, #tpu.memory_space<vmem>>, vector<1x1x768xf32>
    %67 = vector.shape_cast %66 : vector<1x1x768xf32> to vector<1x768xf32>
    %c11_90 = arith.constant 11 : index
    %c0_91 = arith.constant 0 : index
    %68 = vector.load %arg8[%c11_90, %c0_91] : memref<102x768xf32, #tpu.memory_space<vmem>>, vector<1x768xf32>
    tpu.vector_store %arg8[%c11_90, %c0_91], %67 {strides = array<i32>} : memref<102x768xf32, #tpu.memory_space<vmem>>, vector<1x768xf32>,
    %c0_92 = arith.constant 0 : index
    %c1_93 = arith.constant 1 : index
    %c11_94 = arith.constant 11 : index
    %69 = vector.load %arg1[%c0_92, %c1_93, %c11_94] : memref<1x2x896xf32, #tpu.memory_space<vmem>>, vector<1x1x768xf32>
    %70 = vector.shape_cast %69 : vector<1x1x768xf32> to vector<1x768xf32>
    %c62 = arith.constant 62 : index
    %c0_95 = arith.constant 0 : index
    %71 = vector.load %arg8[%c62, %c0_95] : memref<102x768xf32, #tpu.memory_space<vmem>>, vector<1x768xf32>
    tpu.vector_store %arg8[%c62, %c0_95], %70 {strides = array<i32>} : memref<102x768xf32, #tpu.memory_space<vmem>>, vector<1x768xf32>,
    %c0_96 = arith.constant 0 : index
    %c0_97 = arith.constant 0 : index
    %c12 = arith.constant 12 : index
    %72 = vector.load %arg1[%c0_96, %c0_97, %c12] : memref<1x2x896xf32, #tpu.memory_space<vmem>>, vector<1x1x768xf32>
    %73 = vector.shape_cast %72 : vector<1x1x768xf32> to vector<1x768xf32>
    %c12_98 = arith.constant 12 : index
    %c0_99 = arith.constant 0 : index
    %74 = vector.load %arg8[%c12_98, %c0_99] : memref<102x768xf32, #tpu.memory_space<vmem>>, vector<1x768xf32>
    tpu.vector_store %arg8[%c12_98, %c0_99], %73 {strides = array<i32>} : memref<102x768xf32, #tpu.memory_space<vmem>>, vector<1x768xf32>,
    %c0_100 = arith.constant 0 : index
    %c1_101 = arith.constant 1 : index
    %c12_102 = arith.constant 12 : index
    %75 = vector.load %arg1[%c0_100, %c1_101, %c12_102] : memref<1x2x896xf32, #tpu.memory_space<vmem>>, vector<1x1x768xf32>
    %76 = vector.shape_cast %75 : vector<1x1x768xf32> to vector<1x768xf32>
    %c63 = arith.constant 63 : index
    %c0_103 = arith.constant 0 : index
    %77 = vector.load %arg8[%c63, %c0_103] : memref<102x768xf32, #tpu.memory_space<vmem>>, vector<1x768xf32>
    tpu.vector_store %arg8[%c63, %c0_103], %76 {strides = array<i32>} : memref<102x768xf32, #tpu.memory_space<vmem>>, vector<1x768xf32>,
    %c0_104 = arith.constant 0 : index
    %c0_105 = arith.constant 0 : index
    %c13 = arith.constant 13 : index
    %78 = vector.load %arg1[%c0_104, %c0_105, %c13] : memref<1x2x896xf32, #tpu.memory_space<vmem>>, vector<1x1x768xf32>
    %79 = vector.shape_cast %78 : vector<1x1x768xf32> to vector<1x768xf32>
    %c13_106 = arith.constant 13 : index
    %c0_107 = arith.constant 0 : index
    %80 = vector.load %arg8[%c13_106, %c0_107] : memref<102x768xf32, #tpu.memory_space<vmem>>, vector<1x768xf32>
    tpu.vector_store %arg8[%c13_106, %c0_107], %79 {strides = array<i32>} : memref<102x768xf32, #tpu.memory_space<vmem>>, vector<1x768xf32>,
    %c0_108 = arith.constant 0 : index
    %c1_109 = arith.constant 1 : index
    %c13_110 = arith.constant 13 : index
    %81 = vector.load %arg1[%c0_108, %c1_109, %c13_110] : memref<1x2x896xf32, #tpu.memory_space<vmem>>, vector<1x1x768xf32>
    %82 = vector.shape_cast %81 : vector<1x1x768xf32> to vector<1x768xf32>
    %c64 = arith.constant 64 : index
    %c0_111 = arith.constant 0 : index
    %83 = vector.load %arg8[%c64, %c0_111] : memref<102x768xf32, #tpu.memory_space<vmem>>, vector<1x768xf32>
    tpu.vector_store %arg8[%c64, %c0_111], %82 {strides = array<i32>} : memref<102x768xf32, #tpu.memory_space<vmem>>, vector<1x768xf32>,
    %c0_112 = arith.constant 0 : index
    %c0_113 = arith.constant 0 : index
    %c14 = arith.constant 14 : index
    %84 = vector.load %arg1[%c0_112, %c0_113, %c14] : memref<1x2x896xf32, #tpu.memory_space<vmem>>, vector<1x1x768xf32>
    %85 = vector.shape_cast %84 : vector<1x1x768xf32> to vector<1x768xf32>
    %c14_114 = arith.constant 14 : index
    %c0_115 = arith.constant 0 : index
    %86 = vector.load %arg8[%c14_114, %c0_115] : memref<102x768xf32, #tpu.memory_space<vmem>>, vector<1x768xf32>
    tpu.vector_store %arg8[%c14_114, %c0_115], %85 {strides = array<i32>} : memref<102x768xf32, #tpu.memory_space<vmem>>, vector<1x768xf32>,
    %c0_116 = arith.constant 0 : index
    %c1_117 = arith.constant 1 : index
    %c14_118 = arith.constant 14 : index
    %87 = vector.load %arg1[%c0_116, %c1_117, %c14_118] : memref<1x2x896xf32, #tpu.memory_space<vmem>>, vector<1x1x768xf32>
    %88 = vector.shape_cast %87 : vector<1x1x768xf32> to vector<1x768xf32>
    %c65 = arith.constant 65 : index
    %c0_119 = arith.constant 0 : index
    %89 = vector.load %arg8[%c65, %c0_119] : memref<102x768xf32, #tpu.memory_space<vmem>>, vector<1x768xf32>
    tpu.vector_store %arg8[%c65, %c0_119], %88 {strides = array<i32>} : memref<102x768xf32, #tpu.memory_space<vmem>>, vector<1x768xf32>,
    %c0_120 = arith.constant 0 : index
    %c0_121 = arith.constant 0 : index
    %c15 = arith.constant 15 : index
    %90 = vector.load %arg1[%c0_120, %c0_121, %c15] : memref<1x2x896xf32, #tpu.memory_space<vmem>>, vector<1x1x768xf32>
    %91 = vector.shape_cast %90 : vector<1x1x768xf32> to vector<1x768xf32>
    %c15_122 = arith.constant 15 : index
    %c0_123 = arith.constant 0 : index
    %92 = vector.load %arg8[%c15_122, %c0_123] : memref<102x768xf32, #tpu.memory_space<vmem>>, vector<1x768xf32>
    tpu.vector_store %arg8[%c15_122, %c0_123], %91 {strides = array<i32>} : memref<102x768xf32, #tpu.memory_space<vmem>>, vector<1x768xf32>,
    %c0_124 = arith.constant 0 : index
    %c1_125 = arith.constant 1 : index
    %c15_126 = arith.constant 15 : index
    %93 = vector.load %arg1[%c0_124, %c1_125, %c15_126] : memref<1x2x896xf32, #tpu.memory_space<vmem>>, vector<1x1x768xf32>
    %94 = vector.shape_cast %93 : vector<1x1x768xf32> to vector<1x768xf32>
    %c66 = arith.constant 66 : index
    %c0_127 = arith.constant 0 : index
    %95 = vector.load %arg8[%c66, %c0_127] : memref<102x768xf32, #tpu.memory_space<vmem>>, vector<1x768xf32>
    tpu.vector_store %arg8[%c66, %c0_127], %94 {strides = array<i32>} : memref<102x768xf32, #tpu.memory_space<vmem>>, vector<1x768xf32>,
    %c0_128 = arith.constant 0 : index
    %c0_129 = arith.constant 0 : index
    %c16 = arith.constant 16 : index
    %96 = vector.load %arg1[%c0_128, %c0_129, %c16] : memref<1x2x896xf32, #tpu.memory_space<vmem>>, vector<1x1x768xf32>
    %97 = vector.shape_cast %96 : vector<1x1x768xf32> to vector<1x768xf32>
    %c16_130 = arith.constant 16 : index
    %c0_131 = arith.constant 0 : index
    %98 = vector.load %arg8[%c16_130, %c0_131] : memref<102x768xf32, #tpu.memory_space<vmem>>, vector<1x768xf32>
    tpu.vector_store %arg8[%c16_130, %c0_131], %97 {strides = array<i32>} : memref<102x768xf32, #tpu.memory_space<vmem>>, vector<1x768xf32>,
    %c0_132 = arith.constant 0 : index
    %c1_133 = arith.constant 1 : index
    %c16_134 = arith.constant 16 : index
    %99 = vector.load %arg1[%c0_132, %c1_133, %c16_134] : memref<1x2x896xf32, #tpu.memory_space<vmem>>, vector<1x1x768xf32>
    %100 = vector.shape_cast %99 : vector<1x1x768xf32> to vector<1x768xf32>
    %c67 = arith.constant 67 : index
    %c0_135 = arith.constant 0 : index
    %101 = vector.load %arg8[%c67, %c0_135] : memref<102x768xf32, #tpu.memory_space<vmem>>, vector<1x768xf32>
    tpu.vector_store %arg8[%c67, %c0_135], %100 {strides = array<i32>} : memref<102x768xf32, #tpu.memory_space<vmem>>, vector<1x768xf32>,
    %c0_136 = arith.constant 0 : index
    %c0_137 = arith.constant 0 : index
    %c17 = arith.constant 17 : index
    %102 = vector.load %arg1[%c0_136, %c0_137, %c17] : memref<1x2x896xf32, #tpu.memory_space<vmem>>, vector<1x1x768xf32>
    %103 = vector.shape_cast %102 : vector<1x1x768xf32> to vector<1x768xf32>
    %c17_138 = arith.constant 17 : index
    %c0_139 = arith.constant 0 : index
    %104 = vector.load %arg8[%c17_138, %c0_139] : memref<102x768xf32, #tpu.memory_space<vmem>>, vector<1x768xf32>
    tpu.vector_store %arg8[%c17_138, %c0_139], %103 {strides = array<i32>} : memref<102x768xf32, #tpu.memory_space<vmem>>, vector<1x768xf32>,
    %c0_140 = arith.constant 0 : index
    %c1_141 = arith.constant 1 : index
    %c17_142 = arith.constant 17 : index
    %105 = vector.load %arg1[%c0_140, %c1_141, %c17_142] : memref<1x2x896xf32, #tpu.memory_space<vmem>>, vector<1x1x768xf32>
    %106 = vector.shape_cast %105 : vector<1x1x768xf32> to vector<1x768xf32>
    %c68 = arith.constant 68 : index
    %c0_143 = arith.constant 0 : index
    %107 = vector.load %arg8[%c68, %c0_143] : memref<102x768xf32, #tpu.memory_space<vmem>>, vector<1x768xf32>
    tpu.vector_store %arg8[%c68, %c0_143], %106 {strides = array<i32>} : memref<102x768xf32, #tpu.memory_space<vmem>>, vector<1x768xf32>,
    %c0_144 = arith.constant 0 : index
    %c0_145 = arith.constant 0 : index
    %c18 = arith.constant 18 : index
    %108 = vector.load %arg1[%c0_144, %c0_145, %c18] : memref<1x2x896xf32, #tpu.memory_space<vmem>>, vector<1x1x768xf32>
    %109 = vector.shape_cast %108 : vector<1x1x768xf32> to vector<1x768xf32>
    %c18_146 = arith.constant 18 : index
    %c0_147 = arith.constant 0 : index
    %110 = vector.load %arg8[%c18_146, %c0_147] : memref<102x768xf32, #tpu.memory_space<vmem>>, vector<1x768xf32>
    tpu.vector_store %arg8[%c18_146, %c0_147], %109 {strides = array<i32>} : memref<102x768xf32, #tpu.memory_space<vmem>>, vector<1x768xf32>,
    %c0_148 = arith.constant 0 : index
    %c1_149 = arith.constant 1 : index
    %c18_150 = arith.constant 18 : index
    %111 = vector.load %arg1[%c0_148, %c1_149, %c18_150] : memref<1x2x896xf32, #tpu.memory_space<vmem>>, vector<1x1x768xf32>
    %112 = vector.shape_cast %111 : vector<1x1x768xf32> to vector<1x768xf32>
    %c69 = arith.constant 69 : index
    %c0_151 = arith.constant 0 : index
    %113 = vector.load %arg8[%c69, %c0_151] : memref<102x768xf32, #tpu.memory_space<vmem>>, vector<1x768xf32>
    tpu.vector_store %arg8[%c69, %c0_151], %112 {strides = array<i32>} : memref<102x768xf32, #tpu.memory_space<vmem>>, vector<1x768xf32>,
    %c0_152 = arith.constant 0 : index
    %c0_153 = arith.constant 0 : index
    %c19 = arith.constant 19 : index
    %114 = vector.load %arg1[%c0_152, %c0_153, %c19] : memref<1x2x896xf32, #tpu.memory_space<vmem>>, vector<1x1x768xf32>
    %115 = vector.shape_cast %114 : vector<1x1x768xf32> to vector<1x768xf32>
    %c19_154 = arith.constant 19 : index
    %c0_155 = arith.constant 0 : index
    %116 = vector.load %arg8[%c19_154, %c0_155] : memref<102x768xf32, #tpu.memory_space<vmem>>, vector<1x768xf32>
    tpu.vector_store %arg8[%c19_154, %c0_155], %115 {strides = array<i32>} : memref<102x768xf32, #tpu.memory_space<vmem>>, vector<1x768xf32>,
    %c0_156 = arith.constant 0 : index
    %c1_157 = arith.constant 1 : index
    %c19_158 = arith.constant 19 : index
    %117 = vector.load %arg1[%c0_156, %c1_157, %c19_158] : memref<1x2x896xf32, #tpu.memory_space<vmem>>, vector<1x1x768xf32>
    %118 = vector.shape_cast %117 : vector<1x1x768xf32> to vector<1x768xf32>
    %c70 = arith.constant 70 : index
    %c0_159 = arith.constant 0 : index
    %119 = vector.load %arg8[%c70, %c0_159] : memref<102x768xf32, #tpu.memory_space<vmem>>, vector<1x768xf32>
    tpu.vector_store %arg8[%c70, %c0_159], %118 {strides = array<i32>} : memref<102x768xf32, #tpu.memory_space<vmem>>, vector<1x768xf32>,
    %c0_160 = arith.constant 0 : index
    %c0_161 = arith.constant 0 : index
    %c20 = arith.constant 20 : index
    %120 = vector.load %arg1[%c0_160, %c0_161, %c20] : memref<1x2x896xf32, #tpu.memory_space<vmem>>, vector<1x1x768xf32>
    %121 = vector.shape_cast %120 : vector<1x1x768xf32> to vector<1x768xf32>
    %c20_162 = arith.constant 20 : index
    %c0_163 = arith.constant 0 : index
    %122 = vector.load %arg8[%c20_162, %c0_163] : memref<102x768xf32, #tpu.memory_space<vmem>>, vector<1x768xf32>
    tpu.vector_store %arg8[%c20_162, %c0_163], %121 {strides = array<i32>} : memref<102x768xf32, #tpu.memory_space<vmem>>, vector<1x768xf32>,
    %c0_164 = arith.constant 0 : index
    %c1_165 = arith.constant 1 : index
    %c20_166 = arith.constant 20 : index
    %123 = vector.load %arg1[%c0_164, %c1_165, %c20_166] : memref<1x2x896xf32, #tpu.memory_space<vmem>>, vector<1x1x768xf32>
    %124 = vector.shape_cast %123 : vector<1x1x768xf32> to vector<1x768xf32>
    %c71 = arith.constant 71 : index
    %c0_167 = arith.constant 0 : index
    %125 = vector.load %arg8[%c71, %c0_167] : memref<102x768xf32, #tpu.memory_space<vmem>>, vector<1x768xf32>
    tpu.vector_store %arg8[%c71, %c0_167], %124 {strides = array<i32>} : memref<102x768xf32, #tpu.memory_space<vmem>>, vector<1x768xf32>,
    %c0_168 = arith.constant 0 : index
    %c0_169 = arith.constant 0 : index
    %c21 = arith.constant 21 : index
    %126 = vector.load %arg1[%c0_168, %c0_169, %c21] : memref<1x2x896xf32, #tpu.memory_space<vmem>>, vector<1x1x768xf32>
    %127 = vector.shape_cast %126 : vector<1x1x768xf32> to vector<1x768xf32>
    %c21_170 = arith.constant 21 : index
    %c0_171 = arith.constant 0 : index
    %128 = vector.load %arg8[%c21_170, %c0_171] : memref<102x768xf32, #tpu.memory_space<vmem>>, vector<1x768xf32>
    tpu.vector_store %arg8[%c21_170, %c0_171], %127 {strides = array<i32>} : memref<102x768xf32, #tpu.memory_space<vmem>>, vector<1x768xf32>,
    %c0_172 = arith.constant 0 : index
    %c1_173 = arith.constant 1 : index
    %c21_174 = arith.constant 21 : index
    %129 = vector.load %arg1[%c0_172, %c1_173, %c21_174] : memref<1x2x896xf32, #tpu.memory_space<vmem>>, vector<1x1x768xf32>
    %130 = vector.shape_cast %129 : vector<1x1x768xf32> to vector<1x768xf32>
    %c72 = arith.constant 72 : index
    %c0_175 = arith.constant 0 : index
    %131 = vector.load %arg8[%c72, %c0_175] : memref<102x768xf32, #tpu.memory_space<vmem>>, vector<1x768xf32>
    tpu.vector_store %arg8[%c72, %c0_175], %130 {strides = array<i32>} : memref<102x768xf32, #tpu.memory_space<vmem>>, vector<1x768xf32>,
    %c0_176 = arith.constant 0 : index
    %c0_177 = arith.constant 0 : index
    %c22 = arith.constant 22 : index
    %132 = vector.load %arg1[%c0_176, %c0_177, %c22] : memref<1x2x896xf32, #tpu.memory_space<vmem>>, vector<1x1x768xf32>
    %133 = vector.shape_cast %132 : vector<1x1x768xf32> to vector<1x768xf32>
    %c22_178 = arith.constant 22 : index
    %c0_179 = arith.constant 0 : index
    %134 = vector.load %arg8[%c22_178, %c0_179] : memref<102x768xf32, #tpu.memory_space<vmem>>, vector<1x768xf32>
    tpu.vector_store %arg8[%c22_178, %c0_179], %133 {strides = array<i32>} : memref<102x768xf32, #tpu.memory_space<vmem>>, vector<1x768xf32>,
    %c0_180 = arith.constant 0 : index
    %c1_181 = arith.constant 1 : index
    %c22_182 = arith.constant 22 : index
    %135 = vector.load %arg1[%c0_180, %c1_181, %c22_182] : memref<1x2x896xf32, #tpu.memory_space<vmem>>, vector<1x1x768xf32>
    %136 = vector.shape_cast %135 : vector<1x1x768xf32> to vector<1x768xf32>
    %c73 = arith.constant 73 : index
    %c0_183 = arith.constant 0 : index
    %137 = vector.load %arg8[%c73, %c0_183] : memref<102x768xf32, #tpu.memory_space<vmem>>, vector<1x768xf32>
    tpu.vector_store %arg8[%c73, %c0_183], %136 {strides = array<i32>} : memref<102x768xf32, #tpu.memory_space<vmem>>, vector<1x768xf32>,
    %c0_184 = arith.constant 0 : index
    %c0_185 = arith.constant 0 : index
    %c23 = arith.constant 23 : index
    %138 = vector.load %arg1[%c0_184, %c0_185, %c23] : memref<1x2x896xf32, #tpu.memory_space<vmem>>, vector<1x1x768xf32>
    %139 = vector.shape_cast %138 : vector<1x1x768xf32> to vector<1x768xf32>
    %c23_186 = arith.constant 23 : index
    %c0_187 = arith.constant 0 : index
    %140 = vector.load %arg8[%c23_186, %c0_187] : memref<102x768xf32, #tpu.memory_space<vmem>>, vector<1x768xf32>
    tpu.vector_store %arg8[%c23_186, %c0_187], %139 {strides = array<i32>} : memref<102x768xf32, #tpu.memory_space<vmem>>, vector<1x768xf32>,
    %c0_188 = arith.constant 0 : index
    %c1_189 = arith.constant 1 : index
    %c23_190 = arith.constant 23 : index
    %141 = vector.load %arg1[%c0_188, %c1_189, %c23_190] : memref<1x2x896xf32, #tpu.memory_space<vmem>>, vector<1x1x768xf32>
    %142 = vector.shape_cast %141 : vector<1x1x768xf32> to vector<1x768xf32>
    %c74 = arith.constant 74 : index
    %c0_191 = arith.constant 0 : index
    %143 = vector.load %arg8[%c74, %c0_191] : memref<102x768xf32, #tpu.memory_space<vmem>>, vector<1x768xf32>
    tpu.vector_store %arg8[%c74, %c0_191], %142 {strides = array<i32>} : memref<102x768xf32, #tpu.memory_space<vmem>>, vector<1x768xf32>,
    %c0_192 = arith.constant 0 : index
    %c0_193 = arith.constant 0 : index
    %c24 = arith.constant 24 : index
    %144 = vector.load %arg1[%c0_192, %c0_193, %c24] : memref<1x2x896xf32, #tpu.memory_space<vmem>>, vector<1x1x768xf32>
    %145 = vector.shape_cast %144 : vector<1x1x768xf32> to vector<1x768xf32>
    %c24_194 = arith.constant 24 : index
    %c0_195 = arith.constant 0 : index
    %146 = vector.load %arg8[%c24_194, %c0_195] : memref<102x768xf32, #tpu.memory_space<vmem>>, vector<1x768xf32>
    tpu.vector_store %arg8[%c24_194, %c0_195], %145 {strides = array<i32>} : memref<102x768xf32, #tpu.memory_space<vmem>>, vector<1x768xf32>,
    %c0_196 = arith.constant 0 : index
    %c1_197 = arith.constant 1 : index
    %c24_198 = arith.constant 24 : index
    %147 = vector.load %arg1[%c0_196, %c1_197, %c24_198] : memref<1x2x896xf32, #tpu.memory_space<vmem>>, vector<1x1x768xf32>
    %148 = vector.shape_cast %147 : vector<1x1x768xf32> to vector<1x768xf32>
    %c75 = arith.constant 75 : index
    %c0_199 = arith.constant 0 : index
    %149 = vector.load %arg8[%c75, %c0_199] : memref<102x768xf32, #tpu.memory_space<vmem>>, vector<1x768xf32>
    tpu.vector_store %arg8[%c75, %c0_199], %148 {strides = array<i32>} : memref<102x768xf32, #tpu.memory_space<vmem>>, vector<1x768xf32>,
    %c0_200 = arith.constant 0 : index
    %c0_201 = arith.constant 0 : index
    %c25 = arith.constant 25 : index
    %150 = vector.load %arg1[%c0_200, %c0_201, %c25] : memref<1x2x896xf32, #tpu.memory_space<vmem>>, vector<1x1x768xf32>
    %151 = vector.shape_cast %150 : vector<1x1x768xf32> to vector<1x768xf32>
    %c25_202 = arith.constant 25 : index
    %c0_203 = arith.constant 0 : index
    %152 = vector.load %arg8[%c25_202, %c0_203] : memref<102x768xf32, #tpu.memory_space<vmem>>, vector<1x768xf32>
    tpu.vector_store %arg8[%c25_202, %c0_203], %151 {strides = array<i32>} : memref<102x768xf32, #tpu.memory_space<vmem>>, vector<1x768xf32>,
    %c0_204 = arith.constant 0 : index
    %c1_205 = arith.constant 1 : index
    %c25_206 = arith.constant 25 : index
    %153 = vector.load %arg1[%c0_204, %c1_205, %c25_206] : memref<1x2x896xf32, #tpu.memory_space<vmem>>, vector<1x1x768xf32>
    %154 = vector.shape_cast %153 : vector<1x1x768xf32> to vector<1x768xf32>
    %c76 = arith.constant 76 : index
    %c0_207 = arith.constant 0 : index
    %155 = vector.load %arg8[%c76, %c0_207] : memref<102x768xf32, #tpu.memory_space<vmem>>, vector<1x768xf32>
    tpu.vector_store %arg8[%c76, %c0_207], %154 {strides = array<i32>} : memref<102x768xf32, #tpu.memory_space<vmem>>, vector<1x768xf32>,
    %c0_208 = arith.constant 0 : index
    %c0_209 = arith.constant 0 : index
    %c26 = arith.constant 26 : index
    %156 = vector.load %arg1[%c0_208, %c0_209, %c26] : memref<1x2x896xf32, #tpu.memory_space<vmem>>, vector<1x1x768xf32>
    %157 = vector.shape_cast %156 : vector<1x1x768xf32> to vector<1x768xf32>
    %c26_210 = arith.constant 26 : index
    %c0_211 = arith.constant 0 : index
    %158 = vector.load %arg8[%c26_210, %c0_211] : memref<102x768xf32, #tpu.memory_space<vmem>>, vector<1x768xf32>
    tpu.vector_store %arg8[%c26_210, %c0_211], %157 {strides = array<i32>} : memref<102x768xf32, #tpu.memory_space<vmem>>, vector<1x768xf32>,
    %c0_212 = arith.constant 0 : index
    %c1_213 = arith.constant 1 : index
    %c26_214 = arith.constant 26 : index
    %159 = vector.load %arg1[%c0_212, %c1_213, %c26_214] : memref<1x2x896xf32, #tpu.memory_space<vmem>>, vector<1x1x768xf32>
    %160 = vector.shape_cast %159 : vector<1x1x768xf32> to vector<1x768xf32>
    %c77 = arith.constant 77 : index
    %c0_215 = arith.constant 0 : index
    %161 = vector.load %arg8[%c77, %c0_215] : memref<102x768xf32, #tpu.memory_space<vmem>>, vector<1x768xf32>
    tpu.vector_store %arg8[%c77, %c0_215], %160 {strides = array<i32>} : memref<102x768xf32, #tpu.memory_space<vmem>>, vector<1x768xf32>,
    %c0_216 = arith.constant 0 : index
    %c0_217 = arith.constant 0 : index
    %c27 = arith.constant 27 : index
    %162 = vector.load %arg1[%c0_216, %c0_217, %c27] : memref<1x2x896xf32, #tpu.memory_space<vmem>>, vector<1x1x768xf32>
    %163 = vector.shape_cast %162 : vector<1x1x768xf32> to vector<1x768xf32>
    %c27_218 = arith.constant 27 : index
    %c0_219 = arith.constant 0 : index
    %164 = vector.load %arg8[%c27_218, %c0_219] : memref<102x768xf32, #tpu.memory_space<vmem>>, vector<1x768xf32>
    tpu.vector_store %arg8[%c27_218, %c0_219], %163 {strides = array<i32>} : memref<102x768xf32, #tpu.memory_space<vmem>>, vector<1x768xf32>,
    %c0_220 = arith.constant 0 : index
    %c1_221 = arith.constant 1 : index
    %c27_222 = arith.constant 27 : index
    %165 = vector.load %arg1[%c0_220, %c1_221, %c27_222] : memref<1x2x896xf32, #tpu.memory_space<vmem>>, vector<1x1x768xf32>
    %166 = vector.shape_cast %165 : vector<1x1x768xf32> to vector<1x768xf32>
    %c78 = arith.constant 78 : index
    %c0_223 = arith.constant 0 : index
    %167 = vector.load %arg8[%c78, %c0_223] : memref<102x768xf32, #tpu.memory_space<vmem>>, vector<1x768xf32>
    tpu.vector_store %arg8[%c78, %c0_223], %166 {strides = array<i32>} : memref<102x768xf32, #tpu.memory_space<vmem>>, vector<1x768xf32>,
    %c0_224 = arith.constant 0 : index
    %c0_225 = arith.constant 0 : index
    %c28 = arith.constant 28 : index
    %168 = vector.load %arg1[%c0_224, %c0_225, %c28] : memref<1x2x896xf32, #tpu.memory_space<vmem>>, vector<1x1x768xf32>
    %169 = vector.shape_cast %168 : vector<1x1x768xf32> to vector<1x768xf32>
    %c28_226 = arith.constant 28 : index
    %c0_227 = arith.constant 0 : index
    %170 = vector.load %arg8[%c28_226, %c0_227] : memref<102x768xf32, #tpu.memory_space<vmem>>, vector<1x768xf32>
    tpu.vector_store %arg8[%c28_226, %c0_227], %169 {strides = array<i32>} : memref<102x768xf32, #tpu.memory_space<vmem>>, vector<1x768xf32>,
    %c0_228 = arith.constant 0 : index
    %c1_229 = arith.constant 1 : index
    %c28_230 = arith.constant 28 : index
    %171 = vector.load %arg1[%c0_228, %c1_229, %c28_230] : memref<1x2x896xf32, #tpu.memory_space<vmem>>, vector<1x1x768xf32>
    %172 = vector.shape_cast %171 : vector<1x1x768xf32> to vector<1x768xf32>
    %c79 = arith.constant 79 : index
    %c0_231 = arith.constant 0 : index
    %173 = vector.load %arg8[%c79, %c0_231] : memref<102x768xf32, #tpu.memory_space<vmem>>, vector<1x768xf32>
    tpu.vector_store %arg8[%c79, %c0_231], %172 {strides = array<i32>} : memref<102x768xf32, #tpu.memory_space<vmem>>, vector<1x768xf32>,
    %c0_232 = arith.constant 0 : index
    %c0_233 = arith.constant 0 : index
    %c29 = arith.constant 29 : index
    %174 = vector.load %arg1[%c0_232, %c0_233, %c29] : memref<1x2x896xf32, #tpu.memory_space<vmem>>, vector<1x1x768xf32>
    %175 = vector.shape_cast %174 : vector<1x1x768xf32> to vector<1x768xf32>
    %c29_234 = arith.constant 29 : index
    %c0_235 = arith.constant 0 : index
    %176 = vector.load %arg8[%c29_234, %c0_235] : memref<102x768xf32, #tpu.memory_space<vmem>>, vector<1x768xf32>
    tpu.vector_store %arg8[%c29_234, %c0_235], %175 {strides = array<i32>} : memref<102x768xf32, #tpu.memory_space<vmem>>, vector<1x768xf32>,
    %c0_236 = arith.constant 0 : index
    %c1_237 = arith.constant 1 : index
    %c29_238 = arith.constant 29 : index
    %177 = vector.load %arg1[%c0_236, %c1_237, %c29_238] : memref<1x2x896xf32, #tpu.memory_space<vmem>>, vector<1x1x768xf32>
    %178 = vector.shape_cast %177 : vector<1x1x768xf32> to vector<1x768xf32>
    %c80 = arith.constant 80 : index
    %c0_239 = arith.constant 0 : index
    %179 = vector.load %arg8[%c80, %c0_239] : memref<102x768xf32, #tpu.memory_space<vmem>>, vector<1x768xf32>
    tpu.vector_store %arg8[%c80, %c0_239], %178 {strides = array<i32>} : memref<102x768xf32, #tpu.memory_space<vmem>>, vector<1x768xf32>,
    %c0_240 = arith.constant 0 : index
    %c0_241 = arith.constant 0 : index
    %c30 = arith.constant 30 : index
    %180 = vector.load %arg1[%c0_240, %c0_241, %c30] : memref<1x2x896xf32, #tpu.memory_space<vmem>>, vector<1x1x768xf32>
    %181 = vector.shape_cast %180 : vector<1x1x768xf32> to vector<1x768xf32>
    %c30_242 = arith.constant 30 : index
    %c0_243 = arith.constant 0 : index
    %182 = vector.load %arg8[%c30_242, %c0_243] : memref<102x768xf32, #tpu.memory_space<vmem>>, vector<1x768xf32>
    tpu.vector_store %arg8[%c30_242, %c0_243], %181 {strides = array<i32>} : memref<102x768xf32, #tpu.memory_space<vmem>>, vector<1x768xf32>,
    %c0_244 = arith.constant 0 : index
    %c1_245 = arith.constant 1 : index
    %c30_246 = arith.constant 30 : index
    %183 = vector.load %arg1[%c0_244, %c1_245, %c30_246] : memref<1x2x896xf32, #tpu.memory_space<vmem>>, vector<1x1x768xf32>
    %184 = vector.shape_cast %183 : vector<1x1x768xf32> to vector<1x768xf32>
    %c81 = arith.constant 81 : index
    %c0_247 = arith.constant 0 : index
    %185 = vector.load %arg8[%c81, %c0_247] : memref<102x768xf32, #tpu.memory_space<vmem>>, vector<1x768xf32>
    tpu.vector_store %arg8[%c81, %c0_247], %184 {strides = array<i32>} : memref<102x768xf32, #tpu.memory_space<vmem>>, vector<1x768xf32>,
    %c0_248 = arith.constant 0 : index
    %c0_249 = arith.constant 0 : index
    %c31 = arith.constant 31 : index
    %186 = vector.load %arg1[%c0_248, %c0_249, %c31] : memref<1x2x896xf32, #tpu.memory_space<vmem>>, vector<1x1x768xf32>
    %187 = vector.shape_cast %186 : vector<1x1x768xf32> to vector<1x768xf32>
    %c31_250 = arith.constant 31 : index
    %c0_251 = arith.constant 0 : index
    %188 = vector.load %arg8[%c31_250, %c0_251] : memref<102x768xf32, #tpu.memory_space<vmem>>, vector<1x768xf32>
    tpu.vector_store %arg8[%c31_250, %c0_251], %187 {strides = array<i32>} : memref<102x768xf32, #tpu.memory_space<vmem>>, vector<1x768xf32>,
    %c0_252 = arith.constant 0 : index
    %c1_253 = arith.constant 1 : index
    %c31_254 = arith.constant 31 : index
    %189 = vector.load %arg1[%c0_252, %c1_253, %c31_254] : memref<1x2x896xf32, #tpu.memory_space<vmem>>, vector<1x1x768xf32>
    %190 = vector.shape_cast %189 : vector<1x1x768xf32> to vector<1x768xf32>
    %c82 = arith.constant 82 : index
    %c0_255 = arith.constant 0 : index
    %191 = vector.load %arg8[%c82, %c0_255] : memref<102x768xf32, #tpu.memory_space<vmem>>, vector<1x768xf32>
    tpu.vector_store %arg8[%c82, %c0_255], %190 {strides = array<i32>} : memref<102x768xf32, #tpu.memory_space<vmem>>, vector<1x768xf32>,
    %c0_256 = arith.constant 0 : index
    %c0_257 = arith.constant 0 : index
    %c32 = arith.constant 32 : index
    %192 = vector.load %arg1[%c0_256, %c0_257, %c32] : memref<1x2x896xf32, #tpu.memory_space<vmem>>, vector<1x1x768xf32>
    %193 = vector.shape_cast %192 : vector<1x1x768xf32> to vector<1x768xf32>
    %c32_258 = arith.constant 32 : index
    %c0_259 = arith.constant 0 : index
    %194 = vector.load %arg8[%c32_258, %c0_259] : memref<102x768xf32, #tpu.memory_space<vmem>>, vector<1x768xf32>
    tpu.vector_store %arg8[%c32_258, %c0_259], %193 {strides = array<i32>} : memref<102x768xf32, #tpu.memory_space<vmem>>, vector<1x768xf32>,
    %c0_260 = arith.constant 0 : index
    %c1_261 = arith.constant 1 : index
    %c32_262 = arith.constant 32 : index
    %195 = vector.load %arg1[%c0_260, %c1_261, %c32_262] : memref<1x2x896xf32, #tpu.memory_space<vmem>>, vector<1x1x768xf32>
    %196 = vector.shape_cast %195 : vector<1x1x768xf32> to vector<1x768xf32>
    %c83 = arith.constant 83 : index
    %c0_263 = arith.constant 0 : index
    %197 = vector.load %arg8[%c83, %c0_263] : memref<102x768xf32, #tpu.memory_space<vmem>>, vector<1x768xf32>
    tpu.vector_store %arg8[%c83, %c0_263], %196 {strides = array<i32>} : memref<102x768xf32, #tpu.memory_space<vmem>>, vector<1x768xf32>,
    %c0_264 = arith.constant 0 : index
    %c0_265 = arith.constant 0 : index
    %c33 = arith.constant 33 : index
    %198 = vector.load %arg1[%c0_264, %c0_265, %c33] : memref<1x2x896xf32, #tpu.memory_space<vmem>>, vector<1x1x768xf32>
    %199 = vector.shape_cast %198 : vector<1x1x768xf32> to vector<1x768xf32>
    %c33_266 = arith.constant 33 : index
    %c0_267 = arith.constant 0 : index
    %200 = vector.load %arg8[%c33_266, %c0_267] : memref<102x768xf32, #tpu.memory_space<vmem>>, vector<1x768xf32>
    tpu.vector_store %arg8[%c33_266, %c0_267], %199 {strides = array<i32>} : memref<102x768xf32, #tpu.memory_space<vmem>>, vector<1x768xf32>,
    %c0_268 = arith.constant 0 : index
    %c1_269 = arith.constant 1 : index
    %c33_270 = arith.constant 33 : index
    %201 = vector.load %arg1[%c0_268, %c1_269, %c33_270] : memref<1x2x896xf32, #tpu.memory_space<vmem>>, vector<1x1x768xf32>
    %202 = vector.shape_cast %201 : vector<1x1x768xf32> to vector<1x768xf32>
    %c84 = arith.constant 84 : index
    %c0_271 = arith.constant 0 : index
    %203 = vector.load %arg8[%c84, %c0_271] : memref<102x768xf32, #tpu.memory_space<vmem>>, vector<1x768xf32>
    tpu.vector_store %arg8[%c84, %c0_271], %202 {strides = array<i32>} : memref<102x768xf32, #tpu.memory_space<vmem>>, vector<1x768xf32>,
    %c0_272 = arith.constant 0 : index
    %c0_273 = arith.constant 0 : index
    %c34 = arith.constant 34 : index
    %204 = vector.load %arg1[%c0_272, %c0_273, %c34] : memref<1x2x896xf32, #tpu.memory_space<vmem>>, vector<1x1x768xf32>
    %205 = vector.shape_cast %204 : vector<1x1x768xf32> to vector<1x768xf32>
    %c34_274 = arith.constant 34 : index
    %c0_275 = arith.constant 0 : index
    %206 = vector.load %arg8[%c34_274, %c0_275] : memref<102x768xf32, #tpu.memory_space<vmem>>, vector<1x768xf32>
    tpu.vector_store %arg8[%c34_274, %c0_275], %205 {strides = array<i32>} : memref<102x768xf32, #tpu.memory_space<vmem>>, vector<1x768xf32>,
    %c0_276 = arith.constant 0 : index
    %c1_277 = arith.constant 1 : index
    %c34_278 = arith.constant 34 : index
    %207 = vector.load %arg1[%c0_276, %c1_277, %c34_278] : memref<1x2x896xf32, #tpu.memory_space<vmem>>, vector<1x1x768xf32>
    %208 = vector.shape_cast %207 : vector<1x1x768xf32> to vector<1x768xf32>
    %c85 = arith.constant 85 : index
    %c0_279 = arith.constant 0 : index
    %209 = vector.load %arg8[%c85, %c0_279] : memref<102x768xf32, #tpu.memory_space<vmem>>, vector<1x768xf32>
    tpu.vector_store %arg8[%c85, %c0_279], %208 {strides = array<i32>} : memref<102x768xf32, #tpu.memory_space<vmem>>, vector<1x768xf32>,
    %c0_280 = arith.constant 0 : index
    %c0_281 = arith.constant 0 : index
    %c35 = arith.constant 35 : index
    %210 = vector.load %arg1[%c0_280, %c0_281, %c35] : memref<1x2x896xf32, #tpu.memory_space<vmem>>, vector<1x1x768xf32>
    %211 = vector.shape_cast %210 : vector<1x1x768xf32> to vector<1x768xf32>
    %c35_282 = arith.constant 35 : index
    %c0_283 = arith.constant 0 : index
    %212 = vector.load %arg8[%c35_282, %c0_283] : memref<102x768xf32, #tpu.memory_space<vmem>>, vector<1x768xf32>
    tpu.vector_store %arg8[%c35_282, %c0_283], %211 {strides = array<i32>} : memref<102x768xf32, #tpu.memory_space<vmem>>, vector<1x768xf32>,
    %c0_284 = arith.constant 0 : index
    %c1_285 = arith.constant 1 : index
    %c35_286 = arith.constant 35 : index
    %213 = vector.load %arg1[%c0_284, %c1_285, %c35_286] : memref<1x2x896xf32, #tpu.memory_space<vmem>>, vector<1x1x768xf32>
    %214 = vector.shape_cast %213 : vector<1x1x768xf32> to vector<1x768xf32>
    %c86 = arith.constant 86 : index
    %c0_287 = arith.constant 0 : index
    %215 = vector.load %arg8[%c86, %c0_287] : memref<102x768xf32, #tpu.memory_space<vmem>>, vector<1x768xf32>
    tpu.vector_store %arg8[%c86, %c0_287], %214 {strides = array<i32>} : memref<102x768xf32, #tpu.memory_space<vmem>>, vector<1x768xf32>,
    %c0_288 = arith.constant 0 : index
    %c0_289 = arith.constant 0 : index
    %c36 = arith.constant 36 : index
    %216 = vector.load %arg1[%c0_288, %c0_289, %c36] : memref<1x2x896xf32, #tpu.memory_space<vmem>>, vector<1x1x768xf32>
    %217 = vector.shape_cast %216 : vector<1x1x768xf32> to vector<1x768xf32>
    %c36_290 = arith.constant 36 : index
    %c0_291 = arith.constant 0 : index
    %218 = vector.load %arg8[%c36_290, %c0_291] : memref<102x768xf32, #tpu.memory_space<vmem>>, vector<1x768xf32>
    tpu.vector_store %arg8[%c36_290, %c0_291], %217 {strides = array<i32>} : memref<102x768xf32, #tpu.memory_space<vmem>>, vector<1x768xf32>,
    %c0_292 = arith.constant 0 : index
    %c1_293 = arith.constant 1 : index
    %c36_294 = arith.constant 36 : index
    %219 = vector.load %arg1[%c0_292, %c1_293, %c36_294] : memref<1x2x896xf32, #tpu.memory_space<vmem>>, vector<1x1x768xf32>
    %220 = vector.shape_cast %219 : vector<1x1x768xf32> to vector<1x768xf32>
    %c87 = arith.constant 87 : index
    %c0_295 = arith.constant 0 : index
    %221 = vector.load %arg8[%c87, %c0_295] : memref<102x768xf32, #tpu.memory_space<vmem>>, vector<1x768xf32>
    tpu.vector_store %arg8[%c87, %c0_295], %220 {strides = array<i32>} : memref<102x768xf32, #tpu.memory_space<vmem>>, vector<1x768xf32>,
    %c0_296 = arith.constant 0 : index
    %c0_297 = arith.constant 0 : index
    %c37 = arith.constant 37 : index
    %222 = vector.load %arg1[%c0_296, %c0_297, %c37] : memref<1x2x896xf32, #tpu.memory_space<vmem>>, vector<1x1x768xf32>
    %223 = vector.shape_cast %222 : vector<1x1x768xf32> to vector<1x768xf32>
    %c37_298 = arith.constant 37 : index
    %c0_299 = arith.constant 0 : index
    %224 = vector.load %arg8[%c37_298, %c0_299] : memref<102x768xf32, #tpu.memory_space<vmem>>, vector<1x768xf32>
    tpu.vector_store %arg8[%c37_298, %c0_299], %223 {strides = array<i32>} : memref<102x768xf32, #tpu.memory_space<vmem>>, vector<1x768xf32>,
    %c0_300 = arith.constant 0 : index
    %c1_301 = arith.constant 1 : index
    %c37_302 = arith.constant 37 : index
    %225 = vector.load %arg1[%c0_300, %c1_301, %c37_302] : memref<1x2x896xf32, #tpu.memory_space<vmem>>, vector<1x1x768xf32>
    %226 = vector.shape_cast %225 : vector<1x1x768xf32> to vector<1x768xf32>
    %c88 = arith.constant 88 : index
    %c0_303 = arith.constant 0 : index
    %227 = vector.load %arg8[%c88, %c0_303] : memref<102x768xf32, #tpu.memory_space<vmem>>, vector<1x768xf32>
    tpu.vector_store %arg8[%c88, %c0_303], %226 {strides = array<i32>} : memref<102x768xf32, #tpu.memory_space<vmem>>, vector<1x768xf32>,
    %c0_304 = arith.constant 0 : index
    %c0_305 = arith.constant 0 : index
    %c38 = arith.constant 38 : index
    %228 = vector.load %arg1[%c0_304, %c0_305, %c38] : memref<1x2x896xf32, #tpu.memory_space<vmem>>, vector<1x1x768xf32>
    %229 = vector.shape_cast %228 : vector<1x1x768xf32> to vector<1x768xf32>
    %c38_306 = arith.constant 38 : index
    %c0_307 = arith.constant 0 : index
    %230 = vector.load %arg8[%c38_306, %c0_307] : memref<102x768xf32, #tpu.memory_space<vmem>>, vector<1x768xf32>
    tpu.vector_store %arg8[%c38_306, %c0_307], %229 {strides = array<i32>} : memref<102x768xf32, #tpu.memory_space<vmem>>, vector<1x768xf32>,
    %c0_308 = arith.constant 0 : index
    %c1_309 = arith.constant 1 : index
    %c38_310 = arith.constant 38 : index
    %231 = vector.load %arg1[%c0_308, %c1_309, %c38_310] : memref<1x2x896xf32, #tpu.memory_space<vmem>>, vector<1x1x768xf32>
    %232 = vector.shape_cast %231 : vector<1x1x768xf32> to vector<1x768xf32>
    %c89 = arith.constant 89 : index
    %c0_311 = arith.constant 0 : index
    %233 = vector.load %arg8[%c89, %c0_311] : memref<102x768xf32, #tpu.memory_space<vmem>>, vector<1x768xf32>
    tpu.vector_store %arg8[%c89, %c0_311], %232 {strides = array<i32>} : memref<102x768xf32, #tpu.memory_space<vmem>>, vector<1x768xf32>,
    %c0_312 = arith.constant 0 : index
    %c0_313 = arith.constant 0 : index
    %c39 = arith.constant 39 : index
    %234 = vector.load %arg1[%c0_312, %c0_313, %c39] : memref<1x2x896xf32, #tpu.memory_space<vmem>>, vector<1x1x768xf32>
    %235 = vector.shape_cast %234 : vector<1x1x768xf32> to vector<1x768xf32>
    %c39_314 = arith.constant 39 : index
    %c0_315 = arith.constant 0 : index
    %236 = vector.load %arg8[%c39_314, %c0_315] : memref<102x768xf32, #tpu.memory_space<vmem>>, vector<1x768xf32>
    tpu.vector_store %arg8[%c39_314, %c0_315], %235 {strides = array<i32>} : memref<102x768xf32, #tpu.memory_space<vmem>>, vector<1x768xf32>,
    %c0_316 = arith.constant 0 : index
    %c1_317 = arith.constant 1 : index
    %c39_318 = arith.constant 39 : index
    %237 = vector.load %arg1[%c0_316, %c1_317, %c39_318] : memref<1x2x896xf32, #tpu.memory_space<vmem>>, vector<1x1x768xf32>
    %238 = vector.shape_cast %237 : vector<1x1x768xf32> to vector<1x768xf32>
    %c90 = arith.constant 90 : index
    %c0_319 = arith.constant 0 : index
    %239 = vector.load %arg8[%c90, %c0_319] : memref<102x768xf32, #tpu.memory_space<vmem>>, vector<1x768xf32>
    tpu.vector_store %arg8[%c90, %c0_319], %238 {strides = array<i32>} : memref<102x768xf32, #tpu.memory_space<vmem>>, vector<1x768xf32>,
    %c0_320 = arith.constant 0 : index
    %c0_321 = arith.constant 0 : index
    %c40 = arith.constant 40 : index
    %240 = vector.load %arg1[%c0_320, %c0_321, %c40] : memref<1x2x896xf32, #tpu.memory_space<vmem>>, vector<1x1x768xf32>
    %241 = vector.shape_cast %240 : vector<1x1x768xf32> to vector<1x768xf32>
    %c40_322 = arith.constant 40 : index
    %c0_323 = arith.constant 0 : index
    %242 = vector.load %arg8[%c40_322, %c0_323] : memref<102x768xf32, #tpu.memory_space<vmem>>, vector<1x768xf32>
    tpu.vector_store %arg8[%c40_322, %c0_323], %241 {strides = array<i32>} : memref<102x768xf32, #tpu.memory_space<vmem>>, vector<1x768xf32>,
    %c0_324 = arith.constant 0 : index
    %c1_325 = arith.constant 1 : index
    %c40_326 = arith.constant 40 : index
    %243 = vector.load %arg1[%c0_324, %c1_325, %c40_326] : memref<1x2x896xf32, #tpu.memory_space<vmem>>, vector<1x1x768xf32>
    %244 = vector.shape_cast %243 : vector<1x1x768xf32> to vector<1x768xf32>
    %c91 = arith.constant 91 : index
    %c0_327 = arith.constant 0 : index
    %245 = vector.load %arg8[%c91, %c0_327] : memref<102x768xf32, #tpu.memory_space<vmem>>, vector<1x768xf32>
    tpu.vector_store %arg8[%c91, %c0_327], %244 {strides = array<i32>} : memref<102x768xf32, #tpu.memory_space<vmem>>, vector<1x768xf32>,
    %c0_328 = arith.constant 0 : index
    %c0_329 = arith.constant 0 : index
    %c41 = arith.constant 41 : index
    %246 = vector.load %arg1[%c0_328, %c0_329, %c41] : memref<1x2x896xf32, #tpu.memory_space<vmem>>, vector<1x1x768xf32>
    %247 = vector.shape_cast %246 : vector<1x1x768xf32> to vector<1x768xf32>
    %c41_330 = arith.constant 41 : index
    %c0_331 = arith.constant 0 : index
    %248 = vector.load %arg8[%c41_330, %c0_331] : memref<102x768xf32, #tpu.memory_space<vmem>>, vector<1x768xf32>
    tpu.vector_store %arg8[%c41_330, %c0_331], %247 {strides = array<i32>} : memref<102x768xf32, #tpu.memory_space<vmem>>, vector<1x768xf32>,
    %c0_332 = arith.constant 0 : index
    %c1_333 = arith.constant 1 : index
    %c41_334 = arith.constant 41 : index
    %249 = vector.load %arg1[%c0_332, %c1_333, %c41_334] : memref<1x2x896xf32, #tpu.memory_space<vmem>>, vector<1x1x768xf32>
    %250 = vector.shape_cast %249 : vector<1x1x768xf32> to vector<1x768xf32>
    %c92 = arith.constant 92 : index
    %c0_335 = arith.constant 0 : index
    %251 = vector.load %arg8[%c92, %c0_335] : memref<102x768xf32, #tpu.memory_space<vmem>>, vector<1x768xf32>
    tpu.vector_store %arg8[%c92, %c0_335], %250 {strides = array<i32>} : memref<102x768xf32, #tpu.memory_space<vmem>>, vector<1x768xf32>,
    %c0_336 = arith.constant 0 : index
    %c0_337 = arith.constant 0 : index
    %c42 = arith.constant 42 : index
    %252 = vector.load %arg1[%c0_336, %c0_337, %c42] : memref<1x2x896xf32, #tpu.memory_space<vmem>>, vector<1x1x768xf32>
    %253 = vector.shape_cast %252 : vector<1x1x768xf32> to vector<1x768xf32>
    %c42_338 = arith.constant 42 : index
    %c0_339 = arith.constant 0 : index
    %254 = vector.load %arg8[%c42_338, %c0_339] : memref<102x768xf32, #tpu.memory_space<vmem>>, vector<1x768xf32>
    tpu.vector_store %arg8[%c42_338, %c0_339], %253 {strides = array<i32>} : memref<102x768xf32, #tpu.memory_space<vmem>>, vector<1x768xf32>,
    %c0_340 = arith.constant 0 : index
    %c1_341 = arith.constant 1 : index
    %c42_342 = arith.constant 42 : index
    %255 = vector.load %arg1[%c0_340, %c1_341, %c42_342] : memref<1x2x896xf32, #tpu.memory_space<vmem>>, vector<1x1x768xf32>
    %256 = vector.shape_cast %255 : vector<1x1x768xf32> to vector<1x768xf32>
    %c93 = arith.constant 93 : index
    %c0_343 = arith.constant 0 : index
    %257 = vector.load %arg8[%c93, %c0_343] : memref<102x768xf32, #tpu.memory_space<vmem>>, vector<1x768xf32>
    tpu.vector_store %arg8[%c93, %c0_343], %256 {strides = array<i32>} : memref<102x768xf32, #tpu.memory_space<vmem>>, vector<1x768xf32>,
    %c0_344 = arith.constant 0 : index
    %c0_345 = arith.constant 0 : index
    %c43 = arith.constant 43 : index
    %258 = vector.load %arg1[%c0_344, %c0_345, %c43] : memref<1x2x896xf32, #tpu.memory_space<vmem>>, vector<1x1x768xf32>
    %259 = vector.shape_cast %258 : vector<1x1x768xf32> to vector<1x768xf32>
    %c43_346 = arith.constant 43 : index
    %c0_347 = arith.constant 0 : index
    %260 = vector.load %arg8[%c43_346, %c0_347] : memref<102x768xf32, #tpu.memory_space<vmem>>, vector<1x768xf32>
    tpu.vector_store %arg8[%c43_346, %c0_347], %259 {strides = array<i32>} : memref<102x768xf32, #tpu.memory_space<vmem>>, vector<1x768xf32>,
    %c0_348 = arith.constant 0 : index
    %c1_349 = arith.constant 1 : index
    %c43_350 = arith.constant 43 : index
    %261 = vector.load %arg1[%c0_348, %c1_349, %c43_350] : memref<1x2x896xf32, #tpu.memory_space<vmem>>, vector<1x1x768xf32>
    %262 = vector.shape_cast %261 : vector<1x1x768xf32> to vector<1x768xf32>
    %c94 = arith.constant 94 : index
    %c0_351 = arith.constant 0 : index
    %263 = vector.load %arg8[%c94, %c0_351] : memref<102x768xf32, #tpu.memory_space<vmem>>, vector<1x768xf32>
    tpu.vector_store %arg8[%c94, %c0_351], %262 {strides = array<i32>} : memref<102x768xf32, #tpu.memory_space<vmem>>, vector<1x768xf32>,
    %c0_352 = arith.constant 0 : index
    %c0_353 = arith.constant 0 : index
    %c44 = arith.constant 44 : index
    %264 = vector.load %arg1[%c0_352, %c0_353, %c44] : memref<1x2x896xf32, #tpu.memory_space<vmem>>, vector<1x1x768xf32>
    %265 = vector.shape_cast %264 : vector<1x1x768xf32> to vector<1x768xf32>
    %c44_354 = arith.constant 44 : index
    %c0_355 = arith.constant 0 : index
    %266 = vector.load %arg8[%c44_354, %c0_355] : memref<102x768xf32, #tpu.memory_space<vmem>>, vector<1x768xf32>
    tpu.vector_store %arg8[%c44_354, %c0_355], %265 {strides = array<i32>} : memref<102x768xf32, #tpu.memory_space<vmem>>, vector<1x768xf32>,
    %c0_356 = arith.constant 0 : index
    %c1_357 = arith.constant 1 : index
    %c44_358 = arith.constant 44 : index
    %267 = vector.load %arg1[%c0_356, %c1_357, %c44_358] : memref<1x2x896xf32, #tpu.memory_space<vmem>>, vector<1x1x768xf32>
    %268 = vector.shape_cast %267 : vector<1x1x768xf32> to vector<1x768xf32>
    %c95 = arith.constant 95 : index
    %c0_359 = arith.constant 0 : index
    %269 = vector.load %arg8[%c95, %c0_359] : memref<102x768xf32, #tpu.memory_space<vmem>>, vector<1x768xf32>
    tpu.vector_store %arg8[%c95, %c0_359], %268 {strides = array<i32>} : memref<102x768xf32, #tpu.memory_space<vmem>>, vector<1x768xf32>,
    %c0_360 = arith.constant 0 : index
    %c0_361 = arith.constant 0 : index
    %c45 = arith.constant 45 : index
    %270 = vector.load %arg1[%c0_360, %c0_361, %c45] : memref<1x2x896xf32, #tpu.memory_space<vmem>>, vector<1x1x768xf32>
    %271 = vector.shape_cast %270 : vector<1x1x768xf32> to vector<1x768xf32>
    %c45_362 = arith.constant 45 : index
    %c0_363 = arith.constant 0 : index
    %272 = vector.load %arg8[%c45_362, %c0_363] : memref<102x768xf32, #tpu.memory_space<vmem>>, vector<1x768xf32>
    tpu.vector_store %arg8[%c45_362, %c0_363], %271 {strides = array<i32>} : memref<102x768xf32, #tpu.memory_space<vmem>>, vector<1x768xf32>,
    %c0_364 = arith.constant 0 : index
    %c1_365 = arith.constant 1 : index
    %c45_366 = arith.constant 45 : index
    %273 = vector.load %arg1[%c0_364, %c1_365, %c45_366] : memref<1x2x896xf32, #tpu.memory_space<vmem>>, vector<1x1x768xf32>
    %274 = vector.shape_cast %273 : vector<1x1x768xf32> to vector<1x768xf32>
    %c96 = arith.constant 96 : index
    %c0_367 = arith.constant 0 : index
    %275 = vector.load %arg8[%c96, %c0_367] : memref<102x768xf32, #tpu.memory_space<vmem>>, vector<1x768xf32>
    tpu.vector_store %arg8[%c96, %c0_367], %274 {strides = array<i32>} : memref<102x768xf32, #tpu.memory_space<vmem>>, vector<1x768xf32>,
    %c0_368 = arith.constant 0 : index
    %c0_369 = arith.constant 0 : index
    %c46 = arith.constant 46 : index
    %276 = vector.load %arg1[%c0_368, %c0_369, %c46] : memref<1x2x896xf32, #tpu.memory_space<vmem>>, vector<1x1x768xf32>
    %277 = vector.shape_cast %276 : vector<1x1x768xf32> to vector<1x768xf32>
    %c46_370 = arith.constant 46 : index
    %c0_371 = arith.constant 0 : index
    %278 = vector.load %arg8[%c46_370, %c0_371] : memref<102x768xf32, #tpu.memory_space<vmem>>, vector<1x768xf32>
    tpu.vector_store %arg8[%c46_370, %c0_371], %277 {strides = array<i32>} : memref<102x768xf32, #tpu.memory_space<vmem>>, vector<1x768xf32>,
    %c0_372 = arith.constant 0 : index
    %c1_373 = arith.constant 1 : index
    %c46_374 = arith.constant 46 : index
    %279 = vector.load %arg1[%c0_372, %c1_373, %c46_374] : memref<1x2x896xf32, #tpu.memory_space<vmem>>, vector<1x1x768xf32>
    %280 = vector.shape_cast %279 : vector<1x1x768xf32> to vector<1x768xf32>
    %c97 = arith.constant 97 : index
    %c0_375 = arith.constant 0 : index
    %281 = vector.load %arg8[%c97, %c0_375] : memref<102x768xf32, #tpu.memory_space<vmem>>, vector<1x768xf32>
    tpu.vector_store %arg8[%c97, %c0_375], %280 {strides = array<i32>} : memref<102x768xf32, #tpu.memory_space<vmem>>, vector<1x768xf32>,
    %c0_376 = arith.constant 0 : index
    %c0_377 = arith.constant 0 : index
    %c47 = arith.constant 47 : index
    %282 = vector.load %arg1[%c0_376, %c0_377, %c47] : memref<1x2x896xf32, #tpu.memory_space<vmem>>, vector<1x1x768xf32>
    %283 = vector.shape_cast %282 : vector<1x1x768xf32> to vector<1x768xf32>
    %c47_378 = arith.constant 47 : index
    %c0_379 = arith.constant 0 : index
    %284 = vector.load %arg8[%c47_378, %c0_379] : memref<102x768xf32, #tpu.memory_space<vmem>>, vector<1x768xf32>
    tpu.vector_store %arg8[%c47_378, %c0_379], %283 {strides = array<i32>} : memref<102x768xf32, #tpu.memory_space<vmem>>, vector<1x768xf32>,
    %c0_380 = arith.constant 0 : index
    %c1_381 = arith.constant 1 : index
    %c47_382 = arith.constant 47 : index
    %285 = vector.load %arg1[%c0_380, %c1_381, %c47_382] : memref<1x2x896xf32, #tpu.memory_space<vmem>>, vector<1x1x768xf32>
    %286 = vector.shape_cast %285 : vector<1x1x768xf32> to vector<1x768xf32>
    %c98 = arith.constant 98 : index
    %c0_383 = arith.constant 0 : index
    %287 = vector.load %arg8[%c98, %c0_383] : memref<102x768xf32, #tpu.memory_space<vmem>>, vector<1x768xf32>
    tpu.vector_store %arg8[%c98, %c0_383], %286 {strides = array<i32>} : memref<102x768xf32, #tpu.memory_space<vmem>>, vector<1x768xf32>,
    %c0_384 = arith.constant 0 : index
    %c0_385 = arith.constant 0 : index
    %c48 = arith.constant 48 : index
    %288 = vector.load %arg1[%c0_384, %c0_385, %c48] : memref<1x2x896xf32, #tpu.memory_space<vmem>>, vector<1x1x768xf32>
    %289 = vector.shape_cast %288 : vector<1x1x768xf32> to vector<1x768xf32>
    %c48_386 = arith.constant 48 : index
    %c0_387 = arith.constant 0 : index
    %290 = vector.load %arg8[%c48_386, %c0_387] : memref<102x768xf32, #tpu.memory_space<vmem>>, vector<1x768xf32>
    tpu.vector_store %arg8[%c48_386, %c0_387], %289 {strides = array<i32>} : memref<102x768xf32, #tpu.memory_space<vmem>>, vector<1x768xf32>,
    %c0_388 = arith.constant 0 : index
    %c1_389 = arith.constant 1 : index
    %c48_390 = arith.constant 48 : index
    %291 = vector.load %arg1[%c0_388, %c1_389, %c48_390] : memref<1x2x896xf32, #tpu.memory_space<vmem>>, vector<1x1x768xf32>
    %292 = vector.shape_cast %291 : vector<1x1x768xf32> to vector<1x768xf32>
    %c99 = arith.constant 99 : index
    %c0_391 = arith.constant 0 : index
    %293 = vector.load %arg8[%c99, %c0_391] : memref<102x768xf32, #tpu.memory_space<vmem>>, vector<1x768xf32>
    tpu.vector_store %arg8[%c99, %c0_391], %292 {strides = array<i32>} : memref<102x768xf32, #tpu.memory_space<vmem>>, vector<1x768xf32>,
    %c0_392 = arith.constant 0 : index
    %c0_393 = arith.constant 0 : index
    %c49 = arith.constant 49 : index
    %294 = vector.load %arg1[%c0_392, %c0_393, %c49] : memref<1x2x896xf32, #tpu.memory_space<vmem>>, vector<1x1x768xf32>
    %295 = vector.shape_cast %294 : vector<1x1x768xf32> to vector<1x768xf32>
    %c49_394 = arith.constant 49 : index
    %c0_395 = arith.constant 0 : index
    %296 = vector.load %arg8[%c49_394, %c0_395] : memref<102x768xf32, #tpu.memory_space<vmem>>, vector<1x768xf32>
    tpu.vector_store %arg8[%c49_394, %c0_395], %295 {strides = array<i32>} : memref<102x768xf32, #tpu.memory_space<vmem>>, vector<1x768xf32>,
    %c0_396 = arith.constant 0 : index
    %c1_397 = arith.constant 1 : index
    %c49_398 = arith.constant 49 : index
    %297 = vector.load %arg1[%c0_396, %c1_397, %c49_398] : memref<1x2x896xf32, #tpu.memory_space<vmem>>, vector<1x1x768xf32>
    %298 = vector.shape_cast %297 : vector<1x1x768xf32> to vector<1x768xf32>
    %c100 = arith.constant 100 : index
    %c0_399 = arith.constant 0 : index
    %299 = vector.load %arg8[%c100, %c0_399] : memref<102x768xf32, #tpu.memory_space<vmem>>, vector<1x768xf32>
    tpu.vector_store %arg8[%c100, %c0_399], %298 {strides = array<i32>} : memref<102x768xf32, #tpu.memory_space<vmem>>, vector<1x768xf32>,
    %c0_400 = arith.constant 0 : index
    %c0_401 = arith.constant 0 : index
    %c50 = arith.constant 50 : index
    %300 = vector.load %arg1[%c0_400, %c0_401, %c50] : memref<1x2x896xf32, #tpu.memory_space<vmem>>, vector<1x1x768xf32>
    %301 = vector.shape_cast %300 : vector<1x1x768xf32> to vector<1x768xf32>
    %c50_402 = arith.constant 50 : index
    %c0_403 = arith.constant 0 : index
    %302 = vector.load %arg8[%c50_402, %c0_403] : memref<102x768xf32, #tpu.memory_space<vmem>>, vector<1x768xf32>
    tpu.vector_store %arg8[%c50_402, %c0_403], %301 {strides = array<i32>} : memref<102x768xf32, #tpu.memory_space<vmem>>, vector<1x768xf32>,
    %c0_404 = arith.constant 0 : index
    %c1_405 = arith.constant 1 : index
    %c50_406 = arith.constant 50 : index
    %303 = vector.load %arg1[%c0_404, %c1_405, %c50_406] : memref<1x2x896xf32, #tpu.memory_space<vmem>>, vector<1x1x768xf32>
    %304 = vector.shape_cast %303 : vector<1x1x768xf32> to vector<1x768xf32>
    %c101 = arith.constant 101 : index
    %c0_407 = arith.constant 0 : index
    %305 = vector.load %arg8[%c101, %c0_407] : memref<102x768xf32, #tpu.memory_space<vmem>>, vector<1x768xf32>
    tpu.vector_store %arg8[%c101, %c0_407], %304 {strides = array<i32>} : memref<102x768xf32, #tpu.memory_space<vmem>>, vector<1x768xf32>,
    %c0_408 = arith.constant 0 : index
    %c0_409 = arith.constant 0 : index
    %306 = vector.load %arg2[%c0_408, %c0_409] : memref<32x102xf32, #tpu.memory_space<vmem>>, vector<32x102xf32>
    %c0_410 = arith.constant 0 : index
    %c0_411 = arith.constant 0 : index
    %307 = vector.load %arg8[%c0_410, %c0_411] : memref<102x768xf32, #tpu.memory_space<vmem>>, vector<102x768xf32>
    %cst = arith.constant dense<0.000000e+00> : vector<32x768xf32>
    %308 = tpu.matmul %306, %307, %cst {dimension_numbers = #tpu.dot_dimension_numbers<[1], [0], [0], [1], [0, 0, 1, 1], [], []>} : vector<32x102xf32>, vector<102x768xf32>, vector<32x768xf32> -> vector<32x768xf32>
    %c0_412 = arith.constant 0 : index
    %c0_413 = arith.constant 0 : index
    %309 = vector.load %arg4[%c0_412, %c0_413] : memref<32x2xf32, #tpu.memory_space<vmem>>, vector<32x1xf32>
    %310 = vector.broadcast %309 : vector<32x1xf32> to vector<32x768xf32>
    %311 = arith.addf %308, %310 : vector<32x768xf32>
    %cst_414 = arith.constant 0.000000e+00 : f32
    %312 = vector.broadcast %cst_414 : f32 to vector<32x768xf32>
    %313 = arith.cmpf ogt, %311, %312 : vector<32x768xf32>
    %cst_415 = arith.constant 0.000000e+00 : f32
    %314 = vector.broadcast %cst_415 : f32 to vector<32x768xf32>
    %315 = arith.minimumf %311, %314 : vector<32x768xf32>
    %316 = math.exp %315 : vector<32x768xf32>
    %cst_416 = arith.constant 1.000000e+00 : f32
    %317 = vector.broadcast %cst_416 : f32 to vector<32x768xf32>
    %318 = arith.subf %316, %317 : vector<32x768xf32>
    %319 = arith.select %313, %311, %318 : vector<32x768xi1>, vector<32x768xf32>
    %320 = tpu.iota {dimensions = array<i32: 0>} : vector<128x187xi32>
    %c0_i32 = arith.constant 0 : i32
    %321 = vector.broadcast %c0_i32 : i32 to vector<128x187xi32>
    %322 = arith.addi %320, %321 : vector<128x187xi32>
    %323 = tpu.iota {dimensions = array<i32: 1>} : vector<128x187xi32>
    %c2_i32 = arith.constant 2 : i32
    %324 = vector.broadcast %c2_i32 : i32 to vector<128x187xi32>
    %325 = arith.shrsi %322, %324 : vector<128x187xi32>
    %326 = arith.cmpi eq, %325, %323 : vector<128x187xi32>
    %cst_417 = arith.constant 2.500000e-01 : f32
    %cst_418 = arith.constant 0.000000e+00 : f32
    %327 = vector.broadcast %cst_417 : f32 to vector<128x187xf32>
    %328 = vector.broadcast %cst_418 : f32 to vector<128x187xf32>
    %329 = arith.select %326, %327, %328 : vector<128x187xi1>, vector<128x187xf32>
    %c0_419 = arith.constant 0 : index
    %c0_420 = arith.constant 0 : index
    %330 = vector.load %arg9[%c0_419, %c0_420] : memref<768x187xf32, #tpu.memory_space<vmem>>, vector<128x187xf32>
    tpu.vector_store %arg9[%c0_419, %c0_420], %329 {strides = array<i32>} : memref<768x187xf32, #tpu.memory_space<vmem>>, vector<128x187xf32>,
    %331 = tpu.iota {dimensions = array<i32: 0>} : vector<128x187xi32>
    %c128_i32 = arith.constant 128 : i32
    %332 = vector.broadcast %c128_i32 : i32 to vector<128x187xi32>
    %333 = arith.addi %331, %332 : vector<128x187xi32>
    %334 = tpu.iota {dimensions = array<i32: 1>} : vector<128x187xi32>
    %c2_i32_421 = arith.constant 2 : i32
    %335 = vector.broadcast %c2_i32_421 : i32 to vector<128x187xi32>
    %336 = arith.shrsi %333, %335 : vector<128x187xi32>
    %337 = arith.cmpi eq, %336, %334 : vector<128x187xi32>
    %cst_422 = arith.constant 2.500000e-01 : f32
    %cst_423 = arith.constant 0.000000e+00 : f32
    %338 = vector.broadcast %cst_422 : f32 to vector<128x187xf32>
    %339 = vector.broadcast %cst_423 : f32 to vector<128x187xf32>
    %340 = arith.select %337, %338, %339 : vector<128x187xi1>, vector<128x187xf32>
    %c128 = arith.constant 128 : index
    %c0_424 = arith.constant 0 : index
    %341 = vector.load %arg9[%c128, %c0_424] : memref<768x187xf32, #tpu.memory_space<vmem>>, vector<128x187xf32>
    tpu.vector_store %arg9[%c128, %c0_424], %340 {strides = array<i32>} : memref<768x187xf32, #tpu.memory_space<vmem>>, vector<128x187xf32>,
    %342 = tpu.iota {dimensions = array<i32: 0>} : vector<128x187xi32>
    %c256_i32 = arith.constant 256 : i32
    %343 = vector.broadcast %c256_i32 : i32 to vector<128x187xi32>
    %344 = arith.addi %342, %343 : vector<128x187xi32>
    %345 = tpu.iota {dimensions = array<i32: 1>} : vector<128x187xi32>
    %c2_i32_425 = arith.constant 2 : i32
    %346 = vector.broadcast %c2_i32_425 : i32 to vector<128x187xi32>
    %347 = arith.shrsi %344, %346 : vector<128x187xi32>
    %348 = arith.cmpi eq, %347, %345 : vector<128x187xi32>
    %cst_426 = arith.constant 2.500000e-01 : f32
    %cst_427 = arith.constant 0.000000e+00 : f32
    %349 = vector.broadcast %cst_426 : f32 to vector<128x187xf32>
    %350 = vector.broadcast %cst_427 : f32 to vector<128x187xf32>
    %351 = arith.select %348, %349, %350 : vector<128x187xi1>, vector<128x187xf32>
    %c256 = arith.constant 256 : index
    %c0_428 = arith.constant 0 : index
    %352 = vector.load %arg9[%c256, %c0_428] : memref<768x187xf32, #tpu.memory_space<vmem>>, vector<128x187xf32>
    tpu.vector_store %arg9[%c256, %c0_428], %351 {strides = array<i32>} : memref<768x187xf32, #tpu.memory_space<vmem>>, vector<128x187xf32>,
    %353 = tpu.iota {dimensions = array<i32: 0>} : vector<128x187xi32>
    %c384_i32 = arith.constant 384 : i32
    %354 = vector.broadcast %c384_i32 : i32 to vector<128x187xi32>
    %355 = arith.addi %353, %354 : vector<128x187xi32>
    %356 = tpu.iota {dimensions = array<i32: 1>} : vector<128x187xi32>
    %c2_i32_429 = arith.constant 2 : i32
    %357 = vector.broadcast %c2_i32_429 : i32 to vector<128x187xi32>
    %358 = arith.shrsi %355, %357 : vector<128x187xi32>
    %359 = arith.cmpi eq, %358, %356 : vector<128x187xi32>
    %cst_430 = arith.constant 2.500000e-01 : f32
    %cst_431 = arith.constant 0.000000e+00 : f32
    %360 = vector.broadcast %cst_430 : f32 to vector<128x187xf32>
    %361 = vector.broadcast %cst_431 : f32 to vector<128x187xf32>
    %362 = arith.select %359, %360, %361 : vector<128x187xi1>, vector<128x187xf32>
    %c384 = arith.constant 384 : index
    %c0_432 = arith.constant 0 : index
    %363 = vector.load %arg9[%c384, %c0_432] : memref<768x187xf32, #tpu.memory_space<vmem>>, vector<128x187xf32>
    tpu.vector_store %arg9[%c384, %c0_432], %362 {strides = array<i32>} : memref<768x187xf32, #tpu.memory_space<vmem>>, vector<128x187xf32>,
    %364 = tpu.iota {dimensions = array<i32: 0>} : vector<128x187xi32>
    %c512_i32 = arith.constant 512 : i32
    %365 = vector.broadcast %c512_i32 : i32 to vector<128x187xi32>
    %366 = arith.addi %364, %365 : vector<128x187xi32>
    %367 = tpu.iota {dimensions = array<i32: 1>} : vector<128x187xi32>
    %c2_i32_433 = arith.constant 2 : i32
    %368 = vector.broadcast %c2_i32_433 : i32 to vector<128x187xi32>
    %369 = arith.shrsi %366, %368 : vector<128x187xi32>
    %370 = arith.cmpi eq, %369, %367 : vector<128x187xi32>
    %cst_434 = arith.constant 2.500000e-01 : f32
    %cst_435 = arith.constant 0.000000e+00 : f32
    %371 = vector.broadcast %cst_434 : f32 to vector<128x187xf32>
    %372 = vector.broadcast %cst_435 : f32 to vector<128x187xf32>
    %373 = arith.select %370, %371, %372 : vector<128x187xi1>, vector<128x187xf32>
    %c512 = arith.constant 512 : index
    %c0_436 = arith.constant 0 : index
    %374 = vector.load %arg9[%c512, %c0_436] : memref<768x187xf32, #tpu.memory_space<vmem>>, vector<128x187xf32>
    tpu.vector_store %arg9[%c512, %c0_436], %373 {strides = array<i32>} : memref<768x187xf32, #tpu.memory_space<vmem>>, vector<128x187xf32>,
    %375 = tpu.iota {dimensions = array<i32: 0>} : vector<128x187xi32>
    %c640_i32 = arith.constant 640 : i32
    %376 = vector.broadcast %c640_i32 : i32 to vector<128x187xi32>
    %377 = arith.addi %375, %376 : vector<128x187xi32>
    %378 = tpu.iota {dimensions = array<i32: 1>} : vector<128x187xi32>
    %c2_i32_437 = arith.constant 2 : i32
    %379 = vector.broadcast %c2_i32_437 : i32 to vector<128x187xi32>
    %380 = arith.shrsi %377, %379 : vector<128x187xi32>
    %381 = arith.cmpi eq, %380, %378 : vector<128x187xi32>
    %cst_438 = arith.constant 2.500000e-01 : f32
    %cst_439 = arith.constant 0.000000e+00 : f32
    %382 = vector.broadcast %cst_438 : f32 to vector<128x187xf32>
    %383 = vector.broadcast %cst_439 : f32 to vector<128x187xf32>
    %384 = arith.select %381, %382, %383 : vector<128x187xi1>, vector<128x187xf32>
    %c640 = arith.constant 640 : index
    %c0_440 = arith.constant 0 : index
    %385 = vector.load %arg9[%c640, %c0_440] : memref<768x187xf32, #tpu.memory_space<vmem>>, vector<128x187xf32>
    tpu.vector_store %arg9[%c640, %c0_440], %384 {strides = array<i32>} : memref<768x187xf32, #tpu.memory_space<vmem>>, vector<128x187xf32>,
    %c0_441 = arith.constant 0 : index
    %c0_442 = arith.constant 0 : index
    %386 = vector.load %arg9[%c0_441, %c0_442] : memref<768x187xf32, #tpu.memory_space<vmem>>, vector<768x187xf32>
    %cst_443 = arith.constant dense<0.000000e+00> : vector<32x187xf32>
    %387 = tpu.matmul %319, %386, %cst_443 {dimension_numbers = #tpu.dot_dimension_numbers<[1], [0], [0], [1], [0, 0, 1, 1], [], []>} : vector<32x768xf32>, vector<768x187xf32>, vector<32x187xf32> -> vector<32x187xf32>
    %cst_444 = arith.constant 0.000000e+00 : f32
    %388 = vector.broadcast %cst_444 : f32 to vector<32x7xf32>
    %c0_445 = arith.constant 0 : index
    %c0_446 = arith.constant 0 : index
    %389 = vector.load %arg10[%c0_445, %c0_446] : memref<32x201xf32, #tpu.memory_space<vmem>>, vector<32x7xf32>
    tpu.vector_store %arg10[%c0_445, %c0_446], %388 {strides = array<i32>} : memref<32x201xf32, #tpu.memory_space<vmem>>, vector<32x7xf32>,
    %cst_447 = arith.constant 0.000000e+00 : f32
    %390 = vector.broadcast %cst_447 : f32 to vector<32x7xf32>
    %c0_448 = arith.constant 0 : index
    %c194 = arith.constant 194 : index
    %391 = vector.load %arg10[%c0_448, %c194] : memref<32x201xf32, #tpu.memory_space<vmem>>, vector<32x7xf32>
    tpu.vector_store %arg10[%c0_448, %c194], %390 {strides = array<i32>} : memref<32x201xf32, #tpu.memory_space<vmem>>, vector<32x7xf32>,
    %c0_449 = arith.constant 0 : index
    %c7_450 = arith.constant 7 : index
    %392 = vector.load %arg10[%c0_449, %c7_450] : memref<32x201xf32, #tpu.memory_space<vmem>>, vector<32x187xf32>
    tpu.vector_store %arg10[%c0_449, %c7_450], %387 {strides = array<i32>} : memref<32x201xf32, #tpu.memory_space<vmem>>, vector<32x187xf32>,
    %c0_451 = arith.constant 0 : index
    %c0_452 = arith.constant 0 : index
    %393 = vector.load %arg10[%c0_451, %c0_452] : memref<32x201xf32, #tpu.memory_space<vmem>>, vector<32x187xf32>
    %c0_453 = arith.constant 0 : index
    %c0_454 = arith.constant 0 : index
    %394 = vector.load %arg11[%c0_453, %c0_454] : memref<480x187xf32, #tpu.memory_space<vmem>>, vector<32x187xf32>
    tpu.vector_store %arg11[%c0_453, %c0_454], %393 {strides = array<i32>} : memref<480x187xf32, #tpu.memory_space<vmem>>, vector<32x187xf32>,
    %c0_455 = arith.constant 0 : index
    %c1_456 = arith.constant 1 : index
    %395 = vector.load %arg10[%c0_455, %c1_456] : memref<32x201xf32, #tpu.memory_space<vmem>>, vector<32x187xf32>
    %c32_457 = arith.constant 32 : index
    %c0_458 = arith.constant 0 : index
    %396 = vector.load %arg11[%c32_457, %c0_458] : memref<480x187xf32, #tpu.memory_space<vmem>>, vector<32x187xf32>
    tpu.vector_store %arg11[%c32_457, %c0_458], %395 {strides = array<i32>} : memref<480x187xf32, #tpu.memory_space<vmem>>, vector<32x187xf32>,
    %c0_459 = arith.constant 0 : index
    %c2_460 = arith.constant 2 : index
    %397 = vector.load %arg10[%c0_459, %c2_460] : memref<32x201xf32, #tpu.memory_space<vmem>>, vector<32x187xf32>
    %c64_461 = arith.constant 64 : index
    %c0_462 = arith.constant 0 : index
    %398 = vector.load %arg11[%c64_461, %c0_462] : memref<480x187xf32, #tpu.memory_space<vmem>>, vector<32x187xf32>
    tpu.vector_store %arg11[%c64_461, %c0_462], %397 {strides = array<i32>} : memref<480x187xf32, #tpu.memory_space<vmem>>, vector<32x187xf32>,
    %c0_463 = arith.constant 0 : index
    %c3_464 = arith.constant 3 : index
    %399 = vector.load %arg10[%c0_463, %c3_464] : memref<32x201xf32, #tpu.memory_space<vmem>>, vector<32x187xf32>
    %c96_465 = arith.constant 96 : index
    %c0_466 = arith.constant 0 : index
    %400 = vector.load %arg11[%c96_465, %c0_466] : memref<480x187xf32, #tpu.memory_space<vmem>>, vector<32x187xf32>
    tpu.vector_store %arg11[%c96_465, %c0_466], %399 {strides = array<i32>} : memref<480x187xf32, #tpu.memory_space<vmem>>, vector<32x187xf32>,
    %c0_467 = arith.constant 0 : index
    %c4_468 = arith.constant 4 : index
    %401 = vector.load %arg10[%c0_467, %c4_468] : memref<32x201xf32, #tpu.memory_space<vmem>>, vector<32x187xf32>
    %c128_469 = arith.constant 128 : index
    %c0_470 = arith.constant 0 : index
    %402 = vector.load %arg11[%c128_469, %c0_470] : memref<480x187xf32, #tpu.memory_space<vmem>>, vector<32x187xf32>
    tpu.vector_store %arg11[%c128_469, %c0_470], %401 {strides = array<i32>} : memref<480x187xf32, #tpu.memory_space<vmem>>, vector<32x187xf32>,
    %c0_471 = arith.constant 0 : index
    %c5_472 = arith.constant 5 : index
    %403 = vector.load %arg10[%c0_471, %c5_472] : memref<32x201xf32, #tpu.memory_space<vmem>>, vector<32x187xf32>
    %c160 = arith.constant 160 : index
    %c0_473 = arith.constant 0 : index
    %404 = vector.load %arg11[%c160, %c0_473] : memref<480x187xf32, #tpu.memory_space<vmem>>, vector<32x187xf32>
    tpu.vector_store %arg11[%c160, %c0_473], %403 {strides = array<i32>} : memref<480x187xf32, #tpu.memory_space<vmem>>, vector<32x187xf32>,
    %c0_474 = arith.constant 0 : index
    %c6_475 = arith.constant 6 : index
    %405 = vector.load %arg10[%c0_474, %c6_475] : memref<32x201xf32, #tpu.memory_space<vmem>>, vector<32x187xf32>
    %c192 = arith.constant 192 : index
    %c0_476 = arith.constant 0 : index
    %406 = vector.load %arg11[%c192, %c0_476] : memref<480x187xf32, #tpu.memory_space<vmem>>, vector<32x187xf32>
    tpu.vector_store %arg11[%c192, %c0_476], %405 {strides = array<i32>} : memref<480x187xf32, #tpu.memory_space<vmem>>, vector<32x187xf32>,
    %c0_477 = arith.constant 0 : index
    %c7_478 = arith.constant 7 : index
    %407 = vector.load %arg10[%c0_477, %c7_478] : memref<32x201xf32, #tpu.memory_space<vmem>>, vector<32x187xf32>
    %c224 = arith.constant 224 : index
    %c0_479 = arith.constant 0 : index
    %408 = vector.load %arg11[%c224, %c0_479] : memref<480x187xf32, #tpu.memory_space<vmem>>, vector<32x187xf32>
    tpu.vector_store %arg11[%c224, %c0_479], %407 {strides = array<i32>} : memref<480x187xf32, #tpu.memory_space<vmem>>, vector<32x187xf32>,
    %c0_480 = arith.constant 0 : index
    %c8_481 = arith.constant 8 : index
    %409 = vector.load %arg10[%c0_480, %c8_481] : memref<32x201xf32, #tpu.memory_space<vmem>>, vector<32x187xf32>
    %c256_482 = arith.constant 256 : index
    %c0_483 = arith.constant 0 : index
    %410 = vector.load %arg11[%c256_482, %c0_483] : memref<480x187xf32, #tpu.memory_space<vmem>>, vector<32x187xf32>
    tpu.vector_store %arg11[%c256_482, %c0_483], %409 {strides = array<i32>} : memref<480x187xf32, #tpu.memory_space<vmem>>, vector<32x187xf32>,
    %c0_484 = arith.constant 0 : index
    %c9_485 = arith.constant 9 : index
    %411 = vector.load %arg10[%c0_484, %c9_485] : memref<32x201xf32, #tpu.memory_space<vmem>>, vector<32x187xf32>
    %c288 = arith.constant 288 : index
    %c0_486 = arith.constant 0 : index
    %412 = vector.load %arg11[%c288, %c0_486] : memref<480x187xf32, #tpu.memory_space<vmem>>, vector<32x187xf32>
    tpu.vector_store %arg11[%c288, %c0_486], %411 {strides = array<i32>} : memref<480x187xf32, #tpu.memory_space<vmem>>, vector<32x187xf32>,
    %c0_487 = arith.constant 0 : index
    %c10_488 = arith.constant 10 : index
    %413 = vector.load %arg10[%c0_487, %c10_488] : memref<32x201xf32, #tpu.memory_space<vmem>>, vector<32x187xf32>
    %c320 = arith.constant 320 : index
    %c0_489 = arith.constant 0 : index
    %414 = vector.load %arg11[%c320, %c0_489] : memref<480x187xf32, #tpu.memory_space<vmem>>, vector<32x187xf32>
    tpu.vector_store %arg11[%c320, %c0_489], %413 {strides = array<i32>} : memref<480x187xf32, #tpu.memory_space<vmem>>, vector<32x187xf32>,
    %c0_490 = arith.constant 0 : index
    %c11_491 = arith.constant 11 : index
    %415 = vector.load %arg10[%c0_490, %c11_491] : memref<32x201xf32, #tpu.memory_space<vmem>>, vector<32x187xf32>
    %c352 = arith.constant 352 : index
    %c0_492 = arith.constant 0 : index
    %416 = vector.load %arg11[%c352, %c0_492] : memref<480x187xf32, #tpu.memory_space<vmem>>, vector<32x187xf32>
    tpu.vector_store %arg11[%c352, %c0_492], %415 {strides = array<i32>} : memref<480x187xf32, #tpu.memory_space<vmem>>, vector<32x187xf32>,
    %c0_493 = arith.constant 0 : index
    %c12_494 = arith.constant 12 : index
    %417 = vector.load %arg10[%c0_493, %c12_494] : memref<32x201xf32, #tpu.memory_space<vmem>>, vector<32x187xf32>
    %c384_495 = arith.constant 384 : index
    %c0_496 = arith.constant 0 : index
    %418 = vector.load %arg11[%c384_495, %c0_496] : memref<480x187xf32, #tpu.memory_space<vmem>>, vector<32x187xf32>
    tpu.vector_store %arg11[%c384_495, %c0_496], %417 {strides = array<i32>} : memref<480x187xf32, #tpu.memory_space<vmem>>, vector<32x187xf32>,
    %c0_497 = arith.constant 0 : index
    %c13_498 = arith.constant 13 : index
    %419 = vector.load %arg10[%c0_497, %c13_498] : memref<32x201xf32, #tpu.memory_space<vmem>>, vector<32x187xf32>
    %c416 = arith.constant 416 : index
    %c0_499 = arith.constant 0 : index
    %420 = vector.load %arg11[%c416, %c0_499] : memref<480x187xf32, #tpu.memory_space<vmem>>, vector<32x187xf32>
    tpu.vector_store %arg11[%c416, %c0_499], %419 {strides = array<i32>} : memref<480x187xf32, #tpu.memory_space<vmem>>, vector<32x187xf32>,
    %c0_500 = arith.constant 0 : index
    %c14_501 = arith.constant 14 : index
    %421 = vector.load %arg10[%c0_500, %c14_501] : memref<32x201xf32, #tpu.memory_space<vmem>>, vector<32x187xf32>
    %c448 = arith.constant 448 : index
    %c0_502 = arith.constant 0 : index
    %422 = vector.load %arg11[%c448, %c0_502] : memref<480x187xf32, #tpu.memory_space<vmem>>, vector<32x187xf32>
    tpu.vector_store %arg11[%c448, %c0_502], %421 {strides = array<i32>} : memref<480x187xf32, #tpu.memory_space<vmem>>, vector<32x187xf32>,
    %c0_503 = arith.constant 0 : index
    %c0_504 = arith.constant 0 : index
    %423 = vector.load %arg3[%c0_503, %c0_504] : memref<32x480xf32, #tpu.memory_space<vmem>>, vector<32x480xf32>
    %c0_505 = arith.constant 0 : index
    %c0_506 = arith.constant 0 : index
    %424 = vector.load %arg11[%c0_505, %c0_506] : memref<480x187xf32, #tpu.memory_space<vmem>>, vector<480x187xf32>
    %cst_507 = arith.constant dense<0.000000e+00> : vector<32x187xf32>
    %425 = tpu.matmul %423, %424, %cst_507 {dimension_numbers = #tpu.dot_dimension_numbers<[1], [0], [0], [1], [0, 0, 1, 1], [], []>} : vector<32x480xf32>, vector<480x187xf32>, vector<32x187xf32> -> vector<32x187xf32>
    %c0_508 = arith.constant 0 : index
    %c1_509 = arith.constant 1 : index
    %426 = vector.load %arg4[%c0_508, %c1_509] : memref<32x2xf32, #tpu.memory_space<vmem>>, vector<32x1xf32>
    %427 = vector.broadcast %426 : vector<32x1xf32> to vector<32x187xf32>
    %428 = arith.addf %425, %427 : vector<32x187xf32>
    %cst_510 = arith.constant 0.000000e+00 : f32
    %429 = vector.broadcast %cst_510 : f32 to vector<32x187xf32>
    %430 = arith.cmpf ogt, %428, %429 : vector<32x187xf32>
    %cst_511 = arith.constant 0.000000e+00 : f32
    %431 = vector.broadcast %cst_511 : f32 to vector<32x187xf32>
    %432 = arith.minimumf %428, %431 : vector<32x187xf32>
    %433 = math.exp %432 : vector<32x187xf32>
    %cst_512 = arith.constant 1.000000e+00 : f32
    %434 = vector.broadcast %cst_512 : f32 to vector<32x187xf32>
    %435 = arith.subf %433, %434 : vector<32x187xf32>
    %436 = arith.select %430, %428, %435 : vector<32x187xi1>, vector<32x187xf32>
    %437 = vector.extract_strided_slice %436 {offsets = [0, 0], sizes = [32, 184], strides = [1, 1]} : vector<32x187xf32> to vector<32x184xf32>
    %438 = vector.shape_cast %437 : vector<32x184xf32> to vector<1x32x184xf32>
    %c0_513 = arith.constant 0 : index
    %c0_514 = arith.constant 0 : index
    %c0_515 = arith.constant 0 : index
    %439 = vector.load %arg5[%c0_513, %c0_514, %c0_515] : memref<2x32x184xf32, #tpu.memory_space<vmem>>, vector<2x32x184xf32>
    %440 = vector.broadcast %438 : vector<1x32x184xf32> to vector<2x32x184xf32>
    %441 = arith.mulf %440, %439 : vector<2x32x184xf32>
    %cst_516 = arith.constant dense<0.000000e+00> : vector<2x32xf32>
    %442 = vector.multi_reduction <add>, %441, %cst_516 [2] : vector<2x32x184xf32> to vector<2x32xf32>
    %cst_517 = arith.constant dense<0.000000e+00> : vector<2xf32>
    %443 = vector.multi_reduction <add>, %442, %cst_517 [1] : vector<2x32xf32> to vector<2xf32>
    %c0_518 = arith.constant 0 : index
    %c0_519 = arith.constant 0 : index
    %444 = vector.load %arg6[%c0_518, %c0_519] : memref<1x2xf32, #tpu.memory_space<vmem>>, vector<1x2xf32>
    %445 = vector.shape_cast %444 : vector<1x2xf32> to vector<2xf32>
    %446 = arith.addf %443, %445 : vector<2xf32>
    %447 = vector.shape_cast %446 : vector<2xf32> to vector<1x1x2xf32>
    %c0_520 = arith.constant 0 : index
    %c0_521 = arith.constant 0 : index
    %c0_522 = arith.constant 0 : index
    %448 = vector.load %arg7[%c0_520, %c0_521, %c0_522] : memref<1x1x2xf32, #tpu.memory_space<vmem>>, vector<1x1x2xf32>
    tpu.vector_store %arg7[%c0_520, %c0_521, %c0_522], %447 {strides = array<i32>} : memref<1x1x2xf32, #tpu.memory_space<vmem>>, vector<1x1x2xf32>,
    return
  }
  func.func @transform_0(%arg0: i32) -> (i32, i32, i32) {
    %c0_i32 = arith.constant 0 : i32
    %c0_i32_0 = arith.constant 0 : i32
    %c0_i32_1 = arith.constant 0 : i32
    return %arg0, %c0_i32, %c0_i32_0 : i32, i32, i32
  }
  func.func @transform_1(%arg0: i32) -> (i32, i32) {
    %c0_i32 = arith.constant 0 : i32
    %c0_i32_0 = arith.constant 0 : i32
    %c0_i32_1 = arith.constant 0 : i32
    return %c0_i32, %c0_i32_0 : i32, i32
  }
  func.func @transform_2(%arg0: i32) -> (i32, i32) {
    %c0_i32 = arith.constant 0 : i32
    %c0_i32_0 = arith.constant 0 : i32
    %c0_i32_1 = arith.constant 0 : i32
    return %c0_i32, %c0_i32_0 : i32, i32
  }
  func.func @transform_3(%arg0: i32) -> (i32, i32) {
    %c0_i32 = arith.constant 0 : i32
    %c0_i32_0 = arith.constant 0 : i32
    %c0_i32_1 = arith.constant 0 : i32
    return %c0_i32, %c0_i32_0 : i32, i32
  }
  func.func @transform_4(%arg0: i32) -> (i32, i32, i32) {
    %c0_i32 = arith.constant 0 : i32
    %c0_i32_0 = arith.constant 0 : i32
    %c0_i32_1 = arith.constant 0 : i32
    %c0_i32_2 = arith.constant 0 : i32
    return %c0_i32, %c0_i32_0, %c0_i32_1 : i32, i32, i32
  }
  func.func @transform_5(%arg0: i32) -> (i32, i32) {
    %c0_i32 = arith.constant 0 : i32
    %c0_i32_0 = arith.constant 0 : i32
    %c0_i32_1 = arith.constant 0 : i32
    return %c0_i32, %c0_i32_0 : i32, i32
  }
  func.func @transform_6(%arg0: i32) -> (i32, i32, i32) {
    %c0_i32 = arith.constant 0 : i32
    %c0_i32_0 = arith.constant 0 : i32
    %c0_i32_1 = arith.constant 0 : i32
    return %arg0, %c0_i32, %c0_i32_0 : i32, i32, i32
  }
}

</mosaic_0001>

<bundles_post_ra>
// kernel: eegnet_forward.1
= control target key start
LH: loop header
LB: loop body
LE: loop exit
PB: predicated region body
PF: predicated region fallthrough
CT: control target
= control target key end

     0   :  { %11 = vsyncpa [#allocation7], 0  ;;  %s8622_s0 = inlined_call_operand.vmem [shape: f32[2,2,896], index: 0, kind: input, shape index: {}]   ;;  %s8623_s1 = inlined_call_operand.vmem [shape: f32[32,102], index: 1, kind: input, shape index: {}]   ;;  %s8624_s2 = inlined_call_operand.vmem [shape: f32[32,480], index: 2, kind: input, shape index: {}]   ;;  %s8625_s3 = inlined_call_operand.vmem [shape: f32[32,2], index: 3, kind: input, shape index: {}]   ;;  %s8626_s4 = inlined_call_operand.vmem [shape: f32[2,32,184], index: 4, kind: input, shape index: {}]   ;;  %s8627_s5 = inlined_call_operand.vmem [shape: f32[1,2], index: 5, kind: input, shape index: {}]   ;;  %s8628_s6 = inlined_call_operand.hbm [shape: f32[2,1,2], index: 6, kind: output, shape index: {}]  }
   0x1   :  { %13 = vsyncpa [#allocation7 + $0x1], 0  ;;  %s5093_s21 = smov 0   ;;  %s5095_s22 = smov 0  }
   0x2   :  { %s5097_s23 = smov 0   ;;  %s5099_s24 = smov 0  }
   0x3 LB: > { %s5114_s25 = sadd.s32 4294967295, %s5001_s24   ;;  %s4519_s26 = sadd.s32 4294967294, %s5001_s24   ;;  %s5001_s24 = sphi %s5099_s24, %s9289_s24   ;;  %s4997_s23 = sphi %s5097_s23, %s9288_s23   ;;  %s4993_s22 = sphi %s5095_s22, %s9287_s22   ;;  %s4989_s21 = sphi %s5093_s21, %s9286_s21  }
   0x4   : > { %s5118_s27 = sadd.s32 1, %s5001_s24   ;;  %s157_s28 = sadd.s32 1, %s4997_s23 }
   0x5   : > { %s154_s29 = ssub.s32 %s5001_s24, %s5118_s27  ;;  %p167_p0 = scmp.ne.s32.totalorder %s4997_s23, %s4993_s22 }
   0x6   : > { %p155_p1 = scmp.eq.s32.totalorder %s154_s29, 0  ;;  %p168_p2 = scmp.eq.s32.totalorder %s5114_s25, 1 }
   0x7   : > { %p173_p3 = scmp.ne.s32.totalorder %s4993_s22, %s4989_s21  ;;  %p174_p4 = scmp.eq.s32.totalorder %s4519_s26, 1 }
   0x8   : > { %s5129_s30 = scalar_select %p155_p1, %s4997_s23, %s157_s28  }
   0x9   : > { %p5131_p5 = por %p168_p2, %p167_p0  ;;  %p5135_p6 = por %p174_p4, %p173_p3 }
   0xa   : > { %p4522_p7 = scmp.ge.s32.totalorder %s5001_s24, 1  ;;  %p215_p8 = scmp.lt.s32.totalorder %s5001_s24, 3 }
   0xc   : > { %p216_p9 = pnand %p4522_p7, %p215_p8 }
   0xe   : > { %219 = sbr.rel (%p216_p9) target bundleno = 1847 (0x737), region = 44 }
  0x13   : > { %p244_p10 = scmp.lt.s32.totalorder %s5114_s25, 1  ;;  %s8632_s14 = smov 81   ;;  %v250_v37 = vlaneseq  ;;  %vm1275_vm0 = vcmask 646144   ;;  %vm1296_vm2 = vcmask 637952   ;;  %vm8690_vm3 = vcmask 728064   ;;  %v1396_v41 = vld [vmem:[%s8625_s3 + $0x10] sm:$0xff] }
  0x14   : > { %s8650_s15 = smov 83   ;;  %s5005_s16 = smov 79   ;;  %vm8687_vm4 = vcmask 662528   ;;  %vm1191_vm5 = vcmask 678912   ;;  %vm1128_vm6 = vcmask 703488   ;;  %vm1254_vm7 = vcmask 654336  }
  0x15   : > { %s245_s9 = scalar_select %p244_p10, %s5114_s25, 1  ;;  %vm5225_vm1 = vcmp.lt.s32.totalorder %v250_v37, 768  ;;  %vm1212_vm8 = vcmask 670720   ;;  %vm8679_vm9 = vcmask 809984   ;;  %vm8676_vm10 = vcmask 736256  }
  0x16   : > { %s5006_s17 = smov 80   ;;  %s8633_s18 = smov 82   ;;  %vm8678_vm11 = vcmask 744448   ;;  %vm8677_vm12 = vcmask 1045504   ;;  %vm8681_vm13 = vcmask 785408   ;;  %vm1107_vm14 = vcmask 711680  }
  0x17   : > { %s4675_s10 = smul.u32 14, %s245_s9  ;;  %s5008_s19 = smov 78   ;;  %vm1086_vm15 = vcmask 719872  }
  0x18   : > { %s8630_s20 = smov 90   ;;  %s8631_s26 = smov 91  }
  0x19   : > { %s5146_s13 = scalar_lea.vmem %s8622_s0, %s4675_s10  ;;  %s8629_s28 = smov 89  }
  0x1a   : > { %v4571_v0 = vld [vmem:[%s5146_s13 + $0x1] ss:$2 sm:$0x7f]  ;;  %s5012_s29 = smov 87   ;;  %s5013_s9 = smov 88  }
  0x1b   : > { %v4569_v1 = vld [vmem:[%s5146_s13 + $0x1] ss:$2 sm:$0x7f]  ;;  %1241 = vrot.lane.b32.xlu1 %v4571_v0, %s8632_s14  ;;  %s5014_s10 = smov 86   ;;  %s5015_s11 = smov 84  }
  0x1c   : > { %1199 = vrot.lane.b32.xlu0 %v4569_v1, %s8650_s15  ;;  %v4573_v2 = vld [vmem:[%s5146_s13 + $0x1] ss:$2 sm:$0x7f]  ;;  %s5016_s12 = smov 85   ;;  %s8637_s14 = smov 96  }
  0x1d   : > { %1283 = vrot.lane.b32.xlu2 %v4573_v2, %s5005_s16  ;;  %v4572_v3 = vld [vmem:[%s5146_s13 + $0x1] ss:$2 sm:$0x7f]  ;;  %s5038_s15 = smov 110  }
  0x1e   : > { %v4570_v4 = vld [vmem:[%s5146_s13 + $0x1] ss:$2 sm:$0x7f] }
  0x1f   : > { %v4574_v5 = vld [vmem:[%s5146_s13 + $0x1] ss:$2 sm:$0x7f] }
  0x20   : > { %v4562_v6 = vld [vmem:[%s5146_s13 + $0x1] ss:$2 sm:$0x7f] }
  0x21   : > { %v4561_v7 = vld [vmem:[%s5146_s13 + $0x1] ss:$2 sm:$0x7f] }
  0x22   : > { %v4563_v8 = vld [vmem:[%s5146_s13 + $0x1] ss:$2 sm:$0x7f] }
  0x23   : > { %1262 = vrot.lane.b32.xlu1 %v4572_v3, %s5006_s17  ;;  %v4565_v9 = vld [vmem:[%s5146_s13 + $0x1] ss:$2 sm:$0x7f] }
  0x24   : > { %1220 = vrot.lane.b32.xlu0 %v4570_v4, %s8633_s18  ;;  %v4564_v10 = vld [vmem:[%s5146_s13 + $0x1] ss:$2 sm:$0x7f]  ;;  %s8638_s18 = smov 94  }
  0x25   : > { %1304 = vrot.lane.b32.xlu2 %v4574_v5, %s5008_s19  ;;  %v4566_v11 = vld [vmem:[%s5146_s13 + $0x1] ss:$2 sm:$0x7f] }
  0x26   : > { %v4568_v12 = vld [vmem:[%s5146_s13 + $0x1] ss:$2 sm:$0x7f] }
  0x27   : > { %v4567_v13 = vld [vmem:[%s5146_s13 + $0x1] ss:$2 sm:$0x7f] }
  0x28   : > { %v4553_v14 = vld [vmem:[%s5146_s13 + $0x1] ss:$2 sm:$0x7f] }
  0x29   : > { %v4555_v15 = vld [vmem:[%s5146_s13 + $0x1] ss:$2 sm:$0x7f] }
  0x2a   : > { %v4554_v16 = vld [vmem:[%s5146_s13 + $0x1] ss:$2 sm:$0x7f] }
  0x2b   : > { %1052 = vrot.lane.b32.xlu1 %v4562_v6, %s8630_s20  ;;  %s8635_s20 = smov 97   ;;  %v4556_v17 = vld [vmem:[%s5146_s13 + $0x1] ss:$2 sm:$0x7f] }
  0x2c   : > { %1031 = vrot.lane.b32.xlu0 %v4561_v7, %s8631_s26  ;;  %s8636_s26 = smov 98   ;;  %v4558_v18 = vld [vmem:[%s5146_s13 + $0x1] ss:$2 sm:$0x7f] }
  0x2d   : > { %1073 = vrot.lane.b32.xlu2 %v4563_v8, %s8629_s28  ;;  %s8634_s28 = smov 99   ;;  %v4557_v19 = vld [vmem:[%s5146_s13 + $0x1] ss:$2 sm:$0x7f] }
  0x2e   : > { %v4559_v20 = vld [vmem:[%s5146_s13 + $0x1] ss:$2 sm:$0x7f] }
  0x2f   : > { %v4560_v21 = vld [vmem:[%s5146_s13 + $0x1] ss:$2 sm:$0x7f] }
  0x30   : > { %v4545_v22 = vld [vmem:[%s5146_s13 + $0x1] ss:$2 sm:$0x7f] }
  0x31   : > { %v4546_v23 = vld [vmem:[%s5146_s13 + $0x1] ss:$2 sm:$0x7f] }
  0x32   : > { %v4547_v24 = vld [vmem:[%s5146_s13 + $0x1] ss:$2 sm:$0x7f] }
  0x33   : > { %1115 = vrot.lane.b32.xlu1 %v4565_v9, %s5012_s29  ;;  %v4548_v25 = vld [vmem:[%s5146_s13 + $0x1] ss:$2 sm:$0x7f] }
  0x34   : > { %1094 = vrot.lane.b32.xlu0 %v4564_v10, %s5013_s9  ;;  %v4549_v26 = vld [vmem:[%s5146_s13 + $0x1] ss:$2 sm:$0x7f] }
  0x35   : > { %1136 = vrot.lane.b32.xlu2 %v4566_v11, %s5014_s10  ;;  %v4550_v27 = vld [vmem:[%s5146_s13 + $0x1] ss:$2 sm:$0x7f] }
  0x36   : > { %v4551_v28 = vld [vmem:[%s5146_s13 + $0x1] ss:$2 sm:$0x7f] }
  0x37   : > { %v4552_v29 = vld [vmem:[%s5146_s13 + $0x1] ss:$2 sm:$0x7f] }
  0x38   : > { %v4538_v30 = vld [vmem:[%s5146_s13 + $0x1] ss:$2 sm:$0x7f] }
  0x39   : > { %v4537_v31 = vld [vmem:[%s5146_s13 + $0x1] ss:$2 sm:$0x7f] }
  0x3a   : > { %v4539_v32 = vld [vmem:[%s5146_s13 + $0x1] ss:$2 sm:$0x7f] }
  0x3b   : > { %1178 = vrot.lane.b32.xlu1 %v4568_v12, %s5015_s11  ;;  %v4541_v33 = vld [vmem:[%s5146_s13 + $0x1] ss:$2 sm:$0x7f] }
  0x3c   : > { %1157 = vrot.lane.b32.xlu0 %v4567_v13, %s5016_s12  ;;  %v4540_v34 = vld [vmem:[%s5146_s13 + $0x1] ss:$2 sm:$0x7f] }
  0x3d   : > { %863 = vrot.lane.b32.xlu2 %v4553_v14, %s8634_s28  ;;  %s8639_s28 = smov 95   ;;  %v4542_v35 = vld [vmem:[%s5146_s13 + $0x1] ss:$2 sm:$0x7f] }
  0x3e   : > { %v4544_v36 = vld [vmem:[%s5146_s13 + $0x1] ss:$2 sm:$0x7f] }
  0x3f   : > { %v4543_v38 = vld [vmem:[%s5146_s13 + $0x1] ss:$2 sm:$0x7f] }
  0x40   : > { %v4529_v43 = vld [vmem:[%s5146_s13 + $0x1] ss:$2 sm:$0x7f] }
  0x41   : > { %v4531_v44 = vld [vmem:[%s5146_s13 + $0x1] ss:$2 sm:$0x7f] }
  0x42   : > { %v4530_v45 = vld [vmem:[%s5146_s13 + $0x1] ss:$2 sm:$0x7f] }
  0x43   : > { %905 = vrot.lane.b32.xlu1 %v4555_v15, %s8635_s20  ;;  %s8640_s20 = smov 93   ;;  %v4532_v49 = vld [vmem:[%s5146_s13 + $0x1] ss:$2 sm:$0x7f] }
  0x44   : > { %884 = vrot.lane.b32.xlu0 %v4554_v16, %s8636_s26  ;;  %s8641_s26 = smov 92   ;;  %v4534_v50 = vld [vmem:[%s5146_s13 + $0x1] ss:$2 sm:$0x7f] }
  0x45   : > { %926 = vrot.lane.b32.xlu2 %v4556_v17, %s8637_s14  ;;  %s8642_s14 = smov 107   ;;  %v4533_v51 = vld [vmem:[%s5146_s13 + $0x1] ss:$2 sm:$0x7f] }
  0x46   : > { %v4535_v55 = vld [vmem:[%s5146_s13 + $0x1] ss:$2 sm:$0x7f]  ;;  %v1249_v15 = vld [vmem:[%s5146_s13] ss:$2 sm:$0x7f] }
  0x47   : > { %v4536_v60 = vld [vmem:[%s5146_s13 + $0x1] ss:$2 sm:$0x7f] }
  0x48   : > { %v4525_v63 = vld [vmem:[%s5146_s13 + $0x1] ss:$2 sm:$0x7f] }
  0x49   : > { %v4526_v3 = vld [vmem:[%s5146_s13 + $0x1] ss:$2 sm:$0x7f] }
  0x4a   : > { %v4527_v8 = vld [vmem:[%s5146_s13 + $0x1] ss:$2 sm:$0x7f] }
  0x4b   : > { %968 = vrot.lane.b32.xlu1 %v4558_v18, %s8638_s18  ;;  %s8643_s18 = smov 106   ;;  %v4528_v11 = vld [vmem:[%s5146_s13 + $0x1] ss:$2 sm:$0x7f] }
  0x4c   : > { %947 = vrot.lane.b32.xlu0 %v4557_v19, %s8639_s28  ;;  %s8644_s28 = smov 105  }
  0x4d   : > { %989 = vrot.lane.b32.xlu2 %v4559_v20, %s8640_s20  ;;  %s8645_s20 = smov 104   ;;  %v1270_v20 = vld [vmem:[%s5146_s13] ss:$2 sm:$0x7f] }
  0x53   : > { %695 = vrot.lane.b32.xlu1 %v4545_v22, %s8642_s14  ;;  %s8647_s14 = smov 102  }
  0x54   : > { %1010 = vrot.lane.b32.xlu0 %v4560_v21, %s8641_s26  ;;  %s8646_s26 = smov 103  }
  0x55   : > { %716 = vrot.lane.b32.xlu2 %v4546_v23, %s8643_s18  ;;  %s8648_s18 = smov 101   ;;  %v1291_v23 = vld [vmem:[%s5146_s13] ss:$2 sm:$0x7f] }
  0x5b   : > { %758 = vrot.lane.b32.xlu1 %v4548_v25, %s8645_s20  ;;  %s8652_s20 = smov 114  }
  0x5c   : > { %737 = vrot.lane.b32.xlu0 %v4547_v24, %s8644_s28  ;;  %s8649_s28 = smov 100  }
  0x5d   : > { %779 = vrot.lane.b32.xlu2 %v4549_v26, %s8646_s26  ;;  %s8654_s26 = smov 115   ;;  %v1081_v26 = vld [vmem:[%s5146_s13] ss:$2 sm:$0x7f] }
  0x63   : > { %821 = vrot.lane.b32.xlu1 %v4551_v28, %s8648_s18  ;;  %s5036_s18 = smov 111  }
  0x64   : > { %800 = vrot.lane.b32.xlu0 %v4550_v27, %s8647_s14  ;;  %s8651_s14 = smov 113  }
  0x65   : > { %842 = vrot.lane.b32.xlu2 %v4552_v29, %s8649_s28  ;;  %s5037_s28 = smov 112  }
  0x6b   : > { %548 = vrot.lane.b32.xlu1 %v4538_v30, %s8652_s20  ;;  %s8657_s20 = smov 109  }
  0x6c   : > { %527 = vrot.lane.b32.xlu0 %v4537_v31, %s8654_s26  ;;  %s8658_s26 = smov 123  }
  0x6d   : > { %569 = vrot.lane.b32.xlu2 %v4539_v32, %s8651_s14  ;;  %s8656_s14 = smov 108  }
  0x73   : > { %611 = vrot.lane.b32.xlu1 %v4541_v33, %s5036_s18 }
  0x74   : > { %590 = vrot.lane.b32.xlu0 %v4540_v34, %s5037_s28 }
  0x75   : > { %632 = vrot.lane.b32.xlu2 %v4542_v35, %s5038_s15 }
  0x77   : > { %v1284_v39 = vpop.permute.xlu2 %1283 }
  0x78   : > { %v1285_v40 = vrot.slane %v1284_v39, 1 }
  0x7a   : > { %v1286_v42 = vsel %vm1275_vm0, %v1284_v39, %v1285_v40  ;;  %v1123_v40 = vld [vmem:[%s5146_s13] ss:$2 sm:$0x7f] }
  0x7b   : > { %674 = vrot.lane.b32.xlu1 %v4544_v36, %s8656_s14  ;;  %1289 = vst.msk [vmem:[#allocation2 + $0x244] ss:$8 sm:$0xf] %vm5225_vm1, %v1286_v42  ;;  %s8660_s14 = smov 121  }
  0x7c   : > { %653 = vrot.lane.b32.xlu0 %v4543_v38, %s8657_s20  ;;  %1290 = vst.msk [vmem:[#allocation2 + $0x244] ss:$8 sm:$0x30] %vm5225_vm1, %v1286_v42  ;;  %s8662_s20 = smov 122  }
  0x7d   : > { %359 = vrot.lane.b32.xlu2 %v4529_v43, %s8658_s26  ;;  %s8710_s26 = smov 120   ;;  %v1102_v36 = vld [vmem:[%s5146_s13] ss:$2 sm:$0x7f] }
  0x7f   : > { %v1305_v46 = vpop.permute.xlu2 %1304 }
  0x80   : > { %v1306_v47 = vrot.slane %v1305_v46, 1 }
  0x82   : > { %v1307_v48 = vsel %vm1296_vm2, %v1305_v46, %v1306_v47 }
  0x83   : > { %401 = vrot.lane.b32.xlu1 %v4531_v44, %s8660_s14  ;;  %1310 = vst.msk [vmem:[#allocation2 + $0x245] ss:$8 sm:$0xf] %vm5225_vm1, %v1307_v48  ;;  %s8664_s14 = smov 118  }
  0x84   : > { %380 = vrot.lane.b32.xlu0 %v4530_v45, %s8662_s20  ;;  %1311 = vst.msk [vmem:[#allocation2 + $0x245] ss:$8 sm:$0x30] %vm5225_vm1, %v1307_v48  ;;  %s8668_s20 = smov 119  }
  0x85   : > { %422 = vrot.lane.b32.xlu2 %v4532_v49, %s8710_s26  ;;  %v1144_v45 = vld [vmem:[%s5146_s13] ss:$2 sm:$0x7f] }
  0x87   : > { %v1074_v52 = vpop.permute.xlu2 %1073 }
  0x88   : > { %v1075_v53 = vrot.slane %v1074_v52, 1 }
  0x8a   : > { %v1076_v54 = vsel %vm8690_vm3, %v1074_v52, %v1075_v53  ;;  %v1186_v53 = vld [vmem:[%s5146_s13] ss:$2 sm:$0x7f]  ;;  %vm8693_vm3 = vcmask 850944  }
  0x8b   : > { %464 = vrot.lane.b32.xlu1 %v4534_v50, %s8664_s14  ;;  %1079 = vst.msk [vmem:[#allocation2 + $0x212] ss:$8 sm:$0xf] %vm5225_vm1, %v1076_v54  ;;  %s8666_s14 = smov 117  }
  0x8c   : > { %443 = vrot.lane.b32.xlu0 %v4533_v51, %s8668_s20  ;;  %1080 = vst.msk [vmem:[#allocation2 + $0x212] ss:$8 sm:$0x30] %vm5225_vm1, %v1076_v54  ;;  %s8670_s20 = smov 127  }
  0x8d   : > { %v1242_v56 = vpop.permute.xlu1 %1241  ;;  %485 = vrot.lane.b32.xlu2 %v4535_v55, %s8666_s14  ;;  %s8674_s14 = smov 116   ;;  %v1165_v50 = vld [vmem:[%s5146_s13] ss:$2 sm:$0x7f] }
  0x8e   : > { %v1200_v57 = vpop.permute.xlu0 %1199  ;;  %v1243_v58 = vrot.slane %v1242_v56, 1 }
  0x8f   : > { %v1201_v59 = vrot.slane %v1200_v57, 1  ;;  %v1137_v0 = vpop.permute.xlu2 %1136 }
  0x90   : > { %v1244_v61 = vsel %vm8687_vm4, %v1242_v56, %v1243_v58  ;;  %v1138_v1 = vrot.slane %v1137_v0, 1  ;;  %vm8689_vm4 = vcmask 875520  }
  0x91   : > { %v1202_v62 = vsel %vm1191_vm5, %v1200_v57, %v1201_v59  ;;  %1247 = vst.msk [vmem:[#allocation2 + $0x242] ss:$8 sm:$0xf] %vm5225_vm1, %v1244_v61  ;;  %v1207_v57 = vld [vmem:[%s5146_s13] ss:$2 sm:$0x7f] }
  0x92   : > { %1248 = vst.msk [vmem:[#allocation2 + $0x242] ss:$8 sm:$0x30] %vm5225_vm1, %v1244_v61  ;;  %v1139_v2 = vsel %vm1128_vm6, %v1137_v0, %v1138_v1  ;;  %v1228_v0 = vld [vmem:[%s5146_s13] ss:$2 sm:$0x7f] }
  0x93   : > { %1205 = vst.msk [vmem:[#allocation2 + $0x240] ss:$8 sm:$0xf] %vm5225_vm1, %v1202_v62  ;;  %275 = vrot.lane.b32.xlu1 %v4525_v63, %s8670_s20  ;;  %s8672_s20 = smov 126  }
  0x94   : > { %506 = vrot.lane.b32.xlu0 %v4536_v60, %s8674_s14  ;;  %1206 = vst.msk [vmem:[#allocation2 + $0x240] ss:$8 sm:$0x30] %vm5225_vm1, %v1202_v62  ;;  %s8712_s14 = smov 124  }
  0x95   : > { %v1263_v4 = vpop.permute.xlu1 %1262  ;;  %1142 = vst.msk [vmem:[#allocation2 + $0x215] ss:$8 sm:$0xf] %vm5225_vm1, %v1139_v2  ;;  %296 = vrot.lane.b32.xlu2 %v4526_v3, %s8672_s20  ;;  %s8714_s20 = smov 125  }
  0x96   : > { %v1221_v5 = vpop.permute.xlu0 %1220  ;;  %v1264_v6 = vrot.slane %v1263_v4, 1  ;;  %1143 = vst.msk [vmem:[#allocation2 + $0x215] ss:$8 sm:$0x30] %vm5225_vm1, %v1139_v2 }
  0x97   : > { %v1222_v7 = vrot.slane %v1221_v5, 1  ;;  %v864_v12 = vpop.permute.xlu2 %863  ;;  %v913_v1 = vld [vmem:[%s5146_s13] ss:$2 sm:$0x7f] }
  0x98   : > { %v1265_v9 = vsel %vm1254_vm7, %v1263_v4, %v1264_v6  ;;  %v865_v13 = vrot.slane %v864_v12, 1  ;;  %v934_v4 = vld [vmem:[%s5146_s13] ss:$2 sm:$0x7f] }
  0x99   : > { %v1223_v10 = vsel %vm1212_vm8, %v1221_v5, %v1222_v7  ;;  %1268 = vst.msk [vmem:[#allocation2 + $0x243] ss:$8 sm:$0xf] %vm5225_vm1, %v1265_v9 }
  0x9a   : > { %1269 = vst.msk [vmem:[#allocation2 + $0x243] ss:$8 sm:$0x30] %vm5225_vm1, %v1265_v9  ;;  %v866_v14 = vsel %vm8679_vm9, %v864_v12, %v865_v13  ;;  %vm8682_vm9 = vcmask 867328  }
  0x9b   : > { %1226 = vst.msk [vmem:[#allocation2 + $0x241] ss:$8 sm:$0xf] %vm5225_vm1, %v1223_v10  ;;  %338 = vrot.lane.b32.xlu1 %v4528_v11, %s8712_s14 }
  0x9c   : > { %317 = vrot.lane.b32.xlu0 %v4527_v8, %s8714_s20  ;;  %1227 = vst.msk [vmem:[#allocation2 + $0x241] ss:$8 sm:$0x30] %vm5225_vm1, %v1223_v10 }
  0x9d   : > { %v1053_v16 = vpop.permute.xlu1 %1052  ;;  %869 = vst.msk [vmem:[#allocation2 + $0x1e0] ss:$8 sm:$0xf] %vm5225_vm1, %v866_v14  ;;  %1251 = vrot.lane.b32.xlu2 %v1249_v15, %s5006_s17  ;;  %s8862_s17 = smov 82  }
  0x9e   : > { %v1032_v17 = vpop.permute.xlu0 %1031  ;;  %v1054_v18 = vrot.slane %v1053_v16, 1  ;;  %870 = vst.msk [vmem:[#allocation2 + $0x1e0] ss:$8 sm:$0x30] %vm5225_vm1, %v866_v14 }
  0x9f   : > { %v1033_v19 = vrot.slane %v1032_v17, 1  ;;  %v927_v24 = vpop.permute.xlu2 %926 }
  0xa0   : > { %v1055_v21 = vsel %vm8676_vm10, %v1053_v16, %v1054_v18  ;;  %v928_v25 = vrot.slane %v927_v24, 1  ;;  %vm8680_vm10 = vcmask 760832   ;;  %v955_v16 = vld [vmem:[%s5146_s13] ss:$2 sm:$0x7f] }
  0xa1   : > { %v1034_v22 = vsel %vm8678_vm11, %v1032_v17, %v1033_v19  ;;  %1058 = vst.msk [vmem:[#allocation2 + $0x211] ss:$8 sm:$0xf] %vm5225_vm1, %v1055_v21  ;;  %vm1149_vm11 = vcmask 695296  }
  0xa2   : > { %1059 = vst.msk [vmem:[#allocation2 + $0x211] ss:$8 sm:$0x30] %vm5225_vm1, %v1055_v21  ;;  %v1388_v27 = vld [vmem:[#allocation2 + $0x240] sm:$0x3f]  ;;  %v929_v29 = vsel %vm8681_vm13, %v927_v24, %v928_v25  ;;  %vm8684_vm13 = vcmask 801792  }
  0xa3   : > { %1037 = vst.msk [vmem:[#allocation2 + $0x210] ss:$8 sm:$0xf] %vm5225_vm1, %v1034_v22  ;;  %4575 = vmatpush.msk.msra.mxu0 %vm8677_vm12, %v1388_v27  ;;  %v1389_v28 = vld [vmem:[#allocation2 + $0x248] sm:$0x3f]  ;;  %1293 = vrot.lane.b32.xlu1 %v1291_v23, %s5008_s19  ;;  %s8863_s19 = smov 81  }
  0xa4   : > { %1272 = vrot.lane.b32.xlu0 %v1270_v20, %s5005_s16  ;;  %1038 = vst.msk [vmem:[#allocation2 + $0x210] ss:$8 sm:$0x30] %vm5225_vm1, %v1034_v22  ;;  %4580 = vmatpush.msk.msra.mxu1 %vm8677_vm12, %v1389_v28  ;;  %v1390_v30 = vld [vmem:[#allocation2 + $0x250] sm:$0x3f]  ;;  %s8861_s16 = smov 83  }
  0xa5   : > { %4585 = vmatpush.msk.msra.mxu2 %vm8677_vm12, %v1390_v30  ;;  %v1391_v31 = vld [vmem:[#allocation2 + $0x258] sm:$0x3f]  ;;  %v1116_v32 = vpop.permute.xlu1 %1115  ;;  %932 = vst.msk [vmem:[#allocation2 + $0x1e3] ss:$8 sm:$0xf] %vm5225_vm1, %v929_v29  ;;  %1083 = vrot.lane.b32.xlu2 %v1081_v26, %s5013_s9  ;;  %s8865_s9 = smov 95  }
  0xa6   : > { %v1095_v33 = vpop.permute.xlu0 %1094  ;;  %4590 = vmatpush.msk.msra.mxu3 %vm8677_vm12, %v1391_v31  ;;  %v1117_v34 = vrot.slane %v1116_v32, 1  ;;  %933 = vst.msk [vmem:[#allocation2 + $0x1e3] ss:$8 sm:$0x30] %vm5225_vm1, %v929_v29  ;;  %vm1170_vm12 = vcmask 687104  }
  0xa7   : > { %v1096_v35 = vrot.slane %v1095_v33, 1  ;;  %v990_v42 = vpop.permute.xlu2 %989  ;;  %v976_v19 = vld [vmem:[%s5146_s13] ss:$2 sm:$0x7f] }
  0xa8   : > { %v1118_v38 = vsel %vm1107_vm14, %v1116_v32, %v1117_v34  ;;  %v991_v43 = vrot.slane %v990_v42, 1  ;;  %v997_v21 = vld [vmem:[%s5146_s13] ss:$2 sm:$0x7f] }
  0xa9   : > { %v1097_v39 = vsel %vm1086_vm15, %v1095_v33, %v1096_v35  ;;  %1121 = vst.msk [vmem:[#allocation2 + $0x214] ss:$8 sm:$0xf] %vm5225_vm1, %v1118_v38  ;;  %v1018_v28 = vld [vmem:[%s5146_s13] ss:$2 sm:$0x7f] }
  0xaa   : > { %1122 = vst.msk [vmem:[#allocation2 + $0x214] ss:$8 sm:$0x30] %vm5225_vm1, %v1118_v38  ;;  %v992_v44 = vsel %vm8680_vm10, %v990_v42, %v991_v43  ;;  %vm8683_vm10 = vcmask 793600  }
  0xab   : > { %1100 = vst.msk [vmem:[#allocation2 + $0x213] ss:$8 sm:$0xf] %vm5225_vm1, %v1097_v39  ;;  %1125 = vrot.lane.b32.xlu1 %v1123_v40, %s5014_s10  ;;  %s8866_s10 = smov 94  }
  0xac   : > { %1104 = vrot.lane.b32.xlu0 %v1102_v36, %s5012_s29  ;;  %1101 = vst.msk [vmem:[#allocation2 + $0x213] ss:$8 sm:$0x30] %vm5225_vm1, %v1097_v39  ;;  %s8864_s29 = smov 96  }
  0xad   : > { %v1179_v46 = vpop.permute.xlu1 %1178  ;;  %995 = vst.msk [vmem:[#allocation2 + $0x1e6] ss:$8 sm:$0xf] %vm5225_vm1, %v992_v44  ;;  %1146 = vrot.lane.b32.xlu2 %v1144_v45, %s5016_s12  ;;  %s8868_s12 = smov 92  }
  0xae   : > { %v1158_v47 = vpop.permute.xlu0 %1157  ;;  %v1180_v48 = vrot.slane %v1179_v46, 1  ;;  %996 = vst.msk [vmem:[#allocation2 + $0x1e6] ss:$8 sm:$0x30] %vm5225_vm1, %v992_v44 }
  0xaf   : > { %v1159_v49 = vrot.slane %v1158_v47, 1  ;;  %v717_v54 = vpop.permute.xlu2 %716  ;;  %v1039_v31 = vld [vmem:[%s5146_s13] ss:$2 sm:$0x7f] }
  0xb0   : > { %v1181_v51 = vsel %vm1170_vm12, %v1179_v46, %v1180_v48  ;;  %v718_v55 = vrot.slane %v717_v54, 1  ;;  %v1060_v33 = vld [vmem:[%s5146_s13] ss:$2 sm:$0x7f] }
  0xb1   : > { %v1160_v52 = vsel %vm1149_vm11, %v1158_v47, %v1159_v49  ;;  %1184 = vst.msk [vmem:[#allocation2 + $0x217] ss:$8 sm:$0xf] %vm5225_vm1, %v1181_v51  ;;  %v745_v45 = vld [vmem:[%s5146_s13] ss:$2 sm:$0x7f] }
  0xb2   : > { %1185 = vst.msk [vmem:[#allocation2 + $0x217] ss:$8 sm:$0x30] %vm5225_vm1, %v1181_v51  ;;  %v719_v56 = vsel %vm8682_vm9, %v717_v54, %v718_v55  ;;  %vm8685_vm9 = vcmask 842752  }
  0xb3   : > { %1163 = vst.msk [vmem:[#allocation2 + $0x216] ss:$8 sm:$0xf] %vm5225_vm1, %v1160_v52  ;;  %1188 = vrot.lane.b32.xlu1 %v1186_v53, %s8861_s16  ;;  %s8869_s16 = smov 91  }
  0xb4   : > { %1167 = vrot.lane.b32.xlu0 %v1165_v50, %s5015_s11  ;;  %1164 = vst.msk [vmem:[#allocation2 + $0x216] ss:$8 sm:$0x30] %vm5225_vm1, %v1160_v52  ;;  %s8867_s11 = smov 93  }
  0xb5   : > { %v906_v58 = vpop.permute.xlu1 %905  ;;  %722 = vst.msk [vmem:[#allocation2 + $0x1b1] ss:$8 sm:$0xf] %vm5225_vm1, %v719_v56  ;;  %1209 = vrot.lane.b32.xlu2 %v1207_v57, %s8862_s17  ;;  %s8870_s17 = smov 90  }
  0xb6   : > { %v885_v59 = vpop.permute.xlu0 %884  ;;  %v907_v60 = vrot.slane %v906_v58, 1  ;;  %723 = vst.msk [vmem:[#allocation2 + $0x1b1] ss:$8 sm:$0x30] %vm5225_vm1, %v719_v56 }
  0xb7   : > { %v886_v61 = vrot.slane %v885_v59, 1  ;;  %v780_v2 = vpop.permute.xlu2 %779  ;;  %v766_v49 = vld [vmem:[%s5146_s13] ss:$2 sm:$0x7f] }
  0xb8   : > { %v908_v62 = vsel %vm8683_vm10, %v906_v58, %v907_v60  ;;  %v781_v3 = vrot.slane %v780_v2, 1  ;;  %vm8686_vm10 = vcmask 769024   ;;  %v787_v51 = vld [vmem:[%s5146_s13] ss:$2 sm:$0x7f] }
  0xb9   : > { %v887_v63 = vsel %vm8684_vm13, %v885_v59, %v886_v61  ;;  %911 = vst.msk [vmem:[#allocation2 + $0x1e2] ss:$8 sm:$0xf] %vm5225_vm1, %v908_v62  ;;  %vm939_vm13 = vcmask 777216  }
  0xba   : > { %912 = vst.msk [vmem:[#allocation2 + $0x1e2] ss:$8 sm:$0x30] %vm5225_vm1, %v908_v62  ;;  %v1382_v5 = vld [vmem:[#allocation2 + $0x210] sm:$0xff]  ;;  %v1383_v6 = vld [vmem:[#allocation2 + $0x218] sm:$0xff]  ;;  %v1384_v7 = vld [vmem:[#allocation2 + $0x220] sm:$0xff]  ;;  %v782_v9 = vsel %vm8685_vm9, %v780_v2, %v781_v3 }
  0xbb   : > { %890 = vst.msk [vmem:[#allocation2 + $0x1e1] ss:$8 sm:$0xf] %vm5225_vm1, %v887_v63  ;;  %1453 = vmatpush.msra.mxu0 %v1382_v5  ;;  %1482 = vmatpush.msra.mxu1 %v1383_v6  ;;  %v1385_v8 = vld [vmem:[#allocation2 + $0x228] sm:$0xff]  ;;  %vm8688_vm9 = vcmask 818176  }
  0xbc   : > { %891 = vst.msk [vmem:[#allocation2 + $0x1e1] ss:$8 sm:$0x30] %vm5225_vm1, %v887_v63  ;;  %1511 = vmatpush.msra.mxu2 %v1384_v7  ;;  %1540 = vmatpush.msra.mxu3 %v1385_v8  ;;  %v808_v58 = vld [vmem:[%s5146_s13] ss:$2 sm:$0x7f] }
  0xbd   : > { %1230 = vrot.lane.b32.xlu0 %v1228_v0, %s8863_s19  ;;  %915 = vrot.lane.b32.xlu1 %v913_v1, %s8864_s29  ;;  %v969_v10 = vpop.permute.xlu1 %968  ;;  %785 = vst.msk [vmem:[#allocation2 + $0x1b4] ss:$8 sm:$0xf] %vm5225_vm1, %v782_v9  ;;  %s8871_s19 = smov 89   ;;  %s8872_s29 = smov 104  }
  0xbe   : > { %v948_v11 = vpop.permute.xlu0 %947  ;;  %v970_v12 = vrot.slane %v969_v10, 1  ;;  %786 = vst.msk [vmem:[#allocation2 + $0x1b4] ss:$8 sm:$0x30] %vm5225_vm1, %v782_v9  ;;  %936 = vrot.lane.b32.xlu2 %v934_v4, %s8865_s9  ;;  %s8873_s9 = smov 103  }
  0xbf   : > { %v949_v13 = vrot.slane %v948_v11, 1  ;;  %v843_v17 = vpop.permute.xlu2 %842  ;;  %v829_v61 = vld [vmem:[%s5146_s13] ss:$2 sm:$0x7f] }
  0xc0   : > { %v971_v14 = vsel %vm8686_vm10, %v969_v10, %v970_v12  ;;  %v844_v18 = vrot.slane %v843_v17, 1  ;;  %vm1002_vm10 = vcmask 752640   ;;  %v850_v63 = vld [vmem:[%s5146_s13] ss:$2 sm:$0x7f] }
  0xc1   : > { %v950_v15 = vsel %vm939_vm13, %v948_v11, %v949_v13  ;;  %974 = vst.msk [vmem:[#allocation2 + $0x1e5] ss:$8 sm:$0xf] %vm5225_vm1, %v971_v14  ;;  %v871_v6 = vld [vmem:[%s5146_s13] ss:$2 sm:$0x7f] }
  0xc2   : > { %975 = vst.msk [vmem:[#allocation2 + $0x1e5] ss:$8 sm:$0x30] %vm5225_vm1, %v971_v14  ;;  %v845_v20 = vsel %vm8688_vm9, %v843_v17, %v844_v18  ;;  %vm8691_vm9 = vcmask 924672  }
  0xc3   : > { %953 = vst.msk [vmem:[#allocation2 + $0x1e4] ss:$8 sm:$0xf] %vm5225_vm1, %v950_v15  ;;  %v892_v7 = vld [vmem:[%s5146_s13] ss:$2 sm:$0x7f] }
  0xc4   : > { %954 = vst.msk [vmem:[#allocation2 + $0x1e4] ss:$8 sm:$0x30] %vm5225_vm1, %v950_v15  ;;  %v577_v10 = vld [vmem:[%s5146_s13] ss:$2 sm:$0x7f] }
  0xc5   : > { %957 = vrot.lane.b32.xlu0 %v955_v16, %s8866_s10  ;;  %978 = vrot.lane.b32.xlu1 %v976_v19, %s8867_s11  ;;  %v696_v23 = vpop.permute.xlu1 %695  ;;  %848 = vst.msk [vmem:[#allocation2 + $0x1b7] ss:$8 sm:$0xf] %vm5225_vm1, %v845_v20  ;;  %s8874_s10 = smov 102   ;;  %s8875_s11 = smov 101  }
  0xc6   : > { %v1011_v22 = vpop.permute.xlu0 %1010  ;;  %v697_v25 = vrot.slane %v696_v23, 1  ;;  %849 = vst.msk [vmem:[#allocation2 + $0x1b7] ss:$8 sm:$0x30] %vm5225_vm1, %v845_v20  ;;  %999 = vrot.lane.b32.xlu2 %v997_v21, %s8868_s12  ;;  %s8876_s12 = smov 100  }
  0xc7   : > { %v1012_v24 = vrot.slane %v1011_v22, 1  ;;  %v570_v29 = vpop.permute.xlu2 %569 }
  0xc8   : > { %v698_v27 = vsel %vm8689_vm4, %v696_v23, %v697_v25  ;;  %v571_v30 = vrot.slane %v570_v29, 1  ;;  %vm8692_vm4 = vcmask 859136   ;;  %v619_v25 = vld [vmem:[%s5146_s13] ss:$2 sm:$0x7f] }
  0xc9   : > { %v1013_v26 = vsel %vm1002_vm10, %v1011_v22, %v1012_v24  ;;  %701 = vst.msk [vmem:[#allocation2 + $0x1b0] ss:$8 sm:$0xf] %vm5225_vm1, %v698_v27  ;;  %v598_v22 = vld [vmem:[%s5146_s13] ss:$2 sm:$0x7f] }
  0xca   : > { %1016 = vst.msk [vmem:[#allocation2 + $0x1e7] ss:$8 sm:$0xf] %vm5225_vm1, %v1013_v26  ;;  %v572_v32 = vsel %vm8691_vm9, %v570_v29, %v571_v30  ;;  %vm8694_vm9 = vcmask 900096  }
  0xcb   : > { %1017 = vst.msk [vmem:[#allocation2 + $0x1e7] ss:$8 sm:$0x30] %vm5225_vm1, %v1013_v26 }
  0xcc   : > { %702 = vst.msk [vmem:[#allocation2 + $0x1b0] ss:$8 sm:$0x30] %vm5225_vm1, %v698_v27  ;;  %v640_v27 = vld [vmem:[%s5146_s13] ss:$2 sm:$0x7f] }
  0xcd   : > { %1020 = vrot.lane.b32.xlu0 %v1018_v28, %s8869_s16  ;;  %1041 = vrot.lane.b32.xlu1 %v1039_v31, %s8870_s17  ;;  %v759_v35 = vpop.permute.xlu1 %758  ;;  %575 = vst.msk [vmem:[#allocation2 + $0x182] ss:$8 sm:$0xf] %vm5225_vm1, %v572_v32  ;;  %s8877_s16 = smov 99   ;;  %s8878_s17 = smov 98  }
  0xce   : > { %v738_v34 = vpop.permute.xlu0 %737  ;;  %v760_v38 = vrot.slane %v759_v35, 1  ;;  %576 = vst.msk [vmem:[#allocation2 + $0x182] ss:$8 sm:$0x30] %vm5225_vm1, %v572_v32  ;;  %1062 = vrot.lane.b32.xlu2 %v1060_v33, %s8871_s19  ;;  %s8879_s19 = smov 97  }
  0xcf   : > { %v739_v36 = vrot.slane %v738_v34, 1  ;;  %v633_v46 = vpop.permute.xlu2 %632 }
  0xd0   : > { %v761_v40 = vsel %vm8693_vm3, %v759_v35, %v760_v38  ;;  %v634_v48 = vrot.slane %v633_v46, 1  ;;  %vm8695_vm3 = vcmask 826368   ;;  %v682_v38 = vld [vmem:[%s5146_s13] ss:$2 sm:$0x7f] }
  0xd1   : > { %v740_v39 = vsel %vm8692_vm4, %v738_v34, %v739_v36  ;;  %v1376_v42 = vld [vmem:[#allocation2 + $0x1e0] sm:$0xff]  ;;  %v1377_v43 = vld [vmem:[#allocation2 + $0x1e8] sm:$0xff]  ;;  %v1378_v44 = vld [vmem:[#allocation2 + $0x1f0] sm:$0xff]  ;;  %764 = vst.msk [vmem:[#allocation2 + $0x1b3] ss:$8 sm:$0xf] %vm5225_vm1, %v761_v40 }
  0xd2   : > { %743 = vst.msk [vmem:[#allocation2 + $0x1b2] ss:$8 sm:$0xf] %vm5225_vm1, %v740_v39  ;;  %1454 = vmatpush.msra.mxu0 %v1376_v42  ;;  %1483 = vmatpush.msra.mxu1 %v1377_v43  ;;  %v1379_v47 = vld [vmem:[#allocation2 + $0x1f8] sm:$0xff]  ;;  %v635_v50 = vsel %vm8694_vm9, %v633_v46, %v634_v48  ;;  %vm8696_vm4 = vcmask 834560   ;;  %vm8697_vm9 = vcmask 1006592  }
  0xd3   : > { %744 = vst.msk [vmem:[#allocation2 + $0x1b2] ss:$8 sm:$0x30] %vm5225_vm1, %v740_v39  ;;  %1512 = vmatpush.msra.mxu2 %v1378_v44  ;;  %1541 = vmatpush.msra.mxu3 %v1379_v47  ;;  %v661_v34 = vld [vmem:[%s5146_s13] ss:$2 sm:$0x7f] }
  0xd4   : > { %765 = vst.msk [vmem:[#allocation2 + $0x1b3] ss:$8 sm:$0x30] %vm5225_vm1, %v761_v40  ;;  %v703_v40 = vld [vmem:[%s5146_s13] ss:$2 sm:$0x7f] }
  0xd5   : > { %747 = vrot.lane.b32.xlu0 %v745_v45, %s8872_s29  ;;  %768 = vrot.lane.b32.xlu1 %v766_v49, %s8873_s9  ;;  %v822_v53 = vpop.permute.xlu1 %821  ;;  %638 = vst.msk [vmem:[#allocation2 + $0x185] ss:$8 sm:$0xf] %vm5225_vm1, %v635_v50  ;;  %s8883_s29 = smov 106   ;;  %s8884_s9 = smov 105  }
  0xd6   : > { %v801_v52 = vpop.permute.xlu0 %800  ;;  %v823_v55 = vrot.slane %v822_v53, 1  ;;  %639 = vst.msk [vmem:[#allocation2 + $0x185] ss:$8 sm:$0x30] %vm5225_vm1, %v635_v50  ;;  %789 = vrot.lane.b32.xlu2 %v787_v51, %s8874_s10  ;;  %s8885_s10 = smov 119  }
  0xd7   : > { %v802_v54 = vrot.slane %v801_v52, 1  ;;  %v360_v59 = vpop.permute.xlu2 %359  ;;  %v724_v48 = vld [vmem:[%s5146_s13] ss:$2 sm:$0x7f] }
  0xd8   : > { %v824_v57 = vsel %vm8695_vm3, %v822_v53, %v823_v55  ;;  %v361_v60 = vrot.slane %v360_v59, 1  ;;  %vm8698_vm3 = vcmask 932864   ;;  %v409_v49 = vld [vmem:[%s5146_s13] ss:$2 sm:$0x7f] }
  0xd9   : > { %v803_v56 = vsel %vm8696_vm4, %v801_v52, %v802_v54  ;;  %827 = vst.msk [vmem:[#allocation2 + $0x1b6] ss:$8 sm:$0xf] %vm5225_vm1, %v824_v57  ;;  %vm8699_vm4 = vcmask 941056  }
  0xda   : > { %806 = vst.msk [vmem:[#allocation2 + $0x1b5] ss:$8 sm:$0xf] %vm5225_vm1, %v803_v56  ;;  %v362_v62 = vsel %vm8697_vm9, %v360_v59, %v361_v60  ;;  %vm8700_vm9 = vcmask 982016  }
  0xdb   : > { %807 = vst.msk [vmem:[#allocation2 + $0x1b5] ss:$8 sm:$0x30] %vm5225_vm1, %v803_v56  ;;  %v430_v52 = vld [vmem:[%s5146_s13] ss:$2 sm:$0x7f] }
  0xdc   : > { %828 = vst.msk [vmem:[#allocation2 + $0x1b6] ss:$8 sm:$0x30] %vm5225_vm1, %v824_v57 }
  0xdd   : > { %810 = vrot.lane.b32.xlu0 %v808_v58, %s8875_s11  ;;  %831 = vrot.lane.b32.xlu1 %v829_v61, %s8876_s12  ;;  %v549_v0 = vpop.permute.xlu1 %548  ;;  %365 = vst.msk [vmem:[#allocation2 + $0x150] ss:$8 sm:$0xf] %vm5225_vm1, %v362_v62  ;;  %s8886_s11 = smov 118   ;;  %s8887_s12 = smov 117  }
  0xde   : > { %v528_v1 = vpop.permute.xlu0 %527  ;;  %v550_v2 = vrot.slane %v549_v0, 1  ;;  %366 = vst.msk [vmem:[#allocation2 + $0x150] ss:$8 sm:$0x30] %vm5225_vm1, %v362_v62  ;;  %852 = vrot.lane.b32.xlu2 %v850_v63, %s8877_s16  ;;  %s8888_s16 = smov 116  }
  0xdf   : > { %v529_v3 = vrot.slane %v528_v1, 1  ;;  %v423_v8 = vpop.permute.xlu2 %422  ;;  %v4524_v62 = vld [vmem:[%s5146_s13 + $0x1] ss:$2 sm:$0x3f] }
  0xe0   : > { %v551_v4 = vsel %vm8698_vm3, %v549_v0, %v550_v2  ;;  %v424_v9 = vrot.slane %v423_v8, 1  ;;  %vm8701_vm3 = vcmask 908288   ;;  %259 = vst.msk [vmem:[#allocation2 + $0x123] ss:$8 sm:$0xf] %vm5225_vm1, %v4524_v62 }
  0xe1   : > { %v530_v5 = vsel %vm8699_vm4, %v528_v1, %v529_v3  ;;  %554 = vst.msk [vmem:[#allocation2 + $0x181] ss:$8 sm:$0xf] %vm5225_vm1, %v551_v4  ;;  %v1370_v11 = vld [vmem:[#allocation2 + $0x1b0] sm:$0xff]  ;;  %v1371_v12 = vld [vmem:[#allocation2 + $0x1b8] sm:$0xff]  ;;  %v1372_v13 = vld [vmem:[#allocation2 + $0x1c0] sm:$0xff] }
  0xe2   : > { %555 = vst.msk [vmem:[#allocation2 + $0x181] ss:$8 sm:$0x30] %vm5225_vm1, %v551_v4  ;;  %1455 = vmatpush.msra.mxu0 %v1370_v11  ;;  %1484 = vmatpush.msra.mxu1 %v1371_v12  ;;  %v1373_v14 = vld [vmem:[#allocation2 + $0x1c8] sm:$0xff]  ;;  %v425_v15 = vsel %vm8700_vm9, %v423_v8, %v424_v9  ;;  %vm8702_vm4 = vcmask 916480   ;;  %vm8703_vm9 = vcmask 957440  }
  0xe3   : > { %533 = vst.msk [vmem:[#allocation2 + $0x180] ss:$8 sm:$0xf] %vm5225_vm1, %v530_v5  ;;  %1513 = vmatpush.msra.mxu2 %v1372_v13  ;;  %1542 = vmatpush.msra.mxu3 %v1373_v14  ;;  %v451_v1 = vld [vmem:[%s5146_s13] ss:$2 sm:$0x7f] }
  0xe4   : > { %534 = vst.msk [vmem:[#allocation2 + $0x180] ss:$8 sm:$0x30] %vm5225_vm1, %v530_v5  ;;  %v472_v4 = vld [vmem:[%s5146_s13] ss:$2 sm:$0x7f] }
  0xe5   : > { %873 = vrot.lane.b32.xlu0 %v871_v6, %s8878_s17  ;;  %894 = vrot.lane.b32.xlu1 %v892_v7, %s8879_s19  ;;  %v612_v16 = vpop.permute.xlu1 %611  ;;  %428 = vst.msk [vmem:[#allocation2 + $0x153] ss:$8 sm:$0xf] %vm5225_vm1, %v425_v15  ;;  %v493_v6 = vld [vmem:[%s5146_s13] ss:$2 sm:$0x7f] }
  0xe6   : > { %v591_v17 = vpop.permute.xlu0 %590  ;;  %v613_v18 = vrot.slane %v612_v16, 1  ;;  %429 = vst.msk [vmem:[#allocation2 + $0x153] ss:$8 sm:$0x30] %vm5225_vm1, %v425_v15  ;;  %579 = vrot.lane.b32.xlu2 %v577_v10, %s5037_s28  ;;  %s8880_s28 = smov 109   ;;  %s8889_s17 = smov 115  }
  0xe7   : > { %v592_v19 = vrot.slane %v591_v17, 1  ;;  %v486_v23 = vpop.permute.xlu2 %485  ;;  %260 = vst.msk [vmem:[#allocation2 + $0x123] ss:$8 sm:$0x30] %vm5225_vm1, %v4524_v62  ;;  %s8890_s19 = smov 114  }
  0xe8   : > { %v614_v20 = vsel %vm8701_vm3, %v612_v16, %v613_v18  ;;  %v487_v24 = vrot.slane %v486_v23, 1  ;;  %vm8704_vm3 = vcmask 883712   ;;  %v514_v13 = vld [vmem:[%s5146_s13] ss:$2 sm:$0x7f] }
  0xe9   : > { %v593_v21 = vsel %vm8702_vm4, %v591_v17, %v592_v19  ;;  %617 = vst.msk [vmem:[#allocation2 + $0x184] ss:$8 sm:$0xf] %vm5225_vm1, %v614_v20  ;;  %vm8705_vm4 = vcmask 891904  }
  0xea   : > { %618 = vst.msk [vmem:[#allocation2 + $0x184] ss:$8 sm:$0x30] %vm5225_vm1, %v614_v20  ;;  %v488_v26 = vsel %vm8703_vm9, %v486_v23, %v487_v24  ;;  %vm8707_vm9 = vcmask 1031168  }
  0xeb   : > { %596 = vst.msk [vmem:[#allocation2 + $0x183] ss:$8 sm:$0xf] %vm5225_vm1, %v593_v21  ;;  %v535_v16 = vld [vmem:[%s5146_s13] ss:$2 sm:$0x7f] }
  0xec   : > { %597 = vst.msk [vmem:[#allocation2 + $0x183] ss:$8 sm:$0x30] %vm5225_vm1, %v593_v21  ;;  %v556_v18 = vld [vmem:[%s5146_s13] ss:$2 sm:$0x7f] }
  0xed   : > { %600 = vrot.lane.b32.xlu0 %v598_v22, %s5036_s18  ;;  %621 = vrot.lane.b32.xlu1 %v619_v25, %s5038_s15  ;;  %v675_v28 = vpop.permute.xlu1 %674  ;;  %491 = vst.msk [vmem:[#allocation2 + $0x156] ss:$8 sm:$0xf] %vm5225_vm1, %v488_v26  ;;  %s8881_s15 = smov 108   ;;  %s8882_s18 = smov 107  }
  0xee   : > { %v654_v29 = vpop.permute.xlu0 %653  ;;  %v676_v30 = vrot.slane %v675_v28, 1  ;;  %492 = vst.msk [vmem:[#allocation2 + $0x156] ss:$8 sm:$0x30] %vm5225_vm1, %v488_v26  ;;  %642 = vrot.lane.b32.xlu2 %v640_v27, %s8880_s28  ;;  %s8891_s28 = smov 113  }
  0xef   : > { %v655_v31 = vrot.slane %v654_v29, 1  ;;  %v297_v35 = vpop.permute.xlu2 %296 }
  0xf0   : > { %v677_v32 = vsel %vm8704_vm3, %v675_v28, %v676_v30  ;;  %v298_v36 = vrot.slane %v297_v35, 1  ;;  %vm8706_vm3 = vcmask 990208   ;;  %v261_v28 = vld [vmem:[%s5146_s13] ss:$2 sm:$0x7f] }
  0xf1   : > { %v656_v33 = vsel %vm8705_vm4, %v654_v29, %v655_v31  ;;  %680 = vst.msk [vmem:[#allocation2 + $0x187] ss:$8 sm:$0xf] %vm5225_vm1, %v677_v32  ;;  %vm8708_vm4 = vcmask 998400  }
  0xf2   : > { %681 = vst.msk [vmem:[#allocation2 + $0x187] ss:$8 sm:$0x30] %vm5225_vm1, %v677_v32  ;;  %v299_v39 = vsel %vm8707_vm9, %v297_v35, %v298_v36  ;;  %vm435_vm9 = vcmask 973824  }
  0xf3   : > { %659 = vst.msk [vmem:[#allocation2 + $0x186] ss:$8 sm:$0xf] %vm5225_vm1, %v656_v33  ;;  %v283_v32 = vld [vmem:[%s5146_s13] ss:$2 sm:$0x7f] }
  0xf4   : > { %660 = vst.msk [vmem:[#allocation2 + $0x186] ss:$8 sm:$0x30] %vm5225_vm1, %v656_v33  ;;  %v304_v35 = vld [vmem:[%s5146_s13] ss:$2 sm:$0x7f] }
  0xf5   : > { %663 = vrot.lane.b32.xlu0 %v661_v34, %s8881_s15  ;;  %684 = vrot.lane.b32.xlu1 %v682_v38, %s8882_s18  ;;  %v402_v42 = vpop.permute.xlu1 %401  ;;  %302 = vst.msk [vmem:[#allocation2 + $0x125] ss:$8 sm:$0xf] %vm5225_vm1, %v299_v39  ;;  %s8892_s15 = smov 127   ;;  %s8893_s18 = smov 126  }
  0xf6   : > { %v381_v43 = vpop.permute.xlu0 %380  ;;  %v403_v44 = vrot.slane %v402_v42, 1  ;;  %303 = vst.msk [vmem:[#allocation2 + $0x125] ss:$8 sm:$0x30] %vm5225_vm1, %v299_v39  ;;  %705 = vrot.lane.b32.xlu2 %v703_v40, %s8883_s29  ;;  %s8894_s29 = smov 123  }
  0xf7   : > { %v382_v45 = vrot.slane %v381_v43, 1  ;;  %v1252_v50 = vpop.permute.xlu2 %1251 }
  0xf8   : > { %v404_v46 = vsel %vm8706_vm3, %v402_v42, %v403_v44  ;;  %v1253_v51 = vrot.slane %v1252_v50, 1  ;;  %vm456_vm3 = vcmask 965632   ;;  %v325_v42 = vld [vmem:[%s5146_s13] ss:$2 sm:$0x7f] }
  0xf9   : > { %v383_v47 = vsel %vm8708_vm4, %v381_v43, %v382_v45  ;;  %407 = vst.msk [vmem:[#allocation2 + $0x152] ss:$8 sm:$0xf] %vm5225_vm1, %v404_v46  ;;  %vm8709_vm4 = vcmask 1039360  }
  0xfa   : > { %408 = vst.msk [vmem:[#allocation2 + $0x152] ss:$8 sm:$0x30] %vm5225_vm1, %v404_v46  ;;  %v1364_v53 = vld [vmem:[#allocation2 + $0x180] sm:$0xff]  ;;  %v1365_v54 = vld [vmem:[#allocation2 + $0x188] sm:$0xff]  ;;  %v1366_v55 = vld [vmem:[#allocation2 + $0x190] sm:$0xff]  ;;  %v1255_v57 = vsel %vm1254_vm7, %v1252_v50, %v1253_v51 }
  0xfb   : > { %386 = vst.msk [vmem:[#allocation2 + $0x151] ss:$8 sm:$0xf] %vm5225_vm1, %v383_v47  ;;  %1456 = vmatpush.msra.mxu0 %v1364_v53  ;;  %1485 = vmatpush.msra.mxu1 %v1365_v54  ;;  %v1367_v56 = vld [vmem:[#allocation2 + $0x198] sm:$0xff]  ;;  %vm498_vm7 = vcmask 949248  }
  0xfc   : > { %387 = vst.msk [vmem:[#allocation2 + $0x151] ss:$8 sm:$0x30] %vm5225_vm1, %v383_v47  ;;  %1514 = vmatpush.msra.mxu2 %v1366_v55  ;;  %1543 = vmatpush.msra.mxu3 %v1367_v56  ;;  %v346_v46 = vld [vmem:[%s5146_s13] ss:$2 sm:$0x7f] }
  0xfd   : > { %726 = vrot.lane.b32.xlu0 %v724_v48, %s8884_s9  ;;  %411 = vrot.lane.b32.xlu1 %v409_v49, %s8710_s26  ;;  %v465_v58 = vpop.permute.xlu1 %464  ;;  %1258 = vst.msk [vmem:[#allocation2 + $0x120] ss:$8 sm:$0xf] %vm5225_vm1, %v1255_v57  ;;  %v367_v49 = vld [vmem:[%s5146_s13] ss:$2 sm:$0x7f] }
  0xfe   : > { %v444_v59 = vpop.permute.xlu0 %443  ;;  %v466_v60 = vrot.slane %v465_v58, 1  ;;  %1259 = vst.msk [vmem:[#allocation2 + $0x120] ss:$8 sm:$0x30] %vm5225_vm1, %v1255_v57  ;;  %432 = vrot.lane.b32.xlu2 %v430_v52, %s8885_s10  ;;  %s8895_s9 = smov 122   ;;  %s9239_s26 = smov 124  }
  0xff   : > { %v445_v61 = vrot.slane %v444_v59, 1  ;;  %v1084_v2 = vpop.permute.xlu2 %1083  ;;  %v388_v54 = vld [vmem:[%s5146_s13] ss:$2 sm:$0x7f] }
 0x100   : > { %v467_v63 = vsel %vm456_vm3, %v465_v58, %v466_v60  ;;  %v1085_v3 = vrot.slane %v1084_v2, 1 }
 0x101   : > { %v446_v0 = vsel %vm435_vm9, %v444_v59, %v445_v61  ;;  %470 = vst.msk [vmem:[#allocation2 + $0x155] ss:$8 sm:$0xf] %vm5225_vm1, %v467_v63 }
 0x102   : > { %471 = vst.msk [vmem:[#allocation2 + $0x155] ss:$8 sm:$0x30] %vm5225_vm1, %v467_v63  ;;  %v1087_v5 = vsel %vm1086_vm15, %v1084_v2, %v1085_v3  ;;  %vm309_vm15 = vcmask 1022976  }
 0x103   : > { %449 = vst.msk [vmem:[#allocation2 + $0x154] ss:$8 sm:$0xf] %vm5225_vm1, %v446_v0 }
 0x104   : > { %450 = vst.msk [vmem:[#allocation2 + $0x154] ss:$8 sm:$0x30] %vm5225_vm1, %v446_v0 }
 0x105   : > { %453 = vrot.lane.b32.xlu0 %v451_v1, %s8886_s11  ;;  %474 = vrot.lane.b32.xlu1 %v472_v4, %s8887_s12  ;;  %v276_v8 = vpop.permute.xlu1 %275  ;;  %1090 = vst.msk [vmem:[#allocation2 + $0xf0] ss:$8 sm:$0xf] %vm5225_vm1, %v1087_v5 }
 0x106   : > { %v507_v7 = vpop.permute.xlu0 %506  ;;  %v277_v10 = vrot.slane %v276_v8, 1  ;;  %1091 = vst.msk [vmem:[#allocation2 + $0xf0] ss:$8 sm:$0x30] %vm5225_vm1, %v1087_v5  ;;  %495 = vrot.lane.b32.xlu2 %v493_v6, %s8888_s16 }
 0x107   : > { %v508_v9 = vrot.slane %v507_v7, 1  ;;  %v1147_v14 = vpop.permute.xlu2 %1146 }
 0x108   : > { %v278_v12 = vsel %vm8709_vm4, %v276_v8, %v277_v10  ;;  %v1148_v15 = vrot.slane %v1147_v14, 1  ;;  %vm330_vm4 = vcmask 1014784  }
 0x109   : > { %v509_v11 = vsel %vm498_vm7, %v507_v7, %v508_v9  ;;  %281 = vst.msk [vmem:[#allocation2 + $0x124] ss:$8 sm:$0xf] %vm5225_vm1, %v278_v12 }
 0x10a   : > { %512 = vst.msk [vmem:[#allocation2 + $0x157] ss:$8 sm:$0xf] %vm5225_vm1, %v509_v11  ;;  %v1150_v17 = vsel %vm1149_vm11, %v1147_v14, %v1148_v15  ;;  %vm8903_vm11 = vcmask 809984  }
 0x10b   : > { %513 = vst.msk [vmem:[#allocation2 + $0x157] ss:$8 sm:$0x30] %vm5225_vm1, %v509_v11 }
 0x10c   : > { %282 = vst.msk [vmem:[#allocation2 + $0x124] ss:$8 sm:$0x30] %vm5225_vm1, %v278_v12 }
 0x10d   : > { %516 = vrot.lane.b32.xlu0 %v514_v13, %s8889_s17  ;;  %537 = vrot.lane.b32.xlu1 %v535_v16, %s8890_s19  ;;  %v339_v20 = vpop.permute.xlu1 %338  ;;  %1153 = vst.msk [vmem:[#allocation2 + $0xf3] ss:$8 sm:$0xf] %vm5225_vm1, %v1150_v17 }
 0x10e   : > { %v318_v19 = vpop.permute.xlu0 %317  ;;  %v340_v22 = vrot.slane %v339_v20, 1  ;;  %1154 = vst.msk [vmem:[#allocation2 + $0xf3] ss:$8 sm:$0x30] %vm5225_vm1, %v1150_v17  ;;  %558 = vrot.lane.b32.xlu2 %v556_v18, %s8891_s28  ;;  %s8896_s28 = smov 121  }
 0x10f   : > { %v319_v21 = vrot.slane %v318_v19, 1  ;;  %v1210_v29 = vpop.permute.xlu2 %1209 }
 0x110   : > { %v341_v24 = vsel %vm330_vm4, %v339_v20, %v340_v22  ;;  %v1211_v31 = vrot.slane %v1210_v29, 1 }
 0x111   : > { %v320_v23 = vsel %vm309_vm15, %v318_v19, %v319_v21  ;;  %v1358_v25 = vld [vmem:[#allocation2 + $0x150] sm:$0xff]  ;;  %v1359_v26 = vld [vmem:[#allocation2 + $0x158] sm:$0xff]  ;;  %v1360_v27 = vld [vmem:[#allocation2 + $0x160] sm:$0xff]  ;;  %344 = vst.msk [vmem:[#allocation2 + $0x127] ss:$8 sm:$0xf] %vm5225_vm1, %v341_v24 }
 0x112   : > { %323 = vst.msk [vmem:[#allocation2 + $0x126] ss:$8 sm:$0xf] %vm5225_vm1, %v320_v23  ;;  %1457 = vmatpush.msra.mxu0 %v1358_v25  ;;  %1486 = vmatpush.msra.mxu1 %v1359_v26  ;;  %v1361_v30 = vld [vmem:[#allocation2 + $0x168] sm:$0xff]  ;;  %v1213_v33 = vsel %vm1212_vm8, %v1210_v29, %v1211_v31  ;;  %vm8901_vm8 = vcmask 769024  }
 0x113   : > { %324 = vst.msk [vmem:[#allocation2 + $0x126] ss:$8 sm:$0x30] %vm5225_vm1, %v320_v23  ;;  %1515 = vmatpush.msra.mxu2 %v1360_v27  ;;  %1544 = vmatpush.msra.mxu3 %v1361_v30 }
 0x114   : > { %345 = vst.msk [vmem:[#allocation2 + $0x127] ss:$8 sm:$0x30] %vm5225_vm1, %v341_v24 }
 0x115   : > { %263 = vrot.lane.b32.xlu0 %v261_v28, %s8892_s15  ;;  %285 = vrot.lane.b32.xlu1 %v283_v32, %s8893_s18  ;;  %1216 = vst.msk [vmem:[#allocation2 + $0xf6] ss:$8 sm:$0xf] %vm5225_vm1, %v1213_v33  ;;  %v1294_v38 = vpop.permute.xlu1 %1293 }
 0x116   : > { %v1273_v34 = vpop.permute.xlu0 %1272  ;;  %1217 = vst.msk [vmem:[#allocation2 + $0xf6] ss:$8 sm:$0x30] %vm5225_vm1, %v1213_v33  ;;  %306 = vrot.lane.b32.xlu2 %v304_v35, %s8714_s20  ;;  %v1295_v39 = vrot.slane %v1294_v38, 1  ;;  %s9238_s20 = smov 125  }
 0x117   : > { %v1274_v36 = vrot.slane %v1273_v34, 1 }
 0x118   : > { %v937_v43 = vpop.permute.xlu2 %936  ;;  %v1297_v44 = vsel %vm1296_vm2, %v1294_v38, %v1295_v39  ;;  %vm8898_vm2 = vcmask 662528  }
 0x119   : > { %v1276_v40 = vsel %vm1275_vm0, %v1273_v34, %v1274_v36  ;;  %v938_v45 = vrot.slane %v937_v43, 1  ;;  %1300 = vst.msk [vmem:[#allocation2 + $0x122] ss:$8 sm:$0xf] %vm5225_vm1, %v1297_v44  ;;  %vm8897_vm0 = vcmask 728064  }
 0x11a   : > { %1279 = vst.msk [vmem:[#allocation2 + $0x121] ss:$8 sm:$0xf] %vm5225_vm1, %v1276_v40 }
 0x11b   : > { %1280 = vst.msk [vmem:[#allocation2 + $0x121] ss:$8 sm:$0x30] %vm5225_vm1, %v1276_v40  ;;  %v940_v47 = vsel %vm939_vm13, %v937_v43, %v938_v45  ;;  %vm8905_vm13 = vcmask 736256  }
 0x11c   : > { %1301 = vst.msk [vmem:[#allocation2 + $0x122] ss:$8 sm:$0x30] %vm5225_vm1, %v1297_v44 }
 0x11d   : > { %327 = vrot.lane.b32.xlu0 %v325_v42, %s8712_s14  ;;  %348 = vrot.lane.b32.xlu1 %v346_v46, %s8894_s29  ;;  %943 = vst.msk [vmem:[#allocation2 + $0xc1] ss:$8 sm:$0xf] %vm5225_vm1, %v940_v47  ;;  %v1126_v51 = vpop.permute.xlu1 %1125  ;;  %s5056_s14 = smov 7  }
 0x11e   : > { %v1105_v48 = vpop.permute.xlu0 %1104  ;;  %944 = vst.msk [vmem:[#allocation2 + $0xc1] ss:$8 sm:$0x30] %vm5225_vm1, %v940_v47  ;;  %369 = vrot.lane.b32.xlu2 %v367_v49, %s8895_s9  ;;  %v1127_v52 = vrot.slane %v1126_v51, 1 }
 0x11f   : > { %v1106_v50 = vrot.slane %v1105_v48, 1 }
 0x120   : > { %v1000_v55 = vpop.permute.xlu2 %999  ;;  %v1129_v56 = vsel %vm1128_vm6, %v1126_v51, %v1127_v52  ;;  %vm8900_vm6 = vcmask 834560  }
 0x121   : > { %v1108_v53 = vsel %vm1107_vm14, %v1105_v48, %v1106_v50  ;;  %v1001_v57 = vrot.slane %v1000_v55, 1  ;;  %v1352_v58 = vld [vmem:[#allocation2 + $0x120] sm:$0xff]  ;;  %v1353_v59 = vld [vmem:[#allocation2 + $0x128] sm:$0xff]  ;;  %v1354_v60 = vld [vmem:[#allocation2 + $0x130] sm:$0xff]  ;;  %vm8906_vm14 = vcmask 916480  }
 0x122   : > { %1111 = vst.msk [vmem:[#allocation2 + $0xf1] ss:$8 sm:$0xf] %vm5225_vm1, %v1108_v53  ;;  %1458 = vmatpush.msra.mxu0 %v1352_v58  ;;  %1487 = vmatpush.msra.mxu1 %v1353_v59  ;;  %v1355_v61 = vld [vmem:[#allocation2 + $0x138] sm:$0xff] }
 0x123   : > { %1112 = vst.msk [vmem:[#allocation2 + $0xf1] ss:$8 sm:$0x30] %vm5225_vm1, %v1108_v53  ;;  %v1003_v62 = vsel %vm1002_vm10, %v1000_v55, %v1001_v57  ;;  %1516 = vmatpush.msra.mxu2 %v1354_v60  ;;  %1545 = vmatpush.msra.mxu3 %v1355_v61  ;;  %vm8902_vm10 = vcmask 760832  }
 0x124   : > { %1132 = vst.msk [vmem:[#allocation2 + $0xf2] ss:$8 sm:$0xf] %vm5225_vm1, %v1129_v56 }
 0x125   : > { %1133 = vst.msk [vmem:[#allocation2 + $0xf2] ss:$8 sm:$0x30] %vm5225_vm1, %v1129_v56  ;;  %390 = vrot.lane.b32.xlu0 %v388_v54, %s8896_s28  ;;  %v1189_v1 = vpop.permute.xlu1 %1188 }
 0x126   : > { %v1168_v63 = vpop.permute.xlu0 %1167  ;;  %1006 = vst.msk [vmem:[#allocation2 + $0xc4] ss:$8 sm:$0xf] %vm5225_vm1, %v1003_v62  ;;  %v1190_v2 = vrot.slane %v1189_v1, 1 }
 0x127   : > { %v1169_v0 = vrot.slane %v1168_v63, 1  ;;  %1007 = vst.msk [vmem:[#allocation2 + $0xc4] ss:$8 sm:$0x30] %vm5225_vm1, %v1003_v62 }
 0x128   : > { %v1063_v4 = vpop.permute.xlu2 %1062  ;;  %v1192_v5 = vsel %vm1191_vm5, %v1189_v1, %v1190_v2  ;;  %vm8899_vm5 = vcmask 785408  }
 0x129   : > { %v1171_v3 = vsel %vm1170_vm12, %v1168_v63, %v1169_v0  ;;  %v1064_v6 = vrot.slane %v1063_v4, 1  ;;  %1195 = vst.msk [vmem:[#allocation2 + $0xf5] ss:$8 sm:$0xf] %vm5225_vm1, %v1192_v5  ;;  %vm8904_vm12 = vcmask 744448  }
 0x12a   : > { %1174 = vst.msk [vmem:[#allocation2 + $0xf4] ss:$8 sm:$0xf] %vm5225_vm1, %v1171_v3 }
 0x12b   : > { %1175 = vst.msk [vmem:[#allocation2 + $0xf4] ss:$8 sm:$0x30] %vm5225_vm1, %v1171_v3  ;;  %v1066_v7 = vsel %vm8897_vm0, %v1063_v4, %v1064_v6  ;;  %vm8907_vm0 = vcmask 850944  }
 0x12c   : > { %1196 = vst.msk [vmem:[#allocation2 + $0xf5] ss:$8 sm:$0x30] %vm5225_vm1, %v1192_v5 }
 0x12d   : > { %1069 = vst.msk [vmem:[#allocation2 + $0xc7] ss:$8 sm:$0xf] %vm5225_vm1, %v1066_v7 }
 0x12e   : > { %1070 = vst.msk [vmem:[#allocation2 + $0xc7] ss:$8 sm:$0x30] %vm5225_vm1, %v1066_v7 }
 0x12f   : > { %v1231_v8 = vpop.permute.xlu0 %1230  ;;  %v916_v9 = vpop.permute.xlu1 %915 }
 0x130   : > { %v1232_v10 = vrot.slane %v1231_v8, 1  ;;  %v917_v11 = vrot.slane %v916_v9, 1  ;;  %v790_v12 = vpop.permute.xlu2 %789 }
 0x131   : > { %v791_v13 = vrot.slane %v790_v12, 1 }
 0x132   : > { %v1234_v14 = vsel %vm8898_vm2, %v1231_v8, %v1232_v10  ;;  %v919_v15 = vsel %vm8899_vm5, %v916_v9, %v917_v11  ;;  %vm8908_vm2 = vcmask 842752   ;;  %vm8909_vm5 = vcmask 891904  }
 0x133   : > { %1237 = vst.msk [vmem:[#allocation2 + $0xf7] ss:$8 sm:$0xf] %vm5225_vm1, %v1234_v14  ;;  %v793_v16 = vsel %vm8900_vm6, %v790_v12, %v791_v13  ;;  %vm8910_vm6 = vcmask 826368  }
 0x134   : > { %1238 = vst.msk [vmem:[#allocation2 + $0xf7] ss:$8 sm:$0x30] %vm5225_vm1, %v1234_v14 }
 0x135   : > { %922 = vst.msk [vmem:[#allocation2 + $0xc0] ss:$8 sm:$0xf] %vm5225_vm1, %v919_v15 }
 0x136   : > { %923 = vst.msk [vmem:[#allocation2 + $0xc0] ss:$8 sm:$0x30] %vm5225_vm1, %v919_v15 }
 0x137   : > { %v958_v17 = vpop.permute.xlu0 %957  ;;  %v979_v18 = vpop.permute.xlu1 %978  ;;  %796 = vst.msk [vmem:[#allocation2 + $0x92] ss:$8 sm:$0xf] %vm5225_vm1, %v793_v16 }
 0x138   : > { %v959_v19 = vrot.slane %v958_v17, 1  ;;  %v980_v20 = vrot.slane %v979_v18, 1  ;;  %797 = vst.msk [vmem:[#allocation2 + $0x92] ss:$8 sm:$0x30] %vm5225_vm1, %v793_v16  ;;  %v853_v21 = vpop.permute.xlu2 %852 }
 0x139   : > { %v854_v22 = vrot.slane %v853_v21, 1 }
 0x13a   : > { %v961_v23 = vsel %vm8901_vm8, %v958_v17, %v959_v19  ;;  %v982_v24 = vsel %vm8902_vm10, %v979_v18, %v980_v20  ;;  %v1346_v25 = vld [vmem:[#allocation2 + $0xf0] sm:$0xff]  ;;  %v1347_v26 = vld [vmem:[#allocation2 + $0xf8] sm:$0xff]  ;;  %v1348_v27 = vld [vmem:[#allocation2 + $0x100] sm:$0xff]  ;;  %vm8911_vm8 = vcmask 818176   ;;  %vm8912_vm10 = vcmask 867328  }
 0x13b   : > { %964 = vst.msk [vmem:[#allocation2 + $0xc2] ss:$8 sm:$0xf] %vm5225_vm1, %v961_v23  ;;  %1459 = vmatpush.msra.mxu0 %v1346_v25  ;;  %1488 = vmatpush.msra.mxu1 %v1347_v26  ;;  %v1349_v28 = vld [vmem:[#allocation2 + $0x108] sm:$0xff]  ;;  %v856_v29 = vsel %vm8903_vm11, %v853_v21, %v854_v22  ;;  %vm8913_vm11 = vcmask 801792  }
 0x13c   : > { %965 = vst.msk [vmem:[#allocation2 + $0xc2] ss:$8 sm:$0x30] %vm5225_vm1, %v961_v23  ;;  %1517 = vmatpush.msra.mxu2 %v1348_v27  ;;  %1546 = vmatpush.msra.mxu3 %v1349_v28 }
 0x13d   : > { %985 = vst.msk [vmem:[#allocation2 + $0xc3] ss:$8 sm:$0xf] %vm5225_vm1, %v982_v24 }
 0x13e   : > { %986 = vst.msk [vmem:[#allocation2 + $0xc3] ss:$8 sm:$0x30] %vm5225_vm1, %v982_v24 }
 0x13f   : > { %v1021_v30 = vpop.permute.xlu0 %1020  ;;  %v1042_v31 = vpop.permute.xlu1 %1041  ;;  %859 = vst.msk [vmem:[#allocation2 + $0x95] ss:$8 sm:$0xf] %vm5225_vm1, %v856_v29 }
 0x140   : > { %v1022_v32 = vrot.slane %v1021_v30, 1  ;;  %v1043_v33 = vrot.slane %v1042_v31, 1  ;;  %860 = vst.msk [vmem:[#allocation2 + $0x95] ss:$8 sm:$0x30] %vm5225_vm1, %v856_v29  ;;  %v580_v34 = vpop.permute.xlu2 %579 }
 0x141   : > { %v581_v35 = vrot.slane %v580_v34, 1 }
 0x142   : > { %v1024_v36 = vsel %vm8904_vm12, %v1021_v30, %v1022_v32  ;;  %v1045_v38 = vsel %vm8905_vm13, %v1042_v31, %v1043_v33  ;;  %vm8914_vm12 = vcmask 793600   ;;  %vm8915_vm13 = vcmask 908288  }
 0x143   : > { %1027 = vst.msk [vmem:[#allocation2 + $0xc5] ss:$8 sm:$0xf] %vm5225_vm1, %v1024_v36  ;;  %v583_v39 = vsel %vm8906_vm14, %v580_v34, %v581_v35  ;;  %vm8916_vm14 = vcmask 900096  }
 0x144   : > { %1028 = vst.msk [vmem:[#allocation2 + $0xc5] ss:$8 sm:$0x30] %vm5225_vm1, %v1024_v36 }
 0x145   : > { %1048 = vst.msk [vmem:[#allocation2 + $0xc6] ss:$8 sm:$0xf] %vm5225_vm1, %v1045_v38 }
 0x146   : > { %1049 = vst.msk [vmem:[#allocation2 + $0xc6] ss:$8 sm:$0x30] %vm5225_vm1, %v1045_v38 }
 0x147   : > { %v748_v40 = vpop.permute.xlu0 %747  ;;  %v769_v42 = vpop.permute.xlu1 %768  ;;  %586 = vst.msk [vmem:[#allocation2 + $0x60] ss:$8 sm:$0xf] %vm5225_vm1, %v583_v39 }
 0x148   : > { %v749_v43 = vrot.slane %v748_v40, 1  ;;  %v770_v44 = vrot.slane %v769_v42, 1  ;;  %587 = vst.msk [vmem:[#allocation2 + $0x60] ss:$8 sm:$0x30] %vm5225_vm1, %v583_v39  ;;  %v643_v45 = vpop.permute.xlu2 %642 }
 0x149   : > { %v644_v46 = vrot.slane %v643_v45, 1 }
 0x14a   : > { %v751_v47 = vsel %vm8907_vm0, %v748_v40, %v749_v43  ;;  %v772_v48 = vsel %vm8908_vm2, %v769_v42, %v770_v44  ;;  %vm8917_vm0 = vcmask 883712   ;;  %vm8918_vm2 = vcmask 875520  }
 0x14b   : > { %754 = vst.msk [vmem:[#allocation2 + $0x90] ss:$8 sm:$0xf] %vm5225_vm1, %v751_v47  ;;  %v646_v52 = vsel %vm8909_vm5, %v643_v45, %v644_v46  ;;  %vm8919_vm5 = vcmask 924672  }
 0x14c   : > { %755 = vst.msk [vmem:[#allocation2 + $0x90] ss:$8 sm:$0x30] %vm5225_vm1, %v751_v47  ;;  %v1340_v49 = vld [vmem:[#allocation2 + $0xc0] sm:$0xff]  ;;  %v1341_v50 = vld [vmem:[#allocation2 + $0xc8] sm:$0xff]  ;;  %v1342_v51 = vld [vmem:[#allocation2 + $0xd0] sm:$0xff] }
 0x14d   : > { %775 = vst.msk [vmem:[#allocation2 + $0x91] ss:$8 sm:$0xf] %vm5225_vm1, %v772_v48  ;;  %1460 = vmatpush.msra.mxu0 %v1340_v49  ;;  %1489 = vmatpush.msra.mxu1 %v1341_v50  ;;  %v1343_v53 = vld [vmem:[#allocation2 + $0xd8] sm:$0xff] }
 0x14e   : > { %776 = vst.msk [vmem:[#allocation2 + $0x91] ss:$8 sm:$0x30] %vm5225_vm1, %v772_v48  ;;  %1518 = vmatpush.msra.mxu2 %v1342_v51  ;;  %1547 = vmatpush.msra.mxu3 %v1343_v53 }
 0x14f   : > { %v811_v54 = vpop.permute.xlu0 %810  ;;  %v832_v55 = vpop.permute.xlu1 %831  ;;  %649 = vst.msk [vmem:[#allocation2 + $0x63] ss:$8 sm:$0xf] %vm5225_vm1, %v646_v52 }
 0x150   : > { %v812_v56 = vrot.slane %v811_v54, 1  ;;  %v833_v57 = vrot.slane %v832_v55, 1  ;;  %650 = vst.msk [vmem:[#allocation2 + $0x63] ss:$8 sm:$0x30] %vm5225_vm1, %v646_v52  ;;  %v706_v58 = vpop.permute.xlu2 %705 }
 0x151   : > { %v707_v59 = vrot.slane %v706_v58, 1 }
 0x152   : > { %v814_v60 = vsel %vm8910_vm6, %v811_v54, %v812_v56  ;;  %v835_v61 = vsel %vm8911_vm8, %v832_v55, %v833_v57  ;;  %vm8920_vm6 = vcmask 859136   ;;  %vm8921_vm8 = vcmask 982016   ;;  %v249_v54 = vld [vmem:[%s5146_s13] ss:$2 sm:$0x3f]  ;;  %s9240_s13 = smov 120  }
 0x153   : > { %817 = vst.msk [vmem:[#allocation2 + $0x93] ss:$8 sm:$0xf] %vm5225_vm1, %v814_v60  ;;  %v709_v62 = vsel %vm8912_vm10, %v706_v58, %v707_v59  ;;  %vm8922_vm10 = vcmask 957440  }
 0x154   : > { %818 = vst.msk [vmem:[#allocation2 + $0x93] ss:$8 sm:$0x30] %vm5225_vm1, %v814_v60 }
 0x155   : > { %838 = vst.msk [vmem:[#allocation2 + $0x94] ss:$8 sm:$0xf] %vm5225_vm1, %v835_v61 }
 0x156   : > { %839 = vst.msk [vmem:[#allocation2 + $0x94] ss:$8 sm:$0x30] %vm5225_vm1, %v835_v61 }
 0x157   : > { %v874_v63 = vpop.permute.xlu0 %873  ;;  %v895_v0 = vpop.permute.xlu1 %894  ;;  %712 = vst.msk [vmem:[#allocation2 + $0x66] ss:$8 sm:$0xf] %vm5225_vm1, %v709_v62 }
 0x158   : > { %v875_v1 = vrot.slane %v874_v63, 1  ;;  %v896_v2 = vrot.slane %v895_v0, 1  ;;  %713 = vst.msk [vmem:[#allocation2 + $0x66] ss:$8 sm:$0x30] %vm5225_vm1, %v709_v62  ;;  %v433_v3 = vpop.permute.xlu2 %432 }
 0x159   : > { %v434_v4 = vrot.slane %v433_v3, 1  ;;  %254 = vst.msk [vmem:[#allocation2] ss:$8 sm:$0xf] %vm5225_vm1, %v249_v54 }
 0x15a   : > { %v877_v5 = vsel %vm8913_vm11, %v874_v63, %v875_v1  ;;  %v898_v6 = vsel %vm8914_vm12, %v895_v0, %v896_v2  ;;  %vm8923_vm11 = vcmask 998400   ;;  %vm8924_vm12 = vcmask 941056   ;;  %255 = vst.msk [vmem:[#allocation2] ss:$8 sm:$0x30] %vm5225_vm1, %v249_v54  ;;  %v1394_v2 = vld [vmem:[%s8625_s3] sm:$0xff] }
 0x15b   : > { %880 = vst.msk [vmem:[#allocation2 + $0x96] ss:$8 sm:$0xf] %vm5225_vm1, %v877_v5  ;;  %v436_v7 = vsel %vm435_vm9, %v433_v3, %v434_v4  ;;  %v8716_v1 = vmov 0   ;;  %v5933_v54 = vshrl.u32 %v250_v37, 7 }
 0x15c   : > { %881 = vst.msk [vmem:[#allocation2 + $0x96] ss:$8 sm:$0x30] %vm5225_vm1, %v877_v5  ;;  %4769 = vset.pattern.permute.xlu1 %v8716_v1  ;;  %4771 = vset.pattern.permute.xlu0 %v8716_v1 }
 0x15d   : > { %901 = vst.msk [vmem:[#allocation2 + $0x97] ss:$8 sm:$0xf] %vm5225_vm1, %v898_v6  ;;  %4770 = vset.pattern.permute.xlu2 %v8716_v1  ;;  %1400 = vperm.xlu1 %4769, %v1394_v2  }
 0x15e   : > { %902 = vst.msk [vmem:[#allocation2 + $0x97] ss:$8 sm:$0x30] %vm5225_vm1, %v898_v6  ;;  %1410 = vperm.xlu0 %4771, %v1396_v41  }
 0x15f   : > { %v601_v8 = vpop.permute.xlu0 %600  ;;  %v622_v9 = vpop.permute.xlu1 %621  ;;  %439 = vst.msk [vmem:[#allocation2 + $0x31] ss:$8 sm:$0xf] %vm5225_vm1, %v436_v7 }
 0x160   : > { %v602_v10 = vrot.slane %v601_v8, 1  ;;  %v623_v11 = vrot.slane %v622_v9, 1  ;;  %440 = vst.msk [vmem:[#allocation2 + $0x31] ss:$8 sm:$0x30] %vm5225_vm1, %v436_v7  ;;  %v496_v12 = vpop.permute.xlu2 %495 }
 0x161   : > { %v497_v13 = vrot.slane %v496_v12, 1 }
 0x162   : > { %v604_v14 = vsel %vm8915_vm13, %v601_v8, %v602_v10  ;;  %v625_v15 = vsel %vm8916_vm14, %v622_v9, %v623_v11  ;;  %vm8925_vm13 = vcmask 932864   ;;  %vm8926_vm14 = vcmask 1039360  }
 0x163   : > { %607 = vst.msk [vmem:[#allocation2 + $0x61] ss:$8 sm:$0xf] %vm5225_vm1, %v604_v14  ;;  %v499_v19 = vsel %vm498_vm7, %v496_v12, %v497_v13 }
 0x164   : > { %608 = vst.msk [vmem:[#allocation2 + $0x61] ss:$8 sm:$0x30] %vm5225_vm1, %v604_v14  ;;  %v1334_v16 = vld [vmem:[#allocation2 + $0x90] sm:$0xff]  ;;  %v1335_v17 = vld [vmem:[#allocation2 + $0x98] sm:$0xff]  ;;  %v1336_v18 = vld [vmem:[#allocation2 + $0xa0] sm:$0xff] }
 0x165   : > { %628 = vst.msk [vmem:[#allocation2 + $0x62] ss:$8 sm:$0xf] %vm5225_vm1, %v625_v15  ;;  %1461 = vmatpush.msra.mxu0 %v1334_v16  ;;  %1490 = vmatpush.msra.mxu1 %v1335_v17  ;;  %v1337_v20 = vld [vmem:[#allocation2 + $0xa8] sm:$0xff] }
 0x166   : > { %629 = vst.msk [vmem:[#allocation2 + $0x62] ss:$8 sm:$0x30] %vm5225_vm1, %v625_v15  ;;  %1519 = vmatpush.msra.mxu2 %v1336_v18  ;;  %1548 = vmatpush.msra.mxu3 %v1337_v20  ;;  %v1397_v15 = vld [vmem:[%s8625_s3 + $0x18] sm:$0xff] }
 0x167   : > { %v664_v21 = vpop.permute.xlu0 %663  ;;  %v685_v22 = vpop.permute.xlu1 %684  ;;  %502 = vst.msk [vmem:[#allocation2 + $0x34] ss:$8 sm:$0xf] %vm5225_vm1, %v499_v19  ;;  %1415 = vperm.xlu1 %4769, %v1397_v15  }
 0x168   : > { %v665_v23 = vrot.slane %v664_v21, 1  ;;  %v686_v24 = vrot.slane %v685_v22, 1  ;;  %503 = vst.msk [vmem:[#allocation2 + $0x34] ss:$8 sm:$0x30] %vm5225_vm1, %v499_v19  ;;  %v559_v25 = vpop.permute.xlu2 %558  ;;  %v5879_v19 = vld [vmem:[%s8623_s1] sm:$0xff] }
 0x169   : > { %v560_v26 = vrot.slane %v559_v25, 1 }
 0x16a   : > { %v667_v27 = vsel %vm8917_vm0, %v664_v21, %v665_v23  ;;  %v688_v28 = vsel %vm8918_vm2, %v685_v22, %v686_v24  ;;  %vm8927_vm0 = vcmask 1031168   ;;  %vm8928_vm2 = vcmask 1006592   ;;  %v1392_v24 = vld [vmem:[#allocation2 + $0x260] sm:$0x3f] }
 0x16b   : > { %670 = vst.msk [vmem:[#allocation2 + $0x64] ss:$8 sm:$0xf] %vm5225_vm1, %v667_v27  ;;  %v562_v29 = vsel %vm8919_vm5, %v559_v25, %v560_v26  ;;  %vm8929_vm5 = vcmask 990208   ;;  %v1393_v25 = vld [vmem:[#allocation2 + $0x268] sm:$0x3f] }
 0x16c   : > { %671 = vst.msk [vmem:[#allocation2 + $0x64] ss:$8 sm:$0x30] %vm5225_vm1, %v667_v27  ;;  %v1386_v26 = vld [vmem:[#allocation2 + $0x230] sm:$0xff]  ;;  %v1387_v27 = vld [vmem:[#allocation2 + $0x238] sm:$0xff] }
 0x16d   : > { %691 = vst.msk [vmem:[#allocation2 + $0x65] ss:$8 sm:$0xf] %vm5225_vm1, %v688_v28 }
 0x16e   : > { %692 = vst.msk [vmem:[#allocation2 + $0x65] ss:$8 sm:$0x30] %vm5225_vm1, %v688_v28  ;;  %v1380_v28 = vld [vmem:[#allocation2 + $0x200] sm:$0xff] }
 0x16f   : > { %v727_v30 = vpop.permute.xlu0 %726  ;;  %v412_v31 = vpop.permute.xlu1 %411  ;;  %565 = vst.msk [vmem:[#allocation2 + $0x37] ss:$8 sm:$0xf] %vm5225_vm1, %v562_v29 }
 0x170   : > { %v728_v32 = vrot.slane %v727_v30, 1  ;;  %v413_v33 = vrot.slane %v412_v31, 1  ;;  %566 = vst.msk [vmem:[#allocation2 + $0x37] ss:$8 sm:$0x30] %vm5225_vm1, %v562_v29  ;;  %v307_v34 = vpop.permute.xlu2 %306  ;;  %v1381_v29 = vld [vmem:[#allocation2 + $0x208] sm:$0xff] }
 0x171   : > { %v308_v35 = vrot.slane %v307_v34, 1 }
 0x172   : > { %v730_v36 = vsel %vm8920_vm6, %v727_v30, %v728_v32  ;;  %v415_v38 = vsel %vm8921_vm8, %v412_v31, %v413_v33  ;;  %vm8930_vm6 = vcmask 834560   ;;  %v5897_v30 = vld [vmem:[%s8623_s1 + $0x8] sm:$0xff]  ;;  %v1374_v31 = vld [vmem:[#allocation2 + $0x1d0] sm:$0xff]  ;;  %v1375_v32 = vld [vmem:[#allocation2 + $0x1d8] sm:$0xff] }
 0x173   : > { %733 = vst.msk [vmem:[#allocation2 + $0x67] ss:$8 sm:$0xf] %vm5225_vm1, %v730_v36  ;;  %v310_v39 = vsel %vm309_vm15, %v307_v34, %v308_v35  ;;  %vm8931_vm8 = vmmov %vm8930_vm6  ;;  %v1368_v33 = vld [vmem:[#allocation2 + $0x1a0] sm:$0xff]  ;;  %v1369_v34 = vld [vmem:[#allocation2 + $0x1a8] sm:$0xff] }
 0x174   : > { %734 = vst.msk [vmem:[#allocation2 + $0x67] ss:$8 sm:$0x30] %vm5225_vm1, %v730_v36  ;;  %v1395_v35 = vld [vmem:[%s8625_s3 + $0x8] sm:$0xff]  ;;  %v1362_v36 = vld [vmem:[#allocation2 + $0x170] sm:$0xff] }
 0x175   : > { %418 = vst.msk [vmem:[#allocation2 + $0x30] ss:$8 sm:$0xf] %vm5225_vm1, %v415_v38  ;;  %1405 = vperm.xlu2 %4770, %v1395_v35  }
 0x176   : > { %419 = vst.msk [vmem:[#allocation2 + $0x30] ss:$8 sm:$0x30] %vm5225_vm1, %v415_v38  ;;  %v1363_v38 = vld [vmem:[#allocation2 + $0x178] sm:$0xff] }
 0x177   : > { %v454_v40 = vpop.permute.xlu0 %453  ;;  %v475_v42 = vpop.permute.xlu1 %474  ;;  %313 = vst.msk [vmem:[#allocation2 + $0x3] ss:$8 sm:$0xf] %vm5225_vm1, %v310_v39 }
 0x178   : > { %v455_v43 = vrot.slane %v454_v40, 1  ;;  %v476_v44 = vrot.slane %v475_v42, 1  ;;  %314 = vst.msk [vmem:[#allocation2 + $0x3] ss:$8 sm:$0x30] %vm5225_vm1, %v310_v39  ;;  %v370_v45 = vpop.permute.xlu2 %369  ;;  %v1356_v39 = vld [vmem:[#allocation2 + $0x140] sm:$0xff] }
 0x179   : > { %v371_v46 = vrot.slane %v370_v45, 1 }
 0x17a   : > { %v457_v47 = vsel %vm456_vm3, %v454_v40, %v455_v43  ;;  %v478_v48 = vsel %vm8922_vm10, %v475_v42, %v476_v44  ;;  %v1328_v49 = vld [vmem:[#allocation2 + $0x60] sm:$0xff]  ;;  %v1329_v50 = vld [vmem:[#allocation2 + $0x68] sm:$0xff]  ;;  %v1330_v51 = vld [vmem:[#allocation2 + $0x70] sm:$0xff] }
 0x17b   : > { %460 = vst.msk [vmem:[#allocation2 + $0x32] ss:$8 sm:$0xf] %vm5225_vm1, %v457_v47  ;;  %1462 = vmatpush.msra.mxu0 %v1328_v49  ;;  %1491 = vmatpush.msra.mxu1 %v1329_v50  ;;  %v1331_v52 = vld [vmem:[#allocation2 + $0x78] sm:$0xff]  ;;  %v373_v53 = vsel %vm8923_vm11, %v370_v45, %v371_v46  ;;  %vm8934_vm11 = vcmask 1045504   ;;  %v1357_v40 = vld [vmem:[#allocation2 + $0x148] sm:$0xff] }
 0x17c   : > { %461 = vst.msk [vmem:[#allocation2 + $0x32] ss:$8 sm:$0x30] %vm5225_vm1, %v457_v47  ;;  %1520 = vmatpush.msra.mxu2 %v1330_v51  ;;  %1549 = vmatpush.msra.mxu3 %v1331_v52  ;;  %v5913_v42 = vld [vmem:[%s8623_s1 + $0x10] sm:$0xff]  ;;  %v1351_v44 = vld [vmem:[#allocation2 + $0x118] sm:$0xff]  ;;  %v1344_v45 = vld [vmem:[#allocation2 + $0xe0] sm:$0xff] }
 0x17d   : > { %481 = vst.msk [vmem:[#allocation2 + $0x33] ss:$8 sm:$0xf] %vm5225_vm1, %v478_v48  ;;  %v1350_v43 = vld [vmem:[#allocation2 + $0x110] sm:$0xff]  ;;  %v1345_v46 = vld [vmem:[#allocation2 + $0xe8] sm:$0xff]  ;;  %v1332_v49 = vld [vmem:[#allocation2 + $0x80] sm:$0xff] }
 0x17e   : > { %482 = vst.msk [vmem:[#allocation2 + $0x33] ss:$8 sm:$0x30] %vm5225_vm1, %v478_v48  ;;  %v1338_v47 = vld [vmem:[#allocation2 + $0xb0] sm:$0xff]  ;;  %v1339_v48 = vld [vmem:[#allocation2 + $0xb8] sm:$0xff]  ;;  %v1333_v50 = vld [vmem:[#allocation2 + $0x88] sm:$0xff] }
 0x17f   : > { %v517_v55 = vpop.permute.xlu0 %516  ;;  %v538_v56 = vpop.permute.xlu1 %537  ;;  %376 = vst.msk [vmem:[#allocation2 + $0x6] ss:$8 sm:$0xf] %vm5225_vm1, %v373_v53  ;;  %v5926_v51 = vld [vmem:[%s8623_s1 + $0x18] sm:$0xff] }
 0x180   : > { %v518_v57 = vrot.slane %v517_v55, 1  ;;  %v539_v58 = vrot.slane %v538_v56, 1  ;;  %377 = vst.msk [vmem:[#allocation2 + $0x6] ss:$8 sm:$0x30] %vm5225_vm1, %v373_v53 }
 0x182   : > { %v520_v59 = vsel %vm8924_vm12, %v517_v55, %v518_v57  ;;  %v541_v60 = vsel %vm8925_vm13, %v538_v56, %v539_v58  ;;  %vm8935_vm12 = vmmov %vm8934_vm11  ;;  %v5940_v57 = vadd.s32 120, %v5933_v54  ;;  %v5943_v58 = vand.u32 127, %v250_v37 }
 0x183   : > { %523 = vst.msk [vmem:[#allocation2 + $0x35] ss:$8 sm:$0xf] %vm5225_vm1, %v520_v59 }
 0x184   : > { %524 = vst.msk [vmem:[#allocation2 + $0x35] ss:$8 sm:$0x30] %vm5225_vm1, %v520_v59  ;;  %v5946_v59 = vadd.s32 112, %v5933_v54 }
 0x185   : > { %544 = vst.msk [vmem:[#allocation2 + $0x36] ss:$8 sm:$0xf] %vm5225_vm1, %v541_v60 }
 0x186   : > { %545 = vst.msk [vmem:[#allocation2 + $0x36] ss:$8 sm:$0x30] %vm5225_vm1, %v541_v60  ;;  %v5949_v60 = vadd.s32 104, %v5933_v54 }
 0x187   : > { %v264_v61 = vpop.permute.xlu0 %263  ;;  %v286_v62 = vpop.permute.xlu1 %285 }
 0x188   : > { %v265_v63 = vrot.slane %v264_v61, 1  ;;  %v287_v0 = vrot.slane %v286_v62, 1  ;;  %v8759_v2 = vshra.s32 %v5949_v60, 2  ;;  %v5961_v37 = vadd.s32 128, %v5949_v60 }
 0x18a   : > { %v267_v3 = vsel %vm8926_vm14, %v264_v61, %v265_v63  ;;  %v289_v4 = vsel %vm8927_vm0, %v286_v62, %v287_v0  ;;  %v8768_v61 = vshra.s32 %v5940_v57, 2  ;;  %v5953_v62 = vadd.s32 128, %v5940_v57 }
 0x18b   : > { %270 = vst.msk [vmem:[#allocation2 + $0x1] ss:$8 sm:$0xf] %vm5225_vm1, %v267_v3  ;;  %v8764_v63 = vshra.s32 %v5946_v59, 2  ;;  %v5957_v0 = vadd.s32 128, %v5946_v59 }
 0x18c   : > { %271 = vst.msk [vmem:[#allocation2 + $0x1] ss:$8 sm:$0x30] %vm5225_vm1, %v267_v3  ;;  %v1322_v5 = vld [vmem:[#allocation2 + $0x30] sm:$0xff]  ;;  %v1323_v6 = vld [vmem:[#allocation2 + $0x38] sm:$0xff]  ;;  %v1324_v7 = vld [vmem:[#allocation2 + $0x40] sm:$0xff] }
 0x18d   : > { %1463 = vmatpush.msra.mxu0 %v1322_v5  ;;  %1492 = vmatpush.msra.mxu1 %v1323_v6  ;;  %v1325_v8 = vld [vmem:[#allocation2 + $0x48] sm:$0xff]  ;;  %292 = vst.msk [vmem:[#allocation2 + $0x2] ss:$8 sm:$0xf] %vm5225_vm1, %v289_v4  ;;  %v1326_v52 = vld [vmem:[#allocation2 + $0x50] sm:$0xff]  ;;  %v1327_v53 = vld [vmem:[#allocation2 + $0x58] sm:$0xff] }
 0x18e   : > { %1521 = vmatpush.msra.mxu2 %v1324_v7  ;;  %1550 = vmatpush.msra.mxu3 %v1325_v8  ;;  %293 = vst.msk [vmem:[#allocation2 + $0x2] ss:$8 sm:$0x30] %vm5225_vm1, %v289_v4  ;;  %v8766_v3 = vshra.s32 %v5953_v62, 2  ;;  %v8761_v4 = vshra.s32 %v5957_v0, 2  ;;  %v8757_v5 = vshra.s32 %v5961_v37, 2 }
 0x18f   : > { %v328_v9 = vpop.permute.xlu0 %327  ;;  %v349_v10 = vpop.permute.xlu1 %348  ;;  %v8771_v6 = vmov 0.25   ;;  %v6003_v7 = vadd.s32 96, %v5933_v54  ;;  %v6006_v8 = vadd.s32 256, %v5940_v57 }
 0x190   : > { %v329_v11 = vrot.slane %v328_v9, 1  ;;  %v350_v12 = vrot.slane %v349_v10, 1 }
 0x191   : > { %8954 = vst [vmem:[#allocation9_spill] sm:$0xff] %v6006_v8  ;;  %v8753_v15 = vshra.s32 %v6003_v7, 2  ;;  %v6109_v35 = vadd.s32 384, %v6003_v7 }
 0x192   : > { %v331_v13 = vsel %vm330_vm4, %v328_v9, %v329_v11  ;;  %v352_v14 = vsel %vm8928_vm2, %v349_v10, %v350_v12  ;;  %v6009_v9 = vadd.s32 384, %v5940_v57  ;;  %v6012_v10 = vadd.s32 88, %v5933_v54 }
 0x193   : > { %334 = vst.msk [vmem:[#allocation2 + $0x4] ss:$8 sm:$0xf] %vm5225_vm1, %v331_v13  ;;  %v6015_v11 = vadd.s32 256, %v5946_v59  ;;  %v6018_v12 = vadd.s32 384, %v5946_v59 }
 0x194   : > { %335 = vst.msk [vmem:[#allocation2 + $0x4] ss:$8 sm:$0x30] %vm5225_vm1, %v331_v13  ;;  %v6021_v13 = vadd.s32 80, %v5933_v54 }
 0x195   : > { %355 = vst.msk [vmem:[#allocation2 + $0x5] ss:$8 sm:$0xf] %vm5225_vm1, %v352_v14 }
 0x196   : > { %356 = vst.msk [vmem:[#allocation2 + $0x5] ss:$8 sm:$0x30] %vm5225_vm1, %v352_v14  ;;  %v6024_v14 = vadd.s32 256, %v5949_v60 }
 0x197   : > { %v391_v16 = vpop.permute.xlu0 %390  ;;  %8955 = vst [vmem:[#allocation10_spill] sm:$0xff] %v6009_v9 }
 0x198   : > { %v392_v17 = vrot.slane %v391_v16, 1  ;;  %8956 = vst [vmem:[#allocation11_spill] sm:$0xff] %v6015_v11 }
 0x199   : > { %8957 = vst [vmem:[#allocation12_spill] sm:$0xff] %v6018_v12 }
 0x19a   : > { %v394_v18 = vsel %vm8929_vm5, %v391_v16, %v392_v17  ;;  %8958 = vst [vmem:[#allocation13_spill] sm:$0xff] %v6024_v14  ;;  %v6028_v16 = vadd.s32 128, %v6003_v7  ;;  %v8729_v17 = vshra.s32 %v6006_v8, 2 }
 0x19b   : > { %397 = vst.msk [vmem:[#allocation2 + $0x7] ss:$8 sm:$0xf] %vm5225_vm1, %v394_v18 }
 0x19c   : > { %398 = vst.msk [vmem:[#allocation2 + $0x7] ss:$8 sm:$0x30] %vm5225_vm1, %v394_v18  ;;  %vm8932_vm1 = vmmov %vm8930_vm6  ;;  %v8728_v18 = vshra.s32 %v6009_v9, 2 }
 0x19d   : > { %vm8933_vm10 = vmmov %vm8932_vm1  ;;  %8963 = vst [vmem:[#allocation16_spill] sm:$0xff] %v6109_v35 }
 0x19e   : > { %vm8936_vm13 = vmmov %vm8932_vm1 }
 0x19f   : > { %vm8937_vm14 = vmmov %vm8932_vm1 }
 0x1a0   : > { %vm8938_vm0 = vmmov %vm8932_vm1 }
 0x1a1   : > { %vm8939_vm2 = vmmov %vm8938_vm0 }
 0x1a2   : > { %v1316_v20 = vld [vmem:[#allocation2] sm:$0xff]  ;;  %v1317_v21 = vld [vmem:[#allocation2 + $0x8] sm:$0xff]  ;;  %v1318_v22 = vld [vmem:[#allocation2 + $0x10] sm:$0xff] }
 0x1a3   : > { %1464 = vmatpush.msra.mxu0 %v1316_v20  ;;  %1493 = vmatpush.msra.mxu1 %v1317_v21  ;;  %v1319_v23 = vld [vmem:[#allocation2 + $0x18] sm:$0xff]  ;;  %vm8940_vm5 = vmmov %vm8938_vm0  ;;  %v1320_v55 = vld [vmem:[#allocation2 + $0x20] sm:$0xff]  ;;  %v6034_v20 = vadd.s32 128, %v6012_v10  ;;  %v8727_v21 = vshra.s32 %v6015_v11, 2 }
 0x1a4   : > { %1522 = vmatpush.msra.mxu2 %v1318_v22  ;;  %1551 = vmatpush.msra.mxu3 %v1319_v23  ;;  %v1321_v56 = vld [vmem:[#allocation2 + $0x28] sm:$0xff]  ;;  %v8724_v22 = vshra.s32 %v6018_v12, 2  ;;  %v8752_v23 = vshra.s32 %v6028_v16, 2 }
 0x1a5   : > { %4576 = vmatmul.msk.f32.vlgmr.msra.gmra.mxu0 %vm8930_vm6, %v5879_v19  ;;  %4581 = vmatmul.msk.f32.vlgmr.msra.gmra.mxu1 %vm8931_vm8, %v5879_v19  ;;  %vm8941_vm6 = vmmov %vm8938_vm0  ;;  %v8750_v41 = vshra.s32 %v6034_v20, 2 }
 0x1a6   : > { %4586 = vmatmul.msk.f32.vlgmr.msra.gmra.mxu2 %vm8932_vm1, %v5879_v19  ;;  %4591 = vmatmul.msk.f32.vlgmr.msra.gmra.mxu3 %vm8933_vm10, %v5879_v19  ;;  %vm8942_vm8 = vmmov %vm8938_vm0 }
 0x1a7   : > { %4595 = vmatpush.msk.msrb.mxu0 %vm8934_vm11, %v1392_v24  ;;  %4600 = vmatpush.msk.msrb.mxu1 %vm8935_vm12, %v1393_v25  ;;  %vm8943_vm1 = vmmov %vm8938_vm0  ;;  %v8748_v24 = vshra.s32 %v6021_v13, 2  ;;  %v6075_v25 = vadd.s32 128, %v6021_v13 }
 0x1a8   : > { %vm8944_vm10 = vmmov %vm8938_vm0 }
 0x1a9   : > { %1569 = vmatpush.msrb.mxu0 %v1386_v26  ;;  %1598 = vmatpush.msrb.mxu1 %v1387_v27  ;;  %vm8945_vm11 = vmmov %vm8938_vm0  ;;  %v8723_v26 = vshra.s32 %v6024_v14, 2  ;;  %v6084_v27 = vadd.s32 384, %v5949_v60 }
 0x1aa   : > { %vm8946_vm12 = vmmov %vm8938_vm0 }
 0x1ab   : > { %1570 = vmatpush.msrb.mxu0 %v1380_v28  ;;  %1599 = vmatpush.msrb.mxu1 %v1381_v29  ;;  %8961 = vst [vmem:[#allocation14_spill] sm:$0xff] %v6084_v27  ;;  %v6087_v28 = vadd.s32 72, %v5933_v54  ;;  %v8746_v29 = vshra.s32 %v6075_v25, 2 }
 0x1ad   : > { %1571 = vmatpush.msrb.mxu0 %v1374_v31  ;;  %1600 = vmatpush.msrb.mxu1 %v1375_v32  ;;  %v8722_v31 = vshra.s32 %v6084_v27, 2  ;;  %v8745_v32 = vshra.s32 %v6087_v28, 2 }
 0x1ae   : > { %4577 = vmatmul.msk.f32.gmra.mxu0 %vm8936_vm13, %v5897_v30  ;;  %4582 = vmatmul.msk.f32.gmra.mxu1 %vm8937_vm14, %v5897_v30  ;;  %vm8947_vm13 = vmmov %vm8938_vm0  ;;  %vm1833_vm14 = vcmp.eq.s32.totalorder %v8768_v61, %v5943_v58 }
 0x1af   : > { %4587 = vmatmul.msk.f32.gmra.mxu2 %vm8938_vm0, %v5897_v30  ;;  %4592 = vmatmul.msk.f32.gmra.mxu3 %vm8939_vm2, %v5897_v30  ;;  %vm1831_vm0 = vcmp.eq.s32.totalorder %v8764_v63, %v5943_v58  ;;  %vm1829_vm2 = vcmp.eq.s32.totalorder %v8759_v2, %v5943_v58 }
 0x1b0   : > { %1572 = vmatpush.msrb.mxu0 %v1368_v33  ;;  %1601 = vmatpush.msrb.mxu1 %v1369_v34  ;;  %v6101_v33 = vadd.s32 128, %v6087_v28 }
 0x1b1   : > { %4843 = vmatpush.msk.msrb.mxu2 %vm1833_vm14, %v8771_v6 }
 0x1b2   : > { %1573 = vmatpush.msrb.mxu0 %v1362_v36  ;;  %1602 = vmatpush.msrb.mxu1 %v1363_v38  ;;  %v8742_v36 = vshra.s32 %v6101_v33, 2  ;;  %v8720_v38 = vshra.s32 %v6109_v35, 2 }
 0x1b3   : > { %4845 = vmatpush.msk.msrb.mxu2 %vm1831_vm0, %v8771_v6 }
 0x1b4   : > { %1574 = vmatpush.msrb.mxu0 %v1356_v39  ;;  %1603 = vmatpush.msrb.mxu1 %v1357_v40  ;;  %v6135_v39 = vadd.s32 64, %v5933_v54 }
 0x1b5   : > { %4847 = vmatpush.msk.msrb.mxu2 %vm1829_vm2, %v8771_v6 }
 0x1b6   : > { %1575 = vmatpush.msrb.mxu0 %v1350_v43  ;;  %1604 = vmatpush.msrb.mxu1 %v1351_v44  ;;  %v6138_v40 = vadd.s32 128, %v6135_v39  ;;  %v6144_v43 = vadd.s32 384, %v6012_v10  ;;  %v6147_v44 = vadd.s32 56, %v5933_v54 }
 0x1b7   : > { %4578 = vmatmul.msk.f32.gmra.mxu0 %vm8940_vm5, %v5913_v42  ;;  %4583 = vmatmul.msk.f32.gmra.mxu1 %vm8941_vm6, %v5913_v42  ;;  %vm8948_vm5 = vmmov %vm8943_vm1 }
 0x1b8   : > { %4588 = vmatmul.msk.f32.gmra.mxu2 %vm8942_vm8, %v5913_v42  ;;  %4593 = vmatmul.msk.f32.gmra.mxu3 %vm8943_vm1, %v5913_v42  ;;  %vm8949_vm6 = vmmov %vm8943_vm1  ;;  %vm1962_vm8 = vcmp.eq.s32.totalorder %v8766_v3, %v5943_v58  ;;  %vm1960_vm1 = vcmp.eq.s32.totalorder %v8761_v4, %v5943_v58  ;;  %8965 = vst [vmem:[#allocation18_spill] sm:$0xff] %v6144_v43 }
 0x1b9   : > { %1576 = vmatpush.msrb.mxu0 %v1344_v45  ;;  %1605 = vmatpush.msrb.mxu1 %v1345_v46  ;;  %vm8953_vm14 = vmmov %vm8948_vm5  ;;  %v8737_v45 = vshra.s32 %v6135_v39, 2  ;;  %v8736_v46 = vshra.s32 %v6138_v40, 2 }
 0x1ba   : > { %4844 = vmatpush.msk.msrb.mxu3 %vm1962_vm8, %v8771_v6  ;;  %vm8959_vm0 = vmmov %vm8948_vm5  ;;  %vm2218_vm8 = vcmp.eq.s32.totalorder %v8728_v18, %v5943_v58  ;;  %v6237_v18 = vadd.s32 32, %v5933_v54 }
 0x1bb   : > { %1577 = vmatpush.msrb.mxu0 %v1338_v47  ;;  %1606 = vmatpush.msrb.mxu1 %v1339_v48  ;;  %vm8960_vm2 = vmmov %vm8959_vm0  ;;  %v8719_v48 = vshra.s32 %v6144_v43, 2 }
 0x1bc   : > { %4846 = vmatpush.msk.msrb.mxu3 %vm1960_vm1, %v8771_v6  ;;  %v6363_v4 = vadd.s32 384, %v6237_v18 }
 0x1bd   : > { %1578 = vmatpush.msrb.mxu0 %v1332_v49  ;;  %1607 = vmatpush.msrb.mxu1 %v1333_v50  ;;  %v6154_v49 = vadd.s32 128, %v6147_v44  ;;  %v6157_v50 = vadd.s32 256, %v6021_v13 }
 0x1be   : > { %8980 = vst [vmem:[#allocation33_spill] sm:$0xff] %v6363_v4 }
 0x1bf   : > { %1579 = vmatpush.msrb.mxu0 %v1326_v52  ;;  %1608 = vmatpush.msrb.mxu1 %v1327_v53  ;;  %8966 = vst [vmem:[#allocation19_spill] sm:$0xff] %v6157_v50  ;;  %v6163_v52 = vadd.s32 48, %v5933_v54  ;;  %v8735_v53 = vshra.s32 %v6147_v44, 2 }
 0x1c0   : > { %4579 = vmatmul.msk.f32.gmra.mxu0 %vm8944_vm10, %v5926_v51  ;;  %4584 = vmatmul.msk.f32.gmra.mxu1 %vm8945_vm11, %v5926_v51  ;;  %vm1958_vm10 = vcmp.eq.s32.totalorder %v8757_v5, %v5943_v58  ;;  %vm8950_vm11 = vmmov %vm8948_vm5 }
 0x1c1   : > { %4589 = vmatmul.msk.f32.gmra.mxu2 %vm8946_vm12, %v5926_v51  ;;  %4594 = vmatmul.msk.f32.gmra.mxu3 %vm8947_vm13, %v5926_v51  ;;  %vm8951_vm12 = vmmov %vm8948_vm5 }
 0x1c2   : > { %1580 = vmatpush.msrb.mxu0 %v1320_v55  ;;  %1609 = vmatpush.msrb.mxu1 %v1321_v56  ;;  %vm8952_vm13 = vmmov %vm8948_vm5  ;;  %v8733_v55 = vshra.s32 %v6154_v49, 2  ;;  %v8726_v56 = vshra.s32 %v6157_v50, 2 }
 0x1c3   : > { %4848 = vmatpush.msk.msrb.mxu3 %vm1958_vm10, %v8771_v6  ;;  %vm1956_vm10 = vcmp.eq.s32.totalorder %v8752_v23, %v5943_v58  ;;  %v6323_v23 = vadd.s32 8, %v5933_v54 }
 0x1c4   : > { %4851 = vmatpush.msk.msra.mxu1 %vm2218_vm8, %v8771_v6 }
 0x1c5   : > { %4852 = vmatpush.msk.msrb.mxu3 %vm1956_vm10, %v8771_v6  ;;  %vm2212_vm10 = vcmp.eq.s32.totalorder %v8720_v38, %v5943_v58  ;;  %v6190_v38 = vadd.s32 256, %v6087_v28  ;;  %v6350_v2 = vadd.s32 128, %v6323_v23 }
 0x1c7   : > { %8968 = vst [vmem:[#allocation21_spill] sm:$0xff] %v6190_v38 }
 0x1c8   : > { %4596 = vmatmul.msk.f32.vlgmr.msrb.gmra.mxu0 %vm8948_vm5, %v5879_v19  ;;  %4601 = vmatmul.msk.f32.vlgmr.msrb.gmra.mxu1 %vm8949_vm6, %v5879_v19  ;;  %v8751_v19 = vshra.s32 %v6012_v10, 2  ;;  %vm1827_vm5 = vcmp.eq.s32.totalorder %v8753_v15, %v5943_v58  ;;  %vm2090_vm6 = vcmp.eq.s32.totalorder %v8729_v17, %v5943_v58  ;;  %8978 = vst [vmem:[#allocation31_spill] sm:$0xff] %v6350_v2 }
 0x1c9   : > { %4849 = vmatpush.msk.msrb.mxu2 %vm1827_vm5, %v8771_v6  ;;  %4850 = vmatpush.msk.msra.mxu0 %vm2090_vm6, %v8771_v6  ;;  %vm2214_vm5 = vcmp.eq.s32.totalorder %v8722_v31, %v5943_v58  ;;  %vm1821_vm6 = vcmp.eq.s32.totalorder %v8745_v32, %v5943_v58 }
 0x1ca   : > { %vm1825_vm1 = vcmp.eq.s32.totalorder %v8751_v19, %v5943_v58 }
 0x1cb   : > { %4853 = vmatpush.msk.msrb.mxu2 %vm1825_vm1, %v8771_v6  ;;  %vm1950_vm1 = vcmp.eq.s32.totalorder %v8742_v36, %v5943_v58  ;;  %v6288_v36 = vadd.s32 256, %v6163_v52 }
 0x1cd   : > { %8974 = vst [vmem:[#allocation27_spill] sm:$0xff] %v6288_v36 }
 0x1cf   : > { %v6375_v63 = vpop.permute.xlu1 %1400 }
 0x1d0   : > { %4597 = vmatmul.msk.f32.gmra.mxu0 %vm8950_vm11, %v5897_v30  ;;  %4602 = vmatmul.msk.f32.gmra.mxu1 %vm8951_vm12, %v5897_v30  ;;  %vm2088_vm11 = vcmp.eq.s32.totalorder %v8727_v21, %v5943_v58  ;;  %vm2216_vm12 = vcmp.eq.s32.totalorder %v8724_v22, %v5943_v58  ;;  %v6095_v30 = vadd.s32 256, %v6003_v7  ;;  %v6224_v21 = vadd.s32 384, %v6135_v39 }
 0x1d1   : > { %4854 = vmatpush.msk.msra.mxu0 %vm2088_vm11, %v8771_v6  ;;  %4855 = vmatpush.msk.msra.mxu1 %vm2216_vm12, %v8771_v6  ;;  %vm1819_vm11 = vcmp.eq.s32.totalorder %v8737_v45, %v5943_v58  ;;  %vm1948_vm12 = vcmp.eq.s32.totalorder %v8736_v46, %v5943_v58  ;;  %v6259_v46 = vadd.s32 384, %v6147_v44 }
 0x1d2   : > { %8962 = vst [vmem:[#allocation15_spill] sm:$0xff] %v6095_v30  ;;  %v8721_v34 = vshra.s32 %v6095_v30, 2 }
 0x1d3   : > { %4860 = vmatpush.msk.msra.mxu1 %vm2214_vm5, %v8771_v6  ;;  %vm2080_vm5 = vcmp.eq.s32.totalorder %v8726_v56, %v5943_v58  ;;  %v6221_v56 = vadd.s32 256, %v6135_v39  ;;  %8971 = vst [vmem:[#allocation24_spill] sm:$0xff] %v6224_v21 }
 0x1d4   : > { %vm2084_vm8 = vcmp.eq.s32.totalorder %v8721_v34, %v5943_v58  ;;  %v6193_v34 = vadd.s32 384, %v6087_v28  ;;  %8973 = vst [vmem:[#allocation26_spill] sm:$0xff] %v6259_v46 }
 0x1d5   : > { %4864 = vmatpush.msk.msra.mxu1 %vm2212_vm10, %v8771_v6  ;;  %8970 = vst [vmem:[#allocation23_spill] sm:$0xff] %v6221_v56 }
 0x1d6   : > { %8969 = vst [vmem:[#allocation22_spill] sm:$0xff] %v6193_v34  ;;  %v8734_v22 = vshra.s32 %v6193_v34, 2 }
 0x1d8   : > { %4598 = vmatmul.msk.f32.gmra.mxu0 %vm8952_vm13, %v5913_v42  ;;  %4603 = vmatmul.msk.f32.gmra.mxu1 %vm8953_vm14, %v5913_v42  ;;  %vm1954_vm13 = vcmp.eq.s32.totalorder %v8750_v41, %v5943_v58  ;;  %vm1823_vm14 = vcmp.eq.s32.totalorder %v8748_v24, %v5943_v58  ;;  %v6141_v42 = vadd.s32 256, %v6012_v10  ;;  %v6309_v24 = vadd.s32 16, %v5933_v54 }
 0x1d9   : > { %4856 = vmatpush.msk.msrb.mxu3 %vm1954_vm13, %v8771_v6  ;;  %4857 = vmatpush.msk.msrb.mxu2 %vm1823_vm14, %v8771_v6  ;;  %vm2210_vm14 = vcmp.eq.s32.totalorder %v8719_v48, %v5943_v58  ;;  %v6187_v48 = vadd.s32 128, %v6163_v52  ;;  %v6568_v9 = vpop.permute.xlu1 %1415 }
 0x1da   : > { %8964 = vst [vmem:[#allocation17_spill] sm:$0xff] %v6141_v42  ;;  %v8718_v47 = vshra.s32 %v6141_v42, 2  ;;  %4868 = vmatpush.msk.msra.mxu1 %vm2210_vm14, %v8771_v6  ;;  %v8760_v15 = vshra.s32 %v6309_v24, 2  ;;  %v6397_v3 = vadd.s32 256, %v6309_v24 }
 0x1db   : > { %4861 = vmatpush.msk.msrb.mxu2 %vm1821_vm6, %v8771_v6  ;;  %v8731_v31 = vshra.s32 %v6187_v48, 2 }
 0x1dc   : > { %vm2082_vm13 = vcmp.eq.s32.totalorder %v8718_v47, %v5943_v58  ;;  %v8730_v47 = vshra.s32 %v6163_v52, 2  ;;  %8986 = vst [vmem:[#allocation37_spill] sm:$0xff] %v6397_v3 }
 0x1dd   : > { %4865 = vmatpush.msk.msrb.mxu2 %vm1819_vm11, %v8771_v6  ;;  %vm2206_vm11 = vcmp.eq.s32.totalorder %v8734_v22, %v5943_v58  ;;  %v6253_v22 = vadd.s32 128, %v6237_v18 }
 0x1e0   : > { %4599 = vmatmul.msk.f32.gmra.mxu0 %vm8959_vm0, %v5926_v51  ;;  %4604 = vmatmul.msk.f32.gmra.mxu1 %vm8960_vm2, %v5926_v51  ;;  %vm2086_vm0 = vcmp.eq.s32.totalorder %v8723_v26, %v5943_v58  ;;  %vm1952_vm2 = vcmp.eq.s32.totalorder %v8746_v29, %v5943_v58  ;;  %v6160_v51 = vadd.s32 384, %v6021_v13  ;;  %v8732_v26 = vshra.s32 %v6190_v38, 2 }
 0x1e1   : > { %4858 = vmatpush.msk.msra.mxu0 %vm2086_vm0, %v8771_v6  ;;  %4859 = vmatpush.msk.msrb.mxu3 %vm1952_vm2, %v8771_v6  ;;  %vm1817_vm0 = vcmp.eq.s32.totalorder %v8735_v53, %v5943_v58  ;;  %vm1946_vm2 = vcmp.eq.s32.totalorder %v8733_v55, %v5943_v58  ;;  %v8741_v55 = vshra.s32 %v6237_v18, 2  ;;  %v6256_v53 = vadd.s32 256, %v6147_v44 }
 0x1e2   : > { %8967 = vst [vmem:[#allocation20_spill] sm:$0xff] %v6160_v51  ;;  %v8725_v1 = vshra.s32 %v6160_v51, 2  ;;  %4869 = vmatpush.msk.msrb.mxu2 %vm1817_vm0, %v8771_v6  ;;  %vm2078_vm10 = vcmp.eq.s32.totalorder %v8732_v26, %v5943_v58  ;;  %v8740_v26 = vshra.s32 %v6224_v21, 2  ;;  %v8756_v29 = vshra.s32 %v6288_v36, 2 }
 0x1e3   : > { %4862 = vmatpush.msk.msra.mxu0 %vm2084_vm8, %v8771_v6  ;;  %4863 = vmatpush.msk.msrb.mxu3 %vm1950_vm1, %v8771_v6  ;;  %vm1815_vm8 = vcmp.eq.s32.totalorder %v8730_v47, %v5943_v58  ;;  %vm1944_vm1 = vcmp.eq.s32.totalorder %v8731_v31, %v5943_v58  ;;  %v8739_v31 = vshra.s32 %v6221_v56, 2  ;;  %8972 = vst [vmem:[#allocation25_spill] sm:$0xff] %v6256_v53  ;;  %v8987_v36 = vmov 0.25  }
 0x1e4   : > { %vm2208_vm6 = vcmp.eq.s32.totalorder %v8725_v1, %v5943_v58  ;;  %v6218_v1 = vadd.s32 40, %v5933_v54  ;;  %4873 = vmatpush.msk.msrb.mxu2 %vm1815_vm8, %v8771_v6  ;;  %vm2204_vm14 = vcmp.eq.s32.totalorder %v8740_v26, %v5943_v58  ;;  %vm1811_vm0 = vcmp.eq.s32.totalorder %v8741_v55, %v5943_v58 }
 0x1e5   : > { %4866 = vmatpush.msk.msrb.mxu3 %vm1948_vm12, %v8771_v6  ;;  %4867 = vmatpush.msk.msra.mxu0 %vm2082_vm13, %v8771_v6  ;;  %vm2076_vm13 = vcmp.eq.s32.totalorder %v8739_v31, %v5943_v58  ;;  %v8747_v31 = vshra.s32 %v6256_v53, 2  ;;  %v8749_v26 = vshra.s32 %v6259_v46, 2  ;;  %v6285_v55 = vadd.s32 24, %v5933_v54 }
 0x1e6   : > { %4872 = vmatpush.msk.msra.mxu1 %vm2208_vm6, %v8771_v6  ;;  %v8738_v17 = vshra.s32 %v6218_v1, 2  ;;  %v6243_v47 = vadd.s32 128, %v6218_v1  ;;  %v6320_v19 = vadd.s32 384, %v6218_v1  ;;  %v8787_v53 = vshra.s32 %v6397_v3, 2 }
 0x1e7   : > { %4870 = vmatpush.msk.msrb.mxu3 %vm1946_vm2, %v8771_v6  ;;  %4871 = vmatpush.msk.msra.mxu0 %vm2080_vm5, %v8771_v6  ;;  %vm2074_vm6 = vcmp.eq.s32.totalorder %v8747_v31, %v5943_v58  ;;  %vm2202_vm8 = vcmp.eq.s32.totalorder %v8749_v26, %v5943_v58  ;;  %v6302_v32 = vadd.s32 128, %v6285_v55  ;;  %v6312_v26 = vadd.s32 256, %v6218_v1 }
 0x1e8   : > { %4876 = vmatpush.msk.msra.mxu1 %vm2206_vm11, %v8771_v6  ;;  %vm1813_vm12 = vcmp.eq.s32.totalorder %v8738_v17, %v5943_v58  ;;  %v8743_v45 = vshra.s32 %v6243_v47, 2  ;;  %v8744_v17 = vshra.s32 %v6253_v22, 2  ;;  %8977 = vst [vmem:[#allocation30_spill] sm:$0xff] %v6320_v19  ;;  %v6385_v61 = vadd.s32 256, %v6285_v55 }
 0x1e9   : > { %4874 = vmatpush.msk.msrb.mxu3 %vm1944_vm1, %v8771_v6  ;;  %4875 = vmatpush.msk.msra.mxu0 %vm2078_vm10, %v8771_v6  ;;  %8976 = vst [vmem:[#allocation29_spill] sm:$0xff] %v6312_v26  ;;  %v8758_v41 = vshra.s32 %v6302_v32, 2  ;;  %vm2072_vm10 = vcmp.eq.s32.totalorder %v8756_v29, %v5943_v58  ;;  %v8762_v29 = vshra.s32 %v6320_v19, 2  ;;  %v6466_v3 = vadd.s32 256, %v6323_v23 }
 0x1ea   : > { %4877 = vmatpush.msk.msrb.mxu2 %vm1813_vm12, %v8771_v6  ;;  %vm1942_vm2 = vcmp.eq.s32.totalorder %v8743_v45, %v5943_v58  ;;  %4879 = vmatpush.msk.msra.mxu1 %vm2204_vm14, %v8771_v6  ;;  %vm1940_vm5 = vcmp.eq.s32.totalorder %v8744_v17, %v5943_v58  ;;  %v6298_v45 = vadd.s32 384, %v6163_v52  ;;  %v8754_v17 = vshra.s32 %v6285_v55, 2  ;;  %8982 = vst [vmem:[#allocation35_spill] sm:$0xff] %v6385_v61 }
 0x1eb   : > { %4878 = vmatpush.msk.msra.mxu0 %vm2076_vm13, %v8771_v6  ;;  %4881 = vmatpush.msk.msrb.mxu3 %vm1942_vm2, %v8771_v6  ;;  %vm1938_vm12 = vcmp.eq.s32.totalorder %v8758_v41, %v5943_v58  ;;  %vm1807_vm13 = vcmp.eq.s32.totalorder %v8760_v15, %v5943_v58  ;;  %v8767_v41 = vshra.s32 %v6323_v23, 2  ;;  %v6360_v15 = vadd.s32 256, %v6237_v18  ;;  %8993 = vst [vmem:[#allocation41_spill] sm:$0xff] %v6466_v3 }
 0x1ec   : > { %4880 = vmatpush.msk.msrb.mxu2 %vm1811_vm0, %v8771_v6  ;;  %8975 = vst [vmem:[#allocation28_spill] sm:$0xff] %v6298_v45  ;;  %v8755_v31 = vshra.s32 %v6298_v45, 2  ;;  %4884 = vmatpush.msk.msra.mxu1 %vm2202_vm8, %v8771_v6  ;;  %vm1809_vm1 = vcmp.eq.s32.totalorder %v8754_v17, %v5943_v58  ;;  %v6337_v17 = vadd.s32 128, %v6309_v24  ;;  %vm2198_vm0 = vcmp.eq.s32.totalorder %v8762_v29, %v5943_v58 }
 0x1ed   : > { %4882 = vmatpush.msk.msrb.mxu3 %vm1940_vm5, %v8771_v6  ;;  %4883 = vmatpush.msk.msra.mxu0 %vm2074_vm6, %v8771_v6  ;;  %8979 = vst [vmem:[#allocation32_spill] sm:$0xff] %v6360_v15  ;;  %vm1805_vm5 = vcmp.eq.s32.totalorder %v8767_v41, %v5943_v58  ;;  %v6382_v41 = vadd.s32 128, %v5933_v54 }
 0x1ee   : > { %vm2200_vm11 = vcmp.eq.s32.totalorder %v8755_v31, %v5943_v58  ;;  %4885 = vmatpush.msk.msrb.mxu2 %vm1809_vm1, %v8771_v6  ;;  %v8763_v31 = vshra.s32 %v6312_v26, 2  ;;  %v8765_v5 = vshra.s32 %v6337_v17, 2  ;;  %v8984_v26 = vshra.s32 %v6360_v15, 2 }
 0x1ef   : > { %4886 = vmatpush.msk.msra.mxu0 %vm2072_vm10, %v8771_v6  ;;  %4887 = vmatpush.msk.msra.mxu1 %vm2200_vm11, %v8771_v6  ;;  %8981 = vst [vmem:[#allocation34_spill] sm:$0xff] %v6382_v41  ;;  %v8781_v15 = vshra.s32 %v6382_v41, 2 }
 0x1f0   : > { %4888 = vmatpush.msk.msrb.mxu3 %vm1938_vm12, %v8771_v6  ;;  %4889 = vmatpush.msk.msrb.mxu2 %vm1807_vm13, %v8771_v6  ;;  %vm2070_vm14 = vcmp.eq.s32.totalorder %v8763_v31, %v5943_v58  ;;  %vm1936_vm2 = vcmp.eq.s32.totalorder %v8765_v5, %v5943_v58  ;;  %v8983_v31 = vshra.s32 %v6350_v2, 2  ;;  %vm2068_vm8 = vcmp.eq.s32.totalorder %v8984_v26, %v5943_v58 }
 0x1f1   : > { %4890 = vmatpush.msk.msra.mxu0 %vm2070_vm14, %v8771_v6  ;;  %4891 = vmatpush.msk.msra.mxu1 %vm2198_vm0, %v8771_v6  ;;  %v6394_v5 = vadd.s32 384, %v6285_v55  ;;  %v8989_v26 = vshra.s32 %v5933_v54, 2  ;;  %vm1932_vm11 = vcmp.eq.s32.totalorder %v8781_v15, %v5943_v58  ;;  %v6433_v15 = vadd.s32 384, %v6309_v24 }
 0x1f2   : > { %4892 = vmatpush.msk.msrb.mxu3 %vm1936_vm2, %v8771_v6  ;;  %4893 = vmatpush.msk.msrb.mxu2 %vm1805_vm5, %v8771_v6  ;;  %vm1934_vm6 = vcmp.eq.s32.totalorder %v8983_v31, %v5943_v58  ;;  %v8988_v31 = vshra.s32 %v6363_v4, 2  ;;  %vm2064_vm14 = vcmp.eq.s32.totalorder %v8787_v53, %v5943_v58 }
 0x1f3   : > { %8985 = vst [vmem:[#allocation36_spill] sm:$0xff] %v6394_v5  ;;  %4895 = vmatpush.msk.msra.mxu0 %vm2068_vm8, %v8987_v36  ;;  %vm1803_vm10 = vcmp.eq.s32.totalorder %v8989_v26, %v5943_v58 }
 0x1f4   : > { %4894 = vmatpush.msk.msrb.mxu3 %vm1934_vm6, %v8987_v36  ;;  %vm2196_vm1 = vcmp.eq.s32.totalorder %v8988_v31, %v5943_v58  ;;  %4897 = vmatpush.msk.msrb.mxu2 %vm1803_vm10, %v8987_v36  ;;  %v8783_v31 = vshra.s32 %v6394_v5, 2  ;;  %8990 = vst [vmem:[#allocation38_spill] sm:$0xff] %v6433_v15 }
 0x1f5   : > { %4896 = vmatpush.msk.msra.mxu1 %vm2196_vm1, %v8987_v36 }
 0x1f6   : > { %4898 = vmatpush.msk.msrb.mxu3 %vm1932_vm11, %v8987_v36  ;;  %vm2194_vm13 = vcmp.eq.s32.totalorder %v8783_v31, %v5943_v58  ;;  %v6444_v31 = vpop.permute.xlu2 %1405 }
 0x1f7   : > { %4900 = vmatpush.msk.msra.mxu1 %vm2194_vm13, %v8987_v36 }
 0x222   : > { %v1466_v19 = vpop.f32.mrf.mxu0  ;;  %v1495_v29 = vpop.f32.mrf.mxu1 }
 0x223   : > { %v6400_v6 = vadd.f32 %v1466_v19, %v6375_v63  ;;  %v6403_v45 = vadd.f32 %v1495_v29, %v6375_v63  ;;  %v8782_v19 = vshra.s32 %v6385_v61, 2  ;;  %v8794_v61 = vshra.s32 %v6433_v15, 2 }
 0x225   : > { %v1647_v46 = vmin.f32 %v6400_v6, 0.0  ;;  %v1648_v29 = vmin.f32 %v6403_v45, 0.0  ;;  %vm2066_vm12 = vcmp.eq.s32.totalorder %v8782_v19, %v5943_v58  ;;  %v6436_v19 = vadd.s32 512, %v5940_v57 }
 0x226   : > { %4899 = vmatpush.msk.msra.mxu0 %vm2066_vm12, %v8987_v36  ;;  %vm2192_vm0 = vcmp.eq.s32.totalorder %v8794_v61, %v5943_v58  ;;  %v8799_v61 = vshra.s32 %v6466_v3, 2  ;;  %vm1623_vm6 = vcmp.gt.f32.partialorder %v6400_v6, 0.0  ;;  %vm1624_vm8 = vcmp.gt.f32.partialorder %v6403_v45, 0.0 }
 0x227   : > { %v1671_v26 = vmul.f32 1.442695, %v1647_v46  ;;  %v1673_v4 = vmul.f32 1.442695, %v1648_v29  ;;  %8991 = vst [vmem:[#allocation39_spill] sm:$0xff] %v6436_v19  ;;  %4902 = vmatpush.msk.msra.mxu1 %vm2192_vm0, %v8987_v36 }
 0x228   : > { %4901 = vmatpush.msk.msra.mxu0 %vm2064_vm14, %v8987_v36  ;;  %vm2062_vm1 = vcmp.eq.s32.totalorder %v8799_v61, %v5943_v58 }
 0x229   : > { %4779 = vpow2.f32 %v1671_v26  ;;  %v1524_v21 = vpop.f32.mrf.mxu2  ;;  %v1553_v56 = vpop.f32.mrf.mxu3 }
 0x22a   : > { %4781 = vpow2.f32 %v1673_v4  ;;  %v6439_v46 = vadd.f32 %v1524_v21, %v6375_v63  ;;  %v6442_v29 = vadd.f32 %v1553_v56, %v6375_v63  ;;  %v8795_v4 = vshra.s32 %v6436_v19, 2  ;;  %4905 = vmatpush.msk.msra.mxu0 %vm2062_vm1, %v8987_v36 }
 0x22b   : > { %v1469_v26 = vpop.f32.mrf.mxu0  ;;  %v1498_v5 = vpop.f32.mrf.mxu1  ;;  %v6453_v21 = vadd.s32 640, %v5940_v57  ;;  %v6510_v19 = vadd.s32 640, %v5946_v59 }
 0x22c   : > { %v1649_v56 = vmin.f32 %v6439_v46, 0.0  ;;  %v1650_v34 = vmin.f32 %v6442_v29, 0.0  ;;  %vm2346_vm2 = vcmp.eq.s32.totalorder %v8795_v4, %v5943_v58  ;;  %v6469_v50 = vadd.f32 %v1469_v26, %v6444_v31 }
 0x22d   : > { %8992 = vst [vmem:[#allocation40_spill] sm:$0xff] %v6453_v21  ;;  %v8797_v53 = vshra.s32 %v6453_v21, 2  ;;  %v6472_v43 = vadd.f32 %v1498_v5, %v6444_v31  ;;  %4903 = vmatpush.msk.msra.mxu2 %vm2346_vm2, %v8987_v36  ;;  %v6482_v5 = vpop.permute.xlu0 %1410  ;;  %v6495_v21 = vadd.s32 512, %v5946_v59  ;;  %vm1625_vm14 = vcmp.gt.f32.partialorder %v6439_v46, 0.0 }
 0x22e   : > { %v1675_v38 = vmul.f32 1.442695, %v1649_v56  ;;  %v1677_v51 = vmul.f32 1.442695, %v1650_v34  ;;  %8998 = vst [vmem:[#allocation46_spill] sm:$0xff] %v6510_v19  ;;  %vm1626_vm2 = vcmp.gt.f32.partialorder %v6442_v29, 0.0 }
 0x22f   : > { %v4780_v42 = vpop.eup %4779  ;;  %vm2474_vm5 = vcmp.eq.s32.totalorder %v8797_v53, %v5943_v58  ;;  %8996 = vst [vmem:[#allocation44_spill] sm:$0xff] %v6495_v21 }
 0x230   : > { %v4782_v4 = vpop.eup %4781  ;;  %v4605_v15 = vadd.f32 -1.0, %v4780_v42  ;;  %4783 = vpow2.f32 %v1675_v38  ;;  %4904 = vmatpush.msk.msra.mxu3 %vm2474_vm5, %v8987_v36  ;;  %v6492_v42 = vadd.s32 384, %v6323_v23  ;;  %v1653_v38 = vmin.f32 %v6469_v50, 0.0 }
 0x231   : > { %v4606_v34 = vadd.f32 -1.0, %v4782_v4  ;;  %4785 = vpow2.f32 %v1677_v51  ;;  %v1654_v4 = vmin.f32 %v6472_v43, 0.0  ;;  %v8809_v51 = vshra.s32 %v6495_v21, 2 }
 0x232   : > { %v1527_v26 = vpop.f32.mrf.mxu2  ;;  %v1556_v56 = vpop.f32.mrf.mxu3  ;;  %v6488_v53 = vsel %vm1623_vm6, %v6400_v6, %v4605_v15  ;;  %8995 = vst [vmem:[#allocation43_spill] sm:$0xff] %v6492_v42  ;;  %v8808_v3 = vshra.s32 %v6492_v42, 2  ;;  %v1683_v27 = vmul.f32 1.442695, %v1653_v38  ;;  %v6551_v38 = vadd.s32 384, %v5933_v54 }
 0x233   : > { %8994 = vst [vmem:[#allocation42_spill] sm:$0xff] %v6488_v53  ;;  %2748 = vmatmul.f32.vlgmr.msrb.gmra.mxu2 %v6488_v53  ;;  %v6503_v6 = vsel %vm1624_vm8, %v6403_v45, %v4606_v34  ;;  %v6513_v53 = vadd.s32 256, %v5933_v54  ;;  %v6516_v35 = vadd.f32 %v1527_v26, %v6444_v31  ;;  %v6519_v45 = vadd.f32 %v1556_v56, %v6444_v31 }
 0x234   : > { %8997 = vst [vmem:[#allocation45_spill] sm:$0xff] %v6503_v6  ;;  %v1472_v15 = vpop.f32.mrf.mxu0  ;;  %v1501_v61 = vpop.f32.mrf.mxu1  ;;  %2777 = vmatmul.f32.vlgmr.msrb.gmra.mxu3 %v6503_v6  ;;  %vm2190_vm10 = vcmp.eq.s32.totalorder %v8808_v3, %v5943_v58  ;;  %vm2344_vm11 = vcmp.eq.s32.totalorder %v8809_v51, %v5943_v58  ;;  %v8811_v26 = vshra.s32 %v6510_v19, 2  ;;  %v6543_v3 = vmul.f32 1.442695, %v1654_v4 }
 0x235   : > { %8999 = vst [vmem:[#allocation47_spill] sm:$0xff] %v6513_v53  ;;  %v6522_v34 = vadd.f32 %v1472_v15, %v6482_v5  ;;  %v6525_v6 = vadd.f32 %v1501_v61, %v6482_v5  ;;  %v8812_v30 = vshra.s32 %v6513_v53, 2  ;;  %v1655_v51 = vmin.f32 %v6516_v35, 0.0  ;;  %4906 = vmatpush.msk.msra.mxu1 %vm2190_vm10, %v8987_v36  ;;  %4907 = vmatpush.msk.msra.mxu2 %vm2344_vm11, %v8987_v36 }
 0x236   : > { %v4784_v56 = vpop.eup %4783  ;;  %vm2472_vm12 = vcmp.eq.s32.totalorder %v8811_v26, %v5943_v58  ;;  %v1656_v42 = vmin.f32 %v6519_v45, 0.0  ;;  %9000 = vst [vmem:[#allocation48_spill] sm:$0xff] %v6551_v38  ;;  %v6554_v26 = vadd.s32 512, %v5949_v60  ;;  %4787 = vpow2.f32 %v1683_v27 }
 0x237   : > { %v1659_v15 = vmin.f32 %v6522_v34, 0.0  ;;  %v1660_v14 = vmin.f32 %v6525_v6, 0.0  ;;  %vm2060_vm13 = vcmp.eq.s32.totalorder %v8812_v30, %v5943_v58  ;;  %v4786_v61 = vpop.eup %4785  ;;  %4908 = vmatpush.msk.msra.mxu3 %vm2472_vm12, %v8987_v36  ;;  %v6557_v30 = vadd.s32 640, %v5949_v60 }
 0x238   : > { %9001 = vst [vmem:[#allocation49_spill] sm:$0xff] %v6554_v26  ;;  %4909 = vmatpush.msk.msra.mxu0 %vm2060_vm13, %v8987_v36  ;;  %v4607_v41 = vadd.f32 -1.0, %v4784_v56  ;;  %v8822_v2 = vshra.s32 %v6551_v38, 2  ;;  %v4608_v27 = vadd.f32 -1.0, %v4786_v61  ;;  %vm1868_vm8 = vcmask 482304  }
 0x239   : > { %9002 = vst [vmem:[#allocation50_spill] sm:$0xff] %v6557_v30  ;;  %v1695_v4 = vmul.f32 1.442695, %v1659_v15  ;;  %v1697_v53 = vmul.f32 1.442695, %v1660_v14  ;;  %v8823_v15 = vshra.s32 %v6557_v30, 2 }
 0x23a   : > { %v6573_v8 = vsel %vm1625_vm14, %v6439_v46, %v4607_v41  ;;  %vm2188_vm0 = vcmp.eq.s32.totalorder %v8822_v2, %v5943_v58  ;;  %v9004_v41 = vshra.s32 %v6554_v26, 2  ;;  %v6591_v46 = vsel %vm1626_vm2, %v6442_v29, %v4608_v27 }
 0x23b   : > { %v1530_v19 = vpop.f32.mrf.mxu2  ;;  %v1559_v21 = vpop.f32.mrf.mxu3  ;;  %9003 = vst [vmem:[#allocation51_spill] sm:$0xff] %v6573_v8  ;;  %2806 = vmatmul.f32.vlgmr.msra.gmra.mxu0 %v6573_v8  ;;  %vm2470_vm6 = vcmp.eq.s32.totalorder %v8823_v15, %v5943_v58  ;;  %4789 = vpow2.f32 %v1695_v4  ;;  %4910 = vmatpush.msk.msra.mxu1 %vm2188_vm0, %v8987_v36  ;;  %v6601_v2 = vadd.s32 512, %v6003_v7  ;;  %v6604_v29 = vadd.s32 640, %v6003_v7 }
 0x23c   : > { %v6561_v12 = vadd.f32 %v1530_v19, %v6482_v5  ;;  %v6564_v11 = vadd.f32 %v1559_v21, %v6482_v5  ;;  %vm2342_vm5 = vcmp.eq.s32.totalorder %v9004_v41, %v5943_v58  ;;  %9005 = vst [vmem:[#allocation52_spill] sm:$0xff] %v6591_v46  ;;  %2835 = vmatmul.f32.vlgmr.msra.gmra.mxu1 %v6591_v46  ;;  %v6606_v4 = vmul.f32 1.442695, %v1655_v51 }
 0x23d   : > { %v1475_v56 = vpop.f32.mrf.mxu0  ;;  %v1504_v14 = vpop.f32.mrf.mxu1  ;;  %4911 = vmatpush.msk.msra.mxu2 %vm2342_vm5, %v8987_v36  ;;  %9006 = vst [vmem:[#allocation53_spill] sm:$0xff] %v6604_v29  ;;  %v6608_v27 = vmul.f32 1.442695, %v1656_v42  ;;  %4791 = vpow2.f32 %v1697_v53  ;;  %4912 = vmatpush.msk.msra.mxu3 %vm2470_vm6, %v8987_v36  ;;  %v6612_v15 = vadd.s32 128, %v5943_v58  ;;  %v8830_v8 = vshra.s32 %v6601_v2, 2 }
 0x23e   : > { %v1661_v19 = vmin.f32 %v6561_v12, 0.0  ;;  %v6582_v21 = vadd.f32 %v1475_v56, %v6568_v9  ;;  %v1662_v61 = vmin.f32 %v6564_v11, 0.0  ;;  %v4788_v56 = vpop.eup %4787  ;;  %v6598_v41 = vadd.f32 %v1504_v14, %v6568_v9 }
 0x23f   : > { %v8829_v38 = vshra.s32 %v6604_v29, 2  ;;  %v9007_v42 = vshra.s32 %v5940_v57, 2  ;;  %v9008_v53 = vshra.s32 %v5953_v62, 2  ;;  %v4611_v51 = vadd.f32 -1.0, %v4788_v56 }
 0x240   : > { %v6614_v46 = vmul.f32 1.442695, %v1661_v19  ;;  %v1665_v14 = vmin.f32 %v6582_v21, 0.0  ;;  %v6619_v30 = vmul.f32 1.442695, %v1662_v61  ;;  %vm2340_vm11 = vcmp.eq.s32.totalorder %v8830_v8, %v5943_v58 }
 0x241   : > { %vm1834_vm1 = vcmp.eq.s32.totalorder %v9007_v42, %v6612_v15  ;;  %vm1963_vm10 = vcmp.eq.s32.totalorder %v9008_v53, %v6612_v15  ;;  %vm2468_vm12 = vcmp.eq.s32.totalorder %v8829_v38, %v5943_v58  ;;  %v8832_v61 = vmov 0.0   ;;  %v6635_v57 = vpop.eup %4789  ;;  %4913 = vmatpush.msk.msra.mxu2 %vm2340_vm11, %v8987_v36 }
 0x242   : > { %v1866_v26 = vsel %vm1834_vm1, 0.25, %v8832_v61  ;;  %v1995_v62 = vsel %vm1963_vm10, 0.25, %v8832_v61  ;;  %vm1629_vm13 = vcmp.gt.f32.partialorder %v6469_v50, 0.0  ;;  %v6640_v56 = vmul.f32 1.442695, %v1665_v14  ;;  %4914 = vmatpush.msk.msra.mxu3 %vm2468_vm12, %v8987_v36 }
 0x243   : > { %1899 = vst.msk [vmem:[#allocation3 + $0xf8] sm:$0xff] %vm1868_vm8, %v1866_v26  ;;  %v6645_v42 = vsel %vm1629_vm13, %v6469_v50, %v4611_v51  ;;  %4793 = vpow2.f32 %v6543_v3  ;;  %v6649_v53 = vadd.s32 512, %v6012_v10  ;;  %v6651_v38 = vpop.eup %4791  ;;  %v6655_v26 = vadd.s32 640, %v6012_v10 }
 0x244   : > { %9009 = vst [vmem:[#allocation54_spill] sm:$0xff] %v6645_v42  ;;  %2751 = vmatmul.f32.gmra.mxu2 %v6645_v42  ;;  %v9011_v14 = vshra.s32 %v5946_v59, 2  ;;  %v9012_v50 = vshra.s32 %v5957_v0, 2  ;;  %v6664_v3 = vadd.s32 512, %v6021_v13  ;;  %v6671_v42 = vadd.s32 640, %v6021_v13  ;;  %v1533_v59 = vpop.f32.mrf.mxu2  ;;  %v1562_v51 = vpop.f32.mrf.mxu3 }
 0x245   : > { %9010 = vst [vmem:[#allocation55_spill] sm:$0xff] %v6655_v26  ;;  %vm1630_vm12 = vcmp.gt.f32.partialorder %v6472_v43, 0.0  ;;  %4795 = vpow2.f32 %v6614_v46 }
 0x246   : > { %vm1832_vm14 = vcmp.eq.s32.totalorder %v9011_v14, %v6612_v15  ;;  %vm1961_vm0 = vcmp.eq.s32.totalorder %v9012_v50, %v6612_v15  ;;  %9013 = vst [vmem:[#allocation56_spill] sm:$0xff] %v6664_v3  ;;  %v9015_v50 = vshra.s32 %v5949_v60, 2  ;;  %v8835_v14 = vshra.s32 %v6671_v42, 2 }
 0x247   : > { %2027 = vst.msk [vmem:[#allocation3 + $0x1f8] sm:$0xff] %vm1868_vm8, %v1995_v62  ;;  %v1864_v8 = vsel %vm1832_vm14, 0.25, %v8832_v61  ;;  %v1993_v19 = vsel %vm1961_vm0, 0.25, %v8832_v61  ;;  %v9016_v62 = vshra.s32 %v5961_v37, 2  ;;  %v9017_v61 = vshra.s32 %v6649_v53, 2 }
 0x248   : > { %9014 = vst [vmem:[#allocation57_spill] sm:$0xff] %v6671_v42  ;;  %vm1830_vm2 = vcmp.eq.s32.totalorder %v9015_v50, %v6612_v15  ;;  %v9019_v60 = vshra.s32 %v6655_v26, 2  ;;  %v9020_v37 = vshra.s32 %v6664_v3, 2  ;;  %vm2464_vm11 = vcmp.eq.s32.totalorder %v8835_v14, %v5943_v58  ;;  %v1582_v26 = vpop.f32.mrf.mxu0 }
 0x249   : > { %1897 = vst.msk [vmem:[#allocation3 + $0xe8] sm:$0xff] %vm1868_vm8, %v1864_v8  ;;  %vm1959_vm5 = vcmp.eq.s32.totalorder %v9016_v62, %v6612_v15  ;;  %vm2338_vm6 = vcmp.eq.s32.totalorder %v9017_v61, %v5943_v58  ;;  %v9018_v8 = vmov 0.0   ;;  %v6697_v61 = vadd.f32 %v1533_v59, %v6568_v9 }
 0x24a   : > { %2025 = vst.msk [vmem:[#allocation3 + $0x1e8] sm:$0xff] %vm1868_vm8, %v1993_v19  ;;  %v1862_v29 = vsel %vm1830_vm2, 0.25, %v9018_v8  ;;  %v1991_v0 = vsel %vm1959_vm5, 0.25, %v9018_v8  ;;  %vm2466_vm1 = vcmp.eq.s32.totalorder %v9019_v60, %v5943_v58  ;;  %vm2336_vm10 = vcmp.eq.s32.totalorder %v9020_v37, %v5943_v58  ;;  %v4794_v19 = vpop.eup %4793  ;;  %v2571_v50 = vld [vmem:[#allocation3 + $0xf8] sm:$0xff]  ;;  %4915 = vmatpush.msk.msra.mxu2 %vm2338_vm6, %v8987_v36 }
 0x24b   : > { %1895 = vst.msk [vmem:[#allocation3 + $0xd8] sm:$0xff] %vm1868_vm8, %v1862_v29  ;;  %v6704_v62 = vadd.f32 %v1562_v51, %v6568_v9  ;;  %2906 = vmatpush.msrb.mxu0 %v2571_v50  ;;  %v4612_v60 = vadd.f32 -1.0, %v4794_v19  ;;  %4916 = vmatpush.msk.msra.mxu3 %vm2466_vm1, %v8987_v36  ;;  %v1667_v29 = vmin.f32 %v6697_v61, 0.0  ;;  %v6709_v59 = vadd.s32 512, %v6087_v28 }
 0x24c   : > { %4917 = vmatpush.msk.msra.mxu2 %vm2336_vm10, %v8987_v36  ;;  %v6714_v37 = vadd.s32 640, %v6087_v28  ;;  %v9021_v51 = vshra.s32 %v6003_v7, 2  ;;  %v9022_v19 = vshra.s32 %v6028_v16, 2  ;;  %v9023_v7 = vmin.f32 %v6598_v41, 0.0  ;;  %2023 = vst.msk [vmem:[#allocation3 + $0x1d8] sm:$0xff] %vm1868_vm8, %v1991_v0 }
 0x24d   : > { %v6724_v14 = vsel %vm1630_vm12, %v6472_v43, %v4612_v60  ;;  %4918 = vmatpush.msk.msra.mxu3 %vm2464_vm11, %v8987_v36  ;;  %4797 = vpow2.f32 %v6606_v4  ;;  %v1611_v60 = vpop.f32.mrf.mxu1  ;;  %v1711_v42 = vmul.f32 1.442695, %v1667_v29  ;;  %v6761_v29 = vadd.s32 640, %v6135_v39 }
 0x24e   : > { %vm1828_vm13 = vcmp.eq.s32.totalorder %v9021_v51, %v6612_v15  ;;  %vm1957_vm14 = vcmp.eq.s32.totalorder %v9022_v19, %v6612_v15  ;;  %v2603_v50 = vld [vmem:[#allocation3 + $0x1f8] sm:$0xff]  ;;  %v1709_v51 = vmul.f32 1.442695, %v9023_v7  ;;  %2780 = vmatmul.f32.gmra.mxu3 %v6724_v14  ;;  %v8839_v46 = vshra.s32 %v6714_v37, 2 }
 0x24f   : > { %v1860_v3 = vsel %vm1828_vm13, 0.25, %v9018_v8  ;;  %2935 = vmatpush.msrb.mxu1 %v2603_v50  ;;  %v1989_v43 = vsel %vm1957_vm14, 0.25, %v9018_v8  ;;  %4799 = vpow2.f32 %v6619_v30  ;;  %v1668_v7 = vmin.f32 %v6704_v62, 0.0 }
 0x250   : > { %v2569_v16 = vld [vmem:[#allocation3 + $0xe8] sm:$0xff]  ;;  %v9024_v50 = vshra.s32 %v6709_v59, 2  ;;  %1893 = vst.msk [vmem:[#allocation3 + $0xc8] sm:$0xff] %vm1868_vm8, %v1860_v3  ;;  %4801 = vpow2.f32 %v6640_v56  ;;  %vm2462_vm2 = vcmp.eq.s32.totalorder %v8839_v46, %v5943_v58  ;;  %v6748_v30 = vadd.f32 %v1582_v26, %v6375_v63 }
 0x251   : > { %2907 = vmatpush.msrb.mxu0 %v2569_v16  ;;  %v2601_v19 = vld [vmem:[#allocation3 + $0x1e8] sm:$0xff]  ;;  %2021 = vst.msk [vmem:[#allocation3 + $0x1c8] sm:$0xff] %vm1868_vm8, %v1989_v43  ;;  %4803 = vpow2.f32 %v6608_v27  ;;  %v6753_v4 = vadd.f32 %v1611_v60, %v6375_v63  ;;  %v6756_v56 = vadd.s32 512, %v6135_v39  ;;  %4920 = vmatpush.msk.msra.mxu3 %vm2462_vm2, %v8987_v36  ;;  %v9025_v26 = vshra.s32 %v6012_v10, 2  ;;  %v6766_v16 = vpop.eup %4795 }
 0x252   : > { %vm2334_vm0 = vcmp.eq.s32.totalorder %v9024_v50, %v5943_v58  ;;  %2936 = vmatpush.msrb.mxu1 %v2601_v19  ;;  %v2567_v0 = vld [vmem:[#allocation3 + $0xd8] sm:$0xff]  ;;  %4805 = vpow2.f32 %v1709_v51  ;;  %v1651_v3 = vmin.f32 %v6748_v30, 0.0  ;;  %v6768_v63 = vmul.f32 1.442695, %v1668_v7 }
 0x253   : > { %2908 = vmatpush.msrb.mxu0 %v2567_v0  ;;  %4919 = vmatpush.msk.msra.mxu2 %vm2334_vm0, %v8987_v36  ;;  %vm1826_vm5 = vcmp.eq.s32.totalorder %v9025_v26, %v6612_v15  ;;  %4807 = vpow2.f32 %v1711_v42  ;;  %v8840_v27 = vshra.s32 %v6756_v56, 2  ;;  %v4798_v43 = vpop.eup %4797  ;;  %vm1631_vm6 = vcmp.gt.f32.partialorder %v6516_v35, 0.0  ;;  %v2599_v19 = vld [vmem:[#allocation3 + $0x1d8] sm:$0xff] }
 0x254   : > { %v1858_v51 = vsel %vm1826_vm5, 0.25, %v9018_v8  ;;  %vm1632_vm1 = vcmp.gt.f32.partialorder %v6519_v45, 0.0  ;;  %v8841_v60 = vshra.s32 %v6761_v29, 2  ;;  %v9026_v10 = vshra.s32 %v6034_v20, 2  ;;  %2937 = vmatpush.msrb.mxu1 %v2599_v19 }
 0x255   : > { %1891 = vst.msk [vmem:[#allocation3 + $0xb8] sm:$0xff] %vm1868_vm8, %v1858_v51  ;;  %v6779_v42 = vpop.eup %4799  ;;  %v4613_v7 = vadd.f32 -1.0, %v4798_v43  ;;  %v1652_v50 = vmin.f32 %v6753_v4, 0.0  ;;  %vm2332_vm11 = vcmp.eq.s32.totalorder %v8840_v27, %v5943_v58  ;;  %v1679_v46 = vmul.f32 1.442695, %v1651_v3 }
 0x256   : > { %vm1955_vm10 = vcmp.eq.s32.totalorder %v9026_v10, %v6612_v15  ;;  %v6786_v26 = vpop.eup %4801  ;;  %vm6791_vm12 = vcmp.eq.s32.totalorder %v8841_v60, %v5943_v58  ;;  %v4617_v43 = vadd.f32 -1.0, %v6635_v57  ;;  %4921 = vmatpush.msk.msra.mxu2 %vm2332_vm11, %v8987_v36  ;;  %vm1635_vm13 = vcmp.gt.f32.partialorder %v6522_v34, 0.0 }
 0x257   : > { %v1987_v0 = vsel %vm1955_vm10, 0.25, %v9018_v8  ;;  %v2565_v51 = vld [vmem:[#allocation3 + $0xc8] sm:$0xff]  ;;  %v4804_v10 = vpop.eup %4803  ;;  %v6800_v19 = vsel %vm1631_vm6, %v6516_v35, %v4613_v7  ;;  %vm1636_vm14 = vcmp.gt.f32.partialorder %v6525_v6, 0.0  ;;  %v6813_v35 = vadd.s32 512, %v6147_v44  ;;  %4922 = vmatpush.msk.msra.mxu3 %vm6791_vm12, %v8987_v36 }
 0x258   : > { %2019 = vst.msk [vmem:[#allocation3 + $0x1b8] sm:$0xff] %vm1868_vm8, %v1987_v0  ;;  %2909 = vmatpush.msrb.mxu0 %v2565_v51  ;;  %v2597_v27 = vld [vmem:[#allocation3 + $0x1c8] sm:$0xff]  ;;  %v6805_v3 = vpop.eup %4805  ;;  %v4614_v57 = vadd.f32 -1.0, %v4804_v10  ;;  %v6809_v0 = vsel %vm1635_vm13, %v6522_v34, %v4617_v43  ;;  %v4618_v51 = vadd.f32 -1.0, %v6651_v38  ;;  %v9029_v34 = vshra.s32 %v6021_v13, 2 }
 0x259   : > { %2938 = vmatpush.msrb.mxu1 %v2597_v27  ;;  %2809 = vmatmul.f32.gmra.mxu0 %v6800_v19  ;;  %v6815_v7 = vpop.eup %4807  ;;  %v6822_v27 = vadd.s32 640, %v6147_v44  ;;  %v9030_v38 = vshra.s32 %v6075_v25, 2  ;;  %v6831_v43 = vadd.s32 512, %v6163_v52  ;;  %v8843_v13 = vshra.s32 %v6813_v35, 2 }
 0x25a   : > { %2754 = vmatmul.f32.gmra.mxu2 %v6809_v0  ;;  %vm1824_vm0 = vcmp.eq.s32.totalorder %v9029_v34, %v6612_v15  ;;  %v6836_v20 = vsel %vm1632_vm1, %v6519_v45, %v4614_v57  ;;  %v6841_v10 = vsel %vm1636_vm14, %v6525_v6, %v4618_v51  ;;  %v6852_v6 = vadd.s32 640, %v6163_v52 }
 0x25b   : > { %vm1953_vm2 = vcmp.eq.s32.totalorder %v9030_v38, %v6612_v15  ;;  %9031 = vst [vmem:[#allocation58_spill] sm:$0xff] %v6836_v20  ;;  %v1856_v34 = vsel %vm1824_vm0, 0.25, %v9018_v8  ;;  %2838 = vmatmul.f32.gmra.mxu1 %v6836_v20  ;;  %2783 = vmatmul.f32.gmra.mxu3 %v6841_v10  ;;  %vm2330_vm5 = vcmp.eq.s32.totalorder %v8843_v13, %v5943_v58  ;;  %v9032_v51 = vshra.s32 %v6087_v28, 2  ;;  %v1614_v13 = vpop.f32.mrf.mxu1 }
 0x25c   : > { %v2563_v25 = vld [vmem:[#allocation3 + $0xb8] sm:$0xff]  ;;  %1889 = vst.msk [vmem:[#allocation3 + $0xa8] sm:$0xff] %vm1868_vm8, %v1856_v34  ;;  %v1985_v45 = vsel %vm1953_vm2, 0.25, %v9018_v8  ;;  %v9033_v34 = vshra.s32 %v6101_v33, 2  ;;  %v6865_v60 = vadd.s32 512, %v6218_v1  ;;  %4809 = vpow2.f32 %v1679_v46  ;;  %4923 = vmatpush.msk.msra.mxu2 %vm2330_vm5, %v8987_v36 }
 0x25d   : > { %2910 = vmatpush.msrb.mxu0 %v2563_v25  ;;  %2017 = vst.msk [vmem:[#allocation3 + $0x1a8] sm:$0xff] %vm1868_vm8, %v1985_v45  ;;  %vm1822_vm6 = vcmp.eq.s32.totalorder %v9032_v51, %v6612_v15  ;;  %v1681_v57 = vmul.f32 1.442695, %v1652_v50  ;;  %v9034_v25 = vshra.s32 %v6822_v27, 2  ;;  %v9035_v45 = vshra.s32 %v6831_v43, 2 }
 0x25e   : > { %vm1951_vm1 = vcmp.eq.s32.totalorder %v9033_v34, %v6612_v15  ;;  %v8842_v28 = vshra.s32 %v6852_v6, 2  ;;  %v1854_v33 = vsel %vm1822_vm6, 0.25, %v9018_v8  ;;  %v8844_v51 = vshra.s32 %v6865_v60, 2 }
 0x25f   : > { %v2595_v38 = vld [vmem:[#allocation3 + $0x1b8] sm:$0xff]  ;;  %vm2458_vm10 = vcmp.eq.s32.totalorder %v9034_v25, %v5943_v58  ;;  %vm2328_vm11 = vcmp.eq.s32.totalorder %v9035_v45, %v5943_v58  ;;  %v1983_v50 = vsel %vm1951_vm1, 0.25, %v9018_v8  ;;  %v6880_v34 = vadd.s32 640, %v6218_v1  ;;  %v1585_v25 = vpop.f32.mrf.mxu0  ;;  %1887 = vst.msk [vmem:[#allocation3 + $0x98] sm:$0xff] %vm1868_vm8, %v1854_v33 }
 0x260   : > { %2939 = vmatpush.msrb.mxu1 %v2595_v38  ;;  %4924 = vmatpush.msk.msra.mxu3 %vm2458_vm10, %v8987_v36  ;;  %vm2456_vm12 = vcmp.eq.s32.totalorder %v8842_v28, %v5943_v58  ;;  %v9036_v46 = vshra.s32 %v6135_v39, 2  ;;  %v9037_v38 = vshra.s32 %v6138_v40, 2  ;;  %vm1637_vm0 = vcmp.gt.f32.partialorder %v6561_v12, 0.0  ;;  %2015 = vst.msk [vmem:[#allocation3 + $0x198] sm:$0xff] %vm1868_vm8, %v1983_v50 }
 0x261   : > { %4925 = vmatpush.msk.msra.mxu2 %vm2328_vm11, %v8987_v36  ;;  %vm2326_vm2 = vcmp.eq.s32.totalorder %v8844_v51, %v5943_v58  ;;  %v8846_v45 = vshra.s32 %v6880_v34, 2  ;;  %vm1638_vm5 = vcmp.gt.f32.partialorder %v6564_v11, 0.0  ;;  %v6910_v51 = vadd.f32 %v1585_v25, %v6444_v31 }
 0x262   : > { %vm1820_vm13 = vcmp.eq.s32.totalorder %v9036_v46, %v6612_v15  ;;  %vm1949_vm14 = vcmp.eq.s32.totalorder %v9037_v38, %v6612_v15  ;;  %4926 = vmatpush.msk.msra.mxu3 %vm2456_vm12, %v8987_v36  ;;  %v4619_v46 = vadd.f32 -1.0, %v6766_v16  ;;  %v4620_v38 = vadd.f32 -1.0, %v6779_v42  ;;  %v4810_v16 = vpop.eup %4809 }
 0x263   : > { %v1852_v28 = vsel %vm1820_vm13, 0.25, %v9018_v8  ;;  %v2561_v39 = vld [vmem:[#allocation3 + $0xa8] sm:$0xff]  ;;  %v1981_v40 = vsel %vm1949_vm14, 0.25, %v9018_v8  ;;  %4927 = vmatpush.msk.msra.mxu2 %vm2326_vm2, %v8987_v36  ;;  %vm2454_vm6 = vcmp.eq.s32.totalorder %v8846_v45, %v5943_v58  ;;  %v6913_v20 = vadd.s32 512, %v6237_v18 }
 0x264   : > { %2911 = vmatpush.msrb.mxu0 %v2561_v39  ;;  %v2593_v33 = vld [vmem:[#allocation3 + $0x1a8] sm:$0xff]  ;;  %v6918_v50 = vsel %vm1637_vm0, %v6561_v12, %v4619_v46  ;;  %v6921_v39 = vadd.f32 %v1614_v13, %v6444_v31  ;;  %v6924_v45 = vadd.s32 640, %v6237_v18  ;;  %4928 = vmatpush.msk.msra.mxu3 %vm2454_vm6, %v8987_v36  ;;  %v6931_v42 = vsel %vm1638_vm5, %v6564_v11, %v4620_v38 }
 0x265   : > { %2940 = vmatpush.msrb.mxu1 %v2593_v33  ;;  %2812 = vmatmul.f32.gmra.mxu0 %v6918_v50  ;;  %9038 = vst [vmem:[#allocation59_spill] sm:$0xff] %v6931_v42  ;;  %v1657_v25 = vmin.f32 %v6910_v51, 0.0  ;;  %v8852_v12 = vshra.s32 %v6913_v20, 2  ;;  %v9039_v31 = vshra.s32 %v6147_v44, 2  ;;  %4811 = vpow2.f32 %v6768_v63 }
 0x266   : > { %1885 = vst.msk [vmem:[#allocation3 + $0x88] sm:$0xff] %vm1868_vm8, %v1852_v28  ;;  %2841 = vmatmul.f32.gmra.mxu1 %v6931_v42  ;;  %v8851_v13 = vshra.s32 %v6924_v45, 2  ;;  %v9040_v11 = vshra.s32 %v6154_v49, 2  ;;  %v6946_v33 = vadd.f32 -1.0, %v4810_v16  ;;  %4813 = vpow2.f32 %v1681_v57  ;;  %v2559_v63 = vld [vmem:[#allocation3 + $0x98] sm:$0xff] }
 0x267   : > { %vm1818_vm1 = vcmp.eq.s32.totalorder %v9039_v31, %v6612_v15  ;;  %2013 = vst.msk [vmem:[#allocation3 + $0x188] sm:$0xff] %vm1868_vm8, %v1981_v40  ;;  %vm2324_vm11 = vcmp.eq.s32.totalorder %v8852_v12, %v5943_v58  ;;  %v4623_v28 = vadd.f32 -1.0, %v6786_v26  ;;  %2912 = vmatpush.msrb.mxu0 %v2559_v63  ;;  %v6959_v57 = vmul.f32 1.442695, %v1657_v25  ;;  %v2591_v38 = vld [vmem:[#allocation3 + $0x198] sm:$0xff] }
 0x268   : > { %v1850_v46 = vsel %vm1818_vm1, 0.25, %v9018_v8  ;;  %vm1947_vm10 = vcmp.eq.s32.totalorder %v9040_v11, %v6612_v15  ;;  %vm2452_vm12 = vcmp.eq.s32.totalorder %v8851_v13, %v5943_v58  ;;  %4929 = vmatpush.msk.msra.mxu2 %vm2324_vm11, %v8987_v36  ;;  %vm1641_vm13 = vcmp.gt.f32.partialorder %v6582_v21, 0.0  ;;  %2941 = vmatpush.msrb.mxu1 %v2591_v38  ;;  %v1617_v13 = vpop.f32.mrf.mxu1 }
 0x269   : > { %1883 = vst.msk [vmem:[#allocation3 + $0x78] sm:$0xff] %vm1868_vm8, %v1850_v46  ;;  %v1979_v49 = vsel %vm1947_vm10, 0.25, %v9018_v8  ;;  %v4624_v40 = vadd.f32 -1.0, %v6805_v3  ;;  %4930 = vmatpush.msk.msra.mxu3 %vm2452_vm12, %v8987_v36  ;;  %v6966_v16 = vsel %vm1641_vm13, %v6582_v21, %v4623_v28  ;;  %vm1642_vm14 = vcmp.gt.f32.partialorder %v6598_v41, 0.0 }
 0x26a   : > { %v6970_v31 = vadd.s32 512, %v6285_v55  ;;  %v6973_v26 = vadd.s32 640, %v6285_v55  ;;  %2011 = vst.msk [vmem:[#allocation3 + $0x178] sm:$0xff] %vm1868_vm8, %v1979_v49  ;;  %2757 = vmatmul.f32.gmra.mxu2 %v6966_v16  ;;  %v9041_v21 = vshra.s32 %v6163_v52, 2  ;;  %v9042_v25 = vshra.s32 %v6187_v48, 2 }
 0x26b   : > { %v6978_v3 = vsel %vm1642_vm14, %v6598_v41, %v4624_v40  ;;  %v4812_v46 = vpop.eup %4811  ;;  %v6993_v52 = vadd.s32 512, %v6309_v24  ;;  %v6996_v48 = vadd.s32 640, %v6309_v24  ;;  %v9043_v38 = vshra.s32 %v6218_v1, 2 }
 0x26c   : > { %vm1816_vm0 = vcmp.eq.s32.totalorder %v9041_v21, %v6612_v15  ;;  %vm1945_vm2 = vcmp.eq.s32.totalorder %v9042_v25, %v6612_v15  ;;  %2786 = vmatmul.f32.gmra.mxu3 %v6978_v3  ;;  %v8848_v11 = vshra.s32 %v6970_v31, 2  ;;  %v8847_v63 = vshra.s32 %v6973_v26, 2  ;;  %v4814_v28 = vpop.eup %4813 }
 0x26d   : > { %v1848_v49 = vsel %vm1816_vm0, 0.25, %v9018_v8  ;;  %v1977_v41 = vsel %vm1945_vm2, 0.25, %v9018_v8  ;;  %v2557_v40 = vld [vmem:[#allocation3 + $0x88] sm:$0xff]  ;;  %vm1814_vm5 = vcmp.eq.s32.totalorder %v9043_v38, %v6612_v15  ;;  %v9044_v21 = vshra.s32 %v6243_v47, 2 }
 0x26e   : > { %1881 = vst.msk [vmem:[#allocation3 + $0x68] sm:$0xff] %vm1868_vm8, %v1848_v49  ;;  %2913 = vmatpush.msrb.mxu0 %v2557_v40  ;;  %v2589_v25 = vld [vmem:[#allocation3 + $0x188] sm:$0xff]  ;;  %vm2322_vm1 = vcmp.eq.s32.totalorder %v8848_v11, %v5943_v58  ;;  %vm7010_vm10 = vcmp.eq.s32.totalorder %v8847_v63, %v5943_v58  ;;  %v1846_v1 = vsel %vm1814_vm5, 0.25, %v9018_v8  ;;  %vm1627_vm11 = vcmp.gt.f32.partialorder %v6748_v30, 0.0 }
 0x26f   : > { %vm1943_vm6 = vcmp.eq.s32.totalorder %v9044_v21, %v6612_v15  ;;  %2009 = vst.msk [vmem:[#allocation3 + $0x168] sm:$0xff] %vm1868_vm8, %v1977_v41  ;;  %2942 = vmatpush.msrb.mxu1 %v2589_v25  ;;  %v8850_v38 = vshra.s32 %v6993_v52, 2  ;;  %v8849_v21 = vshra.s32 %v6996_v48, 2  ;;  %4931 = vmatpush.msk.msra.mxu2 %vm2322_vm1, %v8987_v36  ;;  %v7023_v63 = vadd.s32 512, %v6323_v23 }
 0x270   : > { %v1975_v47 = vsel %vm1943_vm6, 0.25, %v9018_v8  ;;  %v2555_v40 = vld [vmem:[#allocation3 + $0x78] sm:$0xff]  ;;  %1879 = vst.msk [vmem:[#allocation3 + $0x58] sm:$0xff] %vm1868_vm8, %v1846_v1  ;;  %v7026_v41 = vadd.s32 640, %v6323_v23  ;;  %v9047_v11 = vshra.s32 %v6237_v18, 2  ;;  %v9048_v25 = vshra.s32 %v6253_v22, 2  ;;  %4932 = vmatpush.msk.msra.mxu3 %vm7010_vm10, %v8987_v36  ;;  %v1588_v1 = vpop.f32.mrf.mxu0 }
 0x271   : > { %2914 = vmatpush.msrb.mxu0 %v2555_v40  ;;  %vm1628_vm14 = vcmp.gt.f32.partialorder %v6753_v4, 0.0  ;;  %vm2320_vm0 = vcmp.eq.s32.totalorder %v8850_v38, %v5943_v58  ;;  %vm7044_vm2 = vcmp.eq.s32.totalorder %v8849_v21, %v5943_v58  ;;  %v2587_v40 = vld [vmem:[#allocation3 + $0x178] sm:$0xff]  ;;  %2007 = vst.msk [vmem:[#allocation3 + $0x158] sm:$0xff] %vm1868_vm8, %v1975_v47  ;;  %v8853_v49 = vshra.s32 %v7023_v63, 2  ;;  %v9058_v47 = vld [vmem:[#allocation9_spill] sm:$0xff] }
 0x272   : > { %vm1812_vm12 = vcmp.eq.s32.totalorder %v9047_v11, %v6612_v15  ;;  %vm1941_vm13 = vcmp.eq.s32.totalorder %v9048_v25, %v6612_v15  ;;  %v8854_v25 = vshra.s32 %v7026_v41, 2  ;;  %2943 = vmatpush.msrb.mxu1 %v2587_v40  ;;  %4933 = vmatpush.msk.msra.mxu2 %vm2320_vm0, %v8987_v36  ;;  %vm1643_vm5 = vcmp.gt.f32.partialorder %v6697_v61, 0.0 }
 0x273   : > { %v1844_v22 = vsel %vm1812_vm12, 0.25, %v9018_v8  ;;  %v1973_v11 = vsel %vm1941_vm13, 0.25, %v9018_v8  ;;  %v4625_v21 = vadd.f32 -1.0, %v6815_v7  ;;  %vm1644_vm6 = vcmp.gt.f32.partialorder %v6704_v62, 0.0  ;;  %4934 = vmatpush.msk.msra.mxu3 %vm7044_vm2, %v8987_v36 }
 0x274   : > { %v4626_v38 = vadd.f32 -1.0, %v4812_v46  ;;  %vm2318_vm1 = vcmp.eq.s32.totalorder %v8853_v49, %v5943_v58  ;;  %vm7066_vm10 = vcmp.eq.s32.totalorder %v8854_v25, %v5943_v58  ;;  %v7071_v7 = vadd.f32 %v1588_v1, %v6482_v5  ;;  %1877 = vst.msk [vmem:[#allocation3 + $0x48] sm:$0xff] %vm1868_vm8, %v1844_v22 }
 0x275   : > { %v2553_v12 = vld [vmem:[#allocation3 + $0x68] sm:$0xff]  ;;  %v7074_v46 = vadd.s32 512, %v5933_v54  ;;  %v7078_v40 = vsel %vm1643_vm5, %v6697_v61, %v4625_v21  ;;  %v4610_v25 = vadd.f32 -1.0, %v4814_v28  ;;  %4935 = vmatpush.msk.msra.mxu2 %vm2318_vm1, %v8987_v36  ;;  %v7085_v1 = vadd.f32 %v1617_v13, %v6482_v5  ;;  %4936 = vmatpush.msk.msra.mxu3 %vm7066_vm10, %v8987_v36  ;;  %2005 = vst.msk [vmem:[#allocation3 + $0x148] sm:$0xff] %vm1868_vm8, %v1973_v11 }
 0x276   : > { %2915 = vmatpush.msrb.mxu0 %v2553_v12  ;;  %v2585_v18 = vld [vmem:[#allocation3 + $0x168] sm:$0xff]  ;;  %v7081_v49 = vsel %vm1644_vm6, %v6704_v62, %v4626_v38  ;;  %v7089_v12 = vadd.s32 640, %v5933_v54  ;;  %4815 = vpow2.f32 %v6959_v57  ;;  %v9053_v61 = vmin.f32 %v6921_v39, 0.0 }
 0x277   : > { %2944 = vmatpush.msrb.mxu1 %v2585_v18  ;;  %v2551_v44 = vld [vmem:[#allocation3 + $0x58] sm:$0xff]  ;;  %v2300_v42 = vshra.s32 %v7074_v46, 2  ;;  %v9054_v62 = vshra.s32 %v6285_v55, 2  ;;  %v9055_v5 = vshra.s32 %v6302_v32, 2  ;;  %2815 = vmatmul.f32.gmra.mxu0 %v7078_v40  ;;  %v1663_v13 = vmin.f32 %v7071_v7, 0.0 }
 0x278   : > { %v1693_v21 = vmul.f32 1.442695, %v9053_v61  ;;  %2916 = vmatpush.msrb.mxu0 %v2551_v44  ;;  %2844 = vmatmul.f32.gmra.mxu1 %v7081_v49  ;;  %v8856_v44 = vshra.s32 %v7089_v12, 2  ;;  %v7115_v32 = vsel %vm1627_vm11, %v6748_v30, %v6946_v33  ;;  %v2583_v55 = vld [vmem:[#allocation3 + $0x158] sm:$0xff]  ;;  %v1664_v57 = vmin.f32 %v7085_v1, 0.0 }
 0x279   : > { %vm1810_vm12 = vcmp.eq.s32.totalorder %v9054_v62, %v6612_v15  ;;  %vm1939_vm13 = vcmp.eq.s32.totalorder %v9055_v5, %v6612_v15  ;;  %vm2316_vm0 = vcmp.eq.s32.totalorder %v2300_v42, %v5943_v58  ;;  %2945 = vmatpush.msrb.mxu1 %v2583_v55  ;;  %v7127_v22 = vsel %vm1628_vm14, %v6753_v4, %v4610_v25  ;;  %v9060_v25 = vld [vmem:[#allocation10_spill] sm:$0xff] }
 0x27a   : > { %v1842_v28 = vsel %vm1810_vm12, 0.25, %v9018_v8  ;;  %v1971_v38 = vsel %vm1939_vm13, 0.25, %v9018_v8  ;;  %4937 = vmatpush.msk.msra.mxu2 %vm2316_vm0, %v8987_v36  ;;  %vm2444_vm2 = vcmp.eq.s32.totalorder %v8856_v44, %v5943_v58  ;;  %v9056_v30 = vshra.s32 %v6309_v24, 2 }
 0x27b   : > { %1875 = vst.msk [vmem:[#allocation3 + $0x38] sm:$0xff] %vm1868_vm8, %v1842_v28  ;;  %2864 = vmatmul.f32.vlgmr.msra.gmra.mxu2 %v7115_v32  ;;  %v9057_v11 = vshra.s32 %v6337_v17, 2  ;;  %v9059_v18 = vshra.s32 %v9058_v47, 2  ;;  %4817 = vpow2.f32 %v1693_v21  ;;  %v2549_v4 = vld [vmem:[#allocation3 + $0x48] sm:$0xff]  ;;  %4938 = vmatpush.msk.msra.mxu3 %vm2444_vm2, %v8987_v36  ;;  %v9061_v61 = vshra.s32 %v9060_v25, 2  ;;  %v9063_v36 = vld [vmem:[#allocation31_spill] sm:$0xff] }
 0x27c   : > { %vm1808_vm11 = vcmp.eq.s32.totalorder %v9056_v30, %v6612_v15  ;;  %v4816_v62 = vpop.eup %4815  ;;  %2917 = vmatpush.msrb.mxu0 %v2549_v4  ;;  %v1703_v5 = vmul.f32 1.442695, %v1663_v13  ;;  %2003 = vst.msk [vmem:[#allocation3 + $0x138] sm:$0xff] %vm1868_vm8, %v1971_v38  ;;  %2893 = vmatmul.f32.vlgmr.msra.gmra.mxu3 %v7127_v22  ;;  %v9062_v21 = vshra.s32 %v6323_v23, 2  ;;  %v9064_v55 = vshra.s32 %v9063_v36, 2  ;;  %v9065_v13 = vld [vmem:[#allocation11_spill] sm:$0xff]  ;;  %v1591_v4 = vpop.f32.mrf.mxu0 }
 0x27d   : > { %v1840_v33 = vsel %vm1808_vm11, 0.25, %v9018_v8  ;;  %vm1937_vm5 = vcmp.eq.s32.totalorder %v9057_v11, %v6612_v15  ;;  %vm2091_vm6 = vcmp.eq.s32.totalorder %v9059_v18, %v6612_v15  ;;  %vm2219_vm14 = vcmp.eq.s32.totalorder %v9061_v61, %v6612_v15  ;;  %v2581_v38 = vld [vmem:[#allocation3 + $0x148] sm:$0xff]  ;;  %v9067_v23 = vld [vmem:[#allocation12_spill] sm:$0xff]  ;;  %v1620_v36 = vpop.f32.mrf.mxu1 }
 0x27e   : > { %v1969_v24 = vsel %vm1937_vm5, 0.25, %v9018_v8  ;;  %v2123_v17 = vsel %vm2091_vm6, 0.25, %v9018_v8  ;;  %vm1806_vm1 = vcmp.eq.s32.totalorder %v9062_v21, %v6612_v15  ;;  %vm1935_vm10 = vcmp.eq.s32.totalorder %v9064_v55, %v6612_v15  ;;  %1873 = vst.msk [vmem:[#allocation3 + $0x28] sm:$0xff] %vm1868_vm8, %v1840_v33  ;;  %2946 = vmatpush.msrb.mxu1 %v2581_v38 }
 0x27f   : > { %v2251_v28 = vsel %vm2219_vm14, 0.25, %v9018_v8  ;;  %v9066_v30 = vshra.s32 %v9065_v13, 2  ;;  %v1705_v11 = vmul.f32 1.442695, %v1664_v57  ;;  %2001 = vst.msk [vmem:[#allocation3 + $0x128] sm:$0xff] %vm1868_vm8, %v1969_v24  ;;  %v1838_v47 = vsel %vm1806_vm1, 0.25, %v9018_v8 }
 0x280   : > { %v9068_v18 = vshra.s32 %v9067_v23, 2  ;;  %2155 = vst.msk [vmem:[#allocation3 + $0x2f8] sm:$0xff] %vm1868_vm8, %v2123_v17  ;;  %v1967_v33 = vsel %vm1935_vm10, 0.25, %v9018_v8  ;;  %v9069_v25 = vshra.s32 %v5933_v54, 2  ;;  %4819 = vpow2.f32 %v1703_v5  ;;  %v9072_v24 = vld [vmem:[#allocation34_spill] sm:$0xff]  ;;  %v9090_v5 = vld [vmem:[#allocation39_spill] sm:$0xff] }
 0x281   : > { %vm2089_vm12 = vcmp.eq.s32.totalorder %v9066_v30, %v6612_v15  ;;  %2283 = vst.msk [vmem:[#allocation3 + $0x3f8] sm:$0xff] %vm1868_vm8, %v2251_v28  ;;  %v9073_v21 = vshra.s32 %v9072_v24, 2  ;;  %v4818_v17 = vpop.eup %4817  ;;  %v9074_v30 = vld [vmem:[#allocation13_spill] sm:$0xff]  ;;  %v9078_v28 = vld [vmem:[#allocation14_spill] sm:$0xff]  ;;  %4821 = vpow2.f32 %v1705_v11  ;;  %vm1633_vm1 = vcmp.gt.f32.partialorder %v6910_v51, 0.0 }
 0x282   : > { %vm2217_vm13 = vcmp.eq.s32.totalorder %v9068_v18, %v6612_v15  ;;  %vm7170_vm0 = vcmp.eq.s32.totalorder %v9069_v25, %v6612_v15  ;;  %v2121_v57 = vsel %vm2089_vm12, 0.25, %v9018_v8  ;;  %v2547_v55 = vld [vmem:[#allocation3 + $0x38] sm:$0xff]  ;;  %1871 = vst.msk [vmem:[#allocation3 + $0x18] sm:$0xff] %vm1868_vm8, %v1838_v47  ;;  %v9075_v38 = vshra.s32 %v9074_v30, 2 }
 0x283   : > { %vm1933_vm2 = vcmp.eq.s32.totalorder %v9073_v21, %v6612_v15  ;;  %v2249_v13 = vsel %vm2217_vm13, 0.25, %v9018_v8  ;;  %v9079_v23 = vshra.s32 %v9078_v28, 2  ;;  %v7196_v25 = vadd.f32 %v1591_v4, %v6568_v9  ;;  %2918 = vmatpush.msrb.mxu0 %v2547_v55  ;;  %1999 = vst.msk [vmem:[#allocation3 + $0x118] sm:$0xff] %vm1868_vm8, %v1967_v33  ;;  %v2579_v24 = vld [vmem:[#allocation3 + $0x138] sm:$0xff]  ;;  %v9102_v28 = vld [vmem:[#allocation18_spill] sm:$0xff] }
 0x284   : > { %vm7184_vm11 = vcmp.eq.s32.totalorder %v9075_v38, %v6612_v15  ;;  %v1836_v47 = vsel %vm7170_vm0, 0.25, %v9018_v8  ;;  %2153 = vst.msk [vmem:[#allocation3 + $0x2e8] sm:$0xff] %vm1868_vm8, %v2121_v57  ;;  %v1965_v21 = vsel %vm1933_vm2, 0.25, %v9018_v8  ;;  %v7205_v30 = vadd.f32 %v1620_v36, %v6568_v9  ;;  %v9082_v38 = vld [vmem:[#allocation15_spill] sm:$0xff]  ;;  %2947 = vmatpush.msrb.mxu1 %v2579_v24  ;;  %v9086_v57 = vld [vmem:[#allocation16_spill] sm:$0xff] }
 0x285   : > { %vm7191_vm5 = vcmp.eq.s32.totalorder %v9079_v23, %v6612_v15  ;;  %v9083_v4 = vshra.s32 %v9082_v38, 2  ;;  %v4615_v33 = vadd.f32 -1.0, %v4816_v62  ;;  %v2545_v55 = vld [vmem:[#allocation3 + $0x28] sm:$0xff]  ;;  %2281 = vst.msk [vmem:[#allocation3 + $0x3e8] sm:$0xff] %vm1868_vm8, %v2249_v13  ;;  %v2119_v61 = vsel %vm7184_vm11, 0.25, %v9018_v8  ;;  %v9106_v18 = vld [vmem:[#allocation44_spill] sm:$0xff] }
 0x286   : > { %v2247_v9 = vsel %vm7191_vm5, 0.25, %v9018_v8  ;;  %v9087_v36 = vshra.s32 %v9086_v57, 2  ;;  %2919 = vmatpush.msrb.mxu0 %v2545_v55  ;;  %v2577_v62 = vld [vmem:[#allocation3 + $0x128] sm:$0xff]  ;;  %1869 = vst.msk [vmem:[#allocation3 + $0x8] sm:$0xff] %vm1868_vm8, %v1836_v47  ;;  %v1669_v13 = vmin.f32 %v7196_v25, 0.0  ;;  %v9091_v23 = vshra.s32 %v9090_v5, 2 }
 0x287   : > { %vm7210_vm6 = vcmp.eq.s32.totalorder %v9083_v4, %v6612_v15  ;;  %v7239_v24 = vsel %vm1633_vm1, %v6910_v51, %v4615_v33  ;;  %v4616_v38 = vadd.f32 -1.0, %v4818_v17  ;;  %v4820_v4 = vpop.eup %4819  ;;  %2948 = vmatpush.msrb.mxu1 %v2577_v62  ;;  %v2635_v57 = vld [vmem:[#allocation3 + $0x2f8] sm:$0xff]  ;;  %1997 = vst.msk [vmem:[#allocation3 + $0x108] sm:$0xff] %vm1868_vm8, %v1965_v21  ;;  %vm1634_vm13 = vcmp.gt.f32.partialorder %v6921_v39, 0.0  ;;  %v9098_v33 = vld [vmem:[#allocation17_spill] sm:$0xff] }
 0x288   : > { %vm7224_vm14 = vcmp.eq.s32.totalorder %v9087_v36, %v6612_v15  ;;  %vm7234_vm10 = vcmp.eq.s32.totalorder %v9091_v23, %v6612_v15  ;;  %v2117_v47 = vsel %vm7210_vm6, 0.25, %v9018_v8  ;;  %v9094_v55 = vld [vmem:[#allocation40_spill] sm:$0xff]  ;;  %2867 = vmatmul.f32.gmra.mxu2 %v7239_v24  ;;  %2151 = vst.msk [vmem:[#allocation3 + $0x2d8] sm:$0xff] %vm1868_vm8, %v2119_v61  ;;  %v1670_v17 = vmin.f32 %v7205_v30, 0.0  ;;  %v9114_v23 = vld [vmem:[#allocation19_spill] sm:$0xff] }
 0x289   : > { %v9095_v36 = vshra.s32 %v9094_v55, 2  ;;  %2964 = vmatpush.msrb.mxu2 %v2635_v57  ;;  %v2667_v51 = vld [vmem:[#allocation3 + $0x3f8] sm:$0xff]  ;;  %v2245_v21 = vsel %vm7224_vm14, 0.25, %v9018_v8  ;;  %v7260_v11 = vsel %vm1634_vm13, %v6921_v39, %v4616_v38  ;;  %v9099_v62 = vshra.s32 %v9098_v33, 2  ;;  %v4822_v57 = vpop.eup %4821  ;;  %2279 = vst.msk [vmem:[#allocation3 + $0x3d8] sm:$0xff] %vm1868_vm8, %v2247_v9 }
 0x28a   : > { %2993 = vmatpush.msrb.mxu3 %v2667_v51  ;;  %v2543_v55 = vld [vmem:[#allocation3 + $0x18] sm:$0xff]  ;;  %v2379_v61 = vsel %vm7234_vm10, 0.25, %v9018_v8  ;;  %v9103_v39 = vshra.s32 %v9102_v28, 2  ;;  %v1715_v33 = vmul.f32 1.442695, %v1669_v13  ;;  %2149 = vst.msk [vmem:[#allocation3 + $0x2c8] sm:$0xff] %vm1868_vm8, %v2117_v47 }
 0x28b   : > { %vm7248_vm12 = vcmp.eq.s32.totalorder %v9095_v36, %v6612_v15  ;;  %vm7265_vm0 = vcmp.eq.s32.totalorder %v9099_v62, %v6612_v15  ;;  %2920 = vmatpush.msrb.mxu0 %v2543_v55  ;;  %v2575_v36 = vld [vmem:[#allocation3 + $0x118] sm:$0xff]  ;;  %2896 = vmatmul.f32.gmra.mxu3 %v7260_v11  ;;  %v9107_v51 = vshra.s32 %v9106_v18, 2  ;;  %v2633_v28 = vld [vmem:[#allocation3 + $0x2e8] sm:$0xff]  ;;  %2277 = vst.msk [vmem:[#allocation3 + $0x3c8] sm:$0xff] %vm1868_vm8, %v2245_v21  ;;  %vm1639_vm10 = vcmp.gt.f32.partialorder %v7071_v7, 0.0 }
 0x28c   : > { %vm7276_vm2 = vcmp.eq.s32.totalorder %v9103_v39, %v6612_v15  ;;  %v2507_v9 = vsel %vm7248_vm12, 0.25, %v9018_v8  ;;  %2949 = vmatpush.msrb.mxu1 %v2575_v36  ;;  %v2115_v13 = vsel %vm7265_vm0, 0.25, %v9018_v8  ;;  %v9110_v47 = vld [vmem:[#allocation46_spill] sm:$0xff]  ;;  %v4621_v39 = vadd.f32 -1.0, %v4820_v4  ;;  %2965 = vmatpush.msrb.mxu2 %v2633_v28  ;;  %2411 = vst.msk [vmem:[#allocation3 + $0x4f8] sm:$0xff] %vm1868_vm8, %v2379_v61 }
 0x28d   : > { %vm7288_vm11 = vcmp.eq.s32.totalorder %v9107_v51, %v6612_v15  ;;  %v9111_v5 = vshra.s32 %v9110_v47, 2  ;;  %v2665_v18 = vld [vmem:[#allocation3 + $0x3e8] sm:$0xff]  ;;  %v1717_v51 = vmul.f32 1.442695, %v1670_v17  ;;  %v2243_v21 = vsel %vm7276_vm2, 0.25, %v9018_v8  ;;  %2539 = vst.msk [vmem:[#allocation3 + $0x5f8] sm:$0xff] %vm1868_vm8, %v2507_v9 }
 0x28e   : > { %v9115_v36 = vshra.s32 %v9114_v23, 2  ;;  %2994 = vmatpush.msrb.mxu3 %v2665_v18  ;;  %v2541_v47 = vld [vmem:[#allocation3 + $0x8] sm:$0xff]  ;;  %v2377_v4 = vsel %vm7288_vm11, 0.25, %v9018_v8  ;;  %v9118_v17 = vld [vmem:[#allocation20_spill] sm:$0xff]  ;;  %4823 = vpow2.f32 %v1715_v33  ;;  %2147 = vst.msk [vmem:[#allocation3 + $0x2b8] sm:$0xff] %vm1868_vm8, %v2115_v13  ;;  %vm1640_vm0 = vcmp.gt.f32.partialorder %v7085_v1, 0.0 }
 0x28f   : > { %vm7299_vm5 = vcmp.eq.s32.totalorder %v9111_v5, %v6612_v15  ;;  %v9119_v61 = vshra.s32 %v9118_v17, 2  ;;  %2921 = vmatpush.msrb.mxu0 %v2541_v47  ;;  %v2573_v28 = vld [vmem:[#allocation3 + $0x108] sm:$0xff]  ;;  %v2631_v23 = vld [vmem:[#allocation3 + $0x2d8] sm:$0xff]  ;;  %2275 = vst.msk [vmem:[#allocation3 + $0x3b8] sm:$0xff] %vm1868_vm8, %v2243_v21  ;;  %v7350_v17 = vsel %vm1639_vm10, %v7071_v7, %v4621_v39  ;;  %4825 = vpow2.f32 %v1717_v51 }
 0x290   : > { %vm7310_vm6 = vcmp.eq.s32.totalorder %v9115_v36, %v6612_v15  ;;  %v2505_v9 = vsel %vm7299_vm5, 0.25, %v9018_v8  ;;  %v9122_v5 = vld [vmem:[#allocation49_spill] sm:$0xff]  ;;  %2950 = vmatpush.msrb.mxu1 %v2573_v28  ;;  %v9126_v36 = vld [vmem:[#allocation42_spill] sm:$0xff]  ;;  %2966 = vmatpush.msrb.mxu2 %v2631_v23  ;;  %v2663_v28 = vld [vmem:[#allocation3 + $0x3d8] sm:$0xff]  ;;  %2409 = vst.msk [vmem:[#allocation3 + $0x4e8] sm:$0xff] %vm1868_vm8, %v2377_v4  ;;  %v9140_v18 = vshra.s32 %v6601_v2, 2 }
 0x291   : > { %vm7321_vm14 = vcmp.eq.s32.totalorder %v9119_v61, %v6612_v15  ;;  %v9123_v62 = vshra.s32 %v9122_v5, 2  ;;  %2922 = vmatmul.f32.vlgmr.msrb.gmra.mxu0 %v9126_v36  ;;  %v2113_v33 = vsel %vm7310_vm6, 0.25, %v9018_v8  ;;  %v9127_v13 = vld [vmem:[#allocation50_spill] sm:$0xff]  ;;  %v4622_v61 = vadd.f32 -1.0, %v4822_v57  ;;  %v9131_v5 = vld [vmem:[#allocation45_spill] sm:$0xff]  ;;  %2995 = vmatpush.msrb.mxu3 %v2663_v28  ;;  %2537 = vst.msk [vmem:[#allocation3 + $0x5e8] sm:$0xff] %vm1868_vm8, %v2505_v9 }
 0x292   : > { %v9128_v55 = vshra.s32 %v9127_v13, 2  ;;  %2951 = vmatmul.f32.vlgmr.msrb.gmra.mxu1 %v9131_v5  ;;  %v2241_v44 = vsel %vm7321_vm14, 0.25, %v9018_v8  ;;  %v9132_v21 = vld [vmem:[#allocation21_spill] sm:$0xff]  ;;  %v9136_v39 = vld [vmem:[#allocation22_spill] sm:$0xff]  ;;  %2870 = vmatmul.f32.gmra.mxu2 %v7350_v17  ;;  %2145 = vst.msk [vmem:[#allocation3 + $0x2a8] sm:$0xff] %vm1868_vm8, %v2113_v33  ;;  %vm7387_vm11 = vcmp.eq.s32.totalorder %v9140_v18, %v6612_v15  ;;  %v9155_v18 = vshra.s32 %v6649_v53, 2 }
 0x293   : > { %vm7332_vm1 = vcmp.eq.s32.totalorder %v9123_v62, %v6612_v15  ;;  %v9133_v62 = vshra.s32 %v9132_v21, 2  ;;  %v2629_v7 = vld [vmem:[#allocation3 + $0x2c8] sm:$0xff]  ;;  %v9137_v51 = vshra.s32 %v9136_v39, 2  ;;  %v7378_v38 = vsel %vm1640_vm0, %v7085_v1, %v4622_v61  ;;  %v2699_v1 = vld [vmem:[#allocation3 + $0x4f8] sm:$0xff]  ;;  %2273 = vst.msk [vmem:[#allocation3 + $0x3a8] sm:$0xff] %vm1868_vm8, %v2241_v44 }
 0x294   : > { %vm7345_vm12 = vcmp.eq.s32.totalorder %v9128_v55, %v6612_v15  ;;  %v2375_v57 = vsel %vm7332_vm1, 0.25, %v9018_v8  ;;  %2967 = vmatpush.msrb.mxu2 %v2629_v7  ;;  %v2661_v23 = vld [vmem:[#allocation3 + $0x3c8] sm:$0xff]  ;;  %2899 = vmatmul.f32.gmra.mxu3 %v7378_v38  ;;  %v4824_v2 = vpop.eup %4823  ;;  %v2731_v28 = vld [vmem:[#allocation3 + $0x5f8] sm:$0xff]  ;;  %v2373_v7 = vsel %vm7387_vm11, 0.25, %v9018_v8  ;;  %vm7432_vm1 = vcmp.eq.s32.totalorder %v9155_v18, %v6612_v15 }
 0x295   : > { %vm7360_vm13 = vcmp.eq.s32.totalorder %v9133_v62, %v6612_v15  ;;  %vm7372_vm2 = vcmp.eq.s32.totalorder %v9137_v51, %v6612_v15  ;;  %v2503_v9 = vsel %vm7345_vm12, 0.25, %v9018_v8  ;;  %2996 = vmatpush.msrb.mxu3 %v2661_v23  ;;  %v9143_v55 = vld [vmem:[#allocation53_spill] sm:$0xff]  ;;  %3022 = vmatpush.msra.mxu0 %v2699_v1  ;;  %2407 = vst.msk [vmem:[#allocation3 + $0x4d8] sm:$0xff] %vm1868_vm8, %v2375_v57  ;;  %v9147_v44 = vld [vmem:[#allocation23_spill] sm:$0xff]  ;;  %v9151_v57 = vld [vmem:[#allocation24_spill] sm:$0xff]  ;;  %v4826_v4 = vpop.eup %4825  ;;  %vm1645_vm0 = vcmp.gt.f32.partialorder %v7196_v25, 0.0 }
 0x296   : > { %v2111_v33 = vsel %vm7360_vm13, 0.25, %v9018_v8  ;;  %v9144_v47 = vshra.s32 %v9143_v55, 2  ;;  %v2239_v5 = vsel %vm7372_vm2, 0.25, %v9018_v8  ;;  %v9148_v21 = vshra.s32 %v9147_v44, 2  ;;  %3051 = vmatpush.msra.mxu1 %v2731_v28  ;;  %v2627_v36 = vld [vmem:[#allocation3 + $0x2b8] sm:$0xff]  ;;  %2535 = vst.msk [vmem:[#allocation3 + $0x5d8] sm:$0xff] %vm1868_vm8, %v2503_v9 }
 0x297   : > { %v9152_v39 = vshra.s32 %v9151_v57, 2  ;;  %2968 = vmatpush.msrb.mxu2 %v2627_v36  ;;  %v2659_v23 = vld [vmem:[#allocation3 + $0x3b8] sm:$0xff]  ;;  %2143 = vst.msk [vmem:[#allocation3 + $0x298] sm:$0xff] %vm1868_vm8, %v2111_v33  ;;  %v2697_v1 = vld [vmem:[#allocation3 + $0x4e8] sm:$0xff]  ;;  %v4627_v36 = vadd.f32 -1.0, %v4824_v2  ;;  %vm1646_vm11 = vcmp.gt.f32.partialorder %v7205_v30, 0.0 }
 0x298   : > { %vm7399_vm5 = vcmp.eq.s32.totalorder %v9144_v47, %v6612_v15  ;;  %vm7410_vm6 = vcmp.eq.s32.totalorder %v9148_v21, %v6612_v15  ;;  %2997 = vmatpush.msrb.mxu3 %v2659_v23  ;;  %2271 = vst.msk [vmem:[#allocation3 + $0x398] sm:$0xff] %vm1868_vm8, %v2239_v5  ;;  %v9158_v55 = vld [vmem:[#allocation54_spill] sm:$0xff]  ;;  %v9159_v47 = vld [vmem:[#allocation55_spill] sm:$0xff]  ;;  %3023 = vmatpush.msra.mxu0 %v2697_v1  ;;  %v9163_v44 = vld [vmem:[#allocation25_spill] sm:$0xff]  ;;  %v4628_v23 = vadd.f32 -1.0, %v4826_v4  ;;  %v9193_v28 = vshra.s32 %v6756_v56, 2 }
 0x299   : > { %vm7421_vm14 = vcmp.eq.s32.totalorder %v9152_v39, %v6612_v15  ;;  %v2501_v9 = vsel %vm7399_vm5, 0.25, %v9018_v8  ;;  %2925 = vmatmul.f32.gmra.mxu0 %v9158_v55  ;;  %v2109_v33 = vsel %vm7410_vm6, 0.25, %v9018_v8  ;;  %v9160_v61 = vshra.s32 %v9159_v47, 2  ;;  %v2729_v53 = vld [vmem:[#allocation3 + $0x5e8] sm:$0xff]  ;;  %2405 = vst.msk [vmem:[#allocation3 + $0x4c8] sm:$0xff] %vm1868_vm8, %v2373_v7  ;;  %v9171_v18 = vld [vmem:[#allocation56_spill] sm:$0xff] }
 0x29a   : > { %2954 = vmatmul.f32.gmra.mxu1 %v6724_v14  ;;  %v2237_v5 = vsel %vm7421_vm14, 0.25, %v9018_v8  ;;  %v9164_v21 = vshra.s32 %v9163_v44, 2  ;;  %v2625_v57 = vld [vmem:[#allocation3 + $0x2a8] sm:$0xff]  ;;  %2533 = vst.msk [vmem:[#allocation3 + $0x5c8] sm:$0xff] %vm1868_vm8, %v2501_v9  ;;  %v2371_v14 = vsel %vm7432_vm1, 0.25, %v9018_v8  ;;  %v9172_v13 = vshra.s32 %v9171_v18, 2 }
 0x29b   : > { %vm7444_vm10 = vcmp.eq.s32.totalorder %v9160_v61, %v6612_v15  ;;  %3052 = vmatpush.msra.mxu1 %v2729_v53  ;;  %v9167_v7 = vld [vmem:[#allocation26_spill] sm:$0xff]  ;;  %2969 = vmatpush.msrb.mxu2 %v2625_v57  ;;  %2141 = vst.msk [vmem:[#allocation3 + $0x288] sm:$0xff] %vm1868_vm8, %v2109_v33  ;;  %v7484_v55 = vsel %vm1645_vm0, %v7196_v25, %v4627_v36  ;;  %v9175_v47 = vld [vmem:[#allocation57_spill] sm:$0xff]  ;;  %v9179_v44 = vld [vmem:[#allocation27_spill] sm:$0xff]  ;;  %v9199_v51 = vshra.s32 %v6813_v35, 2  ;;  %v9202_v18 = vshra.s32 %v6822_v27, 2 }
 0x29c   : > { %vm7456_vm12 = vcmp.eq.s32.totalorder %v9164_v21, %v6612_v15  ;;  %v9168_v39 = vshra.s32 %v9167_v7, 2  ;;  %v2657_v2 = vld [vmem:[#allocation3 + $0x3a8] sm:$0xff]  ;;  %v2499_v9 = vsel %vm7444_vm10, 0.25, %v9018_v8  ;;  %vm7479_vm2 = vcmp.eq.s32.totalorder %v9172_v13, %v6612_v15  ;;  %v2695_v4 = vld [vmem:[#allocation3 + $0x4d8] sm:$0xff]  ;;  %2269 = vst.msk [vmem:[#allocation3 + $0x388] sm:$0xff] %vm1868_vm8, %v2237_v5  ;;  %2873 = vmatmul.f32.gmra.mxu2 %v7484_v55 }
 0x29d   : > { %2998 = vmatpush.msrb.mxu3 %v2657_v2  ;;  %v2107_v33 = vsel %vm7456_vm12, 0.25, %v9018_v8  ;;  %v9176_v61 = vshra.s32 %v9175_v47, 2  ;;  %v7500_v25 = vsel %vm1646_vm11, %v7205_v30, %v4628_v23  ;;  %3024 = vmatpush.msra.mxu0 %v2695_v4  ;;  %v2727_v53 = vld [vmem:[#allocation3 + $0x5d8] sm:$0xff]  ;;  %2403 = vst.msk [vmem:[#allocation3 + $0x4b8] sm:$0xff] %vm1868_vm8, %v2371_v14  ;;  %v9180_v21 = vshra.s32 %v9179_v44, 2  ;;  %v9189_v1 = vld [vmem:[#allocation29_spill] sm:$0xff] }
 0x29e   : > { %vm7467_vm13 = vcmp.eq.s32.totalorder %v9168_v39, %v6612_v15  ;;  %2902 = vmatmul.f32.gmra.mxu3 %v7500_v25  ;;  %3053 = vmatpush.msra.mxu1 %v2727_v53  ;;  %v2623_v62 = vld [vmem:[#allocation3 + $0x298] sm:$0xff]  ;;  %2531 = vst.msk [vmem:[#allocation3 + $0x5b8] sm:$0xff] %vm1868_vm8, %v2499_v9  ;;  %v2369_v30 = vsel %vm7479_vm2, 0.25, %v9018_v8  ;;  %v9183_v39 = vshra.s32 %v6709_v59, 2  ;;  %v9186_v9 = vshra.s32 %v6714_v37, 2 }
 0x29f   : > { %vm7494_vm5 = vcmp.eq.s32.totalorder %v9176_v61, %v6612_v15  ;;  %v2235_v5 = vsel %vm7467_vm13, 0.25, %v9018_v8  ;;  %vm2073_vm6 = vcmp.eq.s32.totalorder %v9180_v21, %v6612_v15  ;;  %v9181_v36 = vld [vmem:[#allocation28_spill] sm:$0xff]  ;;  %2970 = vmatpush.msrb.mxu2 %v2623_v62  ;;  %2139 = vst.msk [vmem:[#allocation3 + $0x278] sm:$0xff] %vm1868_vm8, %v2107_v33  ;;  %v9190_v4 = vshra.s32 %v9189_v1, 2  ;;  %v9191_v33 = vld [vmem:[#allocation30_spill] sm:$0xff]  ;;  %v9205_v1 = vld [vmem:[#allocation35_spill] sm:$0xff] }
 0x2a0   : > { %v9182_v57 = vshra.s32 %v9181_v36, 2  ;;  %v2655_v14 = vld [vmem:[#allocation3 + $0x398] sm:$0xff]  ;;  %v2497_v7 = vsel %vm7494_vm5, 0.25, %v9018_v8  ;;  %vm7524_vm1 = vcmp.eq.s32.totalorder %v9183_v39, %v6612_v15  ;;  %v2693_v23 = vld [vmem:[#allocation3 + $0x4c8] sm:$0xff]  ;;  %2267 = vst.msk [vmem:[#allocation3 + $0x378] sm:$0xff] %vm1868_vm8, %v2235_v5  ;;  %v2105_v2 = vsel %vm2073_vm6, 0.25, %v9018_v8 }
 0x2a1   : > { %2999 = vmatpush.msrb.mxu3 %v2655_v14  ;;  %vm7533_vm10 = vcmp.eq.s32.totalorder %v9186_v9, %v6612_v15  ;;  %2928 = vmatmul.f32.gmra.mxu0 %v6809_v0  ;;  %v2725_v59 = vld [vmem:[#allocation3 + $0x5c8] sm:$0xff]  ;;  %2401 = vst.msk [vmem:[#allocation3 + $0x4a8] sm:$0xff] %vm1868_vm8, %v2369_v30  ;;  %vm2071_vm12 = vcmp.eq.s32.totalorder %v9190_v4, %v6612_v15  ;;  %v2367_v0 = vsel %vm7524_vm1, 0.25, %v9018_v8  ;;  %v9192_v47 = vshra.s32 %v9191_v33, 2  ;;  %v9195_v30 = vld [vmem:[#allocation32_spill] sm:$0xff] }
 0x2a2   : > { %vm2201_vm14 = vcmp.eq.s32.totalorder %v9182_v57, %v6612_v15  ;;  %3025 = vmatpush.msra.mxu0 %v2693_v23  ;;  %2957 = vmatmul.f32.gmra.mxu1 %v6841_v10  ;;  %v2621_v37 = vld [vmem:[#allocation3 + $0x288] sm:$0xff]  ;;  %2529 = vst.msk [vmem:[#allocation3 + $0x5a8] sm:$0xff] %vm1868_vm8, %v2497_v7  ;;  %v2495_v10 = vsel %vm7533_vm10, 0.25, %v9018_v8  ;;  %vm2333_vm0 = vcmp.eq.s32.totalorder %v9193_v28, %v6612_v15  ;;  %v2103_v5 = vsel %vm2071_vm12, 0.25, %v9018_v8 }
 0x2a3   : > { %v2233_v13 = vsel %vm2201_vm14, 0.25, %v9018_v8  ;;  %3054 = vmatpush.msra.mxu1 %v2725_v59  ;;  %vm2199_vm13 = vcmp.eq.s32.totalorder %v9192_v47, %v6612_v15  ;;  %2971 = vmatpush.msrb.mxu2 %v2621_v37  ;;  %v2653_v61 = vld [vmem:[#allocation3 + $0x388] sm:$0xff]  ;;  %2137 = vst.msk [vmem:[#allocation3 + $0x268] sm:$0xff] %vm1868_vm8, %v2105_v2  ;;  %v9194_v44 = vshra.s32 %v6761_v29, 2  ;;  %v9196_v56 = vshra.s32 %v9195_v30, 2  ;;  %v9207_v37 = vld [vmem:[#allocation36_spill] sm:$0xff] }
 0x2a4   : > { %3000 = vmatpush.msrb.mxu3 %v2653_v61  ;;  %v2691_v53 = vld [vmem:[#allocation3 + $0x4b8] sm:$0xff]  ;;  %2265 = vst.msk [vmem:[#allocation3 + $0x368] sm:$0xff] %vm1868_vm8, %v2233_v13  ;;  %v2231_v62 = vsel %vm2199_vm13, 0.25, %v9018_v8  ;;  %v2365_v57 = vsel %vm2333_vm0, 0.25, %v9018_v8  ;;  %v9197_v14 = vld [vmem:[#allocation33_spill] sm:$0xff]  ;;  %vm7578_vm6 = vcmp.eq.s32.totalorder %v9199_v51, %v6612_v15  ;;  %vm7587_vm14 = vcmp.eq.s32.totalorder %v9202_v18, %v6612_v15  ;;  %v9213_v30 = vld [vmem:[#allocation38_spill] sm:$0xff] }
 0x2a5   : > { %vm2461_vm2 = vcmp.eq.s32.totalorder %v9194_v44, %v6612_v15  ;;  %3026 = vmatpush.msra.mxu0 %v2691_v53  ;;  %v2723_v21 = vld [vmem:[#allocation3 + $0x5b8] sm:$0xff]  ;;  %2399 = vst.msk [vmem:[#allocation3 + $0x498] sm:$0xff] %vm1868_vm8, %v2367_v0  ;;  %vm2069_vm11 = vcmp.eq.s32.totalorder %v9196_v56, %v6612_v15  ;;  %v9198_v29 = vshra.s32 %v9197_v14, 2  ;;  %v9206_v4 = vshra.s32 %v9205_v1, 2  ;;  %v9211_v44 = vld [vmem:[#allocation37_spill] sm:$0xff] }
 0x2a6   : > { %3055 = vmatpush.msra.mxu1 %v2723_v21  ;;  %v2619_v36 = vld [vmem:[#allocation3 + $0x278] sm:$0xff]  ;;  %2527 = vst.msk [vmem:[#allocation3 + $0x598] sm:$0xff] %vm1868_vm8, %v2495_v10  ;;  %v2493_v39 = vsel %vm2461_vm2, 0.25, %v9018_v8  ;;  %v2101_v9 = vsel %vm2069_vm11, 0.25, %v9018_v8  ;;  %v9208_v0 = vshra.s32 %v9207_v37, 2  ;;  %v9209_v47 = vshra.s32 %v6831_v43, 2 }
 0x2a7   : > { %vm2197_vm5 = vcmp.eq.s32.totalorder %v9198_v29, %v6612_v15  ;;  %2972 = vmatpush.msrb.mxu2 %v2619_v36  ;;  %v2651_v7 = vld [vmem:[#allocation3 + $0x378] sm:$0xff]  ;;  %2135 = vst.msk [vmem:[#allocation3 + $0x258] sm:$0xff] %vm1868_vm8, %v2103_v5  ;;  %vm2067_vm1 = vcmp.eq.s32.totalorder %v9206_v4, %v6612_v15  ;;  %v9210_v28 = vshra.s32 %v6852_v6, 2  ;;  %v9212_v43 = vshra.s32 %v9211_v44, 2  ;;  %v9217_v23 = vld [vmem:[#allocation41_spill] sm:$0xff] }
 0x2a8   : > { %3001 = vmatpush.msrb.mxu3 %v2651_v7  ;;  %v2689_v2 = vld [vmem:[#allocation3 + $0x4a8] sm:$0xff]  ;;  %2263 = vst.msk [vmem:[#allocation3 + $0x358] sm:$0xff] %vm1868_vm8, %v2231_v62  ;;  %v2229_v13 = vsel %vm2197_vm5, 0.25, %v9018_v8  ;;  %vm2195_vm10 = vcmp.eq.s32.totalorder %v9208_v0, %v6612_v15  ;;  %vm2329_vm12 = vcmp.eq.s32.totalorder %v9209_v47, %v6612_v15  ;;  %v2099_v10 = vsel %vm2067_vm1, 0.25, %v9018_v8  ;;  %v9219_v18 = vld [vmem:[#allocation43_spill] sm:$0xff]  ;;  %v9225_v47 = vld [vmem:[#allocation48_spill] sm:$0xff] }
 0x2a9   : > { %2931 = vmatmul.f32.gmra.mxu0 %v6966_v16  ;;  %v2721_v35 = vld [vmem:[#allocation3 + $0x5a8] sm:$0xff]  ;;  %2397 = vst.msk [vmem:[#allocation3 + $0x488] sm:$0xff] %vm1868_vm8, %v2365_v57  ;;  %v2363_v16 = vsel %vm7578_vm6, 0.25, %v9018_v8  ;;  %vm2457_vm13 = vcmp.eq.s32.totalorder %v9210_v28, %v6612_v15  ;;  %v2227_v5 = vsel %vm2195_vm10, 0.25, %v9018_v8  ;;  %vm2065_vm0 = vcmp.eq.s32.totalorder %v9212_v43, %v6612_v15  ;;  %v9223_v0 = vld [vmem:[#allocation47_spill] sm:$0xff] }
 0x2aa   : > { %3027 = vmatpush.msra.mxu0 %v2689_v2  ;;  %2960 = vmatmul.f32.gmra.mxu1 %v6978_v3  ;;  %v2617_v27 = vld [vmem:[#allocation3 + $0x268] sm:$0xff]  ;;  %2525 = vst.msk [vmem:[#allocation3 + $0x588] sm:$0xff] %vm1868_vm8, %v2493_v39  ;;  %v2491_v3 = vsel %vm7587_vm14, 0.25, %v9018_v8  ;;  %v2361_v62 = vsel %vm2329_vm12, 0.25, %v9018_v8  ;;  %v9214_v6 = vshra.s32 %v9213_v30, 2  ;;  %v2489_v36 = vsel %vm2457_vm13, 0.25, %v9018_v8 }
 0x2ab   : > { %3056 = vmatpush.msra.mxu1 %v2721_v35  ;;  %2973 = vmatpush.msrb.mxu2 %v2617_v27  ;;  %v2649_v33 = vld [vmem:[#allocation3 + $0x368] sm:$0xff]  ;;  %2133 = vst.msk [vmem:[#allocation3 + $0x248] sm:$0xff] %vm1868_vm8, %v2101_v9  ;;  %v9215_v57 = vshra.s32 %v6865_v60, 2  ;;  %v2097_v29 = vsel %vm2065_vm0, 0.25, %v9018_v8  ;;  %v9216_v7 = vshra.s32 %v6880_v34, 2  ;;  %v9218_v60 = vshra.s32 %v9217_v23, 2 }
 0x2ac   : > { %3002 = vmatpush.msrb.mxu3 %v2649_v33  ;;  %v2687_v61 = vld [vmem:[#allocation3 + $0x498] sm:$0xff]  ;;  %2261 = vst.msk [vmem:[#allocation3 + $0x348] sm:$0xff] %vm1868_vm8, %v2229_v13  ;;  %vm2193_vm2 = vcmp.eq.s32.totalorder %v9214_v6, %v6612_v15  ;;  %v9220_v34 = vshra.s32 %v9219_v18, 2  ;;  %v9221_v13 = vshra.s32 %v6913_v20, 2  ;;  %v9222_v27 = vshra.s32 %v6924_v45, 2 }
 0x2ad   : > { %3028 = vmatpush.msra.mxu0 %v2687_v61  ;;  %v2719_v53 = vld [vmem:[#allocation3 + $0x598] sm:$0xff]  ;;  %2395 = vst.msk [vmem:[#allocation3 + $0x478] sm:$0xff] %vm1868_vm8, %v2363_v16  ;;  %vm2327_vm11 = vcmp.eq.s32.totalorder %v9215_v57, %v6612_v15  ;;  %vm2455_vm5 = vcmp.eq.s32.totalorder %v9216_v7, %v6612_v15  ;;  %v2225_v51 = vsel %vm2193_vm2, 0.25, %v9018_v8  ;;  %vm2063_vm6 = vcmp.eq.s32.totalorder %v9218_v60, %v6612_v15 }
 0x2ae   : > { %3057 = vmatpush.msra.mxu1 %v2719_v53  ;;  %v2615_v21 = vld [vmem:[#allocation3 + $0x258] sm:$0xff]  ;;  %2523 = vst.msk [vmem:[#allocation3 + $0x578] sm:$0xff] %vm1868_vm8, %v2491_v3  ;;  %v2359_v9 = vsel %vm2327_vm11, 0.25, %v9018_v8  ;;  %vm2191_vm14 = vcmp.eq.s32.totalorder %v9220_v34, %v6612_v15  ;;  %v2487_v35 = vsel %vm2455_vm5, 0.25, %v9018_v8  ;;  %vm2325_vm1 = vcmp.eq.s32.totalorder %v9221_v13, %v6612_v15 }
 0x2af   : > { %2974 = vmatpush.msrb.mxu2 %v2615_v21  ;;  %v2647_v56 = vld [vmem:[#allocation3 + $0x358] sm:$0xff]  ;;  %2131 = vst.msk [vmem:[#allocation3 + $0x238] sm:$0xff] %vm1868_vm8, %v2099_v10  ;;  %v2095_v4 = vsel %vm2063_vm6, 0.25, %v9018_v8  ;;  %vm2453_vm10 = vcmp.eq.s32.totalorder %v9222_v27, %v6612_v15  ;;  %v2223_v37 = vsel %vm2191_vm14, 0.25, %v9018_v8  ;;  %v9224_v20 = vshra.s32 %v9223_v0, 2 }
 0x2b0   : > { %3003 = vmatpush.msrb.mxu3 %v2647_v56  ;;  %v2685_v14 = vld [vmem:[#allocation3 + $0x488] sm:$0xff]  ;;  %2259 = vst.msk [vmem:[#allocation3 + $0x338] sm:$0xff] %vm1868_vm8, %v2227_v5  ;;  %v2357_v3 = vsel %vm2325_vm1, 0.25, %v9018_v8  ;;  %v9226_v45 = vshra.s32 %v9225_v47, 2  ;;  %v2485_v10 = vsel %vm2453_vm10, 0.25, %v9018_v8  ;;  %v9227_v28 = vshra.s32 %v6970_v31, 2 }
 0x2b1   : > { %3029 = vmatpush.msra.mxu0 %v2685_v14  ;;  %v2717_v39 = vld [vmem:[#allocation3 + $0x588] sm:$0xff]  ;;  %2393 = vst.msk [vmem:[#allocation3 + $0x468] sm:$0xff] %vm1868_vm8, %v2361_v62  ;;  %vm2061_vm12 = vcmp.eq.s32.totalorder %v9224_v20, %v6612_v15  ;;  %v9228_v44 = vshra.s32 %v6973_v26, 2  ;;  %v9229_v31 = vshra.s32 %v6993_v52, 2  ;;  %v9230_v26 = vshra.s32 %v6996_v48, 2  ;;  %v9235_v34 = vld [vmem:[#allocation52_spill] sm:$0xff] }
 0x2b2   : > { %3058 = vmatpush.msra.mxu1 %v2717_v39  ;;  %v2613_v2 = vld [vmem:[#allocation3 + $0x248] sm:$0xff]  ;;  %2521 = vst.msk [vmem:[#allocation3 + $0x568] sm:$0xff] %vm1868_vm8, %v2489_v36  ;;  %vm2189_vm13 = vcmp.eq.s32.totalorder %v9226_v45, %v6612_v15  ;;  %vm2323_vm0 = vcmp.eq.s32.totalorder %v9227_v28, %v6612_v15  ;;  %v2093_v5 = vsel %vm2061_vm12, 0.25, %v9018_v8  ;;  %v9231_v52 = vshra.s32 %v7023_v63, 2 }
 0x2b3   : > { %2975 = vmatpush.msrb.mxu2 %v2613_v2  ;;  %v2645_v59 = vld [vmem:[#allocation3 + $0x348] sm:$0xff]  ;;  %2129 = vst.msk [vmem:[#allocation3 + $0x228] sm:$0xff] %vm1868_vm8, %v2097_v29  ;;  %vm2451_vm2 = vcmp.eq.s32.totalorder %v9228_v44, %v6612_v15  ;;  %v2221_v21 = vsel %vm2189_vm13, 0.25, %v9018_v8  ;;  %vm2321_vm11 = vcmp.eq.s32.totalorder %v9229_v31, %v6612_v15  ;;  %v2355_v30 = vsel %vm2323_vm0, 0.25, %v9018_v8 }
 0x2b4   : > { %3004 = vmatpush.msrb.mxu3 %v2645_v59  ;;  %v2683_v1 = vld [vmem:[#allocation3 + $0x478] sm:$0xff]  ;;  %2257 = vst.msk [vmem:[#allocation3 + $0x328] sm:$0xff] %vm1868_vm8, %v2225_v51  ;;  %vm2449_vm5 = vcmp.eq.s32.totalorder %v9230_v26, %v6612_v15  ;;  %v2483_v56 = vsel %vm2451_vm2, 0.25, %v9018_v8  ;;  %vm2319_vm6 = vcmp.eq.s32.totalorder %v9231_v52, %v6612_v15  ;;  %v2353_v57 = vsel %vm2321_vm11, 0.25, %v9018_v8 }
 0x2b5   : > { %3030 = vmatpush.msra.mxu0 %v2683_v1  ;;  %v2715_v16 = vld [vmem:[#allocation3 + $0x578] sm:$0xff]  ;;  %2391 = vst.msk [vmem:[#allocation3 + $0x458] sm:$0xff] %vm1868_vm8, %v2359_v9  ;;  %v9232_v48 = vshra.s32 %v7026_v41, 2  ;;  %v2481_v29 = vsel %vm2449_vm5, 0.25, %v9018_v8  ;;  %vm2317_vm1 = vcmp.eq.s32.totalorder %v2300_v42, %v6612_v15  ;;  %v2351_v7 = vsel %vm2319_vm6, 0.25, %v9018_v8 }
 0x2b6   : > { %3059 = vmatpush.msra.mxu1 %v2715_v16  ;;  %v2611_v33 = vld [vmem:[#allocation3 + $0x238] sm:$0xff]  ;;  %2519 = vst.msk [vmem:[#allocation3 + $0x558] sm:$0xff] %vm1868_vm8, %v2487_v35  ;;  %v9233_v41 = vshra.s32 %v7089_v12, 2  ;;  %v2349_v42 = vsel %vm2317_vm1, 0.25, %v9018_v8  ;;  %v9236_v16 = vld [vmem:[#allocation58_spill] sm:$0xff]  ;;  %v2749_v0 = vpop.f32.mrf.mxu2  ;;  %vm3080_vm12 = vcmask 56320  }
 0x2b7   : > { %2976 = vmatpush.msrb.mxu2 %v2611_v33  ;;  %v2643_v61 = vld [vmem:[#allocation3 + $0x338] sm:$0xff]  ;;  %2127 = vst.msk [vmem:[#allocation3 + $0x218] sm:$0xff] %vm1868_vm8, %v2095_v4  ;;  %vm2447_vm14 = vcmp.eq.s32.totalorder %v9232_v48, %v6612_v15  ;;  %v2778_v20 = vpop.f32.mrf.mxu3  ;;  %vm3085_vm13 = vcmask 597520   ;;  %vm3126_vm0 = vcmask 1047608   ;;  %vm3128_vm2 = vcmask 539648  }
 0x2b8   : > { %3005 = vmatpush.msrb.mxu3 %v2643_v61  ;;  %v2681_v53 = vld [vmem:[#allocation3 + $0x468] sm:$0xff]  ;;  %2255 = vst.msk [vmem:[#allocation3 + $0x318] sm:$0xff] %vm1868_vm8, %v2223_v37  ;;  %vm2445_vm10 = vcmp.eq.s32.totalorder %v9233_v41, %v6612_v15  ;;  %v2479_v51 = vsel %vm2447_vm14, 0.25, %v9018_v8  ;;  %v9234_v9 = vld [vmem:[#allocation51_spill] sm:$0xff]  ;;  %vm9241_vm11 = vcmask 1031168   ;;  %vm9242_vm5 = vcmask 998400  }
 0x2b9   : > { %3031 = vmatpush.msra.mxu0 %v2681_v53  ;;  %v2713_v43 = vld [vmem:[#allocation3 + $0x568] sm:$0xff]  ;;  %2389 = vst.msk [vmem:[#allocation3 + $0x448] sm:$0xff] %vm1868_vm8, %v2357_v3  ;;  %v2477_v60 = vsel %vm2445_vm10, 0.25, %v9018_v8  ;;  %v9237_v37 = vld [vmem:[#allocation59_spill] sm:$0xff]  ;;  %v2807_v3 = vpop.f32.mrf.mxu0  ;;  %vm9243_vm6 = vcmask 957440   ;;  %vm9244_vm14 = vcmask 1039360  }
 0x2ba   : > { %3060 = vmatpush.msra.mxu1 %v2713_v43  ;;  %v2609_v62 = vld [vmem:[#allocation3 + $0x228] sm:$0xff]  ;;  %2517 = vst.msk [vmem:[#allocation3 + $0x548] sm:$0xff] %vm1868_vm8, %v2485_v10  ;;  %vm9245_vm1 = vcmask 990208   ;;  %vm9246_vm10 = vcmask 932864  }
 0x2bb   : > { %2977 = vmatpush.msrb.mxu2 %v2609_v62  ;;  %v2641_v6 = vld [vmem:[#allocation3 + $0x328] sm:$0xff]  ;;  %2125 = vst.msk [vmem:[#allocation3 + $0x208] sm:$0xff] %vm1868_vm8, %v2093_v5 }
 0x2bc   : > { %3006 = vmatpush.msrb.mxu3 %v2641_v6  ;;  %v2679_v36 = vld [vmem:[#allocation3 + $0x458] sm:$0xff]  ;;  %2253 = vst.msk [vmem:[#allocation3 + $0x308] sm:$0xff] %vm1868_vm8, %v2221_v21 }
 0x2bd   : > { %3032 = vmatpush.msra.mxu0 %v2679_v36  ;;  %v2711_v14 = vld [vmem:[#allocation3 + $0x558] sm:$0xff]  ;;  %2387 = vst.msk [vmem:[#allocation3 + $0x438] sm:$0xff] %vm1868_vm8, %v2355_v30 }
 0x2be   : > { %3061 = vmatpush.msra.mxu1 %v2711_v14  ;;  %v2607_v63 = vld [vmem:[#allocation3 + $0x218] sm:$0xff]  ;;  %2515 = vst.msk [vmem:[#allocation3 + $0x538] sm:$0xff] %vm1868_vm8, %v2483_v56 }
 0x2bf   : > { %2978 = vmatpush.msrb.mxu2 %v2607_v63  ;;  %v2639_v39 = vld [vmem:[#allocation3 + $0x318] sm:$0xff]  ;;  %2385 = vst.msk [vmem:[#allocation3 + $0x428] sm:$0xff] %vm1868_vm8, %v2353_v57 }
 0x2c0   : > { %3007 = vmatpush.msrb.mxu3 %v2639_v39  ;;  %v2677_v23 = vld [vmem:[#allocation3 + $0x448] sm:$0xff]  ;;  %2513 = vst.msk [vmem:[#allocation3 + $0x528] sm:$0xff] %vm1868_vm8, %v2481_v29 }
 0x2c1   : > { %3033 = vmatpush.msra.mxu0 %v2677_v23  ;;  %v2709_v46 = vld [vmem:[#allocation3 + $0x548] sm:$0xff]  ;;  %2383 = vst.msk [vmem:[#allocation3 + $0x418] sm:$0xff] %vm1868_vm8, %v2351_v7 }
 0x2c2   : > { %3062 = vmatpush.msra.mxu1 %v2709_v46  ;;  %v2605_v15 = vld [vmem:[#allocation3 + $0x208] sm:$0xff]  ;;  %2511 = vst.msk [vmem:[#allocation3 + $0x518] sm:$0xff] %vm1868_vm8, %v2479_v51 }
 0x2c3   : > { %2979 = vmatpush.msrb.mxu2 %v2605_v15  ;;  %v2637_v12 = vld [vmem:[#allocation3 + $0x308] sm:$0xff]  ;;  %2381 = vst.msk [vmem:[#allocation3 + $0x408] sm:$0xff] %vm1868_vm8, %v2349_v42 }
 0x2c4   : > { %3008 = vmatpush.msrb.mxu3 %v2637_v12  ;;  %v2675_v2 = vld [vmem:[#allocation3 + $0x438] sm:$0xff]  ;;  %2980 = vmatmul.f32.vlgmr.msrb.gmra.mxu2 %v9234_v9  ;;  %2509 = vst.msk [vmem:[#allocation3 + $0x508] sm:$0xff] %vm1868_vm8, %v2477_v60 }
 0x2c5   : > { %3034 = vmatpush.msra.mxu0 %v2675_v2  ;;  %v2707_v18 = vld [vmem:[#allocation3 + $0x538] sm:$0xff]  ;;  %3009 = vmatmul.f32.vlgmr.msrb.gmra.mxu3 %v9235_v34  ;;  %3083 = vst.msk [vmem:[#allocation4 + $0x20] sm:$0xff] %vm3080_vm12, %v9018_v8 }
 0x2c6   : > { %3063 = vmatpush.msra.mxu1 %v2707_v18  ;;  %v2673_v59 = vld [vmem:[#allocation3 + $0x428] sm:$0xff]  ;;  %3081 = vst.msk [vmem:[#allocation4] sm:$0xff] %vm3080_vm12, %v9018_v8 }
 0x2c7   : > { %3035 = vmatpush.msra.mxu0 %v2673_v59  ;;  %v2705_v35 = vld [vmem:[#allocation3 + $0x528] sm:$0xff]  ;;  %3082 = vst.msk [vmem:[#allocation4 + $0x10] sm:$0xff] %vm3080_vm12, %v9018_v8 }
 0x2c8   : > { %3064 = vmatpush.msra.mxu1 %v2705_v35  ;;  %v2671_v13 = vld [vmem:[#allocation3 + $0x418] sm:$0xff]  ;;  %3084 = vst.msk [vmem:[#allocation4 + $0x30] sm:$0xff] %vm3080_vm12, %v9018_v8 }
 0x2c9   : > { %3036 = vmatpush.msra.mxu0 %v2671_v13  ;;  %v2703_v1 = vld [vmem:[#allocation3 + $0x518] sm:$0xff]  ;;  %3087 = vst.msk [vmem:[#allocation4 + $0x18] sm:$0xff] %vm3085_vm13, %v9018_v8 }
 0x2ca   : > { %3065 = vmatpush.msra.mxu1 %v2703_v1  ;;  %v2669_v4 = vld [vmem:[#allocation3 + $0x408] sm:$0xff]  ;;  %3086 = vst.msk [vmem:[#allocation4 + $0x8] sm:$0xff] %vm3085_vm13, %v9018_v8 }
 0x2cb   : > { %3037 = vmatpush.msra.mxu0 %v2669_v4  ;;  %v2701_v27 = vld [vmem:[#allocation3 + $0x508] sm:$0xff]  ;;  %3088 = vst.msk [vmem:[#allocation4 + $0x28] sm:$0xff] %vm3085_vm13, %v9018_v8 }
 0x2cc   : > { %3066 = vmatpush.msra.mxu1 %v2701_v27  ;;  %3038 = vmatmul.f32.vlgmr.msra.gmra.mxu0 %v7115_v32  ;;  %3089 = vst.msk [vmem:[#allocation4 + $0x38] sm:$0xff] %vm3085_vm13, %v9018_v8  ;;  %vm9248_vm13 = vmmov %vm9244_vm14 }
 0x2cd   : > { %3067 = vmatmul.f32.vlgmr.msra.gmra.mxu1 %v7127_v22  ;;  %2983 = vmatmul.f32.gmra.mxu2 %v6800_v19  ;;  %v2752_v19 = vpop.f32.mrf.mxu2 }
 0x2ce   : > { %3012 = vmatmul.f32.gmra.mxu3 %v9236_v16 }
 0x2d1   : > { %v2781_v32 = vpop.f32.mrf.mxu3 }
 0x2d2   : > { %v2782_v10 = vadd.f32 %v2781_v32, %v2752_v19 }
 0x2d4   : > { %3041 = vmatmul.f32.gmra.mxu0 %v7239_v24 }
 0x2d5   : > { %3070 = vmatmul.f32.gmra.mxu1 %v7260_v11  ;;  %2986 = vmatmul.f32.gmra.mxu2 %v6918_v50  ;;  %v2779_v11 = vadd.f32 %v2778_v20, %v2749_v0 }
 0x2d6   : > { %3015 = vmatmul.f32.gmra.mxu3 %v9237_v37  ;;  %v2810_v28 = vpop.f32.mrf.mxu0 }
 0x2d7   : > { %v2808_v47 = vadd.f32 %v2807_v3, %v2779_v11 }
 0x2dc   : > { %3044 = vmatmul.f32.gmra.mxu0 %v7350_v17  ;;  %v2836_v17 = vpop.f32.mrf.mxu1 }
 0x2dd   : > { %3073 = vmatmul.f32.gmra.mxu1 %v7378_v38  ;;  %2989 = vmatmul.f32.gmra.mxu2 %v7078_v40  ;;  %v2755_v22 = vpop.f32.mrf.mxu2  ;;  %v2837_v45 = vadd.f32 %v2836_v17, %v2808_v47 }
 0x2de   : > { %3018 = vmatmul.f32.gmra.mxu3 %v7081_v49  ;;  %v2784_v50 = vpop.f32.mrf.mxu3 }
 0x2df   : > { %v2785_v44 = vadd.f32 %v2784_v50, %v2755_v22 }
 0x2e2   : > { %v2813_v21 = vpop.f32.mrf.mxu0 }
 0x2e3   : > { %v2814_v26 = vadd.f32 %v2813_v21, %v2785_v44 }
 0x2e4   : > { %3047 = vmatmul.f32.gmra.mxu0 %v7484_v55  ;;  %v2839_v53 = vpop.f32.mrf.mxu1  ;;  %v2811_v55 = vadd.f32 %v2810_v28, %v2782_v10 }
 0x2e5   : > { %3076 = vmatmul.f32.gmra.mxu1 %v7500_v25 }
 0x2e6   : > { %v2840_v25 = vadd.f32 %v2839_v53, %v2811_v55 }
 0x2ec   : > { %v2842_v31 = vpop.f32.mrf.mxu1 }
 0x2ed   : > { %v2758_v24 = vpop.f32.mrf.mxu2  ;;  %v2843_v6 = vadd.f32 %v2842_v31, %v2814_v26 }
 0x2ef   : > { %v2787_v33 = vpop.f32.mrf.mxu3 }
 0x2f0   : > { %v2788_v52 = vadd.f32 %v2787_v33, %v2758_v24 }
 0x2f4   : > { %v2816_v57 = vpop.f32.mrf.mxu0 }
 0x2f5   : > { %v2845_v14 = vpop.f32.mrf.mxu1  ;;  %v2817_v63 = vadd.f32 %v2816_v57, %v2788_v52 }
 0x2f7   : > { %v2846_v7 = vadd.f32 %v2845_v14, %v2817_v63 }
 0x2fe   : > { %v2865_v38 = vpop.f32.mrf.mxu2 }
 0x2ff   : > { %v2866_v61 = vadd.f32 %v2865_v38, %v2837_v45  ;;  %v2894_v40 = vpop.f32.mrf.mxu3 }
 0x301   : > { %v2895_v49 = vadd.f32 %v2894_v40, %v2866_v61 }
 0x303   : > { %3098 = vrot.lane.b32.xlu0 %v2895_v49, %s5056_s14 }
 0x30b   : > { %v2868_v5 = vpop.f32.mrf.mxu2 }
 0x30c   : > { %v2869_v43 = vadd.f32 %v2868_v5, %v2840_v25 }
 0x30e   : > { %v2897_v62 = vpop.f32.mrf.mxu3  ;;  %v2923_v51 = vpop.f32.mrf.mxu0 }
 0x30f   : > { %v2898_v30 = vadd.f32 %v2897_v62, %v2869_v43  ;;  %v2952_v42 = vpop.f32.mrf.mxu1 }
 0x310   : > { %v2953_v34 = vadd.f32 %v2952_v42, %v2923_v51 }
 0x311   : > { %3102 = vrot.lane.b32.xlu1 %v2898_v30, %s5056_s14 }
 0x315   : > { %v2871_v56 = vpop.f32.mrf.mxu2 }
 0x316   : > { %v2872_v36 = vadd.f32 %v2871_v56, %v2843_v6  ;;  %v2926_v60 = vpop.f32.mrf.mxu0 }
 0x317   : > { %v2900_v48 = vpop.f32.mrf.mxu3  ;;  %v2955_v15 = vpop.f32.mrf.mxu1 }
 0x318   : > { %v2901_v29 = vadd.f32 %v2900_v48, %v2872_v36  ;;  %v2956_v0 = vadd.f32 %v2955_v15, %v2926_v60 }
 0x31a   : > { %3106 = vrot.lane.b32.xlu2 %v2901_v29, %s5056_s14 }
 0x31e   : > { %v2929_v12 = vpop.f32.mrf.mxu0 }
 0x31f   : > { %v2874_v41 = vpop.f32.mrf.mxu2  ;;  %v2958_v2 = vpop.f32.mrf.mxu1 }
 0x320   : > { %v2875_v39 = vadd.f32 %v2874_v41, %v2846_v7  ;;  %v2959_v33 = vadd.f32 %v2958_v2, %v2929_v12 }
 0x321   : > { %v2903_v23 = vpop.f32.mrf.mxu3 }
 0x322   : > { %v2904_v46 = vadd.f32 %v2903_v23, %v2875_v39 }
 0x324   : > { %3110 = vrot.lane.b32.xlu2 %v2904_v46, %s5056_s14 }
 0x326   : > { %v2932_v9 = vpop.f32.mrf.mxu0 }
 0x327   : > { %v2961_v18 = vpop.f32.mrf.mxu1 }
 0x328   : > { %v2962_v49 = vadd.f32 %v2961_v18, %v2932_v9 }
 0x347   : > { %v2981_v59 = vpop.f32.mrf.mxu2 }
 0x348   : > { %v2982_v35 = vadd.f32 %v2981_v59, %v2953_v34  ;;  %v3010_v13 = vpop.f32.mrf.mxu3 }
 0x349   : > { %v3039_v1 = vpop.f32.mrf.mxu0 }
 0x34a   : > { %v3011_v4 = vadd.f32 %v3010_v13, %v2982_v35  ;;  %v3068_v27 = vpop.f32.mrf.mxu1 }
 0x34c   : > { %v3040_v16 = vadd.f32 %v3039_v1, %v3011_v4 }
 0x34e   : > { %v3069_v37 = vadd.f32 %v3068_v27, %v3040_v16 }
 0x350   : > { %v2984_v20 = vpop.f32.mrf.mxu2  ;;  %3100 = vrot.lane.b32.xlu1 %v3069_v37, %s5056_s14 }
 0x351   : > { %v2985_v19 = vadd.f32 %v2984_v20, %v2956_v0  ;;  %v3013_v32 = vpop.f32.mrf.mxu3  ;;  %v3042_v22 = vpop.f32.mrf.mxu0 }
 0x352   : > { %v3071_v50 = vpop.f32.mrf.mxu1 }
 0x353   : > { %v3014_v24 = vadd.f32 %v3013_v32, %v2985_v19 }
 0x355   : > { %v3043_v11 = vadd.f32 %v3042_v22, %v3014_v24 }
 0x357   : > { %v3072_v3 = vadd.f32 %v3071_v50, %v3043_v11 }
 0x358   : > { %v2987_v47 = vpop.f32.mrf.mxu2 }
 0x359   : > { %v2988_v17 = vadd.f32 %v2987_v47, %v2959_v33  ;;  %v3016_v45 = vpop.f32.mrf.mxu3  ;;  %3104 = vrot.lane.b32.xlu2 %v3072_v3, %s5056_s14  ;;  %v3045_v38 = vpop.f32.mrf.mxu0 }
 0x35a   : > { %v3074_v40 = vpop.f32.mrf.mxu1 }
 0x35b   : > { %v3017_v61 = vadd.f32 %v3016_v45, %v2988_v17 }
 0x35d   : > { %v3046_v10 = vadd.f32 %v3045_v38, %v3017_v61 }
 0x35f   : > { %v3075_v28 = vadd.f32 %v3074_v40, %v3046_v10 }
 0x360   : > { %v2990_v53 = vpop.f32.mrf.mxu2 }
 0x361   : > { %v2991_v55 = vadd.f32 %v2990_v53, %v2962_v49  ;;  %3108 = vrot.lane.b32.xlu0 %v3075_v28, %s5056_s14  ;;  %v3019_v25 = vpop.f32.mrf.mxu3  ;;  %v3048_v44 = vpop.f32.mrf.mxu0 }
 0x362   : > { %v3077_v21 = vpop.f32.mrf.mxu1 }
 0x363   : > { %v3020_v5 = vadd.f32 %v3019_v25, %v2991_v55 }
 0x365   : > { %v3049_v43 = vadd.f32 %v3048_v44, %v3020_v5 }
 0x367   : > { %v3078_v31 = vadd.f32 %v3077_v21, %v3049_v43 }
 0x369   : > { %3112 = vrot.lane.b32.xlu1 %v3078_v31, %s5056_s14 }
 0x374   : > { %v3107_v62 = vpop.permute.xlu2 %3106 }
 0x375   : > { %3132 = vst.msk [vmem:[#allocation4 + $0x20] sm:$0xff] %vm3126_vm0, %v3107_v62  ;;  %v3099_v30 = vpop.permute.xlu0 %3098 }
 0x376   : > { %3127 = vst.msk [vmem:[#allocation4] sm:$0xff] %vm3126_vm0, %v3099_v30 }
 0x37c   : > { %v7752_v26 = vld [vmem:[#allocation4 + $0x20] sm:$0xff] }
 0x37d   : > { %3148 = vst [vmem:[#allocation5 + $0x20] sm:$0xff] %v7752_v26  ;;  %v7755_v6 = vld [vmem:[#allocation4] sm:$0xff] }
 0x37e   : > { %v3111_v56 = vpop.permute.xlu2 %3110  ;;  %3144 = vst [vmem:[#allocation5] sm:$0xff] %v7755_v6  ;;  %3272 = vrot.lane.b32.xlu0 %v7755_v6, %s9238_s20  ;;  %3220 = vrot.lane.b32.xlu1 %v7755_v6, %s8893_s18 }
 0x37f   : > { %3134 = vst.msk [vmem:[#allocation4 + $0x30] sm:$0xff] %vm3126_vm0, %v3111_v56  ;;  %3168 = vrot.lane.b32.xlu2 %v7755_v6, %s8892_s15 }
 0x383   : > { %v3103_v8 = vpop.permute.xlu1 %3102 }
 0x384   : > { %3130 = vst.msk [vmem:[#allocation4 + $0x10] sm:$0xff] %vm3126_vm0, %v3103_v8  ;;  %vm9249_vm0 = vmmov %vm9245_vm1 }
 0x386   : > { %v7764_v52 = vld [vmem:[#allocation4 + $0x30] sm:$0xff]  ;;  %3480 = vrot.lane.b32.xlu0 %v7755_v6, %s8896_s28  ;;  %3428 = vrot.lane.b32.xlu1 %v7755_v6, %s8895_s9 }
 0x387   : > { %3150 = vst [vmem:[#allocation5 + $0x30] sm:$0xff] %v7764_v52  ;;  %3324 = vrot.lane.b32.xlu2 %v7755_v6, %s9239_s26 }
 0x38b   : > { %v7773_v36 = vld [vmem:[#allocation4 + $0x10] sm:$0xff] }
 0x38c   : > { %3146 = vst [vmem:[#allocation5 + $0x10] sm:$0xff] %v7773_v36 }
 0x38e   : > { %3376 = vrot.lane.b32.xlu0 %v7755_v6, %s8894_s29  ;;  %3688 = vrot.lane.b32.xlu1 %v7755_v6, %s8887_s12 }
 0x38f   : > { %3276 = vrot.lane.b32.xlu2 %v7773_v36, %s9238_s20 }
 0x396   : > { %3224 = vrot.lane.b32.xlu0 %v7773_v36, %s8893_s18  ;;  %3636 = vrot.lane.b32.xlu1 %v7755_v6, %s8886_s11 }
 0x397   : > { %3484 = vrot.lane.b32.xlu2 %v7773_v36, %s8896_s28 }
 0x39e   : > { %3432 = vrot.lane.b32.xlu0 %v7773_v36, %s8895_s9  ;;  %3844 = vrot.lane.b32.xlu1 %v7755_v6, %s8890_s19 }
 0x39f   : > { %3692 = vrot.lane.b32.xlu2 %v7773_v36, %s8887_s12 }
 0x3a6   : > { %3328 = vrot.lane.b32.xlu0 %v7773_v36, %s9239_s26  ;;  %3172 = vrot.lane.b32.xlu1 %v7773_v36, %s8892_s15 }
 0x3a7   : > { %3228 = vrot.lane.b32.xlu2 %v7752_v26, %s8893_s18 }
 0x3ae   : > { %3640 = vrot.lane.b32.xlu0 %v7773_v36, %s8886_s11  ;;  %3380 = vrot.lane.b32.xlu1 %v7773_v36, %s8894_s29 }
 0x3af   : > { %3436 = vrot.lane.b32.xlu2 %v7752_v26, %s8895_s9 }
 0x3b3   : > { %v3105_v57 = vpop.permute.xlu2 %3104 }
 0x3b4   : > { %v3115_v48 = vsel %vm3080_vm12, %v3103_v8, %v3105_v57 }
 0x3b5   : > { %3131 = vst.msk [vmem:[#allocation4 + $0x18] sm:$0xff] %vm3128_vm2, %v3115_v48 }
 0x3b6   : > { %3848 = vrot.lane.b32.xlu0 %v7773_v36, %s8890_s19  ;;  %3588 = vrot.lane.b32.xlu1 %v7773_v36, %s8885_s10 }
 0x3b7   : > { %3644 = vrot.lane.b32.xlu2 %v7752_v26, %s8886_s11 }
 0x3bc   : > { %v3139_v14 = vld [vmem:[#allocation4 + $0x18] sm:$0xff] }
 0x3bd   : > { %3147 = vst.msk [vmem:[#allocation5 + $0x18] sm:$0xff] %vm1868_vm8, %v3139_v14  ;;  %v7907_v16 = vld [vmem:[#allocation4 + $0x18] sm:$0xff] }
 0x3be   : > { %3176 = vrot.lane.b32.xlu0 %v7752_v26, %s8892_s15  ;;  %3280 = vrot.lane.b32.xlu1 %v7752_v26, %s9238_s20 }
 0x3bf   : > { %3852 = vrot.lane.b32.xlu2 %v7752_v26, %s8890_s19 }
 0x3c2   : > { %v3101_v29 = vpop.permute.xlu1 %3100 }
 0x3c3   : > { %v3114_v63 = vsel %vm3080_vm12, %v3099_v30, %v3101_v29 }
 0x3c4   : > { %3129 = vst.msk [vmem:[#allocation4 + $0x8] sm:$0xff] %vm3128_vm2, %v3114_v63 }
 0x3c6   : > { %3384 = vrot.lane.b32.xlu0 %v7752_v26, %s8894_s29  ;;  %3488 = vrot.lane.b32.xlu1 %v7752_v26, %s8896_s28 }
 0x3c7   : > { %3284 = vrot.lane.b32.xlu2 %v7764_v52, %s9238_s20 }
 0x3cb   : > { %v3137_v7 = vld [vmem:[#allocation4 + $0x8] sm:$0xff] }
 0x3cc   : > { %3145 = vst.msk [vmem:[#allocation5 + $0x8] sm:$0xff] %vm1868_vm8, %v3137_v7  ;;  %v7881_v34 = vld [vmem:[#allocation4 + $0x8] sm:$0xff] }
 0x3ce   : > { %3696 = vrot.lane.b32.xlu0 %v7752_v26, %s8887_s12  ;;  %3332 = vrot.lane.b32.xlu1 %v7752_v26, %s9239_s26 }
 0x3cf   : > { %3180 = vrot.lane.b32.xlu2 %v7764_v52, %s8892_s15 }
 0x3d3   : > { %v3109_v41 = vpop.permute.xlu0 %3108 }
 0x3d4   : > { %v3116_v39 = vsel %vm3080_vm12, %v3107_v62, %v3109_v41 }
 0x3d5   : > { %3133 = vst.msk [vmem:[#allocation4 + $0x28] sm:$0xff] %vm3128_vm2, %v3116_v39 }
 0x3d6   : > { %3592 = vrot.lane.b32.xlu0 %v7752_v26, %s8885_s10  ;;  %3232 = vrot.lane.b32.xlu1 %v7764_v52, %s8893_s18 }
 0x3d7   : > { %3388 = vrot.lane.b32.xlu2 %v7764_v52, %s8894_s29 }
 0x3d9   : > { %v7844_v51 = vpop.permute.xlu2 %3168 }
 0x3db   : > { %v3113_v23 = vpop.permute.xlu1 %3112 }
 0x3dc   : > { %v3117_v42 = vsel %vm3080_vm12, %v3111_v56, %v3113_v23  ;;  %v3141_v46 = vld [vmem:[#allocation4 + $0x28] sm:$0xff]  ;;  %vm9247_vm12 = vcmask 1006592  }
 0x3dd   : > { %3135 = vst.msk [vmem:[#allocation4 + $0x38] sm:$0xff] %vm3128_vm2, %v3117_v42  ;;  %v7945_v33 = vld [vmem:[#allocation4 + $0x28] sm:$0xff]  ;;  %vm9250_vm2 = vmmov %vm9241_vm11 }
 0x3de   : > { %3149 = vst.msk [vmem:[#allocation5 + $0x28] sm:$0xff] %vm1868_vm8, %v3141_v46  ;;  %3800 = vrot.lane.b32.xlu0 %v7752_v26, %s8889_s17  ;;  %3440 = vrot.lane.b32.xlu1 %v7764_v52, %s8895_s9 }
 0x3df   : > { %3336 = vrot.lane.b32.xlu2 %v7764_v52, %s9239_s26 }
 0x3e1   : > { %v7855_v60 = vpop.permute.xlu2 %3324 }
 0x3e4   : > { %v7857_v15 = vld [vmem:[#allocation4 + $0x38] sm:$0xff] }
 0x3e5   : > { %3151 = vst.msk [vmem:[#allocation5 + $0x38] sm:$0xff] %vm1868_vm8, %v7857_v15 }
 0x3e6   : > { %3492 = vrot.lane.b32.xlu0 %v7764_v52, %s8896_s28  ;;  %3700 = vrot.lane.b32.xlu1 %v7764_v52, %s8887_s12 }
 0x3e7   : > { %3596 = vrot.lane.b32.xlu2 %v7764_v52, %s8885_s10 }
 0x3e9   : > { %v7867_v12 = vpop.permute.xlu2 %3276 }
 0x3ee   : > { %3648 = vrot.lane.b32.xlu0 %v7764_v52, %s8886_s11  ;;  %3856 = vrot.lane.b32.xlu1 %v7764_v52, %s8890_s19 }
 0x3ef   : > { %3804 = vrot.lane.b32.xlu2 %v7764_v52, %s8889_s17 }
 0x3f0   : > { %v7875_v2 = vpop.permute.xlu1 %3220  ;;  %v7877_v9 = vpop.permute.xlu0 %3272 }
 0x3f1   : > { %v7879_v18 = vpop.permute.xlu2 %3484 }
 0x3f6   : > { %3170 = vrot.lane.b32.xlu0 %v7881_v34, %s8892_s15  ;;  %3274 = vrot.lane.b32.xlu1 %v7881_v34, %s9238_s20 }
 0x3f7   : > { %3222 = vrot.lane.b32.xlu2 %v7881_v34, %s8893_s18 }
 0x3f8   : > { %v7889_v59 = vpop.permute.xlu1 %3428  ;;  %v7891_v35 = vpop.permute.xlu0 %3480 }
 0x3f9   : > { %v7893_v13 = vpop.permute.xlu2 %3692 }
 0x3fe   : > { %3326 = vrot.lane.b32.xlu0 %v7881_v34, %s9239_s26  ;;  %3482 = vrot.lane.b32.xlu1 %v7881_v34, %s8896_s28 }
 0x3ff   : > { %3430 = vrot.lane.b32.xlu2 %v7881_v34, %s8895_s9 }
 0x400   : > { %v7901_v1 = vpop.permute.xlu1 %3688  ;;  %v7903_v4 = vpop.permute.xlu0 %3376 }
 0x401   : > { %v7905_v27 = vpop.permute.xlu2 %3228 }
 0x406   : > { %3378 = vrot.lane.b32.xlu1 %v7881_v34, %s8894_s29  ;;  %3278 = vrot.lane.b32.xlu0 %v7907_v16, %s9238_s20 }
 0x407   : > { %3690 = vrot.lane.b32.xlu2 %v7881_v34, %s8887_s12 }
 0x408   : > { %v7915_v37 = vpop.permute.xlu1 %3636  ;;  %v7917_v0 = vpop.permute.xlu0 %3224 }
 0x409   : > { %v7919_v20 = vpop.permute.xlu2 %3436 }
 0x40e   : > { %3486 = vrot.lane.b32.xlu0 %v7907_v16, %s8896_s28  ;;  %3226 = vrot.lane.b32.xlu1 %v7907_v16, %s8893_s18 }
 0x40f   : > { %3638 = vrot.lane.b32.xlu2 %v7881_v34, %s8886_s11 }
 0x410   : > { %v7927_v19 = vpop.permute.xlu1 %3844  ;;  %v7929_v32 = vpop.permute.xlu0 %3432 }
 0x411   : > { %v7931_v22 = vpop.permute.xlu2 %3644 }
 0x416   : > { %3694 = vrot.lane.b32.xlu0 %v7907_v16, %s8887_s12  ;;  %3434 = vrot.lane.b32.xlu1 %v7907_v16, %s8895_s9 }
 0x417   : > { %3846 = vrot.lane.b32.xlu2 %v7881_v34, %s8890_s19 }
 0x418   : > { %v7939_v50 = vpop.permute.xlu1 %3172  ;;  %v7941_v24 = vpop.permute.xlu0 %3328 }
 0x419   : > { %v7943_v11 = vpop.permute.xlu2 %3852 }
 0x41e   : > { %3230 = vrot.lane.b32.xlu0 %v7945_v33, %s8893_s18  ;;  %3330 = vrot.lane.b32.xlu1 %v7907_v16, %s9239_s26 }
 0x41f   : > { %3174 = vrot.lane.b32.xlu2 %v7907_v16, %s8892_s15 }
 0x420   : > { %v7953_v3 = vpop.permute.xlu1 %3380  ;;  %v7955_v47 = vpop.permute.xlu0 %3640 }
 0x421   : > { %v7957_v17 = vpop.permute.xlu2 %3284 }
 0x426   : > { %3438 = vrot.lane.b32.xlu0 %v7945_v33, %s8895_s9  ;;  %3642 = vrot.lane.b32.xlu1 %v7907_v16, %s8886_s11 }
 0x427   : > { %3382 = vrot.lane.b32.xlu2 %v7907_v16, %s8894_s29 }
 0x428   : > { %v7965_v45 = vpop.permute.xlu1 %3588  ;;  %v7967_v38 = vpop.permute.xlu0 %3848 }
 0x429   : > { %v7969_v61 = vpop.permute.xlu2 %3180 }
 0x42e   : > { %3646 = vrot.lane.b32.xlu0 %v7945_v33, %s8886_s11  ;;  %3850 = vrot.lane.b32.xlu1 %v7907_v16, %s8890_s19 }
 0x42f   : > { %3590 = vrot.lane.b32.xlu2 %v7907_v16, %s8885_s10 }
 0x430   : > { %v7977_v40 = vpop.permute.xlu1 %3280  ;;  %v7979_v10 = vpop.permute.xlu0 %3176 }
 0x431   : > { %v7981_v49 = vpop.permute.xlu2 %3388 }
 0x436   : > { %3854 = vrot.lane.b32.xlu0 %v7945_v33, %s8890_s19  ;;  %3178 = vrot.lane.b32.xlu1 %v7945_v33, %s8892_s15 }
 0x437   : > { %3282 = vrot.lane.b32.xlu2 %v7945_v33, %s9238_s20 }
 0x438   : > { %v7989_v28 = vpop.permute.xlu1 %3488  ;;  %v7991_v53 = vpop.permute.xlu0 %3384 }
 0x439   : > { %v7993_v55 = vpop.permute.xlu2 %3336 }
 0x43e   : > { %3286 = vrot.lane.b32.xlu0 %v7857_v15, %s9238_s20  ;;  %3386 = vrot.lane.b32.xlu1 %v7945_v33, %s8894_s29 }
 0x43f   : > { %3490 = vrot.lane.b32.xlu2 %v7945_v33, %s8896_s28 }
 0x440   : > { %v8001_v25 = vpop.permute.xlu1 %3332  ;;  %v8003_v5 = vpop.permute.xlu0 %3696 }
 0x441   : > { %v8005_v44 = vpop.permute.xlu2 %3596 }
 0x446   : > { %3586 = vrot.lane.b32.xlu0 %v7881_v34, %s8885_s10  ;;  %3698 = vrot.lane.b32.xlu1 %v7945_v33, %s8887_s12 }
 0x447   : > { %3334 = vrot.lane.b32.xlu2 %v7945_v33, %s9239_s26 }
 0x448   : > { %v8013_v43 = vpop.permute.xlu0 %3592  ;;  %v8015_v21 = vpop.permute.xlu1 %3232 }
 0x449   : > { %v8017_v31 = vpop.permute.xlu2 %3804 }
 0x44e   : > { %3544 = vrot.lane.b32.xlu0 %v7764_v52, %s9240_s13  ;;  %3594 = vrot.lane.b32.xlu1 %v7945_v33, %s8885_s10 }
 0x44f   : > { %3584 = vrot.lane.b32.xlu2 %v7755_v6, %s8885_s10 }
 0x450   : > { %v8025_v62 = vpop.permute.xlu0 %3800  ;;  %v8027_v30 = vpop.permute.xlu1 %3440 }
 0x451   : > { %v3223_v56 = vpop.permute.xlu2 %3222 }
 0x452   : > { %v8031_v8 = vsel %vm9241_vm11, %v7875_v2, %v3223_v56  ;;  %3249 = vst.msk [vmem:[#allocation5 + $0x88] sm:$0xff] %vm1868_vm8, %v3223_v56  ;;  %vm9251_vm11 = vmmov %vm9247_vm12 }
 0x456   : > { %3794 = vrot.lane.b32.xlu0 %v7881_v34, %s8889_s17  ;;  %3494 = vrot.lane.b32.xlu1 %v7857_v15, %s8896_s28  ;;  %s4959_s28 = scalar_lea.hbm %s8628_s6, 2 }
 0x457   : > { %3798 = vrot.lane.b32.xlu2 %v7907_v16, %s8889_s17 }
 0x458   : > { %v8040_v57 = vpop.permute.xlu0 %3492  ;;  %v8042_v48 = vpop.permute.xlu1 %3700 }
 0x459   : > { %v3431_v14 = vpop.permute.xlu2 %3430 }
 0x45a   : > { %v8046_v29 = vsel %vm9242_vm5, %v7889_v59, %v3431_v14  ;;  %3457 = vst.msk [vmem:[#allocation5 + $0x188] sm:$0xff] %vm1868_vm8, %v3431_v14  ;;  %vm9252_vm5 = vmmov %vm9243_vm6 }
 0x45e   : > { %3752 = vrot.lane.b32.xlu0 %v7764_v52, %s8888_s16  ;;  %3802 = vrot.lane.b32.xlu1 %v7945_v33, %s8889_s17 }
 0x45f   : > { %3234 = vrot.lane.b32.xlu2 %v7857_v15, %s8893_s18 }
 0x460   : > { %v8055_v63 = vpop.permute.xlu0 %3648  ;;  %v8057_v7 = vpop.permute.xlu1 %3856 }
 0x461   : > { %v3691_v41 = vpop.permute.xlu2 %3690 }
 0x462   : > { %v8061_v39 = vsel %vm9243_vm6, %v7901_v1, %v3691_v41  ;;  %3717 = vst.msk [vmem:[#allocation5 + $0x2c8] sm:$0xff] %vm1868_vm8, %v3691_v41  ;;  %vm9253_vm6 = vcmask 998400  }
 0x466   : > { %3182 = vrot.lane.b32.xlu0 %v7857_v15, %s8892_s15  ;;  %3796 = vrot.lane.b32.xlu1 %v7773_v36, %s8889_s17 }
 0x467   : > { %3442 = vrot.lane.b32.xlu2 %v7857_v15, %s8895_s9 }
 0x468   : > { %v3171_v52 = vpop.permute.xlu0 %3170  ;;  %v3275_v23 = vpop.permute.xlu1 %3274 }
 0x469   : > { %v8072_v42 = vsel %vm9244_vm14, %v7844_v51, %v3171_v52  ;;  %3197 = vst.msk [vmem:[#allocation5 + $0x48] sm:$0xff] %vm1868_vm8, %v3171_v52  ;;  %v8077_v46 = vsel %vm309_vm15, %v7877_v9, %v3275_v23  ;;  %v3639_v2 = vpop.permute.xlu2 %3638  ;;  %vm9254_vm14 = vmmov %vm9250_vm2 }
 0x46a   : > { %v8081_v59 = vsel %vm456_vm3, %v7915_v37, %v3639_v2  ;;  %3301 = vst.msk [vmem:[#allocation5 + $0xc8] sm:$0xff] %vm1868_vm8, %v3275_v23 }
 0x46b   : > { %3665 = vst.msk [vmem:[#allocation5 + $0x288] sm:$0xff] %vm1868_vm8, %v3639_v2 }
 0x46e   : > { %3390 = vrot.lane.b32.xlu0 %v7857_v15, %s8894_s29  ;;  %3540 = vrot.lane.b32.xlu1 %v7752_v26, %s9240_s13 }
 0x46f   : > { %3792 = vrot.lane.b32.xlu2 %v7755_v6, %s8889_s17 }
 0x470   : > { %v3327_v51 = vpop.permute.xlu0 %3326  ;;  %v3483_v9 = vpop.permute.xlu1 %3482 }
 0x471   : > { %v8093_v1 = vsel %vm330_vm4, %v7855_v60, %v3327_v51  ;;  %3353 = vst.msk [vmem:[#allocation5 + $0x108] sm:$0xff] %vm1868_vm8, %v3327_v51  ;;  %v8098_v37 = vsel %vm9245_vm1, %v7891_v35, %v3483_v9  ;;  %v3847_v56 = vpop.permute.xlu2 %3846  ;;  %vm9255_vm1 = vmmov %vm9253_vm6 }
 0x472   : > { %v8102_v14 = vsel %vm9246_vm10, %v7927_v19, %v3847_v56  ;;  %3509 = vst.msk [vmem:[#allocation5 + $0x1c8] sm:$0xff] %vm1868_vm8, %v3483_v9  ;;  %vm9256_vm10 = vmmov %vm9249_vm0 }
 0x473   : > { %3873 = vst.msk [vmem:[#allocation5 + $0x388] sm:$0xff] %vm1868_vm8, %v3847_v56 }
 0x476   : > { %3338 = vrot.lane.b32.xlu0 %v7857_v15, %s9239_s26  ;;  %3748 = vrot.lane.b32.xlu1 %v7752_v26, %s8888_s16 }
 0x477   : > { %3542 = vrot.lane.b32.xlu2 %v7945_v33, %s9240_s13 }
 0x478   : > { %v3379_v60 = vpop.permute.xlu1 %3378  ;;  %v3279_v35 = vpop.permute.xlu0 %3278 }
 0x479   : > { %v8114_v41 = vsel %vm9247_vm12, %v7903_v4, %v3379_v60  ;;  %3405 = vst.msk [vmem:[#allocation5 + $0x148] sm:$0xff] %vm1868_vm8, %v3379_v60  ;;  %v8119_v19 = vsel %vm309_vm15, %v7867_v12, %v3279_v35  ;;  %v3175_v52 = vpop.permute.xlu2 %3174  ;;  %vm9257_vm12 = vcmask 932864  }
 0x47a   : > { %v8123_v23 = vsel %vm9248_vm13, %v7939_v50, %v3175_v52  ;;  %3303 = vst.msk [vmem:[#allocation5 + $0xd8] sm:$0xff] %vm1868_vm8, %v3279_v35  ;;  %vm9258_vm13 = vmmov %vm9257_vm12 }
 0x47b   : > { %3199 = vst.msk [vmem:[#allocation5 + $0x58] sm:$0xff] %vm1868_vm8, %v3175_v52 }
 0x47e   : > { %3538 = vrot.lane.b32.xlu0 %v7907_v16, %s9240_s13  ;;  %3650 = vrot.lane.b32.xlu1 %v7857_v15, %s8886_s11 }
 0x47f   : > { %3536 = vrot.lane.b32.xlu2 %v7773_v36, %s9240_s13 }
 0x480   : > { %v3487_v26 = vpop.permute.xlu0 %3486  ;;  %v3227_v12 = vpop.permute.xlu1 %3226 }
 0x481   : > { %v8135_v4 = vsel %vm9249_vm0, %v7879_v18, %v3487_v26  ;;  %3511 = vst.msk [vmem:[#allocation5 + $0x1d8] sm:$0xff] %vm1868_vm8, %v3487_v26  ;;  %v8140_v50 = vsel %vm9250_vm2, %v7917_v0, %v3227_v12  ;;  %v3383_v2 = vpop.permute.xlu2 %3382  ;;  %vm9259_vm0 = vcmask 1039360   ;;  %vm9260_vm2 = vmmov %vm9251_vm11 }
 0x482   : > { %v8144_v51 = vsel %vm9251_vm11, %v7953_v3, %v3383_v2  ;;  %3251 = vst.msk [vmem:[#allocation5 + $0x98] sm:$0xff] %vm1868_vm8, %v3227_v12  ;;  %vm9262_vm11 = vmmov %vm9254_vm14 }
 0x483   : > { %3407 = vst.msk [vmem:[#allocation5 + $0x158] sm:$0xff] %vm1868_vm8, %v3383_v2 }
 0x486   : > { %3598 = vrot.lane.b32.xlu0 %v7857_v15, %s8885_s10  ;;  %3534 = vrot.lane.b32.xlu1 %v7881_v34, %s9240_s13 }
 0x487   : > { %3702 = vrot.lane.b32.xlu2 %v7857_v15, %s8887_s12  ;;  %s4460_s12 = scalar_lea.hbm %s8628_s6, %s5114_s25 }
 0x488   : > { %v3695_v18 = vpop.permute.xlu0 %3694  ;;  %v3435_v0 = vpop.permute.xlu1 %3434 }
 0x489   : > { %v8156_v9 = vsel %vm9252_vm5, %v7893_v13, %v3695_v18  ;;  %3719 = vst.msk [vmem:[#allocation5 + $0x2d8] sm:$0xff] %vm1868_vm8, %v3695_v18  ;;  %v8161_v3 = vsel %vm9253_vm6, %v7929_v32, %v3435_v0  ;;  %v3591_v56 = vpop.permute.xlu2 %3590  ;;  %vm9264_vm6 = vmmov %vm9256_vm10 }
 0x48a   : > { %v8165_v60 = vsel %vm435_vm9, %v7965_v45, %v3591_v56  ;;  %3459 = vst.msk [vmem:[#allocation5 + $0x198] sm:$0xff] %vm1868_vm8, %v3435_v0 }
 0x48b   : > { %3615 = vst.msk [vmem:[#allocation5 + $0x258] sm:$0xff] %vm1868_vm8, %v3591_v56 }
 0x48e   : > { %3806 = vrot.lane.b32.xlu0 %v7857_v15, %s8889_s17  ;;  %3546 = vrot.lane.b32.xlu1 %v7857_v15, %s9240_s13 }
 0x48f   : > { %3858 = vrot.lane.b32.xlu2 %v7857_v15, %s8890_s19  ;;  %s4464_s19 = sshll.u32 %s4460_s12, 4  ;;  %s4465_s19 = int_to_ptr.hbm [resolvable:$true] %s4464_s19 }
 0x490   : > { %v3231_v13 = vpop.permute.xlu0 %3230  ;;  %v3331_v32 = vpop.permute.xlu1 %3330  ;;  %s4953_s18 = sshra.s32 %s4465_s19, 4  ;;  %s4954_s18 = int_to_ptr.hbm [resolvable:$true] %s4953_s18 }
 0x491   : > { %v3238_v35 = vsel %vm9254_vm14, %v7905_v27, %v3231_v13  ;;  %3253 = vst.msk [vmem:[#allocation5 + $0xa8] sm:$0xff] %vm1868_vm8, %v3231_v13  ;;  %v8180_v45 = vsel %vm330_vm4, %v7941_v24, %v3331_v32  ;;  %v3283_v52 = vpop.permute.xlu2 %3282  ;;  %vm9265_vm14 = vcmask 941056   ;;  %s4955_s29 = scalar_lea.hbm %s4954_s18, 1  ;;  %p4960_p0 = scmp.lt.s32.totalorder %s4954_s18, %s8628_s6 }
 0x492   : > { %v3290_v26 = vsel %vm309_vm15, %v7977_v40, %v3283_v52  ;;  %3355 = vst.msk [vmem:[#allocation5 + $0x118] sm:$0xff] %vm1868_vm8, %v3331_v32  ;;  %p4956_p11 = scmp.ne.s32.totalorder %s4954_s18, %s4955_s29  ;;  %p4961_p1 = scmp.lt.s32.totalorder %s4959_s28, %s4955_s29 }
 0x493   : > { %3305 = vst.msk [vmem:[#allocation5 + $0xe8] sm:$0xff] %vm1868_vm8, %v3283_v52 }
 0x494   : > { %p4957_p12 = pnand %p4956_p11, %p5131_p5  ;;  %p4962_p2 = por %p4961_p1, %p4960_p0 }
 0x496   : > { %3532 = vrot.lane.b32.xlu0 %v7755_v6, %s9240_s13  ;;  %3754 = vrot.lane.b32.xlu1 %v7857_v15, %s8888_s16  ;;  %s242_s13 = sand.u32 1, %s4993_s22   ;;  %p4958_p13 = pneg %p4957_p12 }
 0x497   : > { %3750 = vrot.lane.b32.xlu2 %v7945_v33, %s8888_s16  ;;  %s4452_s15 = scalar_lea.sflag [#allocation7], %s242_s13 }
 0x498   : > { %v3439_v27 = vpop.permute.xlu0 %3438  ;;  %v3643_v24 = vpop.permute.xlu1 %3642  ;;  %p4963_p3 = pnand %p4962_p2, %p4958_p13 }
 0x499   : > { %v8194_v12 = vsel %vm9255_vm1, %v7919_v20, %v3439_v27  ;;  %3461 = vst.msk [vmem:[#allocation5 + $0x1a8] sm:$0xff] %vm1868_vm8, %v3439_v27  ;;  %v8199_v40 = vsel %vm456_vm3, %v7955_v47, %v3643_v24  ;;  %v3491_v2 = vpop.permute.xlu2 %3490 }
 0x49a   : > { %v8203_v18 = vsel %vm9256_vm10, %v7989_v28, %v3491_v2  ;;  %3667 = vst.msk [vmem:[#allocation5 + $0x298] sm:$0xff] %vm1868_vm8, %v3643_v24  ;;  %vm9267_vm10 = vmmov %vm9259_vm0 }
 0x49b   : > { %3513 = vst.msk [vmem:[#allocation5 + $0x1e8] sm:$0xff] %vm1868_vm8, %v3491_v2 }
 0x49e   : > { %3746 = vrot.lane.b32.xlu0 %v7907_v16, %s8888_s16  ;;  %3740 = vrot.lane.b32.xlu1 %v7755_v6, %s8888_s16 }
 0x49f   : > { %3744 = vrot.lane.b32.xlu2 %v7773_v36, %s8888_s16 }
 0x4a0   : > { %v3647_v15 = vpop.permute.xlu0 %3646  ;;  %v3851_v20 = vpop.permute.xlu1 %3850 }
 0x4a1   : > { %v8215_v33 = vsel %vm456_vm3, %v7931_v22, %v3647_v15  ;;  %3669 = vst.msk [vmem:[#allocation5 + $0x2a8] sm:$0xff] %vm1868_vm8, %v3647_v15  ;;  %v8220_v47 = vsel %vm9257_vm12, %v7967_v38, %v3851_v20  ;;  %v3335_v28 = vpop.permute.xlu2 %3334 }
 0x4a2   : > { %v8224_v16 = vsel %vm330_vm4, %v8001_v25, %v3335_v28  ;;  %3875 = vst.msk [vmem:[#allocation5 + $0x398] sm:$0xff] %vm1868_vm8, %v3851_v20 }
 0x4a3   : > { %3357 = vst.msk [vmem:[#allocation5 + $0x128] sm:$0xff] %vm1868_vm8, %v3335_v28 }
 0x4a7   : > { %3742 = vrot.lane.b32.xlu2 %v7881_v34, %s8888_s16  ;;  %s243_s16 = scalar_lea.vmem [#allocation6], %s242_s13 }
 0x4a8   : > { %v3855_v6 = vpop.permute.xlu0 %3854  ;;  %v3179_v36 = vpop.permute.xlu1 %3178  ;;  %s4462_s17 = sshll.u32 %s243_s16, 4  ;;  %s4463_s17 = int_to_ptr.vmem [resolvable:$true] %s4462_s17 }
 0x4a9   : > { %v8232_v22 = vsel %vm9258_vm13, %v7943_v11, %v3855_v6  ;;  %3877 = vst.msk [vmem:[#allocation5 + $0x3a8] sm:$0xff] %vm1868_vm8, %v3855_v6  ;;  %v3186_v38 = vsel %vm9259_vm0, %v7979_v10, %v3179_v36  ;;  %v3585_v25 = vpop.permute.xlu2 %3584  ;;  %vm9269_vm13 = vmmov %vm9260_vm2  ;;  %vm9270_vm0 = vcmask 982016   ;;  %v3902_v6 = vld [vmem:[#allocation5 + $0x30] sm:$0xff] }
 0x4aa   : > { %3201 = vst.msk [vmem:[#allocation5 + $0x68] sm:$0xff] %vm1868_vm8, %v3179_v36 }
 0x4b0   : > { %v3287_v0 = vpop.permute.xlu0 %3286  ;;  %v3387_v56 = vpop.permute.xlu1 %3386 }
 0x4b1   : > { %v3291_v13 = vsel %vm309_vm15, %v7957_v17, %v3287_v0  ;;  %3307 = vst.msk [vmem:[#allocation5 + $0xf8] sm:$0xff] %vm1868_vm8, %v3287_v0  ;;  %v8243_v34 = vsel %vm9260_vm2, %v7991_v53, %v3387_v56  ;;  %v3799_v11 = vpop.permute.xlu2 %3798  ;;  %vm9261_vm15 = vmmov %vm9252_vm5 }
 0x4b2   : > { %4052 = vmatpush.msra.mxu2 %v3291_v13  ;;  %3409 = vst.msk [vmem:[#allocation5 + $0x168] sm:$0xff] %vm1868_vm8, %v3387_v56  ;;  %vm9263_vm5 = vmmov %vm9255_vm1  ;;  %v3925_v13 = vld [vmem:[#allocation5 + $0xe8] sm:$0xff] }
 0x4b3   : > { %3823 = vst.msk [vmem:[#allocation5 + $0x358] sm:$0xff] %vm1868_vm8, %v3799_v11  ;;  %vm9266_vm1 = vmmov %vm9265_vm14 }
 0x4b4   : > { %4053 = vmatpush.msra.mxu2 %v3290_v26  ;;  %vm9268_vm12 = vmmov %vm9266_vm1 }
 0x4b5   : > { %vm9271_vm2 = vmmov %vm9261_vm15 }
 0x4b6   : > { %4054 = vmatpush.msra.mxu2 %v8119_v19 }
 0x4b8   : > { %v3587_v10 = vpop.permute.xlu0 %3586  ;;  %v3699_v32 = vpop.permute.xlu1 %3698  ;;  %4055 = vmatpush.msra.mxu2 %v8077_v46  ;;  %v3927_v0 = vld [vmem:[#allocation5 + $0xf8] sm:$0xff] }
 0x4b9   : > { %v8250_v17 = vsel %vm435_vm9, %v3585_v25, %v3587_v10  ;;  %3613 = vst.msk [vmem:[#allocation5 + $0x248] sm:$0xff] %vm1868_vm8, %v3587_v10  ;;  %v3706_v53 = vsel %vm9261_vm15, %v8003_v5, %v3699_v32  ;;  %v3235_v52 = vpop.permute.xlu2 %3234  ;;  %vm9272_vm15 = vcmask 932864  }
 0x4ba   : > { %v3239_v26 = vsel %vm9262_vm11, %v8015_v21, %v3235_v52  ;;  %3721 = vst.msk [vmem:[#allocation5 + $0x2e8] sm:$0xff] %vm1868_vm8, %v3699_v32  ;;  %v3917_v32 = vld [vmem:[#allocation5 + $0xa8] sm:$0xff]  ;;  %vm9276_vm11 = vmmov %vm9270_vm0 }
 0x4bb   : > { %4056 = vmatpush.msra.mxu2 %v3239_v26  ;;  %3255 = vst.msk [vmem:[#allocation5 + $0xb8] sm:$0xff] %vm1868_vm8, %v3235_v52  ;;  %v3955_v52 = vld [vmem:[#allocation5 + $0x1d8] sm:$0xff]  ;;  %v5057_v26 = vmov 1  }
 0x4bc   : > { %4772 = vset.pattern.permute.xlu0 %v5057_v26  ;;  %4773 = vset.pattern.permute.xlu1 %v5057_v26 }
 0x4bd   : > { %4057 = vmatpush.msra.mxu2 %v3238_v35  ;;  %4774 = vset.pattern.permute.xlu2 %v5057_v26 }
 0x4bf   : > { %4058 = vmatpush.msra.mxu2 %v8140_v50 }
 0x4c0   : > { %v8260_v46 = vpop.permute.xlu0 %3544  ;;  %v3595_v19 = vpop.permute.xlu1 %3594 }
 0x4c1   : > { %v8264_v27 = vsel %vm435_vm9, %v8013_v43, %v3595_v19  ;;  %3617 = vst.msk [vmem:[#allocation5 + $0x268] sm:$0xff] %vm1868_vm8, %v3595_v19  ;;  %v3443_v5 = vpop.permute.xlu2 %3442  ;;  %4059 = vmatpush.msra.mxu2 %v8031_v8  ;;  %v8363_v19 = vld [vmem:[%s8624_s2 + $0x28] sm:$0xff] }
 0x4c2   : > { %v3447_v21 = vsel %vm9263_vm5, %v8027_v30, %v3443_v5  ;;  %3463 = vst.msk [vmem:[#allocation5 + $0x1b8] sm:$0xff] %vm1868_vm8, %v3443_v5  ;;  %v3913_v5 = vld [vmem:[#allocation5 + $0x88] sm:$0xff] }
 0x4c8   : > { %v3795_v35 = vpop.permute.xlu0 %3794  ;;  %v3495_v24 = vpop.permute.xlu1 %3494 }
 0x4c9   : > { %3821 = vst.msk [vmem:[#allocation5 + $0x348] sm:$0xff] %vm1868_vm8, %v3795_v35  ;;  %v3499_v50 = vsel %vm9264_vm6, %v8040_v57, %v3495_v24  ;;  %v3793_v2 = vpop.permute.xlu2 %3792 }
 0x4ca   : > { %v8275_v43 = vsel %vm9265_vm14, %v3793_v2, %v3795_v35  ;;  %4081 = vmatpush.msra.mxu3 %v3499_v50  ;;  %3515 = vst.msk [vmem:[#allocation5 + $0x1f8] sm:$0xff] %vm1868_vm8, %v3495_v24  ;;  %v8371_v24 = vld [vmem:[%s8624_s2 + $0x40] sm:$0xff] }
 0x4cc   : > { %4082 = vmatpush.msra.mxu3 %v8203_v18 }
 0x4ce   : > { %4083 = vmatpush.msra.mxu3 %v8135_v4 }
 0x4d0   : > { %v8280_v30 = vpop.permute.xlu0 %3752  ;;  %v3803_v8 = vpop.permute.xlu1 %3802  ;;  %4084 = vmatpush.msra.mxu3 %v8098_v37 }
 0x4d1   : > { %v8285_v15 = vsel %vm9266_vm1, %v8025_v62, %v3803_v8  ;;  %3825 = vst.msk [vmem:[#allocation5 + $0x368] sm:$0xff] %vm1868_vm8, %v3803_v8  ;;  %v3543_v57 = vpop.permute.xlu2 %3542  ;;  %v3951_v8 = vld [vmem:[#allocation5 + $0x1b8] sm:$0xff] }
 0x4d2   : > { %4085 = vmatpush.msra.mxu3 %v3447_v21  ;;  %3565 = vst.msk [vmem:[#allocation5 + $0x228] sm:$0xff] %vm1868_vm8, %v3543_v57  ;;  %v3953_v21 = vld [vmem:[#allocation5 + $0x1c8] sm:$0xff] }
 0x4d4   : > { %4086 = vmatpush.msra.mxu3 %v8194_v12 }
 0x4d6   : > { %4087 = vmatpush.msra.mxu3 %v8161_v3 }
 0x4d8   : > { %v3183_v4 = vpop.permute.xlu0 %3182  ;;  %v3797_v18 = vpop.permute.xlu1 %3796  ;;  %4088 = vmatpush.msra.mxu3 %v8046_v29 }
 0x4d9   : > { %v3187_v37 = vsel %vm9267_vm10, %v7969_v61, %v3183_v4  ;;  %3203 = vst.msk [vmem:[#allocation5 + $0x78] sm:$0xff] %vm1868_vm8, %v3183_v4  ;;  %v8296_v62 = vsel %vm9268_vm12, %v3797_v18, %v3799_v11  ;;  %v3537_v20 = vpop.permute.xlu2 %3536  ;;  %v3949_v4 = vld [vmem:[#allocation5 + $0x1a8] sm:$0xff]  ;;  %v3947_v18 = vld [vmem:[#allocation5 + $0x198] sm:$0xff] }
 0x4da   : > { %4060 = vmatpush.msra.mxu2 %v3187_v37  ;;  %v8391_v37 = vld [vmem:[%s8624_s2 + $0x48] sm:$0xff] }
 0x4dc   : > { %4061 = vmatpush.msra.mxu2 %v3186_v38 }
 0x4de   : > { %4062 = vmatpush.msra.mxu2 %v8123_v23  ;;  %v3900_v23 = vld [vmem:[#allocation5 + $0x20] sm:$0xff] }
 0x4e0   : > { %v3391_v12 = vpop.permute.xlu0 %3390  ;;  %v3541_v28 = vpop.permute.xlu1 %3540  ;;  %4063 = vmatpush.msra.mxu2 %v8072_v42  ;;  %v3896_v42 = vld [vmem:[#allocation5] sm:$0xff] }
 0x4e1   : > { %v3395_v29 = vsel %vm9269_vm13, %v7981_v49, %v3391_v12  ;;  %3411 = vst.msk [vmem:[#allocation5 + $0x178] sm:$0xff] %vm1868_vm8, %v3391_v12  ;;  %v8304_v61 = vsel %vm9270_vm0, %v3541_v28, %v3543_v57  ;;  %v3703_v3 = vpop.permute.xlu2 %3702  ;;  %v3898_v49 = vld [vmem:[#allocation5 + $0x10] sm:$0xff]  ;;  %v3909_v57 = vld [vmem:[#allocation5 + $0x68] sm:$0xff] }
 0x4e2   : > { %v3707_v36 = vsel %vm9271_vm2, %v8042_v48, %v3703_v3  ;;  %4064 = vmatpush.msra.mxu2 %v3902_v6  ;;  %4089 = vmatpush.msra.mxu3 %v3395_v29  ;;  %3723 = vst.msk [vmem:[#allocation5 + $0x2f8] sm:$0xff] %vm1868_vm8, %v3703_v3  ;;  %v8315_v48 = vld [vmem:[%s8624_s2] sm:$0xff]  ;;  %v3945_v12 = vld [vmem:[#allocation5 + $0x188] sm:$0xff]  ;;  %vm4364_vm2 = vcmask 457728  }
 0x4e3   : > { %4110 = vmatpush.msrb.mxu0 %v3707_v36 }
 0x4e4   : > { %4065 = vmatpush.msra.mxu2 %v3900_v23  ;;  %4090 = vmatpush.msra.mxu3 %v8243_v34  ;;  %v3901_v23 = vld [vmem:[#allocation5 + $0x28] sm:$0xff] }
 0x4e5   : > { %4111 = vmatpush.msrb.mxu0 %v3706_v53  ;;  %v3957_v53 = vld [vmem:[#allocation5 + $0x1e8] sm:$0xff] }
 0x4e6   : > { %4066 = vmatpush.msra.mxu2 %v3898_v49  ;;  %4091 = vmatpush.msra.mxu3 %v8144_v51  ;;  %v3941_v49 = vld [vmem:[#allocation5 + $0x168] sm:$0xff] }
 0x4e7   : > { %4112 = vmatpush.msrb.mxu0 %v8156_v9 }
 0x4e8   : > { %v3339_v38 = vpop.permute.xlu0 %3338  ;;  %v3749_v25 = vpop.permute.xlu1 %3748  ;;  %4067 = vmatpush.msra.mxu2 %v3896_v42  ;;  %4092 = vmatpush.msra.mxu3 %v8114_v41  ;;  %v3943_v6 = vld [vmem:[#allocation5 + $0x178] sm:$0xff]  ;;  %v3937_v42 = vld [vmem:[#allocation5 + $0x148] sm:$0xff] }
 0x4e9   : > { %v3343_v56 = vsel %vm330_vm4, %v7993_v55, %v3339_v38  ;;  %3359 = vst.msk [vmem:[#allocation5 + $0x138] sm:$0xff] %vm1868_vm8, %v3339_v38  ;;  %v3859_v51 = vpop.permute.xlu2 %3858  ;;  %4113 = vmatpush.msrb.mxu0 %v8061_v39  ;;  %4068 = vmatmul.f32.vlgmr.msra.gmra.mxu2 %v8315_v48  ;;  %v3923_v55 = vld [vmem:[#allocation5 + $0xd8] sm:$0xff]  ;;  %v3921_v39 = vld [vmem:[#allocation5 + $0xc8] sm:$0xff]  ;;  %vm9273_vm4 = vmmov %vm9270_vm0 }
 0x4ea   : > { %4168 = vmatpush.msrb.mxu2 %v3927_v0  ;;  %v3863_v9 = vsel %vm9272_vm15, %v8057_v7, %v3859_v51  ;;  %4093 = vmatpush.msra.mxu3 %v3343_v56  ;;  %3879 = vst.msk [vmem:[#allocation5 + $0x3b8] sm:$0xff] %vm1868_vm8, %v3859_v51  ;;  %v8332_v7 = vld [vmem:[%s8624_s2 + $0x8] sm:$0xff] }
 0x4eb   : > { %4143 = vmatpush.msrb.mxu1 %v3863_v9  ;;  %v8428_v9 = vld [vmem:[%s8624_s2 + $0x10] sm:$0xff] }
 0x4ec   : > { %4169 = vmatpush.msrb.mxu2 %v3925_v13  ;;  %4094 = vmatpush.msra.mxu3 %v8224_v16  ;;  %v8339_v16 = vld [vmem:[%s8624_s2 + $0x20] sm:$0xff]  ;;  %v3989_v13 = vld [vmem:[#allocation5 + $0x2e8] sm:$0xff] }
 0x4ed   : > { %4144 = vmatpush.msrb.mxu1 %v8232_v22 }
 0x4ee   : > { %4170 = vmatpush.msrb.mxu2 %v3923_v55  ;;  %4095 = vmatpush.msra.mxu3 %v8180_v45  ;;  %v3931_v55 = vld [vmem:[#allocation5 + $0x118] sm:$0xff] }
 0x4ef   : > { %4145 = vmatpush.msrb.mxu1 %v8220_v47  ;;  %v3919_v47 = vld [vmem:[#allocation5 + $0xb8] sm:$0xff] }
 0x4f0   : > { %4171 = vmatpush.msrb.mxu2 %v3921_v39  ;;  %v3539_v41 = vpop.permute.xlu0 %3538  ;;  %v3651_v34 = vpop.permute.xlu1 %3650  ;;  %4096 = vmatpush.msra.mxu3 %v8093_v1  ;;  %v3959_v1 = vld [vmem:[#allocation5 + $0x1f8] sm:$0xff] }
 0x4f1   : > { %v8342_v45 = vsel %vm9273_vm4, %v3537_v20, %v3539_v41  ;;  %3563 = vst.msk [vmem:[#allocation5 + $0x218] sm:$0xff] %vm1868_vm8, %v3539_v41  ;;  %v3655_v22 = vsel %vm456_vm3, %v8055_v63, %v3651_v34  ;;  %v3751_v11 = vpop.permute.xlu2 %3750  ;;  %4146 = vmatpush.msrb.mxu1 %v8102_v14  ;;  %4097 = vmatmul.f32.vlgmr.msra.gmra.mxu3 %v8332_v7  ;;  %v4016_v63 = vld [vmem:[%s8625_s3] sm:$0xff]  ;;  %v3915_v14 = vld [vmem:[#allocation5 + $0x98] sm:$0xff]  ;;  %v3905_v20 = vld [vmem:[#allocation5 + $0x48] sm:$0xff] }
 0x4f2   : > { %v8350_v10 = vsel %vm498_vm7, %v3749_v25, %v3751_v11  ;;  %4172 = vmatpush.msrb.mxu2 %v3919_v47  ;;  %4197 = vmatpush.msrb.mxu3 %v3959_v1  ;;  %3671 = vst.msk [vmem:[#allocation5 + $0x2b8] sm:$0xff] %vm1868_vm8, %v3651_v34  ;;  %vm9274_vm3 = vmmov %vm9266_vm1  ;;  %v3897_v25 = vld [vmem:[#allocation5 + $0x8] sm:$0xff]  ;;  %v3935_v51 = vld [vmem:[#allocation5 + $0x138] sm:$0xff] }
 0x4f3   : > { %4114 = vmatpush.msrb.mxu0 %v3655_v22  ;;  %4071 = vmatmul.f32.gmra.mxu2 %v8339_v16  ;;  %3773 = vst.msk [vmem:[#allocation5 + $0x328] sm:$0xff] %vm1868_vm8, %v3751_v11  ;;  %v3985_v34 = vld [vmem:[#allocation5 + $0x2c8] sm:$0xff]  ;;  %v4015_v47 = vld [vmem:[#allocation5 + $0x3b8] sm:$0xff] }
 0x4f4   : > { %4173 = vmatpush.msrb.mxu2 %v3917_v32  ;;  %4198 = vmatpush.msrb.mxu3 %v3957_v53  ;;  %v4013_v32 = vld [vmem:[#allocation5 + $0x3a8] sm:$0xff] }
 0x4f5   : > { %4115 = vmatpush.msrb.mxu0 %v8215_v33  ;;  %4022 = vperm.xlu0 %4772, %v4016_v63   ;;  %v8446_v53 = vld [vmem:[%s8624_s2 + $0x18] sm:$0xff]  ;;  %v4011_v63 = vld [vmem:[#allocation5 + $0x398] sm:$0xff] }
 0x4f6   : > { %4174 = vmatpush.msrb.mxu2 %v3915_v14  ;;  %4199 = vmatpush.msrb.mxu3 %v3955_v52  ;;  %v3977_v14 = vld [vmem:[#allocation5 + $0x288] sm:$0xff] }
 0x4f7   : > { %4116 = vmatpush.msrb.mxu0 %v8199_v40  ;;  %v3911_v40 = vld [vmem:[#allocation5 + $0x78] sm:$0xff]  ;;  %v4009_v52 = vld [vmem:[#allocation5 + $0x388] sm:$0xff] }
 0x4f8   : > { %v3599_v33 = vpop.permute.xlu0 %3598  ;;  %v8366_v35 = vpop.permute.xlu1 %3534  ;;  %4175 = vmatpush.msrb.mxu2 %v3913_v5  ;;  %4200 = vmatpush.msrb.mxu3 %v3953_v21 }
 0x4f9   : > { %v3603_v50 = vsel %vm435_vm9, %v8005_v44, %v3599_v33  ;;  %3619 = vst.msk [vmem:[#allocation5 + $0x278] sm:$0xff] %vm1868_vm8, %v3599_v33  ;;  %v8376_v2 = vpop.permute.xlu2 %3744  ;;  %4117 = vmatpush.msrb.mxu0 %v8081_v59  ;;  %4100 = vmatmul.f32.gmra.mxu3 %v8363_v19  ;;  %v4017_v44 = vld [vmem:[%s8625_s3 + $0x8] sm:$0xff]  ;;  %vm9275_vm9 = vmmov %vm9270_vm0  ;;  %v8455_v33 = vld [vmem:[%s8624_s2 + $0x50] sm:$0xff] }
 0x4fa   : > { %4176 = vmatpush.msrb.mxu2 %v3911_v40  ;;  %4201 = vmatpush.msrb.mxu3 %v3951_v8  ;;  %3561 = vst.msk [vmem:[#allocation5 + $0x208] sm:$0xff] %vm1868_vm8, %v8366_v35  ;;  %v3907_v59 = vld [vmem:[#allocation5 + $0x58] sm:$0xff]  ;;  %v4001_v8 = vld [vmem:[#allocation5 + $0x348] sm:$0xff] }
 0x4fb   : > { %4118 = vmatpush.msrb.mxu0 %v3603_v50  ;;  %4074 = vmatmul.f32.gmra.mxu2 %v8371_v24  ;;  %v3983_v1 = vld [vmem:[#allocation5 + $0x2b8] sm:$0xff]  ;;  %v4005_v50 = vld [vmem:[#allocation5 + $0x368] sm:$0xff] }
 0x4fc   : > { %4177 = vmatpush.msrb.mxu2 %v3909_v57  ;;  %4202 = vmatpush.msrb.mxu3 %v3949_v4  ;;  %v4003_v40 = vld [vmem:[#allocation5 + $0x358] sm:$0xff] }
 0x4fd   : > { %4119 = vmatpush.msrb.mxu0 %v8264_v27  ;;  %4027 = vperm.xlu1 %4773, %v4017_v44   ;;  %v3894_v44 = vld [vmem:[%s8624_s2 + $0x70] sm:$0xff] }
 0x4fe   : > { %4178 = vmatpush.msrb.mxu2 %v3907_v59  ;;  %4203 = vmatpush.msrb.mxu3 %v3947_v18  ;;  %v3965_v59 = vld [vmem:[#allocation5 + $0x228] sm:$0xff] }
 0x4ff   : > { %4120 = vmatpush.msrb.mxu0 %v8165_v60  ;;  %v3903_v60 = vld [vmem:[#allocation5 + $0x38] sm:$0xff]  ;;  %v3997_v18 = vld [vmem:[#allocation5 + $0x328] sm:$0xff] }
 0x500   : > { %v3807_v28 = vpop.permute.xlu0 %3806  ;;  %v3547_v29 = vpop.permute.xlu1 %3546  ;;  %4179 = vmatpush.msrb.mxu2 %v3905_v20  ;;  %4204 = vmatpush.msrb.mxu3 %v3945_v12  ;;  %v3975_v5 = vld [vmem:[#allocation5 + $0x278] sm:$0xff] }
 0x501   : > { %v3811_v27 = vsel %vm9274_vm3, %v8017_v31, %v3807_v28  ;;  %3827 = vst.msk [vmem:[#allocation5 + $0x378] sm:$0xff] %vm1868_vm8, %v3807_v28  ;;  %v3551_v3 = vsel %vm9275_vm9, %v8260_v46, %v3547_v29  ;;  %4121 = vmatpush.msrb.mxu0 %v8250_v17  ;;  %4103 = vmatmul.f32.gmra.mxu3 %v8391_v37  ;;  %v3743_v36 = vpop.permute.xlu2 %3742  ;;  %v3899_v31 = vld [vmem:[#allocation5 + $0x18] sm:$0xff]  ;;  %v8408_v46 = vld [vmem:[%s8624_s2 + $0x60] sm:$0xff] }
 0x502   : > { %4180 = vmatpush.msrb.mxu2 %v3903_v60  ;;  %4205 = vmatpush.msrb.mxu3 %v3943_v6  ;;  %3567 = vst.msk [vmem:[#allocation5 + $0x238] sm:$0xff] %vm1868_vm8, %v3547_v29  ;;  %v3939_v17 = vld [vmem:[#allocation5 + $0x158] sm:$0xff]  ;;  %v4019_v29 = vld [vmem:[%s8625_s3 + $0x18] sm:$0xff]  ;;  %v9280_v60 = vmov 0  }
 0x503   : > { %4122 = vmatpush.msrb.mxu0 %v3551_v3  ;;  %4147 = vmatpush.msrb.mxu1 %v3811_v27  ;;  %3769 = vst.msk [vmem:[#allocation5 + $0x308] sm:$0xff] %vm1868_vm8, %v3743_v36  ;;  %v3963_v20 = vld [vmem:[#allocation5 + $0x218] sm:$0xff]  ;;  %v4018_v27 = vld [vmem:[%s8625_s3 + $0x10] sm:$0xff]  ;;  %v3895_v3 = vld [vmem:[%s8624_s2 + $0x78] sm:$0xff] }
 0x504   : > { %4181 = vmatpush.msrb.mxu2 %v3901_v23  ;;  %4206 = vmatpush.msrb.mxu3 %v3941_v49 }
 0x505   : > { %4123 = vmatpush.msrb.mxu0 %v8304_v61  ;;  %4148 = vmatpush.msrb.mxu1 %v8285_v15  ;;  %v8415_v61 = vld [vmem:[%s8624_s2 + $0x68] sm:$0xff] }
 0x506   : > { %4182 = vmatpush.msrb.mxu2 %v3899_v31  ;;  %4207 = vmatpush.msrb.mxu3 %v3939_v17 }
 0x507   : > { %4124 = vmatpush.msrb.mxu0 %v8342_v45  ;;  %4149 = vmatpush.msrb.mxu1 %v8296_v62  ;;  %v3991_v62 = vld [vmem:[#allocation5 + $0x2f8] sm:$0xff]  ;;  %v3929_v45 = vld [vmem:[#allocation5 + $0x108] sm:$0xff] }
 0x508   : > { %v3533_v15 = vpop.permute.xlu0 %3532  ;;  %v3755_v38 = vpop.permute.xlu1 %3754  ;;  %4077 = vmatmul.f32.gmra.mxu2 %v8408_v46  ;;  %4208 = vmatpush.msrb.mxu3 %v3937_v42  ;;  %v4007_v21 = vld [vmem:[#allocation5 + $0x378] sm:$0xff] }
 0x509   : > { %v3548_v0 = vsel %vm9276_vm11, %v3533_v15, %v8366_v35  ;;  %v3759_v56 = vsel %vm498_vm7, %v8280_v30, %v3755_v38  ;;  %3775 = vst.msk [vmem:[#allocation5 + $0x338] sm:$0xff] %vm1868_vm8, %v3755_v38  ;;  %4183 = vmatpush.msrb.mxu2 %v3897_v25  ;;  %4150 = vmatpush.msrb.mxu1 %v8275_v43  ;;  %v3933_v30 = vld [vmem:[#allocation5 + $0x128] sm:$0xff]  ;;  %v3987_v43 = vld [vmem:[#allocation5 + $0x2d8] sm:$0xff] }
 0x50a   : > { %4106 = vmatmul.f32.gmra.mxu3 %v8415_v61  ;;  %4125 = vmatpush.msrb.mxu0 %v3548_v0  ;;  %v3973_v35 = vld [vmem:[#allocation5 + $0x268] sm:$0xff]  ;;  %v3967_v57 = vld [vmem:[#allocation5 + $0x238] sm:$0xff] }
 0x50b   : > { %4647 = vmatpush.msra.mxu2 %v3991_v62  ;;  %4209 = vmatpush.msrb.mxu3 %v3935_v51  ;;  %v3993_v28 = vld [vmem:[#allocation5 + $0x308] sm:$0xff] }
 0x50c   : > { %4151 = vmatpush.msrb.mxu1 %v3759_v56  ;;  %4126 = vmatmul.f32.vlgmr.msrb.gmra.mxu0 %v8428_v9 }
 0x50d   : > { %4648 = vmatpush.msra.mxu2 %v3989_v13  ;;  %4210 = vmatpush.msrb.mxu3 %v3933_v30 }
 0x50e   : > { %4226 = vmatpush.msra.mxu0 %v3991_v62  ;;  %4152 = vmatpush.msrb.mxu1 %v8350_v10  ;;  %v3981_v10 = vld [vmem:[#allocation5 + $0x2a8] sm:$0xff] }
 0x50f   : > { %4649 = vmatpush.msra.mxu2 %v3987_v43  ;;  %4211 = vmatpush.msrb.mxu3 %v3931_v55 }
 0x510   : > { %v3747_v39 = vpop.permute.xlu0 %3746  ;;  %v3741_v41 = vpop.permute.xlu1 %3740  ;;  %4227 = vmatpush.msra.mxu0 %v3989_v13  ;;  %4184 = vmatmul.f32.vlgmr.msrb.gmra.mxu2 %v8315_v48  ;;  %v8441_v48 = vld [vmem:[%s8624_s2 + $0x30] sm:$0xff]  ;;  %v3999_v4 = vld [vmem:[#allocation5 + $0x338] sm:$0xff] }
 0x511   : > { %v3757_v22 = vsel %vm498_vm7, %v8376_v2, %v3747_v39  ;;  %3771 = vst.msk [vmem:[#allocation5 + $0x318] sm:$0xff] %vm1868_vm8, %v3747_v39  ;;  %v3756_v11 = vsel %vm498_vm7, %v3741_v41, %v3743_v36  ;;  %4650 = vmatpush.msra.mxu2 %v3985_v34  ;;  %4212 = vmatpush.msrb.mxu3 %v3929_v45  ;;  %vm9277_vm7 = vcmask 785408   ;;  %v3971_v2 = vld [vmem:[#allocation5 + $0x258] sm:$0xff] }
 0x512   : > { %4228 = vmatpush.msra.mxu0 %v3987_v43  ;;  %4213 = vmatmul.f32.vlgmr.msrb.gmra.mxu3 %v8332_v7  ;;  %v3979_v7 = vld [vmem:[#allocation5 + $0x298] sm:$0xff]  ;;  %vm9278_vm8 = vmmov %vm9277_vm7 }
 0x513   : > { %4663 = vmatpush.msra.mxu3 %v4015_v47  ;;  %4651 = vmatpush.msra.mxu2 %v3983_v1  ;;  %vm9279_vm5 = vmmov %vm9277_vm7 }
 0x514   : > { %4229 = vmatpush.msra.mxu0 %v3985_v34  ;;  %4153 = vmatpush.msrb.mxu1 %v3757_v22  ;;  %vm9281_vm6 = vmmov %vm9279_vm5 }
 0x515   : > { %4652 = vmatpush.msra.mxu2 %v3981_v10  ;;  %4664 = vmatpush.msra.mxu3 %v4013_v32  ;;  %vm9282_vm14 = vmmov %vm9279_vm5 }
 0x516   : > { %4129 = vmatmul.f32.gmra.mxu0 %v8441_v48  ;;  %4154 = vmatpush.msrb.mxu1 %v3756_v11  ;;  %vm9283_vm1 = vmmov %vm9279_vm5 }
 0x517   : > { %4230 = vmatpush.msra.mxu0 %v3983_v1  ;;  %4653 = vmatpush.msra.mxu2 %v3979_v7  ;;  %vm9284_vm10 = vmmov %vm9283_vm1 }
 0x518   : > { %4665 = vmatpush.msra.mxu3 %v4011_v63  ;;  %4629 = vmatmul.msk.f32.vlgmr.msrb.gmra.mxu1 %vm9277_vm7, %v8446_v53  ;;  %v3995_v12 = vld [vmem:[#allocation5 + $0x318] sm:$0xff]  ;;  %vm9285_vm12 = vmmov %vm9283_vm1 }
 0x519   : > { %4231 = vmatpush.msra.mxu0 %v3981_v10  ;;  %4259 = vmatpush.msra.mxu1 %v4015_v47 }
 0x51a   : > { %4654 = vmatpush.msra.mxu2 %v3977_v14  ;;  %4666 = vmatpush.msra.mxu3 %v4009_v52 }
 0x51b   : > { %4187 = vmatmul.f32.gmra.mxu2 %v8339_v16  ;;  %4232 = vmatpush.msra.mxu0 %v3979_v7  ;;  %v8461_v16 = vld [vmem:[%s8624_s2 + $0x38] sm:$0xff] }
 0x51c   : > { %4260 = vmatpush.msra.mxu1 %v4013_v32  ;;  %4655 = vmatpush.msra.mxu2 %v3975_v5 }
 0x51d   : > { %4667 = vmatpush.msra.mxu3 %v4007_v21  ;;  %4233 = vmatpush.msra.mxu0 %v3977_v14 }
 0x51e   : > { %4216 = vmatmul.f32.gmra.mxu3 %v8363_v19  ;;  %4261 = vmatpush.msra.mxu1 %v4011_v63  ;;  %v3969_v19 = vld [vmem:[#allocation5 + $0x248] sm:$0xff] }
 0x51f   : > { %4656 = vmatpush.msra.mxu2 %v3973_v35  ;;  %4668 = vmatpush.msra.mxu3 %v4005_v50 }
 0x520   : > { %4132 = vmatmul.f32.gmra.mxu0 %v8455_v33  ;;  %4262 = vmatpush.msra.mxu1 %v4009_v52 }
 0x521   : > { %4234 = vmatpush.msra.mxu0 %v3975_v5  ;;  %4657 = vmatpush.msra.mxu2 %v3971_v2 }
 0x522   : > { %4669 = vmatpush.msra.mxu3 %v4003_v40  ;;  %4630 = vmatmul.msk.f32.gmra.mxu1 %vm9278_vm8, %v8461_v16  ;;  %vm4408_vm8 = vcmask 130112  }
 0x523   : > { %4235 = vmatpush.msra.mxu0 %v3973_v35  ;;  %4263 = vmatpush.msra.mxu1 %v4007_v21 }
 0x524   : > { %4658 = vmatpush.msra.mxu2 %v3969_v19  ;;  %4670 = vmatpush.msra.mxu3 %v4001_v8 }
 0x525   : > { %4190 = vmatmul.f32.gmra.mxu2 %v8371_v24  ;;  %4236 = vmatpush.msra.mxu0 %v3971_v2  ;;  %v3891_v24 = vld [vmem:[%s8624_s2 + $0x58] sm:$0xff] }
 0x526   : > { %4264 = vmatpush.msra.mxu1 %v4005_v50  ;;  %4659 = vmatpush.msra.mxu2 %v3967_v57 }
 0x527   : > { %4671 = vmatpush.msra.mxu3 %v3999_v4  ;;  %4237 = vmatpush.msra.mxu0 %v3969_v19 }
 0x528   : > { %4219 = vmatmul.f32.gmra.mxu3 %v8391_v37  ;;  %4265 = vmatpush.msra.mxu1 %v4003_v40  ;;  %v3961_v37 = vld [vmem:[#allocation5 + $0x208] sm:$0xff] }
 0x529   : > { %4660 = vmatpush.msra.mxu2 %v3965_v59  ;;  %4672 = vmatpush.msra.mxu3 %v3997_v18 }
 0x52a   : > { %4135 = vmatmul.f32.gmra.mxu0 %v3894_v44  ;;  %4266 = vmatpush.msra.mxu1 %v4001_v8 }
 0x52b   : > { %4238 = vmatpush.msra.mxu0 %v3967_v57  ;;  %4661 = vmatpush.msra.mxu2 %v3963_v20 }
 0x52c   : > { %4673 = vmatpush.msra.mxu3 %v3995_v12  ;;  %4631 = vmatmul.msk.f32.gmra.mxu1 %vm9279_vm5, %v3891_v24  ;;  %vm4412_vm5 = vcmask 195712  }
 0x52d   : > { %4239 = vmatpush.msra.mxu0 %v3965_v59  ;;  %4267 = vmatpush.msra.mxu1 %v3999_v4 }
 0x52e   : > { %4662 = vmatpush.msra.mxu2 %v3961_v37  ;;  %4674 = vmatpush.msra.mxu3 %v3993_v28 }
 0x52f   : > { %4193 = vmatmul.f32.gmra.mxu2 %v8408_v46  ;;  %4240 = vmatpush.msra.mxu0 %v3963_v20 }
 0x530   : > { %4268 = vmatpush.msra.mxu1 %v3997_v18  ;;  %4037 = vperm.xlu1 %4773, %v4019_v29  }
 0x531   : > { %4222 = vmatmul.f32.gmra.mxu3 %v8415_v61  ;;  %4241 = vmatpush.msra.mxu0 %v3961_v37 }
 0x532   : > { %4269 = vmatpush.msra.mxu1 %v3995_v12  ;;  %4242 = vmatmul.f32.vlgmr.msra.gmra.mxu0 %v8428_v9 }
 0x533   : > { %4777 = vset.pattern.permute.xlu0 %v9280_v60  ;;  %4032 = vperm.xlu2 %4774, %v4018_v27  }
 0x534   : > { %4270 = vmatpush.msra.mxu1 %v3993_v28 }
 0x535   : > { %4632 = vmatmul.msk.f32.gmra.mxu1 %vm9281_vm6, %v3895_v3  ;;  %vm4416_vm6 = vcmask 261312  }
 0x537   : > { %4248 = vmatmul.f32.vlgmr.msra.gmra.mxu2 %v8455_v33 }
 0x538   : > { %4775 = vset.pattern.permute.xlu1 %v5933_v54 }
 0x539   : > { %4635 = vmatmul.msk.f32.vlgmr.msra.gmra.mxu3 %vm9282_vm14, %v3891_v24  ;;  %vm4425_vm14 = vcmask 1041409  }
 0x53a   : > { %4245 = vmatmul.f32.gmra.mxu0 %v8441_v48 }
 0x53b   : > { %4776 = vset.pattern.permute.xlu2 %v9280_v60 }
 0x53d   : > { %4633 = vmatmul.msk.f32.vlgmr.msra.gmra.mxu1 %vm9283_vm1, %v8446_v53  ;;  %vm4428_vm1 = vcmask 254976  }
 0x53f   : > { %4251 = vmatmul.f32.gmra.mxu2 %v3894_v44 }
 0x541   : > { %4636 = vmatmul.msk.f32.gmra.mxu3 %vm9284_vm10, %v3895_v3  ;;  %vm4449_vm10 = vcmask 8192  }
 0x545   : > { %4634 = vmatmul.msk.f32.gmra.mxu1 %vm9285_vm12, %v8461_v16 }
 0x567   : > { %v4023_v51 = vpop.permute.xlu0 %4022 }
 0x56c   : > { %v4069_v26 = vpop.f32.mrf.mxu2 }
 0x56d   : > { %v4070_v13 = vadd.f32 %v4069_v26, %v4023_v51 }
 0x56f   : > { %v4028_v9 = vpop.permute.xlu1 %4027 }
 0x574   : > { %v4098_v6 = vpop.f32.mrf.mxu3 }
 0x575   : > { %v4099_v41 = vadd.f32 %v4098_v6, %v4070_v13 }
 0x576   : > { %v4072_v36 = vpop.f32.mrf.mxu2 }
 0x577   : > { %v4073_v22 = vadd.f32 %v4072_v36, %v4028_v9 }
 0x57c   : > { %v4101_v23 = vpop.f32.mrf.mxu3 }
 0x57d   : > { %v4102_v7 = vadd.f32 %v4101_v23, %v4073_v22 }
 0x57e   : > { %v4075_v54 = vpop.f32.mrf.mxu2 }
 0x584   : > { %v4104_v49 = vpop.f32.mrf.mxu3 }
 0x589   : > { %v4127_v17 = vpop.f32.mrf.mxu0 }
 0x58a   : > { %v4128_v34 = vadd.f32 %v4127_v17, %v4099_v41  ;;  %v4333_v41 = vld [vmem:[%s8626_s4 + $0x8] sm:$0xff] }
 0x58b   : > { %v4078_v31 = vpop.f32.mrf.mxu2 }
 0x58d   : > { %v4107_v46 = vpop.f32.mrf.mxu3  ;;  %v4033_v47 = vpop.permute.xlu2 %4032 }
 0x58e   : > { %v4076_v16 = vadd.f32 %v4075_v54, %v4033_v47 }
 0x590   : > { %v4105_v20 = vadd.f32 %v4104_v49, %v4076_v16 }
 0x593   : > { %v4185_v42 = vpop.f32.mrf.mxu2  ;;  %v4130_v15 = vpop.f32.mrf.mxu0 }
 0x594   : > { %v4186_v32 = vadd.f32 %v4185_v42, %v4023_v51  ;;  %v4131_v5 = vadd.f32 %v4130_v15, %v4102_v7 }
 0x595   : > { %v4156_v61 = vpop.f32.mrf.mxu1  ;;  %v4214_v38 = vpop.f32.mrf.mxu3 }
 0x596   : > { %v8500_v11 = vadd.f32 %v4156_v61, %v4128_v34  ;;  %v4215_v33 = vadd.f32 %v4214_v38, %v4186_v32  ;;  %v4341_v34 = vld [vmem:[%s8626_s4 + $0x48] sm:$0xff] }
 0x598   : > { %v4292_v63 = vmin.f32 %v8500_v11, 0.0  ;;  %vm4284_vm13 = vcmp.gt.f32.partialorder %v8500_v11, 0.0 }
 0x59a   : > { %v4300_v50 = vmul.f32 1.442695, %v4292_v63 }
 0x59c   : > { %4827 = vpow2.f32 %v4300_v50 }
 0x59d   : > { %v4133_v56 = vpop.f32.mrf.mxu0 }
 0x59e   : > { %v4188_v25 = vpop.f32.mrf.mxu2  ;;  %v4134_v27 = vadd.f32 %v4133_v56, %v4105_v20 }
 0x59f   : > { %v4159_v0 = vpop.f32.mrf.mxu1  ;;  %v4189_v44 = vadd.f32 %v4188_v25, %v4028_v9 }
 0x5a0   : > { %v8503_v2 = vadd.f32 %v4159_v0, %v4131_v5 }
 0x5a1   : > { %v4217_v62 = vpop.f32.mrf.mxu3 }
 0x5a2   : > { %v4038_v45 = vpop.permute.xlu1 %4037  ;;  %v4294_v12 = vmin.f32 %v8503_v2, 0.0  ;;  %v4218_v26 = vadd.f32 %v4217_v62, %v4189_v44  ;;  %v4828_v49 = vpop.eup %4827  ;;  %vm4286_vm15 = vcmp.gt.f32.partialorder %v8503_v2, 0.0 }
 0x5a3   : > { %v4079_v1 = vadd.f32 %v4078_v31, %v4038_v45  ;;  %v4637_v62 = vadd.f32 -1.0, %v4828_v49 }
 0x5a4   : > { %v4304_v54 = vmul.f32 1.442695, %v4294_v12 }
 0x5a5   : > { %v4108_v21 = vadd.f32 %v4107_v46, %v4079_v1  ;;  %v4332_v1 = vld [vmem:[%s8626_s4] sm:$0xff] }
 0x5a7   : > { %v4136_v55 = vpop.f32.mrf.mxu0 }
 0x5a8   : > { %v4191_v30 = vpop.f32.mrf.mxu2  ;;  %v4137_v40 = vadd.f32 %v4136_v55, %v4108_v21 }
 0x5a9   : > { %v4162_v43 = vpop.f32.mrf.mxu1  ;;  %v4192_v53 = vadd.f32 %v4191_v30, %v4033_v47  ;;  %v4340_v47 = vld [vmem:[%s8626_s4 + $0x40] sm:$0xff] }
 0x5aa   : > { %v8512_v31 = vadd.f32 %v4162_v43, %v4134_v27 }
 0x5ab   : > { %v4220_v39 = vpop.f32.mrf.mxu3 }
 0x5ac   : > { %v4221_v35 = vadd.f32 %v4220_v39, %v4192_v53  ;;  %v4296_v0 = vmin.f32 %v8512_v31, 0.0  ;;  %vm4288_vm7 = vcmp.gt.f32.partialorder %v8512_v31, 0.0 }
 0x5ae   : > { %v4308_v55 = vmul.f32 1.442695, %v4296_v0 }
 0x5af   : > { %v4243_v14 = vpop.f32.mrf.mxu0 }
 0x5b0   : > { %v4244_v19 = vadd.f32 %v4243_v14, %v4215_v33 }
 0x5b2   : > { %v4165_v48 = vpop.f32.mrf.mxu1  ;;  %v4194_v10 = vpop.f32.mrf.mxu2 }
 0x5b3   : > { %v8505_v8 = vadd.f32 %v4165_v48, %v4137_v40  ;;  %v4195_v59 = vadd.f32 %v4194_v10, %v4038_v45  ;;  %v4324_v45 = vsel %vm4284_vm13, %v8500_v11, %v4637_v62 }
 0x5b4   : > { %v4223_v52 = vpop.f32.mrf.mxu3  ;;  %v4356_v11 = vmul.f32 %v4340_v47, %v4324_v45  ;;  %v4348_v63 = vmul.f32 %v4332_v1, %v4324_v45  ;;  %v4346_v45 = vld [vmem:[%s8626_s4 + $0x70] sm:$0xff] }
 0x5b5   : > { %v4298_v3 = vmin.f32 %v8505_v8, 0.0  ;;  %v4224_v6 = vadd.f32 %v4223_v52, %v4195_v59  ;;  %vm4290_vm3 = vcmp.gt.f32.partialorder %v8505_v8, 0.0 }
 0x5b7   : > { %v4246_v60 = vpop.f32.mrf.mxu0  ;;  %v4312_v46 = vmul.f32 1.442695, %v4298_v3 }
 0x5b8   : > { %v4247_v17 = vadd.f32 %v4246_v60, %v4218_v26  ;;  %v4338_v60 = vld [vmem:[%s8626_s4 + $0x30] sm:$0xff] }
 0x5ba   : > { %v4249_v57 = vpop.f32.mrf.mxu2  ;;  %v4272_v4 = vpop.f32.mrf.mxu1 }
 0x5bb   : > { %v4250_v18 = vadd.f32 %v4249_v57, %v4221_v35  ;;  %v4273_v24 = vadd.f32 %v4272_v4, %v4244_v19  ;;  %v4335_v57 = vld [vmem:[%s8626_s4 + $0x18] sm:$0xff] }
 0x5bc   : > { %v4278_v37 = vpop.f32.mrf.mxu3  ;;  %v4343_v4 = vld [vmem:[%s8626_s4 + $0x58] sm:$0xff] }
 0x5bd   : > { %v4293_v28 = vmin.f32 %v4273_v24, 0.0  ;;  %v8508_v29 = vadd.f32 %v4278_v37, %v4250_v18  ;;  %vm4285_vm0 = vcmp.gt.f32.partialorder %v4273_v24, 0.0  ;;  %v4334_v18 = vld [vmem:[%s8626_s4 + $0x10] sm:$0xff] }
 0x5bf   : > { %v4302_v36 = vmul.f32 1.442695, %v4293_v28  ;;  %v4297_v23 = vmin.f32 %v8508_v29, 0.0  ;;  %vm4289_vm9 = vcmp.gt.f32.partialorder %v8508_v29, 0.0 }
 0x5c1   : > { %4829 = vpow2.f32 %v4302_v36  ;;  %v4310_v15 = vmul.f32 1.442695, %v4297_v23  ;;  %v4345_v36 = vld [vmem:[%s8626_s4 + $0x68] sm:$0xff] }
 0x5c2   : > { %v4252_v42 = vpop.f32.mrf.mxu2  ;;  %v4275_v61 = vpop.f32.mrf.mxu1  ;;  %4831 = vpow2.f32 %v4304_v54 }
 0x5c3   : > { %v4253_v38 = vadd.f32 %v4252_v42, %v4224_v6  ;;  %v4276_v25 = vadd.f32 %v4275_v61, %v4247_v17  ;;  %4833 = vpow2.f32 %v4312_v46  ;;  %v4337_v6 = vld [vmem:[%s8626_s4 + $0x28] sm:$0xff] }
 0x5c4   : > { %v4281_v56 = vpop.f32.mrf.mxu3  ;;  %4835 = vpow2.f32 %v4310_v15 }
 0x5c5   : > { %v4295_v51 = vmin.f32 %v4276_v25, 0.0  ;;  %v4282_v9 = vadd.f32 %v4281_v56, %v4253_v38  ;;  %vm4287_vm4 = vcmp.gt.f32.partialorder %v4276_v25, 0.0 }
 0x5c7   : > { %v4830_v13 = vpop.eup %4829  ;;  %v4306_v30 = vmul.f32 1.442695, %v4295_v51  ;;  %v4299_v43 = vmin.f32 %v4282_v9, 0.0  ;;  %vm4291_vm11 = vcmp.gt.f32.partialorder %v4282_v9, 0.0  ;;  %v4344_v51 = vld [vmem:[%s8626_s4 + $0x60] sm:$0xff] }
 0x5c8   : > { %v4638_v39 = vadd.f32 -1.0, %v4830_v13  ;;  %v4832_v48 = vpop.eup %4831 }
 0x5c9   : > { %4837 = vpow2.f32 %v4306_v30  ;;  %v4314_v22 = vmul.f32 1.442695, %v4299_v43  ;;  %v4834_v7 = vpop.eup %4833  ;;  %v4639_v52 = vadd.f32 -1.0, %v4832_v48  ;;  %v4347_v43 = vld [vmem:[%s8626_s4 + $0x78] sm:$0xff]  ;;  %v4778_v48 = vld [vmem:[%s8627_s5] ss:$0 sm:$0xff] }
 0x5ca   : > { %v4325_v10 = vsel %vm4285_vm0, %v4273_v24, %v4638_v39  ;;  %v4836_v14 = vpop.eup %4835  ;;  %v4643_v16 = vadd.f32 -1.0, %v4834_v7  ;;  %v4342_v24 = vld [vmem:[%s8626_s4 + $0x50] sm:$0xff] }
 0x5cb   : > { %v4349_v32 = vmul.f32 %v4333_v41, %v4325_v10  ;;  %v4357_v53 = vmul.f32 %v4341_v34, %v4325_v10  ;;  %4839 = vpow2.f32 %v4314_v22  ;;  %v4642_v40 = vadd.f32 -1.0, %v4836_v14 }
 0x5cc   : > { %4841 = vpow2.f32 %v4308_v55  ;;  %v4326_v59 = vsel %vm4286_vm15, %v8503_v2, %v4639_v52  ;;  %v4339_v2 = vld [vmem:[%s8626_s4 + $0x38] sm:$0xff]  ;;  %v4330_v28 = vsel %vm4290_vm3, %v8505_v8, %v4643_v16 }
 0x5cd   : > { %v4381_v5 = vsel %vm4364_vm2, %v4357_v53, 0.0  ;;  %v4365_v21 = vsel %vm4364_vm2, %v4349_v32, 0.0  ;;  %v4329_v26 = vsel %vm4289_vm9, %v8508_v29, %v4642_v40  ;;  %v4350_v54 = vmul.f32 %v4334_v18, %v4326_v59 }
 0x5ce   : > { %v4382_v33 = vadd.f32 %v4381_v5, %v4356_v11  ;;  %v4366_v35 = vadd.f32 %v4365_v21, %v4348_v63  ;;  %v4358_v8 = vmul.f32 %v4342_v24, %v4326_v59  ;;  %v4354_v29 = vmul.f32 %v4338_v60, %v4330_v28 }
 0x5cf   : > { %v4838_v50 = vpop.eup %4837  ;;  %v4353_v38 = vmul.f32 %v4337_v6, %v4329_v26  ;;  %v4362_v47 = vmul.f32 %v4346_v45, %v4330_v28  ;;  %v4406_v11 = vadd.s32 4294967288, %v5943_v58  ;;  %v4410_v63 = vadd.s32 4294967280, %v5943_v58 }
 0x5d0   : > { %v4640_v19 = vadd.f32 -1.0, %v4838_v50  ;;  %4383 = vadd.xlane.f32.xlu1 %v4382_v33  ;;  %4367 = vadd.xlane.f32.xlu2 %v4366_v35  ;;  %v4414_v50 = vadd.s32 4294967272, %v5943_v58 }
 0x5d1   : > { %v4840_v44 = vpop.eup %4839  ;;  %v4373_v30 = vsel %vm4364_vm2, %v4353_v38, 0.0 }
 0x5d2   : > { %v4842_v20 = vpop.eup %4841  ;;  %v4327_v12 = vsel %vm4287_vm4, %v4276_v25, %v4640_v19  ;;  %v4644_v37 = vadd.f32 -1.0, %v4840_v44  ;;  %v4361_v25 = vmul.f32 %v4345_v36, %v4329_v26 }
 0x5d3   : > { %v4351_v27 = vmul.f32 %v4335_v57, %v4327_v12  ;;  %v4359_v3 = vmul.f32 %v4343_v4, %v4327_v12  ;;  %v4641_v17 = vadd.f32 -1.0, %v4842_v20 }
 0x5d4   : > { %v4331_v23 = vsel %vm4291_vm11, %v4282_v9, %v4644_v37  ;;  %v4336_v9 = vld [vmem:[%s8626_s4 + $0x20] sm:$0xff]  ;;  %v4389_v13 = vsel %vm4364_vm2, %v4361_v25, 0.0 }
 0x5d5   : > { %v4355_v49 = vmul.f32 %v4339_v2, %v4331_v23  ;;  %v4369_v46 = vsel %vm4364_vm2, %v4351_v27, 0.0  ;;  %v4385_v42 = vsel %vm4364_vm2, %v4359_v3, 0.0  ;;  %v4328_v62 = vsel %vm4288_vm7, %v8512_v31, %v4641_v17 }
 0x5d6   : > { %v4370_v61 = vadd.f32 %v4369_v46, %v4350_v54  ;;  %v4386_v15 = vadd.f32 %v4385_v42, %v4358_v8  ;;  %v4360_v55 = vmul.f32 %v4344_v51, %v4328_v62  ;;  %v4352_v39 = vmul.f32 %v4336_v9, %v4328_v62 }
 0x5d7   : > { %v4377_v0 = vsel %vm4364_vm2, %v4355_v49, 0.0  ;;  %v4363_v34 = vmul.f32 %v4347_v43, %v4331_v23 }
 0x5d8   : > { %4371 = vadd.xlane.f32.xlu0 %v4370_v61  ;;  %4387 = vadd.xlane.f32.xlu2 %v4386_v15  ;;  %v4378_v56 = vadd.f32 %v4377_v0, %v4354_v29  ;;  %v4390_v31 = vadd.f32 %v4389_v13, %v4360_v55  ;;  %v4374_v41 = vadd.f32 %v4373_v30, %v4352_v39 }
 0x5d9   : > { %v4393_v22 = vsel %vm4364_vm2, %v4363_v34, 0.0 }
 0x5da   : > { %4379 = vadd.xlane.f32.xlu1 %v4378_v56  ;;  %v4394_v1 = vadd.f32 %v4393_v22, %v4362_v47 }
 0x5e0   : > { %4391 = vadd.xlane.f32.xlu0 %v4390_v31  ;;  %4375 = vadd.xlane.f32.xlu2 %v4374_v41 }
 0x5e8   : > { %4395 = vadd.xlane.f32.xlu2 %v4394_v1 }
 0x5f3   : > { %4439 = vperm.xlu1 %4775, %v4778_v48  }
 0x643   : > { %v4368_v10 = vpop.xlane.xlu2 %4367  ;;  %v4384_v7 = vpop.xlane.xlu1 %4383 }
 0x644   : > { %v4405_v33 = vperm.slane %v4368_v10, %v5943_v58  ;;  %v4418_v19 = vperm.slane %v4384_v7, %v5943_v58 }
 0x64b   : > { %v4388_v32 = vpop.xlane.xlu2 %4387  ;;  %v4372_v53 = vpop.xlane.xlu0 %4371 }
 0x64c   : > { %v4407_v52 = vperm.slane %v4372_v53, %v4406_v11  ;;  %v4419_v35 = vperm.slane %v4388_v32, %v4406_v11 }
 0x64d   : > { %v4380_v16 = vpop.xlane.xlu1 %4379 }
 0x64e   : > { %v4409_v57 = vsel %vm4408_vm8, %v4407_v52, %v4405_v33  ;;  %v4420_v59 = vsel %vm4408_vm8, %v4419_v35, %v4418_v19  ;;  %v4415_v18 = vperm.slane %v4380_v16, %v4414_v50 }
 0x653   : > { %v4376_v14 = vpop.xlane.xlu2 %4375  ;;  %v4392_v5 = vpop.xlane.xlu0 %4391 }
 0x654   : > { %v4411_v21 = vperm.slane %v4376_v14, %v4410_v63  ;;  %v4421_v40 = vperm.slane %v4392_v5, %v4410_v63 }
 0x656   : > { %v4413_v4 = vsel %vm4412_vm5, %v4411_v21, %v4409_v57  ;;  %v4422_v20 = vsel %vm4412_vm5, %v4421_v40, %v4420_v59 }
 0x657   : > { %v4417_v12 = vsel %vm4416_vm6, %v4415_v18, %v4413_v4 }
 0x65b   : > { %v4396_v44 = vpop.xlane.xlu2 %4395 }
 0x65c   : > { %v4423_v24 = vperm.slane %v4396_v44, %v4414_v50 }
 0x65e   : > { %v4424_v37 = vsel %vm4416_vm6, %v4423_v24, %v4422_v20 }
 0x65f   : > { %v4426_v2 = vsel %vm4425_vm14, %v4424_v37, %v4417_v12 }
 0x660   : > { %v4429_v28 = vsel %vm4428_vm1, %v4426_v2, 0.0 }
 0x661   : > { %4430 = vadd.xlane.f32.xlu0 %v4429_v28 }
 0x665   : > { %v4440_v27 = vpop.permute.xlu1 %4439 }
 0x6d4   : > { %v4431_v3 = vpop.xlane.xlu0 %4430 }
 0x6d5   : > { %v4442_v60 = vadd.f32 %v4440_v27, %v4431_v3 }
 0x6d7   : > { %4445 = vperm.xlu2 %4776, %v4442_v60  }
 0x731   : > { %v4446_v26 = vpop.permute.xlu2 %4445 }
 0x732   : > { %v4447_v6 = vperm.slane %v4446_v26, %v5943_v58 }
 0x734   : > { %4450 = vst.msk [vmem:[%s243_s16] sm:$0x1] %vm4449_vm10, %v4447_v6 }
 0x735   : > { %4966 = shalt.err (!%p4963_p3)
}
 0x736   : > { %4676 = dma.vmem_to_hbm [thread:$0]  (%p5131_p5), %s4463_s17, 16, %s4465_s19, %s4452_s15  }
 0x737 PF: > { %p4682_p4 = scmp.ge.s32.totalorder %s5001_s24, 2  ;;  %s4476_s26 = sand.u32 1, %s4989_s21  }
 0x738   : > { %s4477_s13 = scalar_lea.sflag [#allocation7], %s4476_s26 }
 0x739   : > { %p4679_p7 = pnand %p4682_p4, %p5135_p6 }
 0x73b   : > { %p4680_p8 = pneg %p4679_p7 }
 0x73d   : > { %4984 = dma.done.wait (%p4680_p8), %s4477_s13, 16  }
 0x73e   : > { %4986 = vsyncadd (%p4680_p8), %s4477_s13, 4294967280  ;;  %p16_p9 = scmp.ge.s32.totalorder %s5118_s27, 4   ;;  %s9286_s21 = smov %s4993_s22 }
 0x73f   : > { %s9287_s22 = smov %s4997_s23  ;;  %s9288_s23 = smov %s5129_s30 }
 0x740   : > { %s9289_s24 = smov %s5118_s27  ;;  %18 = sbr.rel (!%p16_p9) target bundleno = 3 (0x3), region = 182 }
 0x745   :  { %4482 = vsyncpa [#allocation7], 1 }
 0x746   :  { %4484 = vsyncpa [#allocation7 + $0x1], 1 }

</bundles_post_ra>
